<compile_context>
chip_gen: v7x
topology: tpu7x:2x2x1
jax: 0.10.0
libtpu: 0.0.40
codegen_flags: <defaults>
</compile_context>

<pallas_src>
import math

import jax
import jax.numpy as jnp
from jax import lax
from jax.experimental import pallas as pl
from jax.experimental.pallas import tpu as pltpu


def _round_up(n, m):
    return ((n + m - 1) // m) * m


# ---------------------------------------------------------------------------
# Pallas kernels
# ---------------------------------------------------------------------------

def _gemm_bias_prelu_kernel(x_ref, w_ref, b_ref, a_ref, o_ref):
    """One M-tile of o = PReLU(x @ w + b).  x:(TM,K) bf16, w:(K,Cp) bf16,
    b,a:(1,Cp) f32, o:(TM,Cp) bf16.  Single-pass bf16 MXU, f32 accumulate."""
    z = jnp.dot(x_ref[...], w_ref[...], preferred_element_type=jnp.float32)
    z = z + b_ref[...]
    o_ref[...] = jnp.where(z >= 0.0, z, z * a_ref[...]).astype(o_ref.dtype)


def _maxpool_kernel(ee_ref, eo_ref, oe_ref, oo_ref, o_ref):
    """MaxPool2d(kernel=3, stride=2) on one image from its 4 parity planes.
    ee:(1,Ho+1,Wo+1,C) eo:(1,Ho+1,Wo,C) oe:(1,Ho,Wo+1,C) oo:(1,Ho,Wo,C).
    All 9 window taps are unit-stride slices of VMEM-resident values."""
    Ho, Wo = o_ref.shape[1], o_ref.shape[2]
    ee = ee_ref[0]
    eo = eo_ref[0]
    oe = oe_ref[0]
    oo = oo_ref[0]
    m = oo
    m = jnp.maximum(m, ee[:Ho, :Wo])
    m = jnp.maximum(m, ee[:Ho, 1:])
    m = jnp.maximum(m, ee[1:, :Wo])
    m = jnp.maximum(m, ee[1:, 1:])
    m = jnp.maximum(m, eo[:Ho])
    m = jnp.maximum(m, eo[1:])
    m = jnp.maximum(m, oe[:, :Wo])
    m = jnp.maximum(m, oe[:, 1:])
    o_ref[0] = m


def _fc_tail_kernel(x_ref, w1_ref, b1_ref, w2_ref, b2_ref, wh_ref, bh_ref,
                    heads_ref, feat_ref):
    """Fused FC tail on one batch row-tile: y = x@W1+b1; feat = y@W2+b2;
    heads = feat@Wh+bh with sigmoid on column 0 (classification) only."""
    y = jnp.dot(x_ref[...], w1_ref[...],
                preferred_element_type=jnp.float32) + b1_ref[...]
    feat = jnp.dot(y.astype(w2_ref.dtype), w2_ref[...],
                   preferred_element_type=jnp.float32) + b2_ref[...]
    z = jnp.dot(feat.astype(wh_ref.dtype), wh_ref[...],
                preferred_element_type=jnp.float32) + bh_ref[...]
    col = jax.lax.broadcasted_iota(jnp.int32, z.shape, 1)
    heads_ref[...] = jnp.where(col == 0, jax.nn.sigmoid(z), z)
    feat_ref[...] = feat


# ---------------------------------------------------------------------------
# Pallas wrappers
# ---------------------------------------------------------------------------

def conv_as_gemm_prelu(patches, w2d, bias, alpha, *, tm=1024):
    """patches:(M,K) bf16, w2d:(K,Co), bias:(Co,), alpha scalar -> (M,Cp) bf16
    with Cp = Co padded to 128 lanes (pad channels are exact zeros)."""
    M, K = patches.shape
    Co = w2d.shape[1]
    Cp = _round_up(Co, 128)                       # lane-dense output store
    tm = min(tm, M)                               # tm==M (full) or 1024 (%8==0)

    w_p = jnp.pad(w2d, ((0, 0), (0, Cp - Co))).astype(jnp.bfloat16)
    b_row = jnp.pad(bias, (0, Cp - Co)).reshape(1, Cp).astype(jnp.float32)
    a_row = jnp.full((1, Cp), alpha, dtype=jnp.float32)

    grid = (pl.cdiv(M, tm),)
    out = pl.pallas_call(
        _gemm_bias_prelu_kernel,
        out_shape=jax.ShapeDtypeStruct((M, Cp), jnp.bfloat16),
        grid=grid,
        in_specs=[
            pl.BlockSpec((tm, K), lambda i: (i, 0)),    # streamed over M
            pl.BlockSpec((K, Cp), lambda i: (0, 0)),    # resident weight
            pl.BlockSpec((1, Cp), lambda i: (0, 0)),    # resident bias
            pl.BlockSpec((1, Cp), lambda i: (0, 0)),    # resident PReLU alpha
        ],
        out_specs=pl.BlockSpec((tm, Cp), lambda i: (i, 0)),
        compiler_params=pltpu.CompilerParams(
            dimension_semantics=("parallel",)),
        cost_estimate=pl.CostEstimate(
            flops=2 * M * K * Cp,
            transcendentals=0,
            bytes_accessed=2 * (M * K + K * Cp + M * Cp)),
    )(patches.astype(jnp.bfloat16), w_p, b_row, a_row)
    return out


def maxpool_3x3_s2(x_nhwc):
    """x:(B,H,W,C) -> (B,Ho,Wo,C), MaxPool2d(kernel=3, stride=2), floor mode."""
    B, H, W, C = x_nhwc.shape
    Ho = (H - 3) // 2 + 1
    Wo = (W - 3) // 2 + 1
    # Parity split (layout plumbing, ~1x the activation bytes instead of 9x).
    xe = x_nhwc[:, 0:2 * Ho + 1:2]                # even rows   (B,Ho+1,W,C)
    xo = x_nhwc[:, 1:2 * Ho:2]                    # odd rows    (B,Ho,  W,C)
    ee = xe[:, :, 0:2 * Wo + 1:2]                 # (B,Ho+1,Wo+1,C)
    eo = xe[:, :, 1:2 * Wo:2]                     # (B,Ho+1,Wo,  C)
    oe = xo[:, :, 0:2 * Wo + 1:2]                 # (B,Ho,  Wo+1,C)
    oo = xo[:, :, 1:2 * Wo:2]                     # (B,Ho,  Wo,  C)

    return pl.pallas_call(
        _maxpool_kernel,
        out_shape=jax.ShapeDtypeStruct((B, Ho, Wo, C), x_nhwc.dtype),
        grid=(B,),
        in_specs=[
            pl.BlockSpec((1, Ho + 1, Wo + 1, C), lambda b: (b, 0, 0, 0)),
            pl.BlockSpec((1, Ho + 1, Wo, C), lambda b: (b, 0, 0, 0)),
            pl.BlockSpec((1, Ho, Wo + 1, C), lambda b: (b, 0, 0, 0)),
            pl.BlockSpec((1, Ho, Wo, C), lambda b: (b, 0, 0, 0)),
        ],
        out_specs=pl.BlockSpec((1, Ho, Wo, C), lambda b: (b, 0, 0, 0)),
        compiler_params=pltpu.CompilerParams(
            dimension_semantics=("parallel",)),
    )(ee, eo, oe, oo)


_HEADS_PAD = 128  # 1 + 4 + 10 + 1 = 16 head columns, padded to a lane width


def fc_tail(x512, params):
    """x512:(B,512) NHWC-flattened conv4 output ->
    (classification, bbox, landmark, iou, feature)."""
    B = x512.shape[0]
    w1, b1 = params["line"]
    w2, b2 = params["center"]
    wc, bc = params["cls"]
    wb, bb = params["bbox"]
    wl, bl = params["landmark"]
    wi, bi = params["iou"]

    # PyTorch flattens conv4 output NCHW (index c*4 + p); our x512 is the NHWC
    # flatten (index p*128 + c).  Permute W1's input rows once instead of
    # transposing the activation at runtime.
    ridx = jnp.arange(512)
    w1p = w1[(ridx % 128) * 4 + (ridx // 128), :]

    wh = jnp.concatenate([wc, wb, wl, wi], axis=1)            # (256, 16)
    bh = jnp.concatenate([bc, bb, bl, bi], axis=0)            # (16,)
    nh = wh.shape[1]
    wh = jnp.pad(wh, ((0, 0), (0, _HEADS_PAD - nh)))
    bh = jnp.pad(bh, (0, _HEADS_PAD - nh)).reshape(1, _HEADS_PAD)

    tb = min(512, B)                                          # tb==B or %8==0
    grid = (pl.cdiv(B, tb),)
    heads, feat = pl.pallas_call(
        _fc_tail_kernel,
        out_shape=(jax.ShapeDtypeStruct((B, _HEADS_PAD), jnp.float32),
                   jax.ShapeDtypeStruct((B, 256), jnp.float32)),
        grid=grid,
        in_specs=[
            pl.BlockSpec((tb, 512), lambda i: (i, 0)),        # streamed rows
            pl.BlockSpec((512, 256), lambda i: (0, 0)),       # resident weights
            pl.BlockSpec((1, 256), lambda i: (0, 0)),
            pl.BlockSpec((256, 256), lambda i: (0, 0)),
            pl.BlockSpec((1, 256), lambda i: (0, 0)),
            pl.BlockSpec((256, _HEADS_PAD), lambda i: (0, 0)),
            pl.BlockSpec((1, _HEADS_PAD), lambda i: (0, 0)),
        ],
        out_specs=(pl.BlockSpec((tb, _HEADS_PAD), lambda i: (i, 0)),
                   pl.BlockSpec((tb, 256), lambda i: (i, 0))),
        compiler_params=pltpu.CompilerParams(
            dimension_semantics=("parallel",)),
    )(x512.astype(jnp.bfloat16), w1p.astype(jnp.bfloat16),
      b1.reshape(1, 256).astype(jnp.float32),
      w2.astype(jnp.bfloat16), b2.reshape(1, 256).astype(jnp.float32),
      wh.astype(jnp.bfloat16), bh.astype(jnp.float32))

    cls = heads[:, 0:1]
    bbox = heads[:, 1:5]
    landmark = heads[:, 5:15]
    iou = heads[:, 15:16]
    return cls, bbox, landmark, iou, feat


def _im2col(x_nhwc, kh, kw, ci):
    """Valid, stride-1 patch extraction from the first `ci` channels
    (drops any lane-padding channels).  Returns ((B*Ho*Wo, kh*kw*ci), dims)."""
    B, H, W, _ = x_nhwc.shape
    Ho, Wo = H - kh + 1, W - kw + 1
    cols = [x_nhwc[:, i:i + Ho, j:j + Wo, :ci]
            for i in range(kh) for j in range(kw)]
    patches = jnp.concatenate(cols, axis=-1)       # (B, Ho, Wo, kh*kw*ci)
    return patches.reshape(B * Ho * Wo, kh * kw * ci), (B, Ho, Wo)


def onet_forward(x_nchw, params):
    """Pallas implementation of ONet.forward (48x48x3 inputs)."""
    x = jnp.transpose(x_nchw, (0, 2, 3, 1)).astype(jnp.bfloat16)  # NHWC
    for name, do_pool in (("conv1", True), ("conv2", True),
                          ("conv3", True), ("conv4", False)):
        w, b, a = params[name]                    # w: (KH, KW, Ci, Co)
        KH, KW, Ci, Co = w.shape
        patches, (B, Ho, Wo) = _im2col(x, KH, KW, Ci)
        y = conv_as_gemm_prelu(patches, w.reshape(KH * KW * Ci, Co), b, a)
        x = y.reshape(B, Ho, Wo, y.shape[-1])     # channels padded to 128
        if do_pool:
            x = maxpool_3x3_s2(x)
    # x: (B, 2, 2, 128); flatten in NHWC order — fc_tail's W1 rows are
    # pre-permuted so this matches PyTorch's NCHW .view(-1, 512).
    flat = x.reshape(x.shape[0], 512)
    return fc_tail(flat, params)


# ---------------------------------------------------------------------------
# Pure-JAX reference mirroring the PyTorch forward (f32, HIGHEST precision)
# ---------------------------------------------------------------------------

def onet_ref(x_nchw, params):
    prec = jax.lax.Precision.HIGHEST
    x = x_nchw.astype(jnp.float32)
    for name, do_pool in (("conv1", True), ("conv2", True),
                          ("conv3", True), ("conv4", False)):
        w, b, a = params[name]
        w_oihw = jnp.transpose(w, (3, 2, 0, 1))
        x = lax.conv_general_dilated(
            x, w_oihw, window_strides=(1, 1), padding="VALID",
            dimension_numbers=("NCHW", "OIHW", "NCHW"), precision=prec)
        x = x + b[None, :, None, None]
        x = jnp.where(x >= 0, x, a * x)           # PReLU (single shared alpha)
        if do_pool:
            x = lax.reduce_window(x, -jnp.inf, lax.max,
                                  (1, 1, 3, 3), (1, 1, 2, 2), "VALID")
    B = x.shape[0]
    flat = x.reshape(B, 512)
    w1, b1 = params["line"]
    w2, b2 = params["center"]
    y = jnp.dot(flat, w1, precision=prec) + b1
    feat = jnp.dot(y, w2, precision=prec) + b2
    wc, bc = params["cls"]
    wb, bb = params["bbox"]
    wl, bl = params["landmark"]
    wi, bi = params["iou"]
    cls = jax.nn.sigmoid(jnp.dot(feat, wc, precision=prec) + bc)
    bbox = jnp.dot(feat, wb, precision=prec) + bb
    landmark = jnp.dot(feat, wl, precision=prec) + bl
    iou = jnp.dot(feat, wi, precision=prec) + bi   # sigmod2 is unused in forward
    return cls, bbox, landmark, iou, feat


# ---------------------------------------------------------------------------
# Deterministic parameters & self-test
# ---------------------------------------------------------------------------

def init_params(key):
    keys = iter(jax.random.split(key, 20))
    p = {}

    def conv(ci, co, k):
        w = jax.random.normal(next(keys), (k, k, ci, co), jnp.float32)
        w = w / math.sqrt(k * k * ci)
        b = 0.1 * jax.random.normal(next(keys), (co,), jnp.float32)
        a = jnp.float32(0.25)                      # nn.PReLU() default
        return (w, b, a)

    def lin(ci, co):
        w = jax.random.normal(next(keys), (ci, co), jnp.float32) / math.sqrt(ci)
        b = 0.1 * jax.random.normal(next(keys), (co,), jnp.float32)
        return (w, b)

    p["conv1"] = conv(3, 32, 3)
    p["conv2"] = conv(32, 64, 3)
    p["conv3"] = conv(64, 64, 3)
    p["conv4"] = conv(64, 128, 2)
    p["line"] = lin(512, 256)
    p["center"] = lin(256, 256)
    p["cls"] = lin(256, 1)
    p["bbox"] = lin(256, 4)
    p["landmark"] = lin(256, 10)
    p["iou"] = lin(256, 1)
    return p


if __name__ == "__main__":
    key = jax.random.PRNGKey(0)
    k_params, k_x = jax.random.split(key)
    params = init_params(k_params)

    # ONet consumes 48x48 RGB crops: the conv/pool stack maps 48x48x3 ->
    # 2x2x128 = 512 features, matching the .view(-1, 512).
    x = jax.random.normal(k_x, (2, 3, 48, 48), dtype=jnp.float32)

    fwd = jax.jit(onet_forward)
    outs = jax.block_until_ready(fwd(x, params))
    refs = jax.block_until_ready(onet_ref(x, params))

    # Tolerance reflects single-pass bf16 MXU + bf16 activations vs. the f32
    # Precision.HIGHEST reference (per the performance review).
    names = ("classification", "boundingbox", "landmark", "iou", "feature")
    for name, o, r in zip(names, outs, refs):
        assert o.shape == r.shape, (name, o.shape, r.shape)
        err = float(jnp.max(jnp.abs(o - r)))
        assert jnp.allclose(o, r, rtol=1e-1, atol=1e-1), (name, err)
    print("KERNEL_OK")
</pallas_src>

<mosaic_0001>
module attributes {stable_mosaic.version = 11 : i64} {
  func.func @_gemm_bias_prelu_kernel(%arg0: i32, %arg1: memref<1024x27xbf16, #tpu.memory_space<vmem>>, %arg2: memref<27x128xbf16, #tpu.memory_space<vmem>>, %arg3: memref<1x128xf32, #tpu.memory_space<vmem>>, %arg4: memref<1x128xf32, #tpu.memory_space<vmem>>, %arg5: memref<1024x128xbf16, #tpu.memory_space<vmem>>) attributes {dimension_semantics = [#tpu.dimension_semantics<parallel>], iteration_bounds = array<i64: 5>, scalar_prefetch = 0 : i64, scratch_operands = 0 : i64, tpu.core_type = #tpu.core_type<tc>, window_params = [{transform_indices = @transform_0, window_bounds = array<i64: 1024, 27>}, {pipeline_mode = #tpu.pipeline_mode<synchronous>, transform_indices = @transform_1, window_bounds = array<i64: 27, 128>}, {pipeline_mode = #tpu.pipeline_mode<synchronous>, transform_indices = @transform_2, window_bounds = array<i64: 1, 128>}, {pipeline_mode = #tpu.pipeline_mode<synchronous>, transform_indices = @transform_3, window_bounds = array<i64: 1, 128>}, {transform_indices = @transform_4, window_bounds = array<i64: 1024, 128>}]} {
    %c0 = arith.constant 0 : index
    %c0_0 = arith.constant 0 : index
    %0 = vector.load %arg1[%c0, %c0_0] : memref<1024x27xbf16, #tpu.memory_space<vmem>>, vector<1024x27xbf16>
    %c0_1 = arith.constant 0 : index
    %c0_2 = arith.constant 0 : index
    %1 = vector.load %arg2[%c0_1, %c0_2] : memref<27x128xbf16, #tpu.memory_space<vmem>>, vector<27x128xbf16>
    %cst = arith.constant dense<0.000000e+00> : vector<1024x128xf32>
    %2 = tpu.matmul %0, %1, %cst {dimension_numbers = #tpu.dot_dimension_numbers<[1], [0], [0], [1], [0, 0, 1, 1], [], []>} : vector<1024x27xbf16>, vector<27x128xbf16>, vector<1024x128xf32> -> vector<1024x128xf32>
    %c0_3 = arith.constant 0 : index
    %c0_4 = arith.constant 0 : index
    %3 = vector.load %arg3[%c0_3, %c0_4] : memref<1x128xf32, #tpu.memory_space<vmem>>, vector<1x128xf32>
    %4 = vector.broadcast %3 : vector<1x128xf32> to vector<1024x128xf32>
    %5 = arith.addf %2, %4 : vector<1024x128xf32>
    %cst_5 = arith.constant 0.000000e+00 : f32
    %6 = vector.broadcast %cst_5 : f32 to vector<1024x128xf32>
    %7 = arith.cmpf oge, %5, %6 : vector<1024x128xf32>
    %c0_6 = arith.constant 0 : index
    %c0_7 = arith.constant 0 : index
    %8 = vector.load %arg4[%c0_6, %c0_7] : memref<1x128xf32, #tpu.memory_space<vmem>>, vector<1x128xf32>
    %9 = vector.broadcast %8 : vector<1x128xf32> to vector<1024x128xf32>
    %10 = arith.mulf %5, %9 : vector<1024x128xf32>
    %11 = arith.select %7, %5, %10 : vector<1024x128xi1>, vector<1024x128xf32>
    %12 = arith.truncf %11 : vector<1024x128xf32> to vector<1024x128xbf16>
    %c0_8 = arith.constant 0 : index
    %c0_9 = arith.constant 0 : index
    %13 = vector.load %arg5[%c0_8, %c0_9] : memref<1024x128xbf16, #tpu.memory_space<vmem>>, vector<1024x128xbf16>
    tpu.vector_store %arg5[%c0_8, %c0_9], %12 {strides = array<i32>} : memref<1024x128xbf16, #tpu.memory_space<vmem>>, vector<1024x128xbf16>,
    return
  }
  func.func @transform_0(%arg0: i32) -> (i32, i32) {
    %c0_i32 = arith.constant 0 : i32
    %c0_i32_0 = arith.constant 0 : i32
    return %arg0, %c0_i32 : i32, i32
  }
  func.func @transform_1(%arg0: i32) -> (i32, i32) {
    %c0_i32 = arith.constant 0 : i32
    %c0_i32_0 = arith.constant 0 : i32
    %c0_i32_1 = arith.constant 0 : i32
    return %c0_i32, %c0_i32_0 : i32, i32
  }
  func.func @transform_2(%arg0: i32) -> (i32, i32) {
    %c0_i32 = arith.constant 0 : i32
    %c0_i32_0 = arith.constant 0 : i32
    %c0_i32_1 = arith.constant 0 : i32
    return %c0_i32, %c0_i32_0 : i32, i32
  }
  func.func @transform_3(%arg0: i32) -> (i32, i32) {
    %c0_i32 = arith.constant 0 : i32
    %c0_i32_0 = arith.constant 0 : i32
    %c0_i32_1 = arith.constant 0 : i32
    return %c0_i32, %c0_i32_0 : i32, i32
  }
  func.func @transform_4(%arg0: i32) -> (i32, i32) {
    %c0_i32 = arith.constant 0 : i32
    %c0_i32_0 = arith.constant 0 : i32
    return %arg0, %c0_i32 : i32, i32
  }
}

module attributes {stable_mosaic.version = 11 : i64} {
  func.func @_maxpool_kernel(%arg0: i32, %arg1: memref<1x23x23x128xbf16, #tpu.memory_space<vmem>>, %arg2: memref<1x23x22x128xbf16, #tpu.memory_space<vmem>>, %arg3: memref<1x22x23x128xbf16, #tpu.memory_space<vmem>>, %arg4: memref<1x22x22x128xbf16, #tpu.memory_space<vmem>>, %arg5: memref<1x22x22x128xbf16, #tpu.memory_space<vmem>>) attributes {dimension_semantics = [#tpu.dimension_semantics<parallel>], iteration_bounds = array<i64: 2>, scalar_prefetch = 0 : i64, scratch_operands = 0 : i64, tpu.core_type = #tpu.core_type<tc>, window_params = [{transform_indices = @transform_0, window_bounds = array<i64: 1, 23, 23, 128>}, {transform_indices = @transform_1, window_bounds = array<i64: 1, 23, 22, 128>}, {transform_indices = @transform_2, window_bounds = array<i64: 1, 22, 23, 128>}, {transform_indices = @transform_3, window_bounds = array<i64: 1, 22, 22, 128>}, {transform_indices = @transform_4, window_bounds = array<i64: 1, 22, 22, 128>}]} {
    %c0 = arith.constant 0 : index
    %c0_0 = arith.constant 0 : index
    %c0_1 = arith.constant 0 : index
    %c0_2 = arith.constant 0 : index
    %0 = vector.load %arg1[%c0, %c0_0, %c0_1, %c0_2] : memref<1x23x23x128xbf16, #tpu.memory_space<vmem>>, vector<1x23x23x128xbf16>
    %1 = vector.shape_cast %0 : vector<1x23x23x128xbf16> to vector<23x23x128xbf16>
    %c0_3 = arith.constant 0 : index
    %c0_4 = arith.constant 0 : index
    %c0_5 = arith.constant 0 : index
    %c0_6 = arith.constant 0 : index
    %2 = vector.load %arg2[%c0_3, %c0_4, %c0_5, %c0_6] : memref<1x23x22x128xbf16, #tpu.memory_space<vmem>>, vector<1x23x22x128xbf16>
    %3 = vector.shape_cast %2 : vector<1x23x22x128xbf16> to vector<23x22x128xbf16>
    %c0_7 = arith.constant 0 : index
    %c0_8 = arith.constant 0 : index
    %c0_9 = arith.constant 0 : index
    %c0_10 = arith.constant 0 : index
    %4 = vector.load %arg3[%c0_7, %c0_8, %c0_9, %c0_10] : memref<1x22x23x128xbf16, #tpu.memory_space<vmem>>, vector<1x22x23x128xbf16>
    %5 = vector.shape_cast %4 : vector<1x22x23x128xbf16> to vector<22x23x128xbf16>
    %c0_11 = arith.constant 0 : index
    %c0_12 = arith.constant 0 : index
    %c0_13 = arith.constant 0 : index
    %c0_14 = arith.constant 0 : index
    %6 = vector.load %arg4[%c0_11, %c0_12, %c0_13, %c0_14] : memref<1x22x22x128xbf16, #tpu.memory_space<vmem>>, vector<1x22x22x128xbf16>
    %7 = vector.shape_cast %6 : vector<1x22x22x128xbf16> to vector<22x22x128xbf16>
    %8 = vector.extract_strided_slice %1 {offsets = [0, 0, 0], sizes = [22, 22, 128], strides = [1, 1, 1]} : vector<23x23x128xbf16> to vector<22x22x128xbf16>
    %9 = arith.maximumf %7, %8 : vector<22x22x128xbf16>
    %10 = vector.extract_strided_slice %1 {offsets = [0, 1, 0], sizes = [22, 22, 128], strides = [1, 1, 1]} : vector<23x23x128xbf16> to vector<22x22x128xbf16>
    %11 = arith.maximumf %9, %10 : vector<22x22x128xbf16>
    %12 = vector.extract_strided_slice %1 {offsets = [1, 0, 0], sizes = [22, 22, 128], strides = [1, 1, 1]} : vector<23x23x128xbf16> to vector<22x22x128xbf16>
    %13 = arith.maximumf %11, %12 : vector<22x22x128xbf16>
    %14 = vector.extract_strided_slice %1 {offsets = [1, 1, 0], sizes = [22, 22, 128], strides = [1, 1, 1]} : vector<23x23x128xbf16> to vector<22x22x128xbf16>
    %15 = arith.maximumf %13, %14 : vector<22x22x128xbf16>
    %16 = vector.extract_strided_slice %3 {offsets = [0, 0, 0], sizes = [22, 22, 128], strides = [1, 1, 1]} : vector<23x22x128xbf16> to vector<22x22x128xbf16>
    %17 = arith.maximumf %15, %16 : vector<22x22x128xbf16>
    %18 = vector.extract_strided_slice %3 {offsets = [1, 0, 0], sizes = [22, 22, 128], strides = [1, 1, 1]} : vector<23x22x128xbf16> to vector<22x22x128xbf16>
    %19 = arith.maximumf %17, %18 : vector<22x22x128xbf16>
    %20 = vector.extract_strided_slice %5 {offsets = [0, 0, 0], sizes = [22, 22, 128], strides = [1, 1, 1]} : vector<22x23x128xbf16> to vector<22x22x128xbf16>
    %21 = arith.maximumf %19, %20 : vector<22x22x128xbf16>
    %22 = vector.extract_strided_slice %5 {offsets = [0, 1, 0], sizes = [22, 22, 128], strides = [1, 1, 1]} : vector<22x23x128xbf16> to vector<22x22x128xbf16>
    %23 = arith.maximumf %21, %22 : vector<22x22x128xbf16>
    %c0_15 = arith.constant 0 : index
    %c0_16 = arith.constant 0 : index
    %c0_17 = arith.constant 0 : index
    %c0_18 = arith.constant 0 : index
    %24 = vector.load %arg5[%c0_15, %c0_16, %c0_17, %c0_18] : memref<1x22x22x128xbf16, #tpu.memory_space<vmem>>, vector<1x22x22x128xbf16>
    %25 = vector.shape_cast %24 : vector<1x22x22x128xbf16> to vector<22x22x128xbf16>
    %26 = vector.shape_cast %23 : vector<22x22x128xbf16> to vector<1x22x22x128xbf16>
    tpu.vector_store %arg5[%c0_15, %c0_16, %c0_17, %c0_18], %26 {strides = array<i32>} : memref<1x22x22x128xbf16, #tpu.memory_space<vmem>>, vector<1x22x22x128xbf16>,
    return
  }
  func.func @transform_0(%arg0: i32) -> (i32, i32, i32, i32) {
    %c0_i32 = arith.constant 0 : i32
    %c0_i32_0 = arith.constant 0 : i32
    %c0_i32_1 = arith.constant 0 : i32
    %c0_i32_2 = arith.constant 0 : i32
    return %arg0, %c0_i32, %c0_i32_0, %c0_i32_1 : i32, i32, i32, i32
  }
  func.func @transform_1(%arg0: i32) -> (i32, i32, i32, i32) {
    %c0_i32 = arith.constant 0 : i32
    %c0_i32_0 = arith.constant 0 : i32
    %c0_i32_1 = arith.constant 0 : i32
    %c0_i32_2 = arith.constant 0 : i32
    return %arg0, %c0_i32, %c0_i32_0, %c0_i32_1 : i32, i32, i32, i32
  }
  func.func @transform_2(%arg0: i32) -> (i32, i32, i32, i32) {
    %c0_i32 = arith.constant 0 : i32
    %c0_i32_0 = arith.constant 0 : i32
    %c0_i32_1 = arith.constant 0 : i32
    %c0_i32_2 = arith.constant 0 : i32
    return %arg0, %c0_i32, %c0_i32_0, %c0_i32_1 : i32, i32, i32, i32
  }
  func.func @transform_3(%arg0: i32) -> (i32, i32, i32, i32) {
    %c0_i32 = arith.constant 0 : i32
    %c0_i32_0 = arith.constant 0 : i32
    %c0_i32_1 = arith.constant 0 : i32
    %c0_i32_2 = arith.constant 0 : i32
    return %arg0, %c0_i32, %c0_i32_0, %c0_i32_1 : i32, i32, i32, i32
  }
  func.func @transform_4(%arg0: i32) -> (i32, i32, i32, i32) {
    %c0_i32 = arith.constant 0 : i32
    %c0_i32_0 = arith.constant 0 : i32
    %c0_i32_1 = arith.constant 0 : i32
    %c0_i32_2 = arith.constant 0 : i32
    return %arg0, %c0_i32, %c0_i32_0, %c0_i32_1 : i32, i32, i32, i32
  }
}

module attributes {stable_mosaic.version = 11 : i64} {
  func.func @_gemm_bias_prelu_kernel(%arg0: i32, %arg1: memref<800x288xbf16, #tpu.memory_space<vmem>>, %arg2: memref<288x128xbf16, #tpu.memory_space<vmem>>, %arg3: memref<1x128xf32, #tpu.memory_space<vmem>>, %arg4: memref<1x128xf32, #tpu.memory_space<vmem>>, %arg5: memref<800x128xbf16, #tpu.memory_space<vmem>>) attributes {dimension_semantics = [#tpu.dimension_semantics<parallel>], iteration_bounds = array<i64: 1>, scalar_prefetch = 0 : i64, scratch_operands = 0 : i64, tpu.core_type = #tpu.core_type<tc>, window_params = [{transform_indices = @transform_0, window_bounds = array<i64: 800, 288>}, {pipeline_mode = #tpu.pipeline_mode<synchronous>, transform_indices = @transform_1, window_bounds = array<i64: 288, 128>}, {pipeline_mode = #tpu.pipeline_mode<synchronous>, transform_indices = @transform_2, window_bounds = array<i64: 1, 128>}, {pipeline_mode = #tpu.pipeline_mode<synchronous>, transform_indices = @transform_3, window_bounds = array<i64: 1, 128>}, {transform_indices = @transform_4, window_bounds = array<i64: 800, 128>}]} {
    %c0 = arith.constant 0 : index
    %c0_0 = arith.constant 0 : index
    %0 = vector.load %arg1[%c0, %c0_0] : memref<800x288xbf16, #tpu.memory_space<vmem>>, vector<800x288xbf16>
    %c0_1 = arith.constant 0 : index
    %c0_2 = arith.constant 0 : index
    %1 = vector.load %arg2[%c0_1, %c0_2] : memref<288x128xbf16, #tpu.memory_space<vmem>>, vector<288x128xbf16>
    %cst = arith.constant dense<0.000000e+00> : vector<800x128xf32>
    %2 = tpu.matmul %0, %1, %cst {dimension_numbers = #tpu.dot_dimension_numbers<[1], [0], [0], [1], [0, 0, 1, 1], [], []>} : vector<800x288xbf16>, vector<288x128xbf16>, vector<800x128xf32> -> vector<800x128xf32>
    %c0_3 = arith.constant 0 : index
    %c0_4 = arith.constant 0 : index
    %3 = vector.load %arg3[%c0_3, %c0_4] : memref<1x128xf32, #tpu.memory_space<vmem>>, vector<1x128xf32>
    %4 = vector.broadcast %3 : vector<1x128xf32> to vector<800x128xf32>
    %5 = arith.addf %2, %4 : vector<800x128xf32>
    %cst_5 = arith.constant 0.000000e+00 : f32
    %6 = vector.broadcast %cst_5 : f32 to vector<800x128xf32>
    %7 = arith.cmpf oge, %5, %6 : vector<800x128xf32>
    %c0_6 = arith.constant 0 : index
    %c0_7 = arith.constant 0 : index
    %8 = vector.load %arg4[%c0_6, %c0_7] : memref<1x128xf32, #tpu.memory_space<vmem>>, vector<1x128xf32>
    %9 = vector.broadcast %8 : vector<1x128xf32> to vector<800x128xf32>
    %10 = arith.mulf %5, %9 : vector<800x128xf32>
    %11 = arith.select %7, %5, %10 : vector<800x128xi1>, vector<800x128xf32>
    %12 = arith.truncf %11 : vector<800x128xf32> to vector<800x128xbf16>
    %c0_8 = arith.constant 0 : index
    %c0_9 = arith.constant 0 : index
    %13 = vector.load %arg5[%c0_8, %c0_9] : memref<800x128xbf16, #tpu.memory_space<vmem>>, vector<800x128xbf16>
    tpu.vector_store %arg5[%c0_8, %c0_9], %12 {strides = array<i32>} : memref<800x128xbf16, #tpu.memory_space<vmem>>, vector<800x128xbf16>,
    return
  }
  func.func @transform_0(%arg0: i32) -> (i32, i32) {
    %c0_i32 = arith.constant 0 : i32
    %c0_i32_0 = arith.constant 0 : i32
    return %arg0, %c0_i32 : i32, i32
  }
  func.func @transform_1(%arg0: i32) -> (i32, i32) {
    %c0_i32 = arith.constant 0 : i32
    %c0_i32_0 = arith.constant 0 : i32
    %c0_i32_1 = arith.constant 0 : i32
    return %c0_i32, %c0_i32_0 : i32, i32
  }
  func.func @transform_2(%arg0: i32) -> (i32, i32) {
    %c0_i32 = arith.constant 0 : i32
    %c0_i32_0 = arith.constant 0 : i32
    %c0_i32_1 = arith.constant 0 : i32
    return %c0_i32, %c0_i32_0 : i32, i32
  }
  func.func @transform_3(%arg0: i32) -> (i32, i32) {
    %c0_i32 = arith.constant 0 : i32
    %c0_i32_0 = arith.constant 0 : i32
    %c0_i32_1 = arith.constant 0 : i32
    return %c0_i32, %c0_i32_0 : i32, i32
  }
  func.func @transform_4(%arg0: i32) -> (i32, i32) {
    %c0_i32 = arith.constant 0 : i32
    %c0_i32_0 = arith.constant 0 : i32
    return %arg0, %c0_i32 : i32, i32
  }
}

module attributes {stable_mosaic.version = 11 : i64} {
  func.func @_maxpool_kernel(%arg0: i32, %arg1: memref<1x10x10x128xbf16, #tpu.memory_space<vmem>>, %arg2: memref<1x10x9x128xbf16, #tpu.memory_space<vmem>>, %arg3: memref<1x9x10x128xbf16, #tpu.memory_space<vmem>>, %arg4: memref<1x9x9x128xbf16, #tpu.memory_space<vmem>>, %arg5: memref<1x9x9x128xbf16, #tpu.memory_space<vmem>>) attributes {dimension_semantics = [#tpu.dimension_semantics<parallel>], iteration_bounds = array<i64: 2>, scalar_prefetch = 0 : i64, scratch_operands = 0 : i64, tpu.core_type = #tpu.core_type<tc>, window_params = [{transform_indices = @transform_0, window_bounds = array<i64: 1, 10, 10, 128>}, {transform_indices = @transform_1, window_bounds = array<i64: 1, 10, 9, 128>}, {transform_indices = @transform_2, window_bounds = array<i64: 1, 9, 10, 128>}, {transform_indices = @transform_3, window_bounds = array<i64: 1, 9, 9, 128>}, {transform_indices = @transform_4, window_bounds = array<i64: 1, 9, 9, 128>}]} {
    %c0 = arith.constant 0 : index
    %c0_0 = arith.constant 0 : index
    %c0_1 = arith.constant 0 : index
    %c0_2 = arith.constant 0 : index
    %0 = vector.load %arg1[%c0, %c0_0, %c0_1, %c0_2] : memref<1x10x10x128xbf16, #tpu.memory_space<vmem>>, vector<1x10x10x128xbf16>
    %1 = vector.shape_cast %0 : vector<1x10x10x128xbf16> to vector<10x10x128xbf16>
    %c0_3 = arith.constant 0 : index
    %c0_4 = arith.constant 0 : index
    %c0_5 = arith.constant 0 : index
    %c0_6 = arith.constant 0 : index
    %2 = vector.load %arg2[%c0_3, %c0_4, %c0_5, %c0_6] : memref<1x10x9x128xbf16, #tpu.memory_space<vmem>>, vector<1x10x9x128xbf16>
    %3 = vector.shape_cast %2 : vector<1x10x9x128xbf16> to vector<10x9x128xbf16>
    %c0_7 = arith.constant 0 : index
    %c0_8 = arith.constant 0 : index
    %c0_9 = arith.constant 0 : index
    %c0_10 = arith.constant 0 : index
    %4 = vector.load %arg3[%c0_7, %c0_8, %c0_9, %c0_10] : memref<1x9x10x128xbf16, #tpu.memory_space<vmem>>, vector<1x9x10x128xbf16>
    %5 = vector.shape_cast %4 : vector<1x9x10x128xbf16> to vector<9x10x128xbf16>
    %c0_11 = arith.constant 0 : index
    %c0_12 = arith.constant 0 : index
    %c0_13 = arith.constant 0 : index
    %c0_14 = arith.constant 0 : index
    %6 = vector.load %arg4[%c0_11, %c0_12, %c0_13, %c0_14] : memref<1x9x9x128xbf16, #tpu.memory_space<vmem>>, vector<1x9x9x128xbf16>
    %7 = vector.shape_cast %6 : vector<1x9x9x128xbf16> to vector<9x9x128xbf16>
    %8 = vector.extract_strided_slice %1 {offsets = [0, 0, 0], sizes = [9, 9, 128], strides = [1, 1, 1]} : vector<10x10x128xbf16> to vector<9x9x128xbf16>
    %9 = arith.maximumf %7, %8 : vector<9x9x128xbf16>
    %10 = vector.extract_strided_slice %1 {offsets = [0, 1, 0], sizes = [9, 9, 128], strides = [1, 1, 1]} : vector<10x10x128xbf16> to vector<9x9x128xbf16>
    %11 = arith.maximumf %9, %10 : vector<9x9x128xbf16>
    %12 = vector.extract_strided_slice %1 {offsets = [1, 0, 0], sizes = [9, 9, 128], strides = [1, 1, 1]} : vector<10x10x128xbf16> to vector<9x9x128xbf16>
    %13 = arith.maximumf %11, %12 : vector<9x9x128xbf16>
    %14 = vector.extract_strided_slice %1 {offsets = [1, 1, 0], sizes = [9, 9, 128], strides = [1, 1, 1]} : vector<10x10x128xbf16> to vector<9x9x128xbf16>
    %15 = arith.maximumf %13, %14 : vector<9x9x128xbf16>
    %16 = vector.extract_strided_slice %3 {offsets = [0, 0, 0], sizes = [9, 9, 128], strides = [1, 1, 1]} : vector<10x9x128xbf16> to vector<9x9x128xbf16>
    %17 = arith.maximumf %15, %16 : vector<9x9x128xbf16>
    %18 = vector.extract_strided_slice %3 {offsets = [1, 0, 0], sizes = [9, 9, 128], strides = [1, 1, 1]} : vector<10x9x128xbf16> to vector<9x9x128xbf16>
    %19 = arith.maximumf %17, %18 : vector<9x9x128xbf16>
    %20 = vector.extract_strided_slice %5 {offsets = [0, 0, 0], sizes = [9, 9, 128], strides = [1, 1, 1]} : vector<9x10x128xbf16> to vector<9x9x128xbf16>
    %21 = arith.maximumf %19, %20 : vector<9x9x128xbf16>
    %22 = vector.extract_strided_slice %5 {offsets = [0, 1, 0], sizes = [9, 9, 128], strides = [1, 1, 1]} : vector<9x10x128xbf16> to vector<9x9x128xbf16>
    %23 = arith.maximumf %21, %22 : vector<9x9x128xbf16>
    %c0_15 = arith.constant 0 : index
    %c0_16 = arith.constant 0 : index
    %c0_17 = arith.constant 0 : index
    %c0_18 = arith.constant 0 : index
    %24 = vector.load %arg5[%c0_15, %c0_16, %c0_17, %c0_18] : memref<1x9x9x128xbf16, #tpu.memory_space<vmem>>, vector<1x9x9x128xbf16>
    %25 = vector.shape_cast %24 : vector<1x9x9x128xbf16> to vector<9x9x128xbf16>
    %26 = vector.shape_cast %23 : vector<9x9x128xbf16> to vector<1x9x9x128xbf16>
    tpu.vector_store %arg5[%c0_15, %c0_16, %c0_17, %c0_18], %26 {strides = array<i32>} : memref<1x9x9x128xbf16, #tpu.memory_space<vmem>>, vector<1x9x9x128xbf16>,
    return
  }
  func.func @transform_0(%arg0: i32) -> (i32, i32, i32, i32) {
    %c0_i32 = arith.constant 0 : i32
    %c0_i32_0 = arith.constant 0 : i32
    %c0_i32_1 = arith.constant 0 : i32
    %c0_i32_2 = arith.constant 0 : i32
    return %arg0, %c0_i32, %c0_i32_0, %c0_i32_1 : i32, i32, i32, i32
  }
  func.func @transform_1(%arg0: i32) -> (i32, i32, i32, i32) {
    %c0_i32 = arith.constant 0 : i32
    %c0_i32_0 = arith.constant 0 : i32
    %c0_i32_1 = arith.constant 0 : i32
    %c0_i32_2 = arith.constant 0 : i32
    return %arg0, %c0_i32, %c0_i32_0, %c0_i32_1 : i32, i32, i32, i32
  }
  func.func @transform_2(%arg0: i32) -> (i32, i32, i32, i32) {
    %c0_i32 = arith.constant 0 : i32
    %c0_i32_0 = arith.constant 0 : i32
    %c0_i32_1 = arith.constant 0 : i32
    %c0_i32_2 = arith.constant 0 : i32
    return %arg0, %c0_i32, %c0_i32_0, %c0_i32_1 : i32, i32, i32, i32
  }
  func.func @transform_3(%arg0: i32) -> (i32, i32, i32, i32) {
    %c0_i32 = arith.constant 0 : i32
    %c0_i32_0 = arith.constant 0 : i32
    %c0_i32_1 = arith.constant 0 : i32
    %c0_i32_2 = arith.constant 0 : i32
    return %arg0, %c0_i32, %c0_i32_0, %c0_i32_1 : i32, i32, i32, i32
  }
  func.func @transform_4(%arg0: i32) -> (i32, i32, i32, i32) {
    %c0_i32 = arith.constant 0 : i32
    %c0_i32_0 = arith.constant 0 : i32
    %c0_i32_1 = arith.constant 0 : i32
    %c0_i32_2 = arith.constant 0 : i32
    return %arg0, %c0_i32, %c0_i32_0, %c0_i32_1 : i32, i32, i32, i32
  }
}

module attributes {stable_mosaic.version = 11 : i64} {
  func.func @_maxpool_kernel(%arg0: i32, %arg1: memref<1x4x4x128xbf16, #tpu.memory_space<vmem>>, %arg2: memref<1x4x3x128xbf16, #tpu.memory_space<vmem>>, %arg3: memref<1x3x4x128xbf16, #tpu.memory_space<vmem>>, %arg4: memref<1x3x3x128xbf16, #tpu.memory_space<vmem>>, %arg5: memref<1x3x3x128xbf16, #tpu.memory_space<vmem>>) attributes {dimension_semantics = [#tpu.dimension_semantics<parallel>], iteration_bounds = array<i64: 2>, scalar_prefetch = 0 : i64, scratch_operands = 0 : i64, tpu.core_type = #tpu.core_type<tc>, window_params = [{transform_indices = @transform_0, window_bounds = array<i64: 1, 4, 4, 128>}, {transform_indices = @transform_1, window_bounds = array<i64: 1, 4, 3, 128>}, {transform_indices = @transform_2, window_bounds = array<i64: 1, 3, 4, 128>}, {transform_indices = @transform_3, window_bounds = array<i64: 1, 3, 3, 128>}, {transform_indices = @transform_4, window_bounds = array<i64: 1, 3, 3, 128>}]} {
    %c0 = arith.constant 0 : index
    %c0_0 = arith.constant 0 : index
    %c0_1 = arith.constant 0 : index
    %c0_2 = arith.constant 0 : index
    %0 = vector.load %arg1[%c0, %c0_0, %c0_1, %c0_2] : memref<1x4x4x128xbf16, #tpu.memory_space<vmem>>, vector<1x4x4x128xbf16>
    %1 = vector.shape_cast %0 : vector<1x4x4x128xbf16> to vector<4x4x128xbf16>
    %c0_3 = arith.constant 0 : index
    %c0_4 = arith.constant 0 : index
    %c0_5 = arith.constant 0 : index
    %c0_6 = arith.constant 0 : index
    %2 = vector.load %arg2[%c0_3, %c0_4, %c0_5, %c0_6] : memref<1x4x3x128xbf16, #tpu.memory_space<vmem>>, vector<1x4x3x128xbf16>
    %3 = vector.shape_cast %2 : vector<1x4x3x128xbf16> to vector<4x3x128xbf16>
    %c0_7 = arith.constant 0 : index
    %c0_8 = arith.constant 0 : index
    %c0_9 = arith.constant 0 : index
    %c0_10 = arith.constant 0 : index
    %4 = vector.load %arg3[%c0_7, %c0_8, %c0_9, %c0_10] : memref<1x3x4x128xbf16, #tpu.memory_space<vmem>>, vector<1x3x4x128xbf16>
    %5 = vector.shape_cast %4 : vector<1x3x4x128xbf16> to vector<3x4x128xbf16>
    %c0_11 = arith.constant 0 : index
    %c0_12 = arith.constant 0 : index
    %c0_13 = arith.constant 0 : index
    %c0_14 = arith.constant 0 : index
    %6 = vector.load %arg4[%c0_11, %c0_12, %c0_13, %c0_14] : memref<1x3x3x128xbf16, #tpu.memory_space<vmem>>, vector<1x3x3x128xbf16>
    %7 = vector.shape_cast %6 : vector<1x3x3x128xbf16> to vector<3x3x128xbf16>
    %8 = vector.extract_strided_slice %1 {offsets = [0, 0, 0], sizes = [3, 3, 128], strides = [1, 1, 1]} : vector<4x4x128xbf16> to vector<3x3x128xbf16>
    %9 = arith.maximumf %7, %8 : vector<3x3x128xbf16>
    %10 = vector.extract_strided_slice %1 {offsets = [0, 1, 0], sizes = [3, 3, 128], strides = [1, 1, 1]} : vector<4x4x128xbf16> to vector<3x3x128xbf16>
    %11 = arith.maximumf %9, %10 : vector<3x3x128xbf16>
    %12 = vector.extract_strided_slice %1 {offsets = [1, 0, 0], sizes = [3, 3, 128], strides = [1, 1, 1]} : vector<4x4x128xbf16> to vector<3x3x128xbf16>
    %13 = arith.maximumf %11, %12 : vector<3x3x128xbf16>
    %14 = vector.extract_strided_slice %1 {offsets = [1, 1, 0], sizes = [3, 3, 128], strides = [1, 1, 1]} : vector<4x4x128xbf16> to vector<3x3x128xbf16>
    %15 = arith.maximumf %13, %14 : vector<3x3x128xbf16>
    %16 = vector.extract_strided_slice %3 {offsets = [0, 0, 0], sizes = [3, 3, 128], strides = [1, 1, 1]} : vector<4x3x128xbf16> to vector<3x3x128xbf16>
    %17 = arith.maximumf %15, %16 : vector<3x3x128xbf16>
    %18 = vector.extract_strided_slice %3 {offsets = [1, 0, 0], sizes = [3, 3, 128], strides = [1, 1, 1]} : vector<4x3x128xbf16> to vector<3x3x128xbf16>
    %19 = arith.maximumf %17, %18 : vector<3x3x128xbf16>
    %20 = vector.extract_strided_slice %5 {offsets = [0, 0, 0], sizes = [3, 3, 128], strides = [1, 1, 1]} : vector<3x4x128xbf16> to vector<3x3x128xbf16>
    %21 = arith.maximumf %19, %20 : vector<3x3x128xbf16>
    %22 = vector.extract_strided_slice %5 {offsets = [0, 1, 0], sizes = [3, 3, 128], strides = [1, 1, 1]} : vector<3x4x128xbf16> to vector<3x3x128xbf16>
    %23 = arith.maximumf %21, %22 : vector<3x3x128xbf16>
    %c0_15 = arith.constant 0 : index
    %c0_16 = arith.constant 0 : index
    %c0_17 = arith.constant 0 : index
    %c0_18 = arith.constant 0 : index
    %24 = vector.load %arg5[%c0_15, %c0_16, %c0_17, %c0_18] : memref<1x3x3x128xbf16, #tpu.memory_space<vmem>>, vector<1x3x3x128xbf16>
    %25 = vector.shape_cast %24 : vector<1x3x3x128xbf16> to vector<3x3x128xbf16>
    %26 = vector.shape_cast %23 : vector<3x3x128xbf16> to vector<1x3x3x128xbf16>
    tpu.vector_store %arg5[%c0_15, %c0_16, %c0_17, %c0_18], %26 {strides = array<i32>} : memref<1x3x3x128xbf16, #tpu.memory_space<vmem>>, vector<1x3x3x128xbf16>,
    return
  }
  func.func @transform_0(%arg0: i32) -> (i32, i32, i32, i32) {
    %c0_i32 = arith.constant 0 : i32
    %c0_i32_0 = arith.constant 0 : i32
    %c0_i32_1 = arith.constant 0 : i32
    %c0_i32_2 = arith.constant 0 : i32
    return %arg0, %c0_i32, %c0_i32_0, %c0_i32_1 : i32, i32, i32, i32
  }
  func.func @transform_1(%arg0: i32) -> (i32, i32, i32, i32) {
    %c0_i32 = arith.constant 0 : i32
    %c0_i32_0 = arith.constant 0 : i32
    %c0_i32_1 = arith.constant 0 : i32
    %c0_i32_2 = arith.constant 0 : i32
    return %arg0, %c0_i32, %c0_i32_0, %c0_i32_1 : i32, i32, i32, i32
  }
  func.func @transform_2(%arg0: i32) -> (i32, i32, i32, i32) {
    %c0_i32 = arith.constant 0 : i32
    %c0_i32_0 = arith.constant 0 : i32
    %c0_i32_1 = arith.constant 0 : i32
    %c0_i32_2 = arith.constant 0 : i32
    return %arg0, %c0_i32, %c0_i32_0, %c0_i32_1 : i32, i32, i32, i32
  }
  func.func @transform_3(%arg0: i32) -> (i32, i32, i32, i32) {
    %c0_i32 = arith.constant 0 : i32
    %c0_i32_0 = arith.constant 0 : i32
    %c0_i32_1 = arith.constant 0 : i32
    %c0_i32_2 = arith.constant 0 : i32
    return %arg0, %c0_i32, %c0_i32_0, %c0_i32_1 : i32, i32, i32, i32
  }
  func.func @transform_4(%arg0: i32) -> (i32, i32, i32, i32) {
    %c0_i32 = arith.constant 0 : i32
    %c0_i32_0 = arith.constant 0 : i32
    %c0_i32_1 = arith.constant 0 : i32
    %c0_i32_2 = arith.constant 0 : i32
    return %arg0, %c0_i32, %c0_i32_0, %c0_i32_1 : i32, i32, i32, i32
  }
}

module attributes {stable_mosaic.version = 11 : i64} {
  func.func @_gemm_bias_prelu_kernel(%arg0: i32, %arg1: memref<8x256xbf16, #tpu.memory_space<vmem>>, %arg2: memref<256x128xbf16, #tpu.memory_space<vmem>>, %arg3: memref<1x128xf32, #tpu.memory_space<vmem>>, %arg4: memref<1x128xf32, #tpu.memory_space<vmem>>, %arg5: memref<8x128xbf16, #tpu.memory_space<vmem>>) attributes {dimension_semantics = [#tpu.dimension_semantics<parallel>], iteration_bounds = array<i64: 1>, scalar_prefetch = 0 : i64, scratch_operands = 0 : i64, tpu.core_type = #tpu.core_type<tc>, window_params = [{transform_indices = @transform_0, window_bounds = array<i64: 8, 256>}, {pipeline_mode = #tpu.pipeline_mode<synchronous>, transform_indices = @transform_1, window_bounds = array<i64: 256, 128>}, {pipeline_mode = #tpu.pipeline_mode<synchronous>, transform_indices = @transform_2, window_bounds = array<i64: 1, 128>}, {pipeline_mode = #tpu.pipeline_mode<synchronous>, transform_indices = @transform_3, window_bounds = array<i64: 1, 128>}, {transform_indices = @transform_4, window_bounds = array<i64: 8, 128>}]} {
    %c0 = arith.constant 0 : index
    %c0_0 = arith.constant 0 : index
    %0 = vector.load %arg1[%c0, %c0_0] : memref<8x256xbf16, #tpu.memory_space<vmem>>, vector<8x256xbf16>
    %c0_1 = arith.constant 0 : index
    %c0_2 = arith.constant 0 : index
    %1 = vector.load %arg2[%c0_1, %c0_2] : memref<256x128xbf16, #tpu.memory_space<vmem>>, vector<256x128xbf16>
    %cst = arith.constant dense<0.000000e+00> : vector<8x128xf32>
    %2 = tpu.matmul %0, %1, %cst {dimension_numbers = #tpu.dot_dimension_numbers<[1], [0], [0], [1], [0, 0, 1, 1], [], []>} : vector<8x256xbf16>, vector<256x128xbf16>, vector<8x128xf32> -> vector<8x128xf32>
    %c0_3 = arith.constant 0 : index
    %c0_4 = arith.constant 0 : index
    %3 = vector.load %arg3[%c0_3, %c0_4] : memref<1x128xf32, #tpu.memory_space<vmem>>, vector<1x128xf32>
    %4 = vector.broadcast %3 : vector<1x128xf32> to vector<8x128xf32>
    %5 = arith.addf %2, %4 : vector<8x128xf32>
    %cst_5 = arith.constant 0.000000e+00 : f32
    %6 = vector.broadcast %cst_5 : f32 to vector<8x128xf32>
    %7 = arith.cmpf oge, %5, %6 : vector<8x128xf32>
    %c0_6 = arith.constant 0 : index
    %c0_7 = arith.constant 0 : index
    %8 = vector.load %arg4[%c0_6, %c0_7] : memref<1x128xf32, #tpu.memory_space<vmem>>, vector<1x128xf32>
    %9 = vector.broadcast %8 : vector<1x128xf32> to vector<8x128xf32>
    %10 = arith.mulf %5, %9 : vector<8x128xf32>
    %11 = arith.select %7, %5, %10 : vector<8x128xi1>, vector<8x128xf32>
    %12 = arith.truncf %11 : vector<8x128xf32> to vector<8x128xbf16>
    %c0_8 = arith.constant 0 : index
    %c0_9 = arith.constant 0 : index
    %13 = vector.load %arg5[%c0_8, %c0_9] : memref<8x128xbf16, #tpu.memory_space<vmem>>, vector<8x128xbf16>
    tpu.vector_store %arg5[%c0_8, %c0_9], %12 {strides = array<i32>} : memref<8x128xbf16, #tpu.memory_space<vmem>>, vector<8x128xbf16>,
    return
  }
  func.func @transform_0(%arg0: i32) -> (i32, i32) {
    %c0_i32 = arith.constant 0 : i32
    %c0_i32_0 = arith.constant 0 : i32
    return %arg0, %c0_i32 : i32, i32
  }
  func.func @transform_1(%arg0: i32) -> (i32, i32) {
    %c0_i32 = arith.constant 0 : i32
    %c0_i32_0 = arith.constant 0 : i32
    %c0_i32_1 = arith.constant 0 : i32
    return %c0_i32, %c0_i32_0 : i32, i32
  }
  func.func @transform_2(%arg0: i32) -> (i32, i32) {
    %c0_i32 = arith.constant 0 : i32
    %c0_i32_0 = arith.constant 0 : i32
    %c0_i32_1 = arith.constant 0 : i32
    return %c0_i32, %c0_i32_0 : i32, i32
  }
  func.func @transform_3(%arg0: i32) -> (i32, i32) {
    %c0_i32 = arith.constant 0 : i32
    %c0_i32_0 = arith.constant 0 : i32
    %c0_i32_1 = arith.constant 0 : i32
    return %c0_i32, %c0_i32_0 : i32, i32
  }
  func.func @transform_4(%arg0: i32) -> (i32, i32) {
    %c0_i32 = arith.constant 0 : i32
    %c0_i32_0 = arith.constant 0 : i32
    return %arg0, %c0_i32 : i32, i32
  }
}

module attributes {stable_mosaic.version = 11 : i64} {
  func.func @_gemm_bias_prelu_kernel(%arg0: i32, %arg1: memref<98x576xbf16, #tpu.memory_space<vmem>>, %arg2: memref<576x128xbf16, #tpu.memory_space<vmem>>, %arg3: memref<1x128xf32, #tpu.memory_space<vmem>>, %arg4: memref<1x128xf32, #tpu.memory_space<vmem>>, %arg5: memref<98x128xbf16, #tpu.memory_space<vmem>>) attributes {dimension_semantics = [#tpu.dimension_semantics<parallel>], iteration_bounds = array<i64: 1>, scalar_prefetch = 0 : i64, scratch_operands = 0 : i64, tpu.core_type = #tpu.core_type<tc>, window_params = [{transform_indices = @transform_0, window_bounds = array<i64: 98, 576>}, {pipeline_mode = #tpu.pipeline_mode<synchronous>, transform_indices = @transform_1, window_bounds = array<i64: 576, 128>}, {pipeline_mode = #tpu.pipeline_mode<synchronous>, transform_indices = @transform_2, window_bounds = array<i64: 1, 128>}, {pipeline_mode = #tpu.pipeline_mode<synchronous>, transform_indices = @transform_3, window_bounds = array<i64: 1, 128>}, {transform_indices = @transform_4, window_bounds = array<i64: 98, 128>}]} {
    %c0 = arith.constant 0 : index
    %c0_0 = arith.constant 0 : index
    %0 = vector.load %arg1[%c0, %c0_0] : memref<98x576xbf16, #tpu.memory_space<vmem>>, vector<98x576xbf16>
    %c0_1 = arith.constant 0 : index
    %c0_2 = arith.constant 0 : index
    %1 = vector.load %arg2[%c0_1, %c0_2] : memref<576x128xbf16, #tpu.memory_space<vmem>>, vector<576x128xbf16>
    %cst = arith.constant dense<0.000000e+00> : vector<98x128xf32>
    %2 = tpu.matmul %0, %1, %cst {dimension_numbers = #tpu.dot_dimension_numbers<[1], [0], [0], [1], [0, 0, 1, 1], [], []>} : vector<98x576xbf16>, vector<576x128xbf16>, vector<98x128xf32> -> vector<98x128xf32>
    %c0_3 = arith.constant 0 : index
    %c0_4 = arith.constant 0 : index
    %3 = vector.load %arg3[%c0_3, %c0_4] : memref<1x128xf32, #tpu.memory_space<vmem>>, vector<1x128xf32>
    %4 = vector.broadcast %3 : vector<1x128xf32> to vector<98x128xf32>
    %5 = arith.addf %2, %4 : vector<98x128xf32>
    %cst_5 = arith.constant 0.000000e+00 : f32
    %6 = vector.broadcast %cst_5 : f32 to vector<98x128xf32>
    %7 = arith.cmpf oge, %5, %6 : vector<98x128xf32>
    %c0_6 = arith.constant 0 : index
    %c0_7 = arith.constant 0 : index
    %8 = vector.load %arg4[%c0_6, %c0_7] : memref<1x128xf32, #tpu.memory_space<vmem>>, vector<1x128xf32>
    %9 = vector.broadcast %8 : vector<1x128xf32> to vector<98x128xf32>
    %10 = arith.mulf %5, %9 : vector<98x128xf32>
    %11 = arith.select %7, %5, %10 : vector<98x128xi1>, vector<98x128xf32>
    %12 = arith.truncf %11 : vector<98x128xf32> to vector<98x128xbf16>
    %c0_8 = arith.constant 0 : index
    %c0_9 = arith.constant 0 : index
    %13 = vector.load %arg5[%c0_8, %c0_9] : memref<98x128xbf16, #tpu.memory_space<vmem>>, vector<98x128xbf16>
    tpu.vector_store %arg5[%c0_8, %c0_9], %12 {strides = array<i32>} : memref<98x128xbf16, #tpu.memory_space<vmem>>, vector<98x128xbf16>,
    return
  }
  func.func @transform_0(%arg0: i32) -> (i32, i32) {
    %c0_i32 = arith.constant 0 : i32
    %c0_i32_0 = arith.constant 0 : i32
    return %arg0, %c0_i32 : i32, i32
  }
  func.func @transform_1(%arg0: i32) -> (i32, i32) {
    %c0_i32 = arith.constant 0 : i32
    %c0_i32_0 = arith.constant 0 : i32
    %c0_i32_1 = arith.constant 0 : i32
    return %c0_i32, %c0_i32_0 : i32, i32
  }
  func.func @transform_2(%arg0: i32) -> (i32, i32) {
    %c0_i32 = arith.constant 0 : i32
    %c0_i32_0 = arith.constant 0 : i32
    %c0_i32_1 = arith.constant 0 : i32
    return %c0_i32, %c0_i32_0 : i32, i32
  }
  func.func @transform_3(%arg0: i32) -> (i32, i32) {
    %c0_i32 = arith.constant 0 : i32
    %c0_i32_0 = arith.constant 0 : i32
    %c0_i32_1 = arith.constant 0 : i32
    return %c0_i32, %c0_i32_0 : i32, i32
  }
  func.func @transform_4(%arg0: i32) -> (i32, i32) {
    %c0_i32 = arith.constant 0 : i32
    %c0_i32_0 = arith.constant 0 : i32
    return %arg0, %c0_i32 : i32, i32
  }
}

module attributes {stable_mosaic.version = 11 : i64} {
  func.func @_fc_tail_kernel(%arg0: i32, %arg1: memref<2x512xbf16, #tpu.memory_space<vmem>>, %arg2: memref<512x256xbf16, #tpu.memory_space<vmem>>, %arg3: memref<1x256xf32, #tpu.memory_space<vmem>>, %arg4: memref<256x256xbf16, #tpu.memory_space<vmem>>, %arg5: memref<1x256xf32, #tpu.memory_space<vmem>>, %arg6: memref<256x128xbf16, #tpu.memory_space<vmem>>, %arg7: memref<1x128xf32, #tpu.memory_space<vmem>>, %arg8: memref<2x128xf32, #tpu.memory_space<vmem>>, %arg9: memref<2x256xf32, #tpu.memory_space<vmem>>) attributes {dimension_semantics = [#tpu.dimension_semantics<parallel>], iteration_bounds = array<i64: 1>, scalar_prefetch = 0 : i64, scratch_operands = 0 : i64, tpu.core_type = #tpu.core_type<tc>, window_params = [{transform_indices = @transform_0, window_bounds = array<i64: 2, 512>}, {pipeline_mode = #tpu.pipeline_mode<synchronous>, transform_indices = @transform_1, window_bounds = array<i64: 512, 256>}, {pipeline_mode = #tpu.pipeline_mode<synchronous>, transform_indices = @transform_2, window_bounds = array<i64: 1, 256>}, {pipeline_mode = #tpu.pipeline_mode<synchronous>, transform_indices = @transform_3, window_bounds = array<i64: 256, 256>}, {pipeline_mode = #tpu.pipeline_mode<synchronous>, transform_indices = @transform_4, window_bounds = array<i64: 1, 256>}, {pipeline_mode = #tpu.pipeline_mode<synchronous>, transform_indices = @transform_5, window_bounds = array<i64: 256, 128>}, {pipeline_mode = #tpu.pipeline_mode<synchronous>, transform_indices = @transform_6, window_bounds = array<i64: 1, 128>}, {transform_indices = @transform_7, window_bounds = array<i64: 2, 128>}, {transform_indices = @transform_8, window_bounds = array<i64: 2, 256>}]} {
    %c0 = arith.constant 0 : index
    %c0_0 = arith.constant 0 : index
    %0 = vector.load %arg1[%c0, %c0_0] : memref<2x512xbf16, #tpu.memory_space<vmem>>, vector<2x512xbf16>
    %c0_1 = arith.constant 0 : index
    %c0_2 = arith.constant 0 : index
    %1 = vector.load %arg2[%c0_1, %c0_2] : memref<512x256xbf16, #tpu.memory_space<vmem>>, vector<512x256xbf16>
    %cst = arith.constant dense<0.000000e+00> : vector<2x256xf32>
    %2 = tpu.matmul %0, %1, %cst {dimension_numbers = #tpu.dot_dimension_numbers<[1], [0], [0], [1], [0, 0, 1, 1], [], []>} : vector<2x512xbf16>, vector<512x256xbf16>, vector<2x256xf32> -> vector<2x256xf32>
    %c0_3 = arith.constant 0 : index
    %c0_4 = arith.constant 0 : index
    %3 = vector.load %arg3[%c0_3, %c0_4] : memref<1x256xf32, #tpu.memory_space<vmem>>, vector<1x256xf32>
    %4 = vector.broadcast %3 : vector<1x256xf32> to vector<2x256xf32>
    %5 = arith.addf %2, %4 : vector<2x256xf32>
    %6 = arith.truncf %5 : vector<2x256xf32> to vector<2x256xbf16>
    %c0_5 = arith.constant 0 : index
    %c0_6 = arith.constant 0 : index
    %7 = vector.load %arg4[%c0_5, %c0_6] : memref<256x256xbf16, #tpu.memory_space<vmem>>, vector<256x256xbf16>
    %cst_7 = arith.constant dense<0.000000e+00> : vector<2x256xf32>
    %8 = tpu.matmul %6, %7, %cst_7 {dimension_numbers = #tpu.dot_dimension_numbers<[1], [0], [0], [1], [0, 0, 1, 1], [], []>} : vector<2x256xbf16>, vector<256x256xbf16>, vector<2x256xf32> -> vector<2x256xf32>
    %c0_8 = arith.constant 0 : index
    %c0_9 = arith.constant 0 : index
    %9 = vector.load %arg5[%c0_8, %c0_9] : memref<1x256xf32, #tpu.memory_space<vmem>>, vector<1x256xf32>
    %10 = vector.broadcast %9 : vector<1x256xf32> to vector<2x256xf32>
    %11 = arith.addf %8, %10 : vector<2x256xf32>
    %12 = arith.truncf %11 : vector<2x256xf32> to vector<2x256xbf16>
    %c0_10 = arith.constant 0 : index
    %c0_11 = arith.constant 0 : index
    %13 = vector.load %arg6[%c0_10, %c0_11] : memref<256x128xbf16, #tpu.memory_space<vmem>>, vector<256x128xbf16>
    %cst_12 = arith.constant dense<0.000000e+00> : vector<2x128xf32>
    %14 = tpu.matmul %12, %13, %cst_12 {dimension_numbers = #tpu.dot_dimension_numbers<[1], [0], [0], [1], [0, 0, 1, 1], [], []>} : vector<2x256xbf16>, vector<256x128xbf16>, vector<2x128xf32> -> vector<2x128xf32>
    %c0_13 = arith.constant 0 : index
    %c0_14 = arith.constant 0 : index
    %15 = vector.load %arg7[%c0_13, %c0_14] : memref<1x128xf32, #tpu.memory_space<vmem>>, vector<1x128xf32>
    %16 = vector.broadcast %15 : vector<1x128xf32> to vector<2x128xf32>
    %17 = arith.addf %14, %16 : vector<2x128xf32>
    %18 = tpu.iota {dimensions = array<i32: 1>} : vector<2x128xi32>
    %c0_i32 = arith.constant 0 : i32
    %19 = vector.broadcast %c0_i32 : i32 to vector<2x128xi32>
    %20 = arith.cmpi eq, %18, %19 : vector<2x128xi32>
    %21 = arith.negf %17 : vector<2x128xf32>
    %22 = math.exp %21 : vector<2x128xf32>
    %cst_15 = arith.constant 1.000000e+00 : f32
    %23 = vector.broadcast %cst_15 : f32 to vector<2x128xf32>
    %24 = arith.addf %23, %22 : vector<2x128xf32>
    %25 = arith.divf %23, %24 : vector<2x128xf32>
    %26 = arith.select %20, %25, %17 : vector<2x128xi1>, vector<2x128xf32>
    %c0_16 = arith.constant 0 : index
    %c0_17 = arith.constant 0 : index
    %27 = vector.load %arg8[%c0_16, %c0_17] : memref<2x128xf32, #tpu.memory_space<vmem>>, vector<2x128xf32>
    tpu.vector_store %arg8[%c0_16, %c0_17], %26 {strides = array<i32>} : memref<2x128xf32, #tpu.memory_space<vmem>>, vector<2x128xf32>,
    %c0_18 = arith.constant 0 : index
    %c0_19 = arith.constant 0 : index
    %28 = vector.load %arg9[%c0_18, %c0_19] : memref<2x256xf32, #tpu.memory_space<vmem>>, vector<2x256xf32>
    tpu.vector_store %arg9[%c0_18, %c0_19], %11 {strides = array<i32>} : memref<2x256xf32, #tpu.memory_space<vmem>>, vector<2x256xf32>,
    return
  }
  func.func @transform_0(%arg0: i32) -> (i32, i32) {
    %c0_i32 = arith.constant 0 : i32
    %c0_i32_0 = arith.constant 0 : i32
    return %arg0, %c0_i32 : i32, i32
  }
  func.func @transform_1(%arg0: i32) -> (i32, i32) {
    %c0_i32 = arith.constant 0 : i32
    %c0_i32_0 = arith.constant 0 : i32
    %c0_i32_1 = arith.constant 0 : i32
    return %c0_i32, %c0_i32_0 : i32, i32
  }
  func.func @transform_2(%arg0: i32) -> (i32, i32) {
    %c0_i32 = arith.constant 0 : i32
    %c0_i32_0 = arith.constant 0 : i32
    %c0_i32_1 = arith.constant 0 : i32
    return %c0_i32, %c0_i32_0 : i32, i32
  }
  func.func @transform_3(%arg0: i32) -> (i32, i32) {
    %c0_i32 = arith.constant 0 : i32
    %c0_i32_0 = arith.constant 0 : i32
    %c0_i32_1 = arith.constant 0 : i32
    return %c0_i32, %c0_i32_0 : i32, i32
  }
  func.func @transform_4(%arg0: i32) -> (i32, i32) {
    %c0_i32 = arith.constant 0 : i32
    %c0_i32_0 = arith.constant 0 : i32
    %c0_i32_1 = arith.constant 0 : i32
    return %c0_i32, %c0_i32_0 : i32, i32
  }
  func.func @transform_5(%arg0: i32) -> (i32, i32) {
    %c0_i32 = arith.constant 0 : i32
    %c0_i32_0 = arith.constant 0 : i32
    %c0_i32_1 = arith.constant 0 : i32
    return %c0_i32, %c0_i32_0 : i32, i32
  }
  func.func @transform_6(%arg0: i32) -> (i32, i32) {
    %c0_i32 = arith.constant 0 : i32
    %c0_i32_0 = arith.constant 0 : i32
    %c0_i32_1 = arith.constant 0 : i32
    return %c0_i32, %c0_i32_0 : i32, i32
  }
  func.func @transform_7(%arg0: i32) -> (i32, i32) {
    %c0_i32 = arith.constant 0 : i32
    %c0_i32_0 = arith.constant 0 : i32
    return %arg0, %c0_i32 : i32, i32
  }
  func.func @transform_8(%arg0: i32) -> (i32, i32) {
    %c0_i32 = arith.constant 0 : i32
    %c0_i32_0 = arith.constant 0 : i32
    return %arg0, %c0_i32 : i32, i32
  }
}

</mosaic_0001>

<bundles_post_ra>
// kernel: onet_forward.8
= control target key start
LH: loop header
LB: loop body
LE: loop exit
PB: predicated region body
PF: predicated region fallthrough
CT: control target
= control target key end

     0   :  { %s4203_s15 = smov 0   ;;  %s4205_s16 = smov 0   ;;  %s5079_s0 = inlined_call_operand.vmem [shape: bf16[4232,27], index: 0, kind: input, shape index: {}]   ;;  %s5080_s1 = inlined_call_operand.vmem [shape: bf16[27,128], index: 1, kind: input, shape index: {}]   ;;  %s5081_s2 = inlined_call_operand.vmem [shape: f32[1,128], index: 2, kind: input, shape index: {}]   ;;  %s5082_s3 = inlined_call_operand.vmem [shape: f32[1,128], index: 3, kind: input, shape index: {}]   ;;  %s5083_s4 = inlined_call_operand.vmem [shape: bf16[4232,128], index: 4, kind: output, shape index: {}]  }
   0x1   :  { %s4207_s17 = smov 0  }
   0x2 LB: > { %s4216_s18 = sadd.s32 4294967295, %s4143_s17   ;;  %s4218_s19 = sadd.s32 1, %s4143_s17   ;;  %s4143_s17 = sphi %s4207_s17, %s5090_s17   ;;  %s4139_s16 = sphi %s4205_s16, %s5089_s16   ;;  %s4135_s15 = sphi %s4203_s15, %s5088_s15  }
   0x3   : > { %s107_s20 = ssub.s32 %s4143_s17, %s4218_s19  ;;  %s110_s21 = sadd.s32 1, %s4139_s16 }
   0x4   : > { %p108_p0 = scmp.eq.s32.totalorder %s107_s20, 0  ;;  %p120_p1 = scmp.ne.s32.totalorder %s4139_s16, %s4135_s15 }
   0x5   : > { %p121_p2 = scmp.eq.s32.totalorder %s4216_s18, 4  ;;  %p2935_p3 = scmp.ge.s32.totalorder %s4143_s17, 1 }
   0x6   : > { %s4226_s22 = scalar_select %p108_p0, %s4139_s16, %s110_s21  }
   0x7   : > { %p4228_p4 = por %p121_p2, %p120_p1  ;;  %p171_p5 = scmp.lt.s32.totalorder %s4143_s17, 6 }
   0x9   : > { %p172_p6 = pnand %p2935_p3, %p171_p5 }
   0xa   : > { %v4021_v0 = vld [vmem:[%s5080_s1] sm:$0xff] (!%p172_p6)   ;;  %vm883_vm0 = vcmask (!%p172_p6), 1044480   ;;  %v4022_v1 = vld [vmem:[%s5080_s1 + $0x8] sm:$0x3f] (!%p172_p6)   ;;  %vm884_vm1 = vcmask (!%p172_p6), 1045504   ;;  %s4239_s28 = sshll.u32 (!%p172_p6), %s4216_s18, 7 }
   0xb   : > { %175 = sbr.rel (%p172_p6) target bundleno = 476 (0x1dc), region = 36  ;;  %3796 = vmatprep.subr.bf16.mxu0 (!%p172_p6), %v4021_v0  ;;  %3928 = vmatprep.subr.bf16.mxu1 (!%p172_p6), %v4021_v0  ;;  %v4177_v2 = vmov (!%p172_p6), 65535   ;;  %p205_p7 = scmp.lt.s32.totalorder (!%p172_p6), %s4239_s28, 528  ;;  %vm690_vm2 = vcmask (!%p172_p6), 220160  }
   0xc   : > { %3797 = vmatpush3.bf16.msra.mxu0 (!%p172_p6), %v4021_v0  ;;  %3930 = vmatpush3.bf16.msra.mxu1 (!%p172_p6), %v4021_v0  ;;  %v885_v3 = vsel (!%p172_p6), %vm883_vm0, 4294967295, %v4177_v2  ;;  %s197_s12 = sand.u32 (!%p172_p6), 1, %s4135_s15  }
   0xd   : > { %v886_v4 = vsel (!%p172_p6), %vm884_vm1, %v885_v3, 0  ;;  %s2936_s13 = sshll.u32 (!%p172_p6), %s197_s12, 9 }
   0xe   : > { %v888_v5 = vand.u32 (!%p172_p6), %v4022_v1, %v886_v4  ;;  %s4405_s14 = scalar_lea.vmem (!%p172_p6), [#allocation2], %s2936_s13  }
  0x10   : > { %3798 = vmatprep.subr.bf16.mxu0 (!%p172_p6), %v888_v5  ;;  %3929 = vmatprep.subr.bf16.mxu1 (!%p172_p6), %v888_v5 }
  0x11   : > { %3799 = vmatpush3.bf16.msra.mxu0 (!%p172_p6), %v888_v5  ;;  %3931 = vmatpush3.bf16.msra.mxu1 (!%p172_p6), %v888_v5 }
  0x12   : > { %s206_s29 = scalar_select %p205_p7, %s4239_s28, 528 }
  0x13   : > { %s2474_s24 = ssub.s32 (%p4228_p4), 529, %s4239_s28  ;;  %s3344_s25 = sshll.u32 (%p4228_p4), %s4216_s18, 9 }
  0x14   : > { %s2938_s30 = sshll.u32 %s206_s29, 2  ;;  %p2475_p8 = scmp.lt.s32.totalorder (%p4228_p4), %s2474_s24, 128 }
  0x15   : > { %s4246_s7 = scalar_lea.vmem %s5079_s0, %s2938_s30  ;;  %s4887_s29 = scalar_lea.vmem (%p4228_p4), %s5083_s4, %s3344_s25  }
  0x16   : > { %v4023_v6 = vld [vmem:[%s4246_s7] sm:$0xff]   ;;  %v4025_v8 = vld [vmem:[%s4246_s7 + $0x8] sm:$0xff]   ;;  %v4027_v10 = vld [vmem:[%s4246_s7 + $0x10] sm:$0xff]  }
  0x17   : > { %v4024_v7 = vld [vmem:[%s4246_s7 + $0x100] sm:$0xff]   ;;  %3800 = vmatprep.mubr.msk.bf16.mxu0 %vm690_vm2, %v4023_v6  ;;  %v4026_v9 = vld [vmem:[%s4246_s7 + $0x108] sm:$0xff]   ;;  %v4028_v11 = vld [vmem:[%s4246_s7 + $0x110] sm:$0xff]  }
  0x18   : > { %3864 = vmatprep.mubr.msk.bf16.mxu1 %vm690_vm2, %v4024_v7  ;;  %3801 = vmatmul.mubr.msk.bf16.vlgmr.msra.gmra.mrb[0].mxu0 %vm690_vm2, %v4025_v8  ;;  %v4029_v12 = vld [vmem:[%s4246_s7 + $0x18] sm:$0xff]   ;;  %v4031_v14 = vld [vmem:[%s4246_s7 + $0x20] sm:$0xff]   ;;  %v4033_v16 = vld [vmem:[%s4246_s7 + $0x28] sm:$0xff]  }
  0x19   : > { %3865 = vmatmul.mubr.msk.bf16.vlgmr.msra.gmra.mrb[0].mxu1 %vm690_vm2, %v4026_v9  ;;  %3804 = vmatprep.mubr.msk.bf16.mxu0 %vm690_vm2, %v4027_v10  ;;  %v4030_v13 = vld [vmem:[%s4246_s7 + $0x118] sm:$0xff]   ;;  %v4032_v15 = vld [vmem:[%s4246_s7 + $0x120] sm:$0xff]   ;;  %v4034_v17 = vld [vmem:[%s4246_s7 + $0x128] sm:$0xff]  }
  0x1a   : > { %3868 = vmatprep.mubr.msk.bf16.mxu1 %vm690_vm2, %v4028_v11  ;;  %v4035_v18 = vld [vmem:[%s4246_s7 + $0x30] sm:$0xff]   ;;  %v4037_v20 = vld [vmem:[%s4246_s7 + $0x38] sm:$0xff]   ;;  %v4039_v22 = vld [vmem:[%s4246_s7 + $0x40] sm:$0xff]  }
  0x1b   : > { %v4036_v19 = vld [vmem:[%s4246_s7 + $0x130] sm:$0xff]   ;;  %v4038_v21 = vld [vmem:[%s4246_s7 + $0x138] sm:$0xff]   ;;  %v4040_v23 = vld [vmem:[%s4246_s7 + $0x140] sm:$0xff]  }
  0x1c   : > { %v4041_v24 = vld [vmem:[%s4246_s7 + $0x48] sm:$0xff]   ;;  %v4043_v26 = vld [vmem:[%s4246_s7 + $0x50] sm:$0xff]   ;;  %v4045_v28 = vld [vmem:[%s4246_s7 + $0x58] sm:$0xff]  }
  0x1d   : > { %v4042_v25 = vld [vmem:[%s4246_s7 + $0x148] sm:$0xff]   ;;  %v4044_v27 = vld [vmem:[%s4246_s7 + $0x150] sm:$0xff]   ;;  %v4046_v29 = vld [vmem:[%s4246_s7 + $0x158] sm:$0xff]  }
  0x1e   : > { %v4047_v30 = vld [vmem:[%s4246_s7 + $0x60] sm:$0xff]   ;;  %v4049_v32 = vld [vmem:[%s4246_s7 + $0x68] sm:$0xff]   ;;  %v4051_v34 = vld [vmem:[%s4246_s7 + $0x70] sm:$0xff]  }
  0x1f   : > { %v4048_v31 = vld [vmem:[%s4246_s7 + $0x160] sm:$0xff]   ;;  %v4050_v33 = vld [vmem:[%s4246_s7 + $0x168] sm:$0xff]   ;;  %v4052_v35 = vld [vmem:[%s4246_s7 + $0x170] sm:$0xff]  }
  0x20   : > { %3805 = vmatmul.mubr.msk.bf16.gmra.mrb[4].mxu0 %vm690_vm2, %v4029_v12  ;;  %v4053_v36 = vld [vmem:[%s4246_s7 + $0x78] sm:$0xff]   ;;  %v4055_v38 = vld [vmem:[%s4246_s7 + $0x80] sm:$0xff]   ;;  %v4057_v40 = vld [vmem:[%s4246_s7 + $0x88] sm:$0xff]  }
  0x21   : > { %3869 = vmatmul.mubr.msk.bf16.gmra.mrb[4].mxu1 %vm690_vm2, %v4030_v13  ;;  %3808 = vmatprep.mubr.msk.bf16.mxu0 %vm690_vm2, %v4031_v14  ;;  %v4054_v37 = vld [vmem:[%s4246_s7 + $0x178] sm:$0xff]   ;;  %v4056_v39 = vld [vmem:[%s4246_s7 + $0x180] sm:$0xff]   ;;  %v4058_v41 = vld [vmem:[%s4246_s7 + $0x188] sm:$0xff]  }
  0x22   : > { %3872 = vmatprep.mubr.msk.bf16.mxu1 %vm690_vm2, %v4032_v15  ;;  %v4059_v42 = vld [vmem:[%s4246_s7 + $0x90] sm:$0xff]   ;;  %v4061_v44 = vld [vmem:[%s4246_s7 + $0x98] sm:$0xff]   ;;  %v4063_v46 = vld [vmem:[%s4246_s7 + $0xa0] sm:$0xff]  }
  0x23   : > { %v4060_v43 = vld [vmem:[%s4246_s7 + $0x190] sm:$0xff]   ;;  %v4062_v45 = vld [vmem:[%s4246_s7 + $0x198] sm:$0xff]   ;;  %v4064_v47 = vld [vmem:[%s4246_s7 + $0x1a0] sm:$0xff]  }
  0x24   : > { %v4065_v48 = vld [vmem:[%s4246_s7 + $0xa8] sm:$0xff]   ;;  %v4067_v50 = vld [vmem:[%s4246_s7 + $0xb0] sm:$0xff]   ;;  %v4069_v52 = vld [vmem:[%s4246_s7 + $0xb8] sm:$0xff]  }
  0x25   : > { %v4066_v49 = vld [vmem:[%s4246_s7 + $0x1a8] sm:$0xff]   ;;  %v4068_v51 = vld [vmem:[%s4246_s7 + $0x1b0] sm:$0xff]   ;;  %v4070_v53 = vld [vmem:[%s4246_s7 + $0x1b8] sm:$0xff]  }
  0x26   : > { %v4071_v54 = vld [vmem:[%s4246_s7 + $0xc0] sm:$0xff]   ;;  %v4073_v56 = vld [vmem:[%s4246_s7 + $0xc8] sm:$0xff]   ;;  %v4075_v58 = vld [vmem:[%s4246_s7 + $0xd0] sm:$0xff]  }
  0x27   : > { %v4072_v55 = vld [vmem:[%s4246_s7 + $0x1c0] sm:$0xff]   ;;  %v4074_v57 = vld [vmem:[%s4246_s7 + $0x1c8] sm:$0xff]   ;;  %v4076_v59 = vld [vmem:[%s4246_s7 + $0x1d0] sm:$0xff]  }
  0x28   : > { %3809 = vmatmul.mubr.msk.bf16.gmra.mrb[8].mxu0 %vm690_vm2, %v4033_v16  ;;  %v4077_v60 = vld [vmem:[%s4246_s7 + $0xd8] sm:$0xff]   ;;  %v4079_v62 = vld [vmem:[%s4246_s7 + $0xe0] sm:$0xff]   ;;  %v4081_v0 = vld [vmem:[%s4246_s7 + $0xe8] sm:$0xff]  }
  0x29   : > { %3873 = vmatmul.mubr.msk.bf16.gmra.mrb[8].mxu1 %vm690_vm2, %v4034_v17  ;;  %3812 = vmatprep.mubr.msk.bf16.mxu0 %vm690_vm2, %v4035_v18  ;;  %v4078_v61 = vld [vmem:[%s4246_s7 + $0x1d8] sm:$0xff]   ;;  %v4080_v63 = vld [vmem:[%s4246_s7 + $0x1e0] sm:$0xff]   ;;  %v4082_v1 = vld [vmem:[%s4246_s7 + $0x1e8] sm:$0xff]  }
  0x2a   : > { %3876 = vmatprep.mubr.msk.bf16.mxu1 %vm690_vm2, %v4036_v19  ;;  %v4083_v2 = vld [vmem:[%s4246_s7 + $0xf0] sm:$0xff]   ;;  %v4085_v4 = vld [vmem:[%s4246_s7 + $0xf8] sm:$0xff]   ;;  %v4379_v6 = vld [vmem:[%s5081_s2] ss:$0 sm:$0xff] }
  0x2b   : > { %v4084_v3 = vld [vmem:[%s4246_s7 + $0x1f0] sm:$0xff]   ;;  %v4086_v5 = vld [vmem:[%s4246_s7 + $0x1f8] sm:$0xff]   ;;  %v4384_v8 = vld [vmem:[%s5082_s3] ss:$0 sm:$0xff] }
  0x30   : > { %3813 = vmatmul.mubr.msk.bf16.gmra.mrb[12].mxu0 %vm690_vm2, %v4037_v20 }
  0x31   : > { %3877 = vmatmul.mubr.msk.bf16.gmra.mrb[12].mxu1 %vm690_vm2, %v4038_v21  ;;  %3816 = vmatprep.mubr.msk.bf16.mxu0 %vm690_vm2, %v4039_v22 }
  0x32   : > { %3880 = vmatprep.mubr.msk.bf16.mxu1 %vm690_vm2, %v4040_v23 }
  0x38   : > { %3817 = vmatmul.mubr.msk.bf16.gmra.mrb[16].mxu0 %vm690_vm2, %v4041_v24 }
  0x39   : > { %3881 = vmatmul.mubr.msk.bf16.gmra.mrb[16].mxu1 %vm690_vm2, %v4042_v25  ;;  %3820 = vmatprep.mubr.msk.bf16.mxu0 %vm690_vm2, %v4043_v26 }
  0x3a   : > { %3884 = vmatprep.mubr.msk.bf16.mxu1 %vm690_vm2, %v4044_v27 }
  0x40   : > { %3821 = vmatmul.mubr.msk.bf16.gmra.mrb[20].mxu0 %vm690_vm2, %v4045_v28 }
  0x41   : > { %3885 = vmatmul.mubr.msk.bf16.gmra.mrb[20].mxu1 %vm690_vm2, %v4046_v29  ;;  %3824 = vmatprep.mubr.msk.bf16.mxu0 %vm690_vm2, %v4047_v30 }
  0x42   : > { %3888 = vmatprep.mubr.msk.bf16.mxu1 %vm690_vm2, %v4048_v31 }
  0x48   : > { %3825 = vmatmul.mubr.msk.bf16.gmra.mrb[24].mxu0 %vm690_vm2, %v4049_v32 }
  0x49   : > { %3889 = vmatmul.mubr.msk.bf16.gmra.mrb[24].mxu1 %vm690_vm2, %v4050_v33  ;;  %3828 = vmatprep.mubr.msk.bf16.mxu0 %vm690_vm2, %v4051_v34 }
  0x4a   : > { %3892 = vmatprep.mubr.msk.bf16.mxu1 %vm690_vm2, %v4052_v35 }
  0x50   : > { %3829 = vmatmul.mubr.msk.bf16.gmra.mrb[28].mxu0 %vm690_vm2, %v4053_v36 }
  0x51   : > { %3893 = vmatmul.mubr.msk.bf16.gmra.mrb[28].mxu1 %vm690_vm2, %v4054_v37  ;;  %3832 = vmatprep.mubr.msk.bf16.mxu0 %vm690_vm2, %v4055_v38 }
  0x52   : > { %3896 = vmatprep.mubr.msk.bf16.mxu1 %vm690_vm2, %v4056_v39 }
  0x58   : > { %3833 = vmatmul.mubr.msk.bf16.gmra.mrb[32].mxu0 %vm690_vm2, %v4057_v40 }
  0x59   : > { %3897 = vmatmul.mubr.msk.bf16.gmra.mrb[32].mxu1 %vm690_vm2, %v4058_v41  ;;  %3836 = vmatprep.mubr.msk.bf16.mxu0 %vm690_vm2, %v4059_v42 }
  0x5a   : > { %3900 = vmatprep.mubr.msk.bf16.mxu1 %vm690_vm2, %v4060_v43 }
  0x60   : > { %3837 = vmatmul.mubr.msk.bf16.gmra.mrb[36].mxu0 %vm690_vm2, %v4061_v44 }
  0x61   : > { %3901 = vmatmul.mubr.msk.bf16.gmra.mrb[36].mxu1 %vm690_vm2, %v4062_v45  ;;  %3840 = vmatprep.mubr.msk.bf16.mxu0 %vm690_vm2, %v4063_v46 }
  0x62   : > { %3904 = vmatprep.mubr.msk.bf16.mxu1 %vm690_vm2, %v4064_v47 }
  0x68   : > { %3841 = vmatmul.mubr.msk.bf16.gmra.mrb[40].mxu0 %vm690_vm2, %v4065_v48 }
  0x69   : > { %3905 = vmatmul.mubr.msk.bf16.gmra.mrb[40].mxu1 %vm690_vm2, %v4066_v49  ;;  %3844 = vmatprep.mubr.msk.bf16.mxu0 %vm690_vm2, %v4067_v50 }
  0x6a   : > { %3908 = vmatprep.mubr.msk.bf16.mxu1 %vm690_vm2, %v4068_v51 }
  0x70   : > { %3845 = vmatmul.mubr.msk.bf16.gmra.mrb[44].mxu0 %vm690_vm2, %v4069_v52 }
  0x71   : > { %3909 = vmatmul.mubr.msk.bf16.gmra.mrb[44].mxu1 %vm690_vm2, %v4070_v53  ;;  %3848 = vmatprep.mubr.msk.bf16.mxu0 %vm690_vm2, %v4071_v54 }
  0x72   : > { %3912 = vmatprep.mubr.msk.bf16.mxu1 %vm690_vm2, %v4072_v55 }
  0x78   : > { %3849 = vmatmul.mubr.msk.bf16.gmra.mrb[48].mxu0 %vm690_vm2, %v4073_v56 }
  0x79   : > { %3913 = vmatmul.mubr.msk.bf16.gmra.mrb[48].mxu1 %vm690_vm2, %v4074_v57  ;;  %3852 = vmatprep.mubr.msk.bf16.mxu0 %vm690_vm2, %v4075_v58 }
  0x7a   : > { %3916 = vmatprep.mubr.msk.bf16.mxu1 %vm690_vm2, %v4076_v59 }
  0x80   : > { %3853 = vmatmul.mubr.msk.bf16.gmra.mrb[52].mxu0 %vm690_vm2, %v4077_v60 }
  0x81   : > { %3917 = vmatmul.mubr.msk.bf16.gmra.mrb[52].mxu1 %vm690_vm2, %v4078_v61  ;;  %3856 = vmatprep.mubr.msk.bf16.mxu0 %vm690_vm2, %v4079_v62 }
  0x82   : > { %3920 = vmatprep.mubr.msk.bf16.mxu1 %vm690_vm2, %v4080_v63 }
  0x88   : > { %3857 = vmatmul.mubr.msk.bf16.gmra.mrb[56].mxu0 %vm690_vm2, %v4081_v0 }
  0x89   : > { %3921 = vmatmul.mubr.msk.bf16.gmra.mrb[56].mxu1 %vm690_vm2, %v4082_v1  ;;  %3860 = vmatprep.mubr.msk.bf16.mxu0 %vm690_vm2, %v4083_v2 }
  0x8a   : > { %3924 = vmatprep.mubr.msk.bf16.mxu1 %vm690_vm2, %v4084_v3 }
  0x90   : > { %3861 = vmatmul.mubr.msk.bf16.gmra.mrb[60].mxu0 %vm690_vm2, %v4085_v4 }
  0x91   : > { %3925 = vmatmul.mubr.msk.bf16.gmra.mrb[60].mxu1 %vm690_vm2, %v4086_v5 }
  0xeb   : > { %v3802_v7 = vpop.f32.mrb[0].mxu0 }
  0xec   : > { %v933_v9 = vadd.f32 %v3802_v7, %v4379_v6  ;;  %v3866_v10 = vpop.f32.mrb[0].mxu1  ;;  %v924_v11 = vpop.f32.mrb[1].mxu0 }
  0xed   : > { %v1189_v12 = vadd.f32 %v3866_v10, %v4379_v6  ;;  %v925_v13 = vadd.f32 %v4379_v6, %v924_v11  ;;  %v1180_v14 = vpop.f32.mrb[1].mxu1  ;;  %v3803_v15 = vpop.f32.mrb[2].mxu0 }
  0xee   : > { %vm1437_vm3 = vcmp.ge.f32.partialorder %v933_v9, 0.0  ;;  %v1572_v16 = vmul.f32 %v4384_v8, %v933_v9  ;;  %v1181_v17 = vadd.f32 %v4379_v6, %v1180_v14  ;;  %v936_v18 = vadd.f32 %v3803_v15, %v4379_v6  ;;  %v3867_v19 = vpop.f32.mrb[2].mxu1  ;;  %v927_v20 = vpop.f32.mrb[3].mxu0 }
  0xef   : > { %vm1501_vm4 = vcmp.ge.f32.partialorder %v1189_v12, 0.0  ;;  %v1636_v21 = vmul.f32 %v4384_v8, %v1189_v12  ;;  %vm1435_vm5 = vcmp.ge.f32.partialorder %v925_v13, 0.0  ;;  %v1570_v22 = vmul.f32 %v4384_v8, %v925_v13  ;;  %v1183_v23 = vpop.f32.mrb[3].mxu1 }
  0xf0   : > { %vm1499_vm6 = vcmp.ge.f32.partialorder %v1181_v17, 0.0  ;;  %v1634_v24 = vmul.f32 %v4384_v8, %v1181_v17  ;;  %vm1438_vm7 = vcmp.ge.f32.partialorder %v936_v18, 0.0  ;;  %v1700_v25 = vsel %vm1437_vm3, %v933_v9, %v1572_v16 }
  0xf1   : > { %v1573_v26 = vmul.f32 %v4384_v8, %v936_v18  ;;  %v1192_v27 = vadd.f32 %v3867_v19, %v4379_v6  ;;  %v1764_v28 = vsel %vm1501_vm4, %v1189_v12, %v1636_v21  ;;  %v1698_v29 = vsel %vm1435_vm5, %v925_v13, %v1570_v22 }
  0xf2   : > { %v928_v30 = vadd.f32 %v4379_v6, %v927_v20  ;;  %v1184_v31 = vadd.f32 %v4379_v6, %v1183_v23  ;;  %v1762_v32 = vsel %vm1499_vm6, %v1181_v17, %v1634_v24 }
  0xf3   : > { %v1701_v33 = vsel %vm1438_vm7, %v936_v18, %v1573_v26  ;;  %vm1502_vm8 = vcmp.ge.f32.partialorder %v1192_v27, 0.0  ;;  %v1637_v34 = vmul.f32 %v4384_v8, %v1192_v27  ;;  %v3806_v35 = vpop.f32.mrb[4].mxu0 }
  0xf4   : > { %v3355_v36 = vpack.c.bf16 %v1701_v33, %v1700_v25  ;;  %vm1436_vm9 = vcmp.ge.f32.partialorder %v928_v30, 0.0  ;;  %v1571_v37 = vmul.f32 %v4384_v8, %v928_v30  ;;  %vm1500_vm10 = vcmp.ge.f32.partialorder %v1184_v31, 0.0  ;;  %v3870_v38 = vpop.f32.mrb[4].mxu1  ;;  %v940_v39 = vpop.f32.mrb[5].mxu0 }
  0xf5   : > { %v1765_v40 = vsel %vm1502_vm8, %v1192_v27, %v1637_v34  ;;  %v1635_v41 = vmul.f32 %v4384_v8, %v1184_v31  ;;  %v949_v42 = vadd.f32 %v3806_v35, %v4379_v6  ;;  %v1205_v43 = vadd.f32 %v3870_v38, %v4379_v6  ;;  %v1196_v44 = vpop.f32.mrb[5].mxu1  ;;  %v3807_v45 = vpop.f32.mrb[6].mxu0 }
  0xf6   : > { %3667 = vst [vmem:[%s4405_s14 + $0x8] sm:$0xff] %v3355_v36   ;;  %v3515_v46 = vpack.c.bf16 %v1765_v40, %v1764_v28  ;;  %v1699_v47 = vsel %vm1436_vm9, %v928_v30, %v1571_v37  ;;  %v941_v48 = vadd.f32 %v4379_v6, %v940_v39  ;;  %v1197_v49 = vadd.f32 %v4379_v6, %v1196_v44  ;;  %v3871_v50 = vpop.f32.mrb[6].mxu1  ;;  %v943_v51 = vpop.f32.mrb[7].mxu0 }
  0xf7   : > { %v3350_v52 = vpack.c.bf16 %v1699_v47, %v1698_v29  ;;  %v1763_v53 = vsel %vm1500_vm10, %v1184_v31, %v1635_v41  ;;  %vm1441_vm11 = vcmp.ge.f32.partialorder %v949_v42, 0.0  ;;  %v1576_v54 = vmul.f32 %v4384_v8, %v949_v42  ;;  %v1199_v55 = vpop.f32.mrb[7].mxu1 }
  0xf8   : > { %3699 = vst [vmem:[%s4405_s14 + $0x108] sm:$0xff] %v3515_v46   ;;  %v3510_v56 = vpack.c.bf16 %v1763_v53, %v1762_v32  ;;  %vm1505_vm12 = vcmp.ge.f32.partialorder %v1205_v43, 0.0  ;;  %v1640_v57 = vmul.f32 %v4384_v8, %v1205_v43  ;;  %vm1439_vm13 = vcmp.ge.f32.partialorder %v941_v48, 0.0 }
  0xf9   : > { %3351 = vst [vmem:[%s4405_s14] sm:$0xff] %v3350_v52   ;;  %v1574_v58 = vmul.f32 %v4384_v8, %v941_v48  ;;  %vm1503_vm14 = vcmp.ge.f32.partialorder %v1197_v49, 0.0  ;;  %v1638_v59 = vmul.f32 %v4384_v8, %v1197_v49  ;;  %v1704_v60 = vsel %vm1441_vm11, %v949_v42, %v1576_v54 }
  0xfa   : > { %3698 = vst [vmem:[%s4405_s14 + $0x100] sm:$0xff] %v3510_v56   ;;  %v952_v61 = vadd.f32 %v3807_v45, %v4379_v6  ;;  %v1208_v62 = vadd.f32 %v3871_v50, %v4379_v6  ;;  %v944_v63 = vadd.f32 %v4379_v6, %v943_v51  ;;  %v1768_v0 = vsel %vm1505_vm12, %v1205_v43, %v1640_v57 }
  0xfb   : > { %v1702_v1 = vsel %vm1439_vm13, %v941_v48, %v1574_v58  ;;  %v1766_v2 = vsel %vm1503_vm14, %v1197_v49, %v1638_v59  ;;  %v1200_v3 = vadd.f32 %v4379_v6, %v1199_v55  ;;  %v3810_v4 = vpop.f32.mrb[8].mxu0 }
  0xfc   : > { %vm1442_vm15 = vcmp.ge.f32.partialorder %v952_v61, 0.0  ;;  %v1577_v5 = vmul.f32 %v4384_v8, %v952_v61  ;;  %vm1506_vm0 = vcmp.ge.f32.partialorder %v1208_v62, 0.0  ;;  %v1641_v7 = vmul.f32 %v4384_v8, %v1208_v62  ;;  %v3874_v9 = vpop.f32.mrb[8].mxu1  ;;  %v956_v10 = vpop.f32.mrb[9].mxu0 }
  0xfd   : > { %vm1440_vm1 = vcmp.ge.f32.partialorder %v944_v63, 0.0  ;;  %v1575_v11 = vmul.f32 %v4384_v8, %v944_v63  ;;  %vm1504_vm2 = vcmp.ge.f32.partialorder %v1200_v3, 0.0  ;;  %v1639_v12 = vmul.f32 %v4384_v8, %v1200_v3  ;;  %v1212_v13 = vpop.f32.mrb[9].mxu1  ;;  %v3811_v14 = vpop.f32.mrb[10].mxu0 }
  0xfe   : > { %v1705_v15 = vsel %vm1442_vm15, %v952_v61, %v1577_v5  ;;  %v1769_v16 = vsel %vm1506_vm0, %v1208_v62, %v1641_v7  ;;  %v965_v17 = vadd.f32 %v3810_v4, %v4379_v6  ;;  %v1221_v18 = vadd.f32 %v3874_v9, %v4379_v6  ;;  %v3875_v19 = vpop.f32.mrb[10].mxu1  ;;  %v959_v20 = vpop.f32.mrb[11].mxu0 }
  0xff   : > { %v3365_v21 = vpack.c.bf16 %v1705_v15, %v1704_v60  ;;  %v3525_v22 = vpack.c.bf16 %v1769_v16, %v1768_v0  ;;  %v1703_v23 = vsel %vm1440_vm1, %v944_v63, %v1575_v11  ;;  %v1767_v24 = vsel %vm1504_vm2, %v1200_v3, %v1639_v12  ;;  %v1215_v25 = vpop.f32.mrb[11].mxu1 }
 0x100   : > { %v3360_v26 = vpack.c.bf16 %v1703_v23, %v1702_v1  ;;  %v3520_v27 = vpack.c.bf16 %v1767_v24, %v1766_v2  ;;  %vm1445_vm3 = vcmp.ge.f32.partialorder %v965_v17, 0.0  ;;  %v1580_v28 = vmul.f32 %v4384_v8, %v965_v17 }
 0x101   : > { %3669 = vst [vmem:[%s4405_s14 + $0x18] sm:$0xff] %v3365_v21   ;;  %3701 = vst [vmem:[%s4405_s14 + $0x118] sm:$0xff] %v3525_v22   ;;  %vm1509_vm4 = vcmp.ge.f32.partialorder %v1221_v18, 0.0  ;;  %v1644_v29 = vmul.f32 %v4384_v8, %v1221_v18  ;;  %v957_v30 = vadd.f32 %v4379_v6, %v956_v10  ;;  %v1213_v31 = vadd.f32 %v4379_v6, %v1212_v13 }
 0x102   : > { %3668 = vst [vmem:[%s4405_s14 + $0x10] sm:$0xff] %v3360_v26   ;;  %3700 = vst [vmem:[%s4405_s14 + $0x110] sm:$0xff] %v3520_v27   ;;  %v1708_v32 = vsel %vm1445_vm3, %v965_v17, %v1580_v28  ;;  %v968_v33 = vadd.f32 %v3811_v14, %v4379_v6  ;;  %v1224_v34 = vadd.f32 %v3875_v19, %v4379_v6 }
 0x103   : > { %v960_v35 = vadd.f32 %v4379_v6, %v959_v20  ;;  %v1772_v36 = vsel %vm1509_vm4, %v1221_v18, %v1644_v29  ;;  %vm1443_vm5 = vcmp.ge.f32.partialorder %v957_v30, 0.0  ;;  %v1578_v37 = vmul.f32 %v4384_v8, %v957_v30  ;;  %v3814_v38 = vpop.f32.mrb[12].mxu0 }
 0x104   : > { %vm1507_vm6 = vcmp.ge.f32.partialorder %v1213_v31, 0.0  ;;  %v1642_v39 = vmul.f32 %v4384_v8, %v1213_v31  ;;  %vm1446_vm7 = vcmp.ge.f32.partialorder %v968_v33, 0.0  ;;  %v1581_v40 = vmul.f32 %v4384_v8, %v968_v33  ;;  %v3878_v41 = vpop.f32.mrb[12].mxu1  ;;  %v972_v42 = vpop.f32.mrb[13].mxu0 }
 0x105   : > { %vm1510_vm8 = vcmp.ge.f32.partialorder %v1224_v34, 0.0  ;;  %v1706_v43 = vsel %vm1443_vm5, %v957_v30, %v1578_v37  ;;  %v1645_v44 = vmul.f32 %v4384_v8, %v1224_v34  ;;  %vm1444_vm9 = vcmp.ge.f32.partialorder %v960_v35, 0.0  ;;  %v1228_v46 = vpop.f32.mrb[13].mxu1  ;;  %v3815_v47 = vpop.f32.mrb[14].mxu0 }
 0x106   : > { %v1579_v45 = vmul.f32 %v4384_v8, %v960_v35  ;;  %v1770_v48 = vsel %vm1507_vm6, %v1213_v31, %v1642_v39  ;;  %v1709_v49 = vsel %vm1446_vm7, %v968_v33, %v1581_v40  ;;  %v1216_v50 = vadd.f32 %v4379_v6, %v1215_v25  ;;  %v3879_v52 = vpop.f32.mrb[14].mxu1  ;;  %v975_v53 = vpop.f32.mrb[15].mxu0 }
 0x107   : > { %v981_v51 = vadd.f32 %v3814_v38, %v4379_v6  ;;  %v3375_v54 = vpack.c.bf16 %v1709_v49, %v1708_v32  ;;  %v1773_v55 = vsel %vm1510_vm8, %v1224_v34, %v1645_v44  ;;  %v1237_v57 = vadd.f32 %v3878_v41, %v4379_v6  ;;  %v1231_v58 = vpop.f32.mrb[15].mxu1 }
 0x108   : > { %v1707_v56 = vsel %vm1444_vm9, %v960_v35, %v1579_v45  ;;  %v3535_v59 = vpack.c.bf16 %v1773_v55, %v1772_v36  ;;  %vm1508_vm10 = vcmp.ge.f32.partialorder %v1216_v50, 0.0  ;;  %v1643_v61 = vmul.f32 %v4384_v8, %v1216_v50 }
 0x109   : > { %v3370_v60 = vpack.c.bf16 %v1707_v56, %v1706_v43  ;;  %3671 = vst [vmem:[%s4405_s14 + $0x28] sm:$0xff] %v3375_v54   ;;  %vm1449_vm11 = vcmp.ge.f32.partialorder %v981_v51, 0.0  ;;  %v1584_v62 = vmul.f32 %v4384_v8, %v981_v51  ;;  %vm1513_vm12 = vcmp.ge.f32.partialorder %v1237_v57, 0.0 }
 0x10a   : > { %v1648_v63 = vmul.f32 %v4384_v8, %v1237_v57  ;;  %3703 = vst [vmem:[%s4405_s14 + $0x128] sm:$0xff] %v3535_v59   ;;  %v1771_v0 = vsel %vm1508_vm10, %v1216_v50, %v1643_v61  ;;  %v973_v1 = vadd.f32 %v4379_v6, %v972_v42  ;;  %v1229_v2 = vadd.f32 %v4379_v6, %v1228_v46 }
 0x10b   : > { %3670 = vst [vmem:[%s4405_s14 + $0x20] sm:$0xff] %v3370_v60   ;;  %v984_v3 = vadd.f32 %v3815_v47, %v4379_v6  ;;  %v3530_v4 = vpack.c.bf16 %v1771_v0, %v1770_v48  ;;  %v1712_v5 = vsel %vm1449_vm11, %v981_v51, %v1584_v62  ;;  %v1240_v9 = vadd.f32 %v3879_v52, %v4379_v6  ;;  %v3818_v10 = vpop.f32.mrb[16].mxu0 }
 0x10c   : > { %v1776_v7 = vsel %vm1513_vm12, %v1237_v57, %v1648_v63  ;;  %vm1447_vm13 = vcmp.ge.f32.partialorder %v973_v1, 0.0  ;;  %v1582_v11 = vmul.f32 %v4384_v8, %v973_v1  ;;  %vm1511_vm14 = vcmp.ge.f32.partialorder %v1229_v2, 0.0  ;;  %v3882_v13 = vpop.f32.mrb[16].mxu1  ;;  %v988_v14 = vpop.f32.mrb[17].mxu0 }
 0x10d   : > { %v1646_v12 = vmul.f32 %v4384_v8, %v1229_v2  ;;  %3702 = vst [vmem:[%s4405_s14 + $0x120] sm:$0xff] %v3530_v4   ;;  %vm1450_vm15 = vcmp.ge.f32.partialorder %v984_v3, 0.0  ;;  %v1585_v15 = vmul.f32 %v4384_v8, %v984_v3  ;;  %vm1514_vm0 = vcmp.ge.f32.partialorder %v1240_v9, 0.0  ;;  %v1244_v17 = vpop.f32.mrb[17].mxu1  ;;  %v3819_v18 = vpop.f32.mrb[18].mxu0 }
 0x10e   : > { %v1649_v16 = vmul.f32 %v4384_v8, %v1240_v9  ;;  %v1710_v19 = vsel %vm1447_vm13, %v973_v1, %v1582_v11  ;;  %v976_v21 = vadd.f32 %v4379_v6, %v975_v53  ;;  %v1232_v22 = vadd.f32 %v4379_v6, %v1231_v58  ;;  %v3883_v23 = vpop.f32.mrb[18].mxu1  ;;  %v991_v24 = vpop.f32.mrb[19].mxu0 }
 0x10f   : > { %v1774_v20 = vsel %vm1511_vm14, %v1229_v2, %v1646_v12  ;;  %v1713_v25 = vsel %vm1450_vm15, %v984_v3, %v1585_v15  ;;  %v997_v27 = vadd.f32 %v3818_v10, %v4379_v6  ;;  %v1253_v28 = vadd.f32 %v3882_v13, %v4379_v6  ;;  %v1247_v29 = vpop.f32.mrb[19].mxu1 }
 0x110   : > { %v1777_v26 = vsel %vm1514_vm0, %v1240_v9, %v1649_v16  ;;  %v3385_v30 = vpack.c.bf16 %v1713_v25, %v1712_v5  ;;  %vm1448_vm1 = vcmp.ge.f32.partialorder %v976_v21, 0.0  ;;  %v1583_v32 = vmul.f32 %v4384_v8, %v976_v21 }
 0x111   : > { %v3545_v31 = vpack.c.bf16 %v1777_v26, %v1776_v7  ;;  %vm1512_vm2 = vcmp.ge.f32.partialorder %v1232_v22, 0.0  ;;  %v1647_v33 = vmul.f32 %v4384_v8, %v1232_v22  ;;  %vm1453_vm3 = vcmp.ge.f32.partialorder %v997_v27, 0.0 }
 0x112   : > { %v1588_v34 = vmul.f32 %v4384_v8, %v997_v27  ;;  %3673 = vst [vmem:[%s4405_s14 + $0x38] sm:$0xff] %v3385_v30   ;;  %v1711_v35 = vsel %vm1448_vm1, %v976_v21, %v1583_v32  ;;  %vm1517_vm4 = vcmp.ge.f32.partialorder %v1253_v28, 0.0  ;;  %v1652_v36 = vmul.f32 %v4384_v8, %v1253_v28 }
 0x113   : > { %3705 = vst [vmem:[%s4405_s14 + $0x138] sm:$0xff] %v3545_v31   ;;  %v989_v37 = vadd.f32 %v4379_v6, %v988_v14  ;;  %v3380_v38 = vpack.c.bf16 %v1711_v35, %v1710_v19  ;;  %v1775_v39 = vsel %vm1512_vm2, %v1232_v22, %v1647_v33  ;;  %v1245_v41 = vadd.f32 %v4379_v6, %v1244_v17  ;;  %v3822_v42 = vpop.f32.mrb[20].mxu0 }
 0x114   : > { %v1716_v40 = vsel %vm1453_vm3, %v997_v27, %v1588_v34  ;;  %v3540_v43 = vpack.c.bf16 %v1775_v39, %v1774_v20  ;;  %v1780_v44 = vsel %vm1517_vm4, %v1253_v28, %v1652_v36  ;;  %v3886_v46 = vpop.f32.mrb[20].mxu1  ;;  %v1004_v47 = vpop.f32.mrb[21].mxu0  ;;  %v1000_v49 = vadd.f32 %v3819_v18, %v4379_v6 }
 0x115   : > { %vm1451_vm5 = vcmp.ge.f32.partialorder %v989_v37, 0.0  ;;  %v1586_v45 = vmul.f32 %v4384_v8, %v989_v37  ;;  %3672 = vst [vmem:[%s4405_s14 + $0x30] sm:$0xff] %v3380_v38   ;;  %vm1515_vm6 = vcmp.ge.f32.partialorder %v1245_v41, 0.0  ;;  %v1650_v48 = vmul.f32 %v4384_v8, %v1245_v41  ;;  %v1260_v51 = vpop.f32.mrb[21].mxu1  ;;  %v3823_v52 = vpop.f32.mrb[22].mxu0 }
 0x116   : > { %v1256_v50 = vadd.f32 %v3883_v23, %v4379_v6  ;;  %3704 = vst [vmem:[%s4405_s14 + $0x130] sm:$0xff] %v3540_v43   ;;  %v992_v54 = vadd.f32 %v4379_v6, %v991_v24  ;;  %v1248_v55 = vadd.f32 %v4379_v6, %v1247_v29  ;;  %v1013_v56 = vadd.f32 %v3822_v42, %v4379_v6  ;;  %v3887_v57 = vpop.f32.mrb[22].mxu1  ;;  %v1007_v58 = vpop.f32.mrb[23].mxu0 }
 0x117   : > { %v1714_v53 = vsel %vm1451_vm5, %v989_v37, %v1586_v45  ;;  %v1778_v59 = vsel %vm1515_vm6, %v1245_v41, %v1650_v48  ;;  %vm1454_vm7 = vcmp.ge.f32.partialorder %v1000_v49, 0.0  ;;  %v1589_v60 = vmul.f32 %v4384_v8, %v1000_v49  ;;  %v1263_v61 = vpop.f32.mrb[23].mxu1 }
 0x118   : > { %vm1518_vm8 = vcmp.ge.f32.partialorder %v1256_v50, 0.0  ;;  %v1653_v62 = vmul.f32 %v4384_v8, %v1256_v50  ;;  %vm1452_vm9 = vcmp.ge.f32.partialorder %v992_v54, 0.0  ;;  %v1587_v63 = vmul.f32 %v4384_v8, %v992_v54 }
 0x119   : > { %vm1516_vm10 = vcmp.ge.f32.partialorder %v1248_v55, 0.0  ;;  %v1717_v0 = vsel %vm1454_vm7, %v1000_v49, %v1589_v60  ;;  %v1651_v1 = vmul.f32 %v4384_v8, %v1248_v55  ;;  %vm1457_vm11 = vcmp.ge.f32.partialorder %v1013_v56, 0.0 }
 0x11a   : > { %v1592_v2 = vmul.f32 %v4384_v8, %v1013_v56  ;;  %v3395_v3 = vpack.c.bf16 %v1717_v0, %v1716_v40  ;;  %v1781_v4 = vsel %vm1518_vm8, %v1256_v50, %v1653_v62  ;;  %v1715_v5 = vsel %vm1452_vm9, %v992_v54, %v1587_v63 }
 0x11b   : > { %v1269_v7 = vadd.f32 %v3886_v46, %v4379_v6  ;;  %v3555_v9 = vpack.c.bf16 %v1781_v4, %v1780_v44  ;;  %v3390_v10 = vpack.c.bf16 %v1715_v5, %v1714_v53  ;;  %v1779_v11 = vsel %vm1516_vm10, %v1248_v55, %v1651_v1  ;;  %v3826_v13 = vpop.f32.mrb[24].mxu0 }
 0x11c   : > { %v1720_v12 = vsel %vm1457_vm11, %v1013_v56, %v1592_v2  ;;  %3675 = vst [vmem:[%s4405_s14 + $0x48] sm:$0xff] %v3395_v3   ;;  %v3550_v14 = vpack.c.bf16 %v1779_v11, %v1778_v59  ;;  %v1005_v16 = vadd.f32 %v4379_v6, %v1004_v47  ;;  %v3890_v17 = vpop.f32.mrb[24].mxu1  ;;  %v1020_v18 = vpop.f32.mrb[25].mxu0  ;;  %v1261_v19 = vadd.f32 %v4379_v6, %v1260_v51 }
 0x11d   : > { %vm1521_vm12 = vcmp.ge.f32.partialorder %v1269_v7, 0.0  ;;  %v1656_v15 = vmul.f32 %v4384_v8, %v1269_v7  ;;  %3707 = vst [vmem:[%s4405_s14 + $0x148] sm:$0xff] %v3555_v9   ;;  %3674 = vst [vmem:[%s4405_s14 + $0x40] sm:$0xff] %v3390_v10   ;;  %v1016_v20 = vadd.f32 %v3823_v52, %v4379_v6  ;;  %v1272_v21 = vadd.f32 %v3887_v57, %v4379_v6  ;;  %v1276_v23 = vpop.f32.mrb[25].mxu1  ;;  %v3827_v24 = vpop.f32.mrb[26].mxu0 }
 0x11e   : > { %v1008_v22 = vadd.f32 %v4379_v6, %v1007_v58  ;;  %3706 = vst [vmem:[%s4405_s14 + $0x140] sm:$0xff] %v3550_v14   ;;  %vm1455_vm13 = vcmp.ge.f32.partialorder %v1005_v16, 0.0  ;;  %v1590_v26 = vmul.f32 %v4384_v8, %v1005_v16  ;;  %v1264_v27 = vadd.f32 %v4379_v6, %v1263_v61  ;;  %v3891_v28 = vpop.f32.mrb[26].mxu1  ;;  %v1023_v29 = vpop.f32.mrb[27].mxu0 }
 0x11f   : > { %v1784_v25 = vsel %vm1521_vm12, %v1269_v7, %v1656_v15  ;;  %vm1519_vm14 = vcmp.ge.f32.partialorder %v1261_v19, 0.0  ;;  %v1654_v30 = vmul.f32 %v4384_v8, %v1261_v19  ;;  %vm1458_vm15 = vcmp.ge.f32.partialorder %v1016_v20, 0.0  ;;  %v1279_v32 = vpop.f32.mrb[27].mxu1 }
 0x120   : > { %v1593_v31 = vmul.f32 %v4384_v8, %v1016_v20  ;;  %v1718_v33 = vsel %vm1455_vm13, %v1005_v16, %v1590_v26  ;;  %vm1522_vm0 = vcmp.ge.f32.partialorder %v1272_v21, 0.0  ;;  %v1657_v34 = vmul.f32 %v4384_v8, %v1272_v21 }
 0x121   : > { %vm1456_vm1 = vcmp.ge.f32.partialorder %v1008_v22, 0.0  ;;  %v1782_v35 = vsel %vm1519_vm14, %v1261_v19, %v1654_v30  ;;  %v1591_v37 = vmul.f32 %v4384_v8, %v1008_v22  ;;  %vm1520_vm2 = vcmp.ge.f32.partialorder %v1264_v27, 0.0 }
 0x122   : > { %v1721_v36 = vsel %vm1458_vm15, %v1016_v20, %v1593_v31  ;;  %v1785_v39 = vsel %vm1522_vm0, %v1272_v21, %v1657_v34  ;;  %v1655_v40 = vmul.f32 %v4384_v8, %v1264_v27  ;;  %v1029_v41 = vadd.f32 %v3826_v13, %v4379_v6 }
 0x123   : > { %v3405_v38 = vpack.c.bf16 %v1721_v36, %v1720_v12  ;;  %v3565_v42 = vpack.c.bf16 %v1785_v39, %v1784_v25  ;;  %v1719_v43 = vsel %vm1456_vm1, %v1008_v22, %v1591_v37  ;;  %v1285_v44 = vadd.f32 %v3890_v17, %v4379_v6  ;;  %v3830_v46 = vpop.f32.mrb[28].mxu0 }
 0x124   : > { %v1021_v45 = vadd.f32 %v4379_v6, %v1020_v18  ;;  %v3400_v47 = vpack.c.bf16 %v1719_v43, %v1718_v33  ;;  %v1783_v48 = vsel %vm1520_vm2, %v1264_v27, %v1655_v40  ;;  %vm1461_vm3 = vcmp.ge.f32.partialorder %v1029_v41, 0.0  ;;  %v3894_v50 = vpop.f32.mrb[28].mxu1  ;;  %v1036_v51 = vpop.f32.mrb[29].mxu0 }
 0x125   : > { %3677 = vst [vmem:[%s4405_s14 + $0x58] sm:$0xff] %v3405_v38   ;;  %v1596_v49 = vmul.f32 %v4384_v8, %v1029_v41  ;;  %3709 = vst [vmem:[%s4405_s14 + $0x158] sm:$0xff] %v3565_v42   ;;  %v3560_v52 = vpack.c.bf16 %v1783_v48, %v1782_v35  ;;  %vm1525_vm4 = vcmp.ge.f32.partialorder %v1285_v44, 0.0  ;;  %v1660_v53 = vmul.f32 %v4384_v8, %v1285_v44  ;;  %v1292_v54 = vpop.f32.mrb[29].mxu1  ;;  %v3831_v55 = vpop.f32.mrb[30].mxu0 }
 0x126   : > { %vm1459_vm5 = vcmp.ge.f32.partialorder %v1021_v45, 0.0  ;;  %3676 = vst [vmem:[%s4405_s14 + $0x50] sm:$0xff] %v3400_v47   ;;  %v1594_v57 = vmul.f32 %v4384_v8, %v1021_v45  ;;  %v1277_v58 = vadd.f32 %v4379_v6, %v1276_v23  ;;  %v1032_v59 = vadd.f32 %v3827_v24, %v4379_v6  ;;  %v3895_v60 = vpop.f32.mrb[30].mxu1  ;;  %v1039_v61 = vpop.f32.mrb[31].mxu0 }
 0x127   : > { %v1724_v56 = vsel %vm1461_vm3, %v1029_v41, %v1596_v49  ;;  %3708 = vst [vmem:[%s4405_s14 + $0x150] sm:$0xff] %v3560_v52   ;;  %v1788_v62 = vsel %vm1525_vm4, %v1285_v44, %v1660_v53  ;;  %v1288_v63 = vadd.f32 %v3891_v28, %v4379_v6  ;;  %v1024_v0 = vadd.f32 %v4379_v6, %v1023_v29  ;;  %v1295_v2 = vpop.f32.mrb[31].mxu1 }
 0x128   : > { %v1280_v1 = vadd.f32 %v4379_v6, %v1279_v32  ;;  %v1722_v3 = vsel %vm1459_vm5, %v1021_v45, %v1594_v57  ;;  %vm1523_vm6 = vcmp.ge.f32.partialorder %v1277_v58, 0.0  ;;  %v1658_v4 = vmul.f32 %v4384_v8, %v1277_v58 }
 0x129   : > { %vm1462_vm7 = vcmp.ge.f32.partialorder %v1032_v59, 0.0  ;;  %v1597_v5 = vmul.f32 %v4384_v8, %v1032_v59  ;;  %vm1526_vm8 = vcmp.ge.f32.partialorder %v1288_v63, 0.0  ;;  %v1661_v7 = vmul.f32 %v4384_v8, %v1288_v63 }
 0x12a   : > { %vm1460_vm9 = vcmp.ge.f32.partialorder %v1024_v0, 0.0  ;;  %v1786_v9 = vsel %vm1523_vm6, %v1277_v58, %v1658_v4  ;;  %v1595_v10 = vmul.f32 %v4384_v8, %v1024_v0  ;;  %vm1524_vm10 = vcmp.ge.f32.partialorder %v1280_v1, 0.0 }
 0x12b   : > { %v1659_v11 = vmul.f32 %v4384_v8, %v1280_v1  ;;  %v1725_v12 = vsel %vm1462_vm7, %v1032_v59, %v1597_v5  ;;  %v1789_v13 = vsel %vm1526_vm8, %v1288_v63, %v1661_v7  ;;  %v1045_v14 = vadd.f32 %v3830_v46, %v4379_v6  ;;  %v3834_v16 = vpop.f32.mrb[32].mxu0 }
 0x12c   : > { %v1301_v15 = vadd.f32 %v3894_v50, %v4379_v6  ;;  %v3415_v17 = vpack.c.bf16 %v1725_v12, %v1724_v56  ;;  %v3575_v18 = vpack.c.bf16 %v1789_v13, %v1788_v62  ;;  %v1723_v19 = vsel %vm1460_vm9, %v1024_v0, %v1595_v10  ;;  %v3898_v21 = vpop.f32.mrb[32].mxu1  ;;  %v1052_v22 = vpop.f32.mrb[33].mxu0 }
 0x12d   : > { %v1787_v20 = vsel %vm1524_vm10, %v1280_v1, %v1659_v11  ;;  %v3410_v23 = vpack.c.bf16 %v1723_v19, %v1722_v3  ;;  %vm1465_vm11 = vcmp.ge.f32.partialorder %v1045_v14, 0.0  ;;  %v1600_v25 = vmul.f32 %v4384_v8, %v1045_v14  ;;  %v1308_v26 = vpop.f32.mrb[33].mxu1  ;;  %v3835_v27 = vpop.f32.mrb[34].mxu0 }
 0x12e   : > { %v3570_v24 = vpack.c.bf16 %v1787_v20, %v1786_v9  ;;  %3679 = vst [vmem:[%s4405_s14 + $0x68] sm:$0xff] %v3415_v17   ;;  %3711 = vst [vmem:[%s4405_s14 + $0x168] sm:$0xff] %v3575_v18   ;;  %vm1529_vm12 = vcmp.ge.f32.partialorder %v1301_v15, 0.0  ;;  %v1664_v28 = vmul.f32 %v4384_v8, %v1301_v15  ;;  %v1037_v29 = vadd.f32 %v4379_v6, %v1036_v51  ;;  %v3899_v31 = vpop.f32.mrb[34].mxu1  ;;  %v4536_v32 = vpop.f32.mrb[35].mxu0 }
 0x12f   : > { %v1293_v30 = vadd.f32 %v4379_v6, %v1292_v54  ;;  %3678 = vst [vmem:[%s4405_s14 + $0x60] sm:$0xff] %v3410_v23   ;;  %v1728_v33 = vsel %vm1465_vm11, %v1045_v14, %v1600_v25  ;;  %v1048_v34 = vadd.f32 %v3831_v55, %v4379_v6  ;;  %v1304_v35 = vadd.f32 %v3895_v60, %v4379_v6  ;;  %v1311_v37 = vpop.f32.mrb[35].mxu1 }
 0x130   : > { %3710 = vst [vmem:[%s4405_s14 + $0x160] sm:$0xff] %v3570_v24   ;;  %v1040_v36 = vadd.f32 %v4379_v6, %v1039_v61  ;;  %v1792_v38 = vsel %vm1529_vm12, %v1301_v15, %v1664_v28  ;;  %vm1463_vm13 = vcmp.ge.f32.partialorder %v1037_v29, 0.0  ;;  %v1598_v39 = vmul.f32 %v4384_v8, %v1037_v29 }
 0x131   : > { %vm1527_vm14 = vcmp.ge.f32.partialorder %v1293_v30, 0.0  ;;  %v1662_v40 = vmul.f32 %v4384_v8, %v1293_v30  ;;  %vm1466_vm15 = vcmp.ge.f32.partialorder %v1048_v34, 0.0  ;;  %v1601_v41 = vmul.f32 %v4384_v8, %v1048_v34 }
 0x132   : > { %vm1530_vm0 = vcmp.ge.f32.partialorder %v1304_v35, 0.0  ;;  %v1726_v42 = vsel %vm1463_vm13, %v1037_v29, %v1598_v39  ;;  %v1665_v43 = vmul.f32 %v4384_v8, %v1304_v35  ;;  %vm1464_vm1 = vcmp.ge.f32.partialorder %v1040_v36, 0.0 }
 0x133   : > { %v1599_v44 = vmul.f32 %v4384_v8, %v1040_v36  ;;  %v1790_v45 = vsel %vm1527_vm14, %v1293_v30, %v1662_v40  ;;  %v1729_v46 = vsel %vm1466_vm15, %v1048_v34, %v1601_v41  ;;  %v1296_v47 = vadd.f32 %v4379_v6, %v1295_v2  ;;  %v3838_v49 = vpop.f32.mrb[36].mxu0 }
 0x134   : > { %v1061_v48 = vadd.f32 %v3834_v16, %v4379_v6  ;;  %v3425_v50 = vpack.c.bf16 %v1729_v46, %v1728_v33  ;;  %v1793_v51 = vsel %vm1530_vm0, %v1304_v35, %v1665_v43  ;;  %v1317_v53 = vadd.f32 %v3898_v21, %v4379_v6  ;;  %v3902_v54 = vpop.f32.mrb[36].mxu1  ;;  %v1068_v55 = vpop.f32.mrb[37].mxu0 }
 0x135   : > { %v1727_v52 = vsel %vm1464_vm1, %v1040_v36, %v1599_v44  ;;  %v3585_v56 = vpack.c.bf16 %v1793_v51, %v1792_v38  ;;  %vm1528_vm2 = vcmp.ge.f32.partialorder %v1296_v47, 0.0  ;;  %v1663_v58 = vmul.f32 %v4384_v8, %v1296_v47  ;;  %v4552_v59 = vpop.f32.mrb[37].mxu1  ;;  %v4554_v60 = vpop.f32.mrb[38].mxu0 }
 0x136   : > { %v3420_v57 = vpack.c.bf16 %v1727_v52, %v1726_v42  ;;  %3681 = vst [vmem:[%s4405_s14 + $0x78] sm:$0xff] %v3425_v50   ;;  %vm1469_vm3 = vcmp.ge.f32.partialorder %v1061_v48, 0.0  ;;  %v1604_v61 = vmul.f32 %v4384_v8, %v1061_v48  ;;  %vm1533_vm4 = vcmp.ge.f32.partialorder %v1317_v53, 0.0  ;;  %v4559_v63 = vpop.f32.mrb[38].mxu1  ;;  %v4561_v0 = vpop.f32.mrb[39].mxu0 }
 0x137   : > { %v1668_v62 = vmul.f32 %v4384_v8, %v1317_v53  ;;  %3713 = vst [vmem:[%s4405_s14 + $0x178] sm:$0xff] %v3585_v56   ;;  %v1791_v1 = vsel %vm1528_vm2, %v1296_v47, %v1663_v58  ;;  %v1053_v2 = vadd.f32 %v4379_v6, %v1052_v22  ;;  %v1309_v3 = vadd.f32 %v4379_v6, %v1308_v26  ;;  %v1327_v5 = vpop.f32.mrb[39].mxu1 }
 0x138   : > { %3680 = vst [vmem:[%s4405_s14 + $0x70] sm:$0xff] %v3420_v57   ;;  %v1064_v4 = vadd.f32 %v3835_v27, %v4379_v6  ;;  %v3580_v7 = vpack.c.bf16 %v1791_v1, %v1790_v45  ;;  %v1732_v9 = vsel %vm1469_vm3, %v1061_v48, %v1604_v61  ;;  %v1320_v11 = vadd.f32 %v3899_v31, %v4379_v6 }
 0x139   : > { %v1796_v10 = vsel %vm1533_vm4, %v1317_v53, %v1668_v62  ;;  %vm1467_vm5 = vcmp.ge.f32.partialorder %v1053_v2, 0.0  ;;  %v1602_v12 = vmul.f32 %v4384_v8, %v1053_v2  ;;  %vm1531_vm6 = vcmp.ge.f32.partialorder %v1309_v3, 0.0 }
 0x13a   : > { %v1666_v13 = vmul.f32 %v4384_v8, %v1309_v3  ;;  %3712 = vst [vmem:[%s4405_s14 + $0x170] sm:$0xff] %v3580_v7   ;;  %vm1470_vm7 = vcmp.ge.f32.partialorder %v1064_v4, 0.0  ;;  %v1605_v14 = vmul.f32 %v4384_v8, %v1064_v4  ;;  %vm1534_vm8 = vcmp.ge.f32.partialorder %v1320_v11, 0.0 }
 0x13b   : > { %v1669_v15 = vmul.f32 %v4384_v8, %v1320_v11  ;;  %v1730_v16 = vsel %vm1467_vm5, %v1053_v2, %v1602_v12  ;;  %v1056_v18 = vadd.f32 %v4379_v6, %v4536_v32  ;;  %v1312_v19 = vadd.f32 %v4379_v6, %v1311_v37  ;;  %v3842_v20 = vpop.f32.mrb[40].mxu0 }
 0x13c   : > { %v1794_v17 = vsel %vm1531_vm6, %v1309_v3, %v1666_v13  ;;  %v1733_v21 = vsel %vm1470_vm7, %v1064_v4, %v1605_v14  ;;  %v1077_v23 = vadd.f32 %v3838_v49, %v4379_v6  ;;  %v1333_v24 = vadd.f32 %v3902_v54, %v4379_v6  ;;  %v3906_v25 = vpop.f32.mrb[40].mxu1  ;;  %v4579_v26 = vpop.f32.mrb[41].mxu0 }
 0x13d   : > { %v1797_v22 = vsel %vm1534_vm8, %v1320_v11, %v1669_v15  ;;  %v3435_v27 = vpack.c.bf16 %v1733_v21, %v1732_v9  ;;  %vm1468_vm9 = vcmp.ge.f32.partialorder %v1056_v18, 0.0  ;;  %v1603_v29 = vmul.f32 %v4384_v8, %v1056_v18  ;;  %v4582_v30 = vpop.f32.mrb[41].mxu1  ;;  %v4584_v31 = vpop.f32.mrb[42].mxu0 }
 0x13e   : > { %v3595_v28 = vpack.c.bf16 %v1797_v22, %v1796_v10  ;;  %vm1532_vm10 = vcmp.ge.f32.partialorder %v1312_v19, 0.0  ;;  %v1667_v32 = vmul.f32 %v4384_v8, %v1312_v19  ;;  %vm1473_vm11 = vcmp.ge.f32.partialorder %v1077_v23, 0.0  ;;  %v4588_v34 = vpop.f32.mrb[42].mxu1  ;;  %v4590_v35 = vpop.f32.mrb[43].mxu0 }
 0x13f   : > { %v1608_v33 = vmul.f32 %v4384_v8, %v1077_v23  ;;  %3683 = vst [vmem:[%s4405_s14 + $0x88] sm:$0xff] %v3435_v27   ;;  %v1731_v36 = vsel %vm1468_vm9, %v1056_v18, %v1603_v29  ;;  %vm1537_vm12 = vcmp.ge.f32.partialorder %v1333_v24, 0.0  ;;  %v1672_v37 = vmul.f32 %v4384_v8, %v1333_v24  ;;  %v4596_v39 = vpop.f32.mrb[43].mxu1 }
 0x140   : > { %3715 = vst [vmem:[%s4405_s14 + $0x188] sm:$0xff] %v3595_v28   ;;  %v1069_v38 = vadd.f32 %v4379_v6, %v1068_v55  ;;  %v3430_v40 = vpack.c.bf16 %v1731_v36, %v1730_v16  ;;  %v1795_v41 = vsel %vm1532_vm10, %v1312_v19, %v1667_v32  ;;  %v1325_v43 = vadd.f32 %v4379_v6, %v4552_v59 }
 0x141   : > { %v1736_v42 = vsel %vm1473_vm11, %v1077_v23, %v1608_v33  ;;  %v3590_v44 = vpack.c.bf16 %v1795_v41, %v1794_v17  ;;  %v1800_v45 = vsel %vm1537_vm12, %v1333_v24, %v1672_v37  ;;  %v1080_v48 = vadd.f32 %v4554_v60, %v4379_v6  ;;  %v4660_v24 = vld [vmem:[%s5081_s2] ss:$0 sm:$0xff] }
 0x142   : > { %vm1471_vm13 = vcmp.ge.f32.partialorder %v1069_v38, 0.0  ;;  %v1606_v46 = vmul.f32 %v4384_v8, %v1069_v38  ;;  %3682 = vst [vmem:[%s4405_s14 + $0x80] sm:$0xff] %v3430_v40   ;;  %vm1535_vm14 = vcmp.ge.f32.partialorder %v1325_v43, 0.0  ;;  %v1670_v47 = vmul.f32 %v4384_v8, %v1325_v43 }
 0x143   : > { %v1336_v49 = vadd.f32 %v4559_v63, %v4379_v6  ;;  %3714 = vst [vmem:[%s4405_s14 + $0x180] sm:$0xff] %v3590_v44   ;;  %v1072_v51 = vadd.f32 %v4379_v6, %v4561_v0  ;;  %v1328_v52 = vadd.f32 %v4379_v6, %v1327_v5  ;;  %v1093_v53 = vadd.f32 %v3842_v20, %v4379_v6  ;;  %v4612_v54 = vpop.f32.mrb[44].mxu0 }
 0x144   : > { %v1734_v50 = vsel %vm1471_vm13, %v1069_v38, %v1606_v46  ;;  %v1798_v55 = vsel %vm1535_vm14, %v1325_v43, %v1670_v47  ;;  %vm1474_vm15 = vcmp.ge.f32.partialorder %v1080_v48, 0.0  ;;  %v1609_v56 = vmul.f32 %v4384_v8, %v1080_v48  ;;  %v4615_v57 = vpop.f32.mrb[44].mxu1  ;;  %v4617_v58 = vpop.f32.mrb[45].mxu0 }
 0x145   : > { %vm1538_vm0 = vcmp.ge.f32.partialorder %v1336_v49, 0.0  ;;  %v1673_v59 = vmul.f32 %v4384_v8, %v1336_v49  ;;  %vm1472_vm1 = vcmp.ge.f32.partialorder %v1072_v51, 0.0  ;;  %v1607_v60 = vmul.f32 %v4384_v8, %v1072_v51  ;;  %v4621_v61 = vpop.f32.mrb[45].mxu1  ;;  %v4623_v62 = vpop.f32.mrb[46].mxu0 }
 0x146   : > { %vm1536_vm2 = vcmp.ge.f32.partialorder %v1328_v52, 0.0  ;;  %v1737_v63 = vsel %vm1474_vm15, %v1080_v48, %v1609_v56  ;;  %v1671_v0 = vmul.f32 %v4384_v8, %v1328_v52  ;;  %vm1477_vm3 = vcmp.ge.f32.partialorder %v1093_v53, 0.0  ;;  %v4627_v2 = vpop.f32.mrb[46].mxu1  ;;  %v4629_v3 = vpop.f32.mrb[47].mxu0 }
 0x147   : > { %v1612_v1 = vmul.f32 %v4384_v8, %v1093_v53  ;;  %v3445_v4 = vpack.c.bf16 %v1737_v63, %v1736_v42  ;;  %v1801_v5 = vsel %vm1538_vm0, %v1336_v49, %v1673_v59  ;;  %v1735_v7 = vsel %vm1472_vm1, %v1072_v51, %v1607_v60  ;;  %v4633_v10 = vpop.f32.mrb[47].mxu1 }
 0x148   : > { %v1349_v9 = vadd.f32 %v3906_v25, %v4379_v6  ;;  %v3605_v11 = vpack.c.bf16 %v1801_v5, %v1800_v45  ;;  %v3440_v12 = vpack.c.bf16 %v1735_v7, %v1734_v50  ;;  %v1799_v13 = vsel %vm1536_vm2, %v1328_v52, %v1671_v0 }
 0x149   : > { %v1740_v14 = vsel %vm1477_vm3, %v1093_v53, %v1612_v1  ;;  %3685 = vst [vmem:[%s4405_s14 + $0x98] sm:$0xff] %v3445_v4   ;;  %v3600_v15 = vpack.c.bf16 %v1799_v13, %v1798_v55  ;;  %v1085_v17 = vadd.f32 %v4379_v6, %v4579_v26  ;;  %v1341_v18 = vadd.f32 %v4379_v6, %v4582_v30 }
 0x14a   : > { %vm1541_vm4 = vcmp.ge.f32.partialorder %v1349_v9, 0.0  ;;  %v1676_v16 = vmul.f32 %v4384_v8, %v1349_v9  ;;  %3717 = vst [vmem:[%s4405_s14 + $0x198] sm:$0xff] %v3605_v11   ;;  %3684 = vst [vmem:[%s4405_s14 + $0x90] sm:$0xff] %v3440_v12   ;;  %v1096_v19 = vadd.f32 %v4584_v31, %v4379_v6  ;;  %v1352_v20 = vadd.f32 %v4588_v34, %v4379_v6  ;;  %v4654_v8 = vld [vmem:[%s5082_s3] ss:$0 sm:$0xff] }
 0x14b   : > { %v1088_v21 = vadd.f32 %v4379_v6, %v4590_v35  ;;  %3716 = vst [vmem:[%s4405_s14 + $0x190] sm:$0xff] %v3600_v15   ;;  %vm1475_vm5 = vcmp.ge.f32.partialorder %v1085_v17, 0.0  ;;  %v1610_v23 = vmul.f32 %v4654_v8, %v1085_v17  ;;  %v1344_v25 = vadd.f32 %v4660_v24, %v4596_v39  ;;  %v4664_v26 = vpop.f32.mrb[48].mxu0 }
 0x14c   : > { %v1804_v22 = vsel %vm1541_vm4, %v1349_v9, %v1676_v16  ;;  %vm1539_vm6 = vcmp.ge.f32.partialorder %v1341_v18, 0.0  ;;  %v1674_v6 = vmul.f32 %v4654_v8, %v1341_v18  ;;  %vm1478_vm7 = vcmp.ge.f32.partialorder %v1096_v19, 0.0  ;;  %v4668_v28 = vpop.f32.mrb[48].mxu1  ;;  %v4670_v29 = vpop.f32.mrb[49].mxu0 }
 0x14d   : > { %v1613_v27 = vmul.f32 %v4654_v8, %v1096_v19  ;;  %v1738_v30 = vsel %vm1475_vm5, %v1085_v17, %v1610_v23  ;;  %vm1542_vm8 = vcmp.ge.f32.partialorder %v1352_v20, 0.0  ;;  %v1677_v31 = vmul.f32 %v4654_v8, %v1352_v20  ;;  %v4673_v32 = vpop.f32.mrb[49].mxu1  ;;  %v4675_v33 = vpop.f32.mrb[50].mxu0 }
 0x14e   : > { %vm1476_vm9 = vcmp.ge.f32.partialorder %v1088_v21, 0.0  ;;  %v1802_v34 = vsel %vm1539_vm6, %v1341_v18, %v1674_v6  ;;  %v1611_v36 = vmul.f32 %v4654_v8, %v1088_v21  ;;  %vm1540_vm10 = vcmp.ge.f32.partialorder %v1344_v25, 0.0  ;;  %v4678_v37 = vpop.f32.mrb[50].mxu1  ;;  %v4680_v38 = vpop.f32.mrb[51].mxu0 }
 0x14f   : > { %v1741_v35 = vsel %vm1478_vm7, %v1096_v19, %v1613_v27  ;;  %v1805_v40 = vsel %vm1542_vm8, %v1352_v20, %v1677_v31  ;;  %v1675_v41 = vmul.f32 %v4654_v8, %v1344_v25  ;;  %v1109_v42 = vadd.f32 %v4660_v24, %v4612_v54  ;;  %v4685_v43 = vpop.f32.mrb[51].mxu1 }
 0x150   : > { %v3455_v39 = vpack.c.bf16 %v1741_v35, %v1740_v14  ;;  %v3615_v44 = vpack.c.bf16 %v1805_v40, %v1804_v22  ;;  %v1739_v45 = vsel %vm1476_vm9, %v1088_v21, %v1611_v36  ;;  %v1365_v46 = vadd.f32 %v4660_v24, %v4615_v57 }
 0x151   : > { %v1101_v47 = vadd.f32 %v4660_v24, %v4617_v58  ;;  %v3450_v48 = vpack.c.bf16 %v1739_v45, %v1738_v30  ;;  %v1803_v49 = vsel %vm1540_vm10, %v1344_v25, %v1675_v41  ;;  %vm1481_vm11 = vcmp.ge.f32.partialorder %v1109_v42, 0.0 }
 0x152   : > { %3687 = vst [vmem:[%s4405_s14 + $0xa8] sm:$0xff] %v3455_v39   ;;  %v1616_v50 = vmul.f32 %v4654_v8, %v1109_v42  ;;  %3719 = vst [vmem:[%s4405_s14 + $0x1a8] sm:$0xff] %v3615_v44   ;;  %v3610_v51 = vpack.c.bf16 %v1803_v49, %v1802_v34  ;;  %vm1545_vm12 = vcmp.ge.f32.partialorder %v1365_v46, 0.0  ;;  %v1680_v52 = vmul.f32 %v4654_v8, %v1365_v46 }
 0x153   : > { %vm1479_vm13 = vcmp.ge.f32.partialorder %v1101_v47, 0.0  ;;  %3686 = vst [vmem:[%s4405_s14 + $0xa0] sm:$0xff] %v3450_v48   ;;  %v1614_v54 = vmul.f32 %v4654_v8, %v1101_v47  ;;  %v1357_v55 = vadd.f32 %v4660_v24, %v4621_v61  ;;  %v1112_v56 = vadd.f32 %v4660_v24, %v4623_v62  ;;  %v4701_v57 = vpop.f32.mrb[52].mxu0 }
 0x154   : > { %v1744_v53 = vsel %vm1481_vm11, %v1109_v42, %v1616_v50  ;;  %3718 = vst [vmem:[%s4405_s14 + $0x1a0] sm:$0xff] %v3610_v51   ;;  %v1808_v58 = vsel %vm1545_vm12, %v1365_v46, %v1680_v52  ;;  %v1368_v59 = vadd.f32 %v4660_v24, %v4627_v2  ;;  %v1104_v60 = vadd.f32 %v4660_v24, %v4629_v3  ;;  %v4710_v0 = vpop.f32.mrb[52].mxu1  ;;  %v4712_v1 = vpop.f32.mrb[53].mxu0 }
 0x155   : > { %v1360_v63 = vadd.f32 %v4660_v24, %v4633_v10  ;;  %v1742_v61 = vsel %vm1479_vm13, %v1101_v47, %v1614_v54  ;;  %vm1543_vm14 = vcmp.ge.f32.partialorder %v1357_v55, 0.0  ;;  %v1678_v62 = vmul.f32 %v4654_v8, %v1357_v55  ;;  %v4715_v4 = vpop.f32.mrb[53].mxu1  ;;  %v4717_v5 = vpop.f32.mrb[54].mxu0 }
 0x156   : > { %vm1482_vm15 = vcmp.ge.f32.partialorder %v1112_v56, 0.0  ;;  %v1617_v2 = vmul.f32 %v4654_v8, %v1112_v56  ;;  %vm1546_vm0 = vcmp.ge.f32.partialorder %v1368_v59, 0.0  ;;  %v1681_v3 = vmul.f32 %v4654_v8, %v1368_v59  ;;  %v4721_v7 = vpop.f32.mrb[54].mxu1  ;;  %v4723_v9 = vpop.f32.mrb[55].mxu0 }
 0x157   : > { %vm1480_vm1 = vcmp.ge.f32.partialorder %v1104_v60, 0.0  ;;  %v1806_v10 = vsel %vm1543_vm14, %v1357_v55, %v1678_v62  ;;  %v1615_v11 = vmul.f32 %v4654_v8, %v1104_v60  ;;  %vm1544_vm2 = vcmp.ge.f32.partialorder %v1360_v63, 0.0  ;;  %v4727_v13 = vpop.f32.mrb[55].mxu1 }
 0x158   : > { %v1679_v12 = vmul.f32 %v4654_v8, %v1360_v63  ;;  %v1745_v14 = vsel %vm1482_vm15, %v1112_v56, %v1617_v2  ;;  %v1809_v15 = vsel %vm1546_vm0, %v1368_v59, %v1681_v3  ;;  %v1125_v16 = vadd.f32 %v4660_v24, %v4664_v26 }
 0x159   : > { %v1381_v17 = vadd.f32 %v4660_v24, %v4668_v28  ;;  %v3465_v18 = vpack.c.bf16 %v1745_v14, %v1744_v53  ;;  %v3625_v19 = vpack.c.bf16 %v1809_v15, %v1808_v58  ;;  %v1743_v20 = vsel %vm1480_vm1, %v1104_v60, %v1615_v11 }
 0x15a   : > { %v1807_v21 = vsel %vm1544_vm2, %v1360_v63, %v1679_v12  ;;  %v3460_v22 = vpack.c.bf16 %v1743_v20, %v1742_v61  ;;  %vm1485_vm3 = vcmp.ge.f32.partialorder %v1125_v16, 0.0  ;;  %v1620_v25 = vmul.f32 %v4654_v8, %v1125_v16 }
 0x15b   : > { %v3620_v23 = vpack.c.bf16 %v1807_v21, %v1806_v10  ;;  %3689 = vst [vmem:[%s4405_s14 + $0xb8] sm:$0xff] %v3465_v18   ;;  %3721 = vst [vmem:[%s4405_s14 + $0x1b8] sm:$0xff] %v3625_v19   ;;  %vm1549_vm4 = vcmp.ge.f32.partialorder %v1381_v17, 0.0  ;;  %v1684_v6 = vmul.f32 %v4654_v8, %v1381_v17  ;;  %v1117_v26 = vadd.f32 %v4660_v24, %v4670_v29  ;;  %v4741_v28 = vpop.f32.mrb[56].mxu0 }
 0x15c   : > { %v1373_v27 = vadd.f32 %v4660_v24, %v4673_v32  ;;  %3688 = vst [vmem:[%s4405_s14 + $0xb0] sm:$0xff] %v3460_v22   ;;  %v1748_v30 = vsel %vm1485_vm3, %v1125_v16, %v1620_v25  ;;  %v1128_v31 = vadd.f32 %v4660_v24, %v4675_v33  ;;  %v1384_v34 = vadd.f32 %v4660_v24, %v4678_v37  ;;  %v4751_v36 = vpop.f32.mrb[56].mxu1  ;;  %v4753_v29 = vpop.f32.mrb[57].mxu0 }
 0x15d   : > { %3720 = vst [vmem:[%s4405_s14 + $0x1b0] sm:$0xff] %v3620_v23   ;;  %v1120_v35 = vadd.f32 %v4660_v24, %v4680_v38  ;;  %v1812_v39 = vsel %vm1549_vm4, %v1381_v17, %v1684_v6  ;;  %vm1483_vm5 = vcmp.ge.f32.partialorder %v1117_v26, 0.0  ;;  %v1618_v32 = vmul.f32 %v4654_v8, %v1117_v26  ;;  %v4756_v40 = vpop.f32.mrb[57].mxu1  ;;  %v4758_v41 = vpop.f32.mrb[58].mxu0 }
 0x15e   : > { %vm1547_vm6 = vcmp.ge.f32.partialorder %v1373_v27, 0.0  ;;  %v1682_v33 = vmul.f32 %v4654_v8, %v1373_v27  ;;  %vm1486_vm7 = vcmp.ge.f32.partialorder %v1128_v31, 0.0  ;;  %v1621_v37 = vmul.f32 %v4654_v8, %v1128_v31  ;;  %v4762_v38 = vpop.f32.mrb[58].mxu1  ;;  %v4764_v42 = vpop.f32.mrb[59].mxu0 }
 0x15f   : > { %vm1550_vm8 = vcmp.ge.f32.partialorder %v1384_v34, 0.0  ;;  %v1746_v44 = vsel %vm1483_vm5, %v1117_v26, %v1618_v32  ;;  %v1685_v45 = vmul.f32 %v4654_v8, %v1384_v34  ;;  %vm1484_vm9 = vcmp.ge.f32.partialorder %v1120_v35, 0.0  ;;  %v4768_v47 = vpop.f32.mrb[59].mxu1 }
 0x160   : > { %v1619_v46 = vmul.f32 %v4654_v8, %v1120_v35  ;;  %v1810_v48 = vsel %vm1547_vm6, %v1373_v27, %v1682_v33  ;;  %v1749_v49 = vsel %vm1486_vm7, %v1128_v31, %v1621_v37  ;;  %v1376_v50 = vadd.f32 %v4660_v24, %v4685_v43 }
 0x161   : > { %v1141_v51 = vadd.f32 %v4660_v24, %v4701_v57  ;;  %v3475_v52 = vpack.c.bf16 %v1749_v49, %v1748_v30  ;;  %v1813_v53 = vsel %vm1550_vm8, %v1384_v34, %v1685_v45  ;;  %v1397_v55 = vadd.f32 %v4660_v24, %v4710_v0 }
 0x162   : > { %v1747_v54 = vsel %vm1484_vm9, %v1120_v35, %v1619_v46  ;;  %v3635_v56 = vpack.c.bf16 %v1813_v53, %v1812_v39  ;;  %vm1548_vm10 = vcmp.ge.f32.partialorder %v1376_v50, 0.0  ;;  %v1683_v59 = vmul.f32 %v4654_v8, %v1376_v50 }
 0x163   : > { %v3470_v58 = vpack.c.bf16 %v1747_v54, %v1746_v44  ;;  %3691 = vst [vmem:[%s4405_s14 + $0xc8] sm:$0xff] %v3475_v52   ;;  %vm1489_vm11 = vcmp.ge.f32.partialorder %v1141_v51, 0.0  ;;  %v1624_v43 = vmul.f32 %v4654_v8, %v1141_v51  ;;  %vm1553_vm12 = vcmp.ge.f32.partialorder %v1397_v55, 0.0  ;;  %v4780_v57 = vpop.f32.mrb[60].mxu0 }
 0x164   : > { %v1688_v60 = vmul.f32 %v4654_v8, %v1397_v55  ;;  %3723 = vst [vmem:[%s4405_s14 + $0x1c8] sm:$0xff] %v3635_v56   ;;  %v1811_v63 = vsel %vm1548_vm10, %v1376_v50, %v1683_v59  ;;  %v1133_v0 = vadd.f32 %v4660_v24, %v4712_v1  ;;  %v1389_v61 = vadd.f32 %v4660_v24, %v4715_v4  ;;  %v4790_v2 = vpop.f32.mrb[60].mxu1  ;;  %v4792_v3 = vpop.f32.mrb[61].mxu0 }
 0x165   : > { %3690 = vst [vmem:[%s4405_s14 + $0xc0] sm:$0xff] %v3470_v58   ;;  %v1144_v62 = vadd.f32 %v4660_v24, %v4717_v5  ;;  %v3630_v10 = vpack.c.bf16 %v1811_v63, %v1810_v48  ;;  %v1752_v11 = vsel %vm1489_vm11, %v1141_v51, %v1624_v43  ;;  %v1400_v12 = vadd.f32 %v4660_v24, %v4721_v7  ;;  %v4796_v14 = vpop.f32.mrb[61].mxu1  ;;  %v4798_v15 = vpop.f32.mrb[62].mxu0 }
 0x166   : > { %v1816_v1 = vsel %vm1553_vm12, %v1397_v55, %v1688_v60  ;;  %vm1487_vm13 = vcmp.ge.f32.partialorder %v1133_v0, 0.0  ;;  %v1622_v4 = vmul.f32 %v4654_v8, %v1133_v0  ;;  %vm1551_vm14 = vcmp.ge.f32.partialorder %v1389_v61, 0.0  ;;  %v4802_v5 = vpop.f32.mrb[62].mxu1  ;;  %v4804_v16 = vpop.f32.mrb[63].mxu0 }
 0x167   : > { %3722 = vst [vmem:[%s4405_s14 + $0x1c0] sm:$0xff] %v3630_v10   ;;  %vm1490_vm15 = vcmp.ge.f32.partialorder %v1144_v62, 0.0  ;;  %v1625_v17 = vmul.f32 %v4654_v8, %v1144_v62  ;;  %vm1554_vm0 = vcmp.ge.f32.partialorder %v1400_v12, 0.0  ;;  %v1689_v7 = vmul.f32 %v4654_v8, %v1400_v12  ;;  %v4809_v18 = vpop.f32.mrb[63].mxu1 }
 0x168   : > { %v1750_v19 = vsel %vm1487_vm13, %v1133_v0, %v1622_v4  ;;  %v1686_v20 = vmul.f32 %v4654_v8, %v1389_v61  ;;  %v1136_v21 = vadd.f32 %v4660_v24, %v4723_v9  ;;  %v1392_v22 = vadd.f32 %v4660_v24, %v4727_v13 }
 0x169   : > { %v1753_v23 = vsel %vm1490_vm15, %v1144_v62, %v1625_v17  ;;  %v1817_v25 = vsel %vm1554_vm0, %v1400_v12, %v1689_v7  ;;  %v1157_v6 = vadd.f32 %v4660_v24, %v4741_v28  ;;  %v1413_v26 = vadd.f32 %v4660_v24, %v4751_v36 }
 0x16a   : > { %v3485_v27 = vpack.c.bf16 %v1753_v23, %v1752_v11  ;;  %v3645_v30 = vpack.c.bf16 %v1817_v25, %v1816_v1  ;;  %vm1488_vm1 = vcmp.ge.f32.partialorder %v1136_v21, 0.0  ;;  %v1623_v31 = vmul.f32 %v4654_v8, %v1136_v21 }
 0x16b   : > { %vm1552_vm2 = vcmp.ge.f32.partialorder %v1392_v22, 0.0  ;;  %v1687_v34 = vmul.f32 %v4654_v8, %v1392_v22  ;;  %vm1493_vm3 = vcmp.ge.f32.partialorder %v1157_v6, 0.0  ;;  %v1628_v9 = vmul.f32 %v4654_v8, %v1157_v6 }
 0x16c   : > { %3693 = vst [vmem:[%s4405_s14 + $0xd8] sm:$0xff] %v3485_v27   ;;  %3725 = vst [vmem:[%s4405_s14 + $0x1d8] sm:$0xff] %v3645_v30   ;;  %v1751_v13 = vsel %vm1488_vm1, %v1136_v21, %v1623_v31  ;;  %vm1557_vm4 = vcmp.ge.f32.partialorder %v1413_v26, 0.0  ;;  %v1692_v28 = vmul.f32 %v4654_v8, %v1413_v26  ;;  %v1149_v35 = vadd.f32 %v4660_v24, %v4753_v29 }
 0x16d   : > { %v1814_v36 = vsel %vm1551_vm14, %v1389_v61, %v1686_v20  ;;  %v3480_v39 = vpack.c.bf16 %v1751_v13, %v1750_v19  ;;  %v1815_v32 = vsel %vm1552_vm2, %v1392_v22, %v1687_v34  ;;  %v1405_v33 = vadd.f32 %v4660_v24, %v4756_v40 }
 0x16e   : > { %v3640_v37 = vpack.c.bf16 %v1815_v32, %v1814_v36  ;;  %v1756_v44 = vsel %vm1493_vm3, %v1157_v6, %v1628_v9  ;;  %vm1491_vm5 = vcmp.ge.f32.partialorder %v1149_v35, 0.0  ;;  %v1626_v45 = vmul.f32 %v4654_v8, %v1149_v35 }
 0x16f   : > { %3692 = vst [vmem:[%s4405_s14 + $0xd0] sm:$0xff] %v3480_v39   ;;  %v1820_v46 = vsel %vm1557_vm4, %v1413_v26, %v1692_v28  ;;  %v1690_v48 = vmul.f32 %v4654_v8, %v1405_v33  ;;  %v1160_v49 = vadd.f32 %v4660_v24, %v4758_v41  ;;  %v1416_v29 = vadd.f32 %v4660_v24, %v4762_v38 }
 0x170   : > { %3724 = vst [vmem:[%s4405_s14 + $0x1d0] sm:$0xff] %v3640_v37   ;;  %vm1555_vm6 = vcmp.ge.f32.partialorder %v1405_v33, 0.0  ;;  %v1152_v40 = vadd.f32 %v4660_v24, %v4764_v42  ;;  %v1408_v50 = vadd.f32 %v4660_v24, %v4768_v47  ;;  %v1173_v51 = vadd.f32 %v4660_v24, %v4780_v57 }
 0x171   : > { %v1754_v52 = vsel %vm1491_vm5, %v1149_v35, %v1626_v45  ;;  %vm1494_vm7 = vcmp.ge.f32.partialorder %v1160_v49, 0.0  ;;  %v1629_v53 = vmul.f32 %v4654_v8, %v1160_v49  ;;  %vm1558_vm8 = vcmp.ge.f32.partialorder %v1416_v29, 0.0 }
 0x172   : > { %v1693_v41 = vmul.f32 %v4654_v8, %v1416_v29  ;;  %vm1492_vm9 = vcmp.ge.f32.partialorder %v1152_v40, 0.0  ;;  %v1627_v38 = vmul.f32 %v4654_v8, %v1152_v40  ;;  %vm1556_vm10 = vcmp.ge.f32.partialorder %v1408_v50, 0.0 }
 0x173   : > { %v1818_v42 = vsel %vm1555_vm6, %v1405_v33, %v1690_v48  ;;  %v1757_v54 = vsel %vm1494_vm7, %v1160_v49, %v1629_v53  ;;  %v1691_v47 = vmul.f32 %v4654_v8, %v1408_v50  ;;  %v1632_v55 = vmul.f32 %v4654_v8, %v1173_v51 }
 0x174   : > { %v3495_v56 = vpack.c.bf16 %v1757_v54, %v1756_v44  ;;  %v1821_v58 = vsel %vm1558_vm8, %v1416_v29, %v1693_v41  ;;  %v1755_v59 = vsel %vm1492_vm9, %v1152_v40, %v1627_v38  ;;  %v1429_v43 = vadd.f32 %v4660_v24, %v4790_v2 }
 0x175   : > { %v3655_v60 = vpack.c.bf16 %v1821_v58, %v1820_v46  ;;  %v3490_v57 = vpack.c.bf16 %v1755_v59, %v1754_v52  ;;  %v1819_v63 = vsel %vm1556_vm10, %v1408_v50, %v1691_v47  ;;  %vm1497_vm11 = vcmp.ge.f32.partialorder %v1173_v51, 0.0 }
 0x176   : > { %3695 = vst [vmem:[%s4405_s14 + $0xe8] sm:$0xff] %v3495_v56   ;;  %v3650_v0 = vpack.c.bf16 %v1819_v63, %v1818_v42  ;;  %v1165_v61 = vadd.f32 %v4660_v24, %v4792_v3  ;;  %v1421_v62 = vadd.f32 %v4660_v24, %v4796_v14  ;;  %v1176_v10 = vadd.f32 %v4660_v24, %v4798_v15 }
 0x177   : > { %3727 = vst [vmem:[%s4405_s14 + $0x1e8] sm:$0xff] %v3655_v60   ;;  %3694 = vst [vmem:[%s4405_s14 + $0xe0] sm:$0xff] %v3490_v57   ;;  %v1432_v2 = vadd.f32 %v4660_v24, %v4802_v5  ;;  %v1168_v11 = vadd.f32 %v4660_v24, %v4804_v16  ;;  %v1760_v12 = vsel %vm1497_vm11, %v1173_v51, %v1632_v55  ;;  %vm1561_vm12 = vcmp.ge.f32.partialorder %v1429_v43, 0.0 }
 0x178   : > { %3726 = vst [vmem:[%s4405_s14 + $0x1e0] sm:$0xff] %v3650_v0   ;;  %v1696_v1 = vmul.f32 %v4654_v8, %v1429_v43  ;;  %v1424_v3 = vadd.f32 %v4660_v24, %v4809_v18  ;;  %vm1495_vm13 = vcmp.ge.f32.partialorder %v1165_v61, 0.0  ;;  %v1630_v14 = vmul.f32 %v4654_v8, %v1165_v61 }
 0x179   : > { %vm1498_vm14 = vcmp.ge.f32.partialorder %v1176_v10, 0.0  ;;  %v1633_v15 = vmul.f32 %v4654_v8, %v1176_v10  ;;  %v1694_v4 = vmul.f32 %v4654_v8, %v1421_v62  ;;  %vm1562_vm15 = vcmp.ge.f32.partialorder %v1432_v2, 0.0 }
 0x17a   : > { %v1697_v5 = vmul.f32 %v4654_v8, %v1432_v2  ;;  %vm1496_vm0 = vcmp.ge.f32.partialorder %v1168_v11, 0.0  ;;  %vm1559_vm1 = vcmp.ge.f32.partialorder %v1421_v62, 0.0  ;;  %v1631_v17 = vmul.f32 %v4654_v8, %v1168_v11  ;;  %2472 = sbr.rel (!%p4228_p4) target bundleno = 476 (0x1dc), region = 40 }
 0x17b   : > { %v1761_v16 = vsel %vm1498_vm14, %v1176_v10, %v1633_v15  ;;  %vm1560_vm2 = vcmp.ge.f32.partialorder %v1424_v3, 0.0  ;;  %v1824_v24 = vsel %vm1561_vm12, %v1429_v43, %v1696_v1  ;;  %v1695_v19 = vmul.f32 %v4654_v8, %v1424_v3 }
 0x17c   : > { %v3505_v7 = vpack.c.bf16 %v1761_v16, %v1760_v12  ;;  %v1825_v18 = vsel %vm1562_vm15, %v1432_v2, %v1697_v5  ;;  %v1758_v20 = vsel %vm1495_vm13, %v1165_v61, %v1630_v14  ;;  %v1759_v22 = vsel %vm1496_vm0, %v1168_v11, %v1631_v17 }
 0x17d   : > { %v3665_v21 = vpack.c.bf16 %v1825_v18, %v1824_v24  ;;  %v1822_v23 = vsel %vm1559_vm1, %v1421_v62, %v1694_v4  ;;  %v3500_v25 = vpack.c.bf16 %v1759_v22, %v1758_v20  ;;  %v1823_v6 = vsel %vm1560_vm2, %v1424_v3, %v1695_v19 }
 0x17e   : > { %3697 = vst [vmem:[%s4405_s14 + $0xf8] sm:$0xff] %v3505_v7   ;;  %v3660_v26 = vpack.c.bf16 %v1823_v6, %v1822_v23 }
 0x17f   : > { %3729 = vst [vmem:[%s4405_s14 + $0x1f8] sm:$0xff] %v3665_v21   ;;  %3696 = vst [vmem:[%s4405_s14 + $0xf0] sm:$0xff] %v3500_v25  }
 0x180   : > { %3728 = vst [vmem:[%s4405_s14 + $0x1f0] sm:$0xff] %v3660_v26  }
 0x181   : > { %s5092_s24 = smov (!%p2475_p8, %s2474_s24), 128 }
 0x182   : > { %s3201_s30 = sshll.u32 %s5092_s24, 6 }
 0x183   : > { %p3204_p9 = scmp.eq.s32.totalorder %s3201_s30, 0 }
 0x184   : > { %s4893_s5 = sshrl.u32 (!%p3204_p9), %s5092_s24, 6 }
 0x185   : > { %2483 = sbr.rel (%p3204_p9) target bundleno = 476 (0x1dc), region = 44  ;;  %p3205_p10 = scmp.le.s32.totalorder (!%p3204_p9), %s4893_s5, 0 }
 0x18c   : > { %2888 = sbr.rel (%p3205_p10) target bundleno = 455 (0x1c7), region = 116  ;;  %s5085_s18 = smov (!%p3205_p10), %s4887_s29 }
 0x18d   : > { %s5086_s23 = smov (!%p3205_p10), %s4405_s14  ;;  %s4902_s28 = smov (!%p3205_p10), 0  }
 0x18e   : > { %s4904_s6 = smov (!%p3205_p10), 0  }
 0x193 LB: >> { %v2499_v8 = vld [vmem:[%s4151_s23] sm:$0xf]  ;;  %v2501_v27 = vld [vmem:[%s4151_s23 + $0x4] sm:$0xf]  ;;  %v2503_v30 = vld [vmem:[%s4151_s23 + $0x8] sm:$0xf]  ;;  %s4159_s6 = sphi %s4904_s6, %s2493_s6   ;;  %s4155_s28 = sphi %s4902_s28, %s5087_s28   ;;  %s4151_s23 = sphi %s5086_s23, %s2632_s23   ;;  %s4147_s18 = sphi %s5085_s18, %s2633_s18  }
 0x194   : >> { %2500 = vst [vmem:[%s4147_s18] sm:$0xf] %v2499_v8  ;;  %2502 = vst [vmem:[%s4147_s18 + $0x4] sm:$0xf] %v2501_v27  ;;  %v2505_v31 = vld [vmem:[%s4151_s23 + $0xc] sm:$0xf]  ;;  %s2627_s7 = sadd.s32 1, %s4155_s28 }
 0x195   : >> { %2504 = vst [vmem:[%s4147_s18 + $0x8] sm:$0xf] %v2503_v30  ;;  %v2507_v34 = vld [vmem:[%s4151_s23 + $0x10] sm:$0xf]  ;;  %v2509_v9 = vld [vmem:[%s4151_s23 + $0x14] sm:$0xf]  ;;  %p2628_p11 = scmp.ge.s32.totalorder %s2627_s7, %s4893_s5 }
 0x196   : >> { %2506 = vst [vmem:[%s4147_s18 + $0xc] sm:$0xf] %v2505_v31  ;;  %2508 = vst [vmem:[%s4147_s18 + $0x10] sm:$0xf] %v2507_v34  ;;  %v2511_v13 = vld [vmem:[%s4151_s23 + $0x18] sm:$0xf] }
 0x197   : >> { %2510 = vst [vmem:[%s4147_s18 + $0x14] sm:$0xf] %v2509_v9  ;;  %v2513_v28 = vld [vmem:[%s4151_s23 + $0x1c] sm:$0xf]  ;;  %v2515_v35 = vld [vmem:[%s4151_s23 + $0x20] sm:$0xf] }
 0x198   : >> { %2512 = vst [vmem:[%s4147_s18 + $0x18] sm:$0xf] %v2511_v13  ;;  %2514 = vst [vmem:[%s4147_s18 + $0x1c] sm:$0xf] %v2513_v28  ;;  %v2517_v36 = vld [vmem:[%s4151_s23 + $0x24] sm:$0xf] }
 0x199   : >> { %2516 = vst [vmem:[%s4147_s18 + $0x20] sm:$0xf] %v2515_v35  ;;  %v2519_v39 = vld [vmem:[%s4151_s23 + $0x28] sm:$0xf]  ;;  %v2521_v32 = vld [vmem:[%s4151_s23 + $0x2c] sm:$0xf] }
 0x19a   : >> { %2518 = vst [vmem:[%s4147_s18 + $0x24] sm:$0xf] %v2517_v36  ;;  %2520 = vst [vmem:[%s4147_s18 + $0x28] sm:$0xf] %v2519_v39  ;;  %v2523_v33 = vld [vmem:[%s4151_s23 + $0x30] sm:$0xf] }
 0x19b   : >> { %2522 = vst [vmem:[%s4147_s18 + $0x2c] sm:$0xf] %v2521_v32  ;;  %v2525_v37 = vld [vmem:[%s4151_s23 + $0x34] sm:$0xf]  ;;  %v2527_v44 = vld [vmem:[%s4151_s23 + $0x38] sm:$0xf] }
 0x19c   : >> { %2524 = vst [vmem:[%s4147_s18 + $0x30] sm:$0xf] %v2523_v33  ;;  %2526 = vst [vmem:[%s4147_s18 + $0x34] sm:$0xf] %v2525_v37  ;;  %v2529_v45 = vld [vmem:[%s4151_s23 + $0x3c] sm:$0xf] }
 0x19d   : >> { %2528 = vst [vmem:[%s4147_s18 + $0x38] sm:$0xf] %v2527_v44  ;;  %v2531_v46 = vld [vmem:[%s4151_s23 + $0x40] sm:$0xf]  ;;  %v2533_v48 = vld [vmem:[%s4151_s23 + $0x44] sm:$0xf] }
 0x19e   : >> { %2530 = vst [vmem:[%s4147_s18 + $0x3c] sm:$0xf] %v2529_v45  ;;  %2532 = vst [vmem:[%s4147_s18 + $0x40] sm:$0xf] %v2531_v46  ;;  %v2535_v49 = vld [vmem:[%s4151_s23 + $0x48] sm:$0xf] }
 0x19f   : >> { %2534 = vst [vmem:[%s4147_s18 + $0x44] sm:$0xf] %v2533_v48  ;;  %v2537_v29 = vld [vmem:[%s4151_s23 + $0x4c] sm:$0xf]  ;;  %v2539_v40 = vld [vmem:[%s4151_s23 + $0x50] sm:$0xf] }
 0x1a0   : >> { %2536 = vst [vmem:[%s4147_s18 + $0x48] sm:$0xf] %v2535_v49  ;;  %2538 = vst [vmem:[%s4147_s18 + $0x4c] sm:$0xf] %v2537_v29  ;;  %v2541_v50 = vld [vmem:[%s4151_s23 + $0x54] sm:$0xf] }
 0x1a1   : >> { %2540 = vst [vmem:[%s4147_s18 + $0x50] sm:$0xf] %v2539_v40  ;;  %v2543_v51 = vld [vmem:[%s4151_s23 + $0x58] sm:$0xf]  ;;  %v2545_v52 = vld [vmem:[%s4151_s23 + $0x5c] sm:$0xf] }
 0x1a2   : >> { %2542 = vst [vmem:[%s4147_s18 + $0x54] sm:$0xf] %v2541_v50  ;;  %2544 = vst [vmem:[%s4147_s18 + $0x58] sm:$0xf] %v2543_v51  ;;  %v2547_v53 = vld [vmem:[%s4151_s23 + $0x60] sm:$0xf] }
 0x1a3   : >> { %2546 = vst [vmem:[%s4147_s18 + $0x5c] sm:$0xf] %v2545_v52  ;;  %v2549_v41 = vld [vmem:[%s4151_s23 + $0x64] sm:$0xf]  ;;  %v2551_v38 = vld [vmem:[%s4151_s23 + $0x68] sm:$0xf] }
 0x1a4   : >> { %2548 = vst [vmem:[%s4147_s18 + $0x60] sm:$0xf] %v2547_v53  ;;  %2550 = vst [vmem:[%s4147_s18 + $0x64] sm:$0xf] %v2549_v41  ;;  %v2553_v42 = vld [vmem:[%s4151_s23 + $0x6c] sm:$0xf] }
 0x1a5   : >> { %2552 = vst [vmem:[%s4147_s18 + $0x68] sm:$0xf] %v2551_v38  ;;  %v2555_v54 = vld [vmem:[%s4151_s23 + $0x70] sm:$0xf]  ;;  %v2557_v47 = vld [vmem:[%s4151_s23 + $0x74] sm:$0xf] }
 0x1a6   : >> { %2554 = vst [vmem:[%s4147_s18 + $0x6c] sm:$0xf] %v2553_v42  ;;  %2556 = vst [vmem:[%s4147_s18 + $0x70] sm:$0xf] %v2555_v54  ;;  %v2559_v55 = vld [vmem:[%s4151_s23 + $0x78] sm:$0xf] }
 0x1a7   : >> { %2558 = vst [vmem:[%s4147_s18 + $0x74] sm:$0xf] %v2557_v47  ;;  %v2561_v56 = vld [vmem:[%s4151_s23 + $0x7c] sm:$0xf]  ;;  %v2563_v58 = vld [vmem:[%s4151_s23 + $0x80] sm:$0xf] }
 0x1a8   : >> { %2560 = vst [vmem:[%s4147_s18 + $0x78] sm:$0xf] %v2559_v55  ;;  %2562 = vst [vmem:[%s4147_s18 + $0x7c] sm:$0xf] %v2561_v56  ;;  %v2565_v59 = vld [vmem:[%s4151_s23 + $0x84] sm:$0xf] }
 0x1a9   : >> { %2564 = vst [vmem:[%s4147_s18 + $0x80] sm:$0xf] %v2563_v58  ;;  %v2567_v43 = vld [vmem:[%s4151_s23 + $0x88] sm:$0xf]  ;;  %v2569_v60 = vld [vmem:[%s4151_s23 + $0x8c] sm:$0xf] }
 0x1aa   : >> { %2566 = vst [vmem:[%s4147_s18 + $0x84] sm:$0xf] %v2565_v59  ;;  %2568 = vst [vmem:[%s4147_s18 + $0x88] sm:$0xf] %v2567_v43  ;;  %v2571_v57 = vld [vmem:[%s4151_s23 + $0x90] sm:$0xf] }
 0x1ab   : >> { %2570 = vst [vmem:[%s4147_s18 + $0x8c] sm:$0xf] %v2569_v60  ;;  %v2573_v63 = vld [vmem:[%s4151_s23 + $0x94] sm:$0xf]  ;;  %v2575_v0 = vld [vmem:[%s4151_s23 + $0x98] sm:$0xf] }
 0x1ac   : >> { %2572 = vst [vmem:[%s4147_s18 + $0x90] sm:$0xf] %v2571_v57  ;;  %2574 = vst [vmem:[%s4147_s18 + $0x94] sm:$0xf] %v2573_v63  ;;  %v2577_v61 = vld [vmem:[%s4151_s23 + $0x9c] sm:$0xf] }
 0x1ad   : >> { %2576 = vst [vmem:[%s4147_s18 + $0x98] sm:$0xf] %v2575_v0  ;;  %v2579_v62 = vld [vmem:[%s4151_s23 + $0xa0] sm:$0xf]  ;;  %v2581_v10 = vld [vmem:[%s4151_s23 + $0xa4] sm:$0xf] }
 0x1ae   : >> { %2578 = vst [vmem:[%s4147_s18 + $0x9c] sm:$0xf] %v2577_v61  ;;  %2580 = vst [vmem:[%s4147_s18 + $0xa0] sm:$0xf] %v2579_v62  ;;  %v2583_v2 = vld [vmem:[%s4151_s23 + $0xa8] sm:$0xf] }
 0x1af   : >> { %2582 = vst [vmem:[%s4147_s18 + $0xa4] sm:$0xf] %v2581_v10  ;;  %v2585_v11 = vld [vmem:[%s4151_s23 + $0xac] sm:$0xf]  ;;  %v2587_v12 = vld [vmem:[%s4151_s23 + $0xb0] sm:$0xf] }
 0x1b0   : >> { %2584 = vst [vmem:[%s4147_s18 + $0xa8] sm:$0xf] %v2583_v2  ;;  %2586 = vst [vmem:[%s4147_s18 + $0xac] sm:$0xf] %v2585_v11  ;;  %v2589_v1 = vld [vmem:[%s4151_s23 + $0xb4] sm:$0xf] }
 0x1b1   : >> { %2588 = vst [vmem:[%s4147_s18 + $0xb0] sm:$0xf] %v2587_v12  ;;  %v2591_v3 = vld [vmem:[%s4151_s23 + $0xb8] sm:$0xf]  ;;  %v2593_v14 = vld [vmem:[%s4151_s23 + $0xbc] sm:$0xf] }
 0x1b2   : >> { %2590 = vst [vmem:[%s4147_s18 + $0xb4] sm:$0xf] %v2589_v1  ;;  %2592 = vst [vmem:[%s4147_s18 + $0xb8] sm:$0xf] %v2591_v3  ;;  %v2595_v15 = vld [vmem:[%s4151_s23 + $0xc0] sm:$0xf] }
 0x1b3   : >> { %2594 = vst [vmem:[%s4147_s18 + $0xbc] sm:$0xf] %v2593_v14  ;;  %v2597_v4 = vld [vmem:[%s4151_s23 + $0xc4] sm:$0xf]  ;;  %v2599_v5 = vld [vmem:[%s4151_s23 + $0xc8] sm:$0xf] }
 0x1b4   : >> { %2596 = vst [vmem:[%s4147_s18 + $0xc0] sm:$0xf] %v2595_v15  ;;  %2598 = vst [vmem:[%s4147_s18 + $0xc4] sm:$0xf] %v2597_v4  ;;  %v2601_v16 = vld [vmem:[%s4151_s23 + $0xcc] sm:$0xf] }
 0x1b5   : >> { %2600 = vst [vmem:[%s4147_s18 + $0xc8] sm:$0xf] %v2599_v5  ;;  %v2603_v17 = vld [vmem:[%s4151_s23 + $0xd0] sm:$0xf]  ;;  %v2605_v24 = vld [vmem:[%s4151_s23 + $0xd4] sm:$0xf] }
 0x1b6   : >> { %2602 = vst [vmem:[%s4147_s18 + $0xcc] sm:$0xf] %v2601_v16  ;;  %2604 = vst [vmem:[%s4147_s18 + $0xd0] sm:$0xf] %v2603_v17  ;;  %v2607_v7 = vld [vmem:[%s4151_s23 + $0xd8] sm:$0xf] }
 0x1b7   : >> { %2606 = vst [vmem:[%s4147_s18 + $0xd4] sm:$0xf] %v2605_v24  ;;  %v2609_v18 = vld [vmem:[%s4151_s23 + $0xdc] sm:$0xf]  ;;  %v2611_v19 = vld [vmem:[%s4151_s23 + $0xe0] sm:$0xf] }
 0x1b8   : >> { %2608 = vst [vmem:[%s4147_s18 + $0xd8] sm:$0xf] %v2607_v7  ;;  %2610 = vst [vmem:[%s4147_s18 + $0xdc] sm:$0xf] %v2609_v18  ;;  %v2613_v20 = vld [vmem:[%s4151_s23 + $0xe4] sm:$0xf] }
 0x1b9   : >> { %2612 = vst [vmem:[%s4147_s18 + $0xe0] sm:$0xf] %v2611_v19  ;;  %v2615_v21 = vld [vmem:[%s4151_s23 + $0xe8] sm:$0xf]  ;;  %v2617_v22 = vld [vmem:[%s4151_s23 + $0xec] sm:$0xf] }
 0x1ba   : >> { %2614 = vst [vmem:[%s4147_s18 + $0xe4] sm:$0xf] %v2613_v20  ;;  %2616 = vst [vmem:[%s4147_s18 + $0xe8] sm:$0xf] %v2615_v21  ;;  %v2619_v23 = vld [vmem:[%s4151_s23 + $0xf0] sm:$0xf] }
 0x1bb   : >> { %2618 = vst [vmem:[%s4147_s18 + $0xec] sm:$0xf] %v2617_v22  ;;  %v2621_v25 = vld [vmem:[%s4151_s23 + $0xf4] sm:$0xf]  ;;  %v2623_v6 = vld [vmem:[%s4151_s23 + $0xf8] sm:$0xf] }
 0x1bc   : >> { %2620 = vst [vmem:[%s4147_s18 + $0xf0] sm:$0xf] %v2619_v23  ;;  %2622 = vst [vmem:[%s4147_s18 + $0xf4] sm:$0xf] %v2621_v25  ;;  %v2625_v26 = vld [vmem:[%s4151_s23 + $0xfc] sm:$0xf] }
 0x1bd   : >> { %2624 = vst [vmem:[%s4147_s18 + $0xf8] sm:$0xf] %v2623_v6  ;;  %2626 = vst [vmem:[%s4147_s18 + $0xfc] sm:$0xf] %v2625_v26  ;;  %s5094_s7 = smov (%p2628_p11, %s2627_s7), 0  ;;  %s2493_s6 = sadd.s32 1, %s4159_s6  }
 0x1be   : >> { %s3206_s8 = sshll.u32 %s5094_s7, 8  ;;  %p2492_p12 = scmp.ge.s32.totalorder %s2493_s6, %s4893_s5 }
 0x1bf   : >> { %s2632_s23 = scalar_lea.vmem %s4405_s14, %s3206_s8 [#allocation2]   ;;  %s2633_s18 = scalar_lea.vmem %s4887_s29, %s3206_s8  }
 0x1c0   : >> { %s5087_s28 = smov %s5094_s7  ;;  %2495 = sbr.rel (!%p2492_p12) target bundleno = 403 (0x193), region = 122 }
 0x1c7 PF: > { %s5061_s9 = sand.u32 63, %s5092_s24   ;;  %s3345_s10 = sshll.u32 %s4893_s5, 8 }
 0x1c8   : > { %s2638_s11 = scalar_lea.vmem %s4405_s14, %s3345_s10 [#allocation2]   ;;  %s2640_s12 = scalar_lea.vmem %s4887_s29, %s3345_s10  }
 0x1c9   : > { %p3211_p13 = scmp.le.s32.totalorder %s5061_s9, 0 }
 0x1ca   : > { %s4161_s13 = smov (!%p3211_p13), %s2640_s12   ;;  %s4165_s15 = smov (!%p3211_p13), %s2638_s11  }
 0x1cb   : > { %2902 = sbr.rel (%p3211_p13) target bundleno = 476 (0x1dc), region = 127  ;;  %s4169_s17 = smov (!%p3211_p13), 0  }
 0x1cc   : > { %s4173_s20 = smov (!%p3211_p13), 0  }
 0x1d2 LB: >> { %v2650_v8 = vld [vmem:[%s4167_s15] sm:$0xf]  ;;  %s2652_s21 = sadd.s32 1, %s4171_s17  ;;  %s2644_s20 = sadd.s32 1, %s4175_s20   ;;  %s4175_s20 = sphi %s4173_s20, %s2644_s20   ;;  %s4171_s17 = sphi %s4169_s17, %s4170_s17   ;;  %s4167_s15 = sphi %s4165_s15, %s2657_s15   ;;  %s4163_s13 = sphi %s4161_s13, %s2658_s13  }
 0x1d3   : >> { %2651 = vst [vmem:[%s4163_s13] sm:$0xf] %v2650_v8  ;;  %p2653_p0 = scmp.ge.s32.totalorder %s2652_s21, %s5061_s9  ;;  %p2643_p1 = scmp.ge.s32.totalorder %s2644_s20, %s5061_s9 }
 0x1d5   : >> { %s5096_s21 = smov (%p2653_p0, %s2652_s21), 0  ;;  %2646 = sbr.rel (!%p2643_p1) target bundleno = 466 (0x1d2), region = 133 }
 0x1d6   : >> { %s3212_s14 = sshll.u32 %s5096_s21, 2  ;;  %s4170_s17 = smov %s5096_s21  }
 0x1d7   : >> { %s2657_s15 = scalar_lea.vmem %s2638_s11, %s3212_s14 [#allocation2]   ;;  %s2658_s13 = scalar_lea.vmem %s2640_s12, %s3212_s14  }
 0x1dc PF: > { %p11_p2 = scmp.ge.s32.totalorder %s4218_s19, 7   ;;  %s5088_s15 = smov %s4139_s16 }
 0x1dd   : > { %s5089_s16 = smov %s4226_s22  ;;  %s5090_s17 = smov %s4218_s19 }
 0x1de   :  { %13 = sbr.rel (!%p11_p2) target bundleno = 2 (0x2), region = 144 }

// kernel: onet_forward.9
= control target key start
LH: loop header
LB: loop body
LE: loop exit
PB: predicated region body
PF: predicated region fallthrough
CT: control target
= control target key end

     0   :  { %s2787_s15 = smov 0   ;;  %s4346_s0 = inlined_call_operand.vmem [shape: bf16[2,23,23,128], index: 0, kind: input, shape index: {}]   ;;  %s4347_s1 = inlined_call_operand.vmem [shape: bf16[2,23,22,128], index: 1, kind: input, shape index: {}]   ;;  %s4348_s2 = inlined_call_operand.vmem [shape: bf16[2,22,23,128], index: 2, kind: input, shape index: {}]   ;;  %s4349_s3 = inlined_call_operand.vmem [shape: bf16[2,22,22,128], index: 3, kind: input, shape index: {}]   ;;  %s4350_s4 = inlined_call_operand.vmem [shape: bf16[2,22,22,128], index: 4, kind: output, shape index: {}]  }
   0x1 LB: > { %s2656_s16 = sadd.s32 4294967295, %s2760_s15   ;;  %p2660_p0 = scmp.ge.s32.totalorder %s2760_s15, 1  ;;  %s2760_s15 = sphi %s2787_s15, %s14_s15  }
   0x2   : > { %p192_p1 = scmp.lt.s32.totalorder %s2760_s15, 3 }
   0x4   : > { %p193_p2 = pnand %p2660_p0, %p192_p1 }
   0x5   : > { %p233_p3 = scmp.lt.s32.totalorder (!%p193_p2), %s2656_s16, 1  ;;  %vm594_vm0 = vsmask.f32 (!%p193_p2), 3328  ;;  %vm595_vm1 = vsmask.f32 (!%p193_p2), 7440 }
   0x6   : > { %196 = sbr.rel (%p193_p2) target bundleno = 390 (0x186), region = 36  ;;  %vm2849_vm2 = vmor (!%p193_p2), %vm594_vm0, %vm595_vm1 }
   0xd   : > { %s4354_s16 = smov (!%p233_p3, %s2656_s16), 1 }
   0xe   : > { %s2744_s17 = smul.u32 276, %s4354_s16 }
   0xf   : > { %s2799_s18 = smul.u32 264, %s4354_s16 }
  0x10   : > { %s2806_s21 = scalar_lea.vmem %s4346_s0, %s2744_s17  ;;  %s2867_s30 = scalar_lea.vmem %s4347_s1, %s2744_s17 }
  0x11   : > { %s2812_s24 = scalar_lea.vmem %s4349_s3, %s2799_s18  ;;  %v258_v0 = vld [vmem:[%s2806_s21] sm:$0xf]  ;;  %v259_v1 = vld [vmem:[%s2806_s21 + $0x4] sm:$0xf]  ;;  %v2817_v2 = vld [vmem:[%s2806_s21 + $0x8] sm:$0xf]  ;;  %s2826_s27 = scalar_lea.vmem %s4348_s2, %s2799_s18 }
  0x12   : > { %v2820_v3 = vld [vmem:[%s2806_s21 + $0xc] sm:$0xf]  ;;  %v2829_v4 = vld [vmem:[%s2806_s21 + $0x10] sm:$0xf]  ;;  %v462_v5 = vld [vmem:[%s2812_s24] sm:$0xf]  ;;  %s2949_s7 = scalar_lea.vmem %s4350_s4, %s2799_s18 }
  0x13   : > { %v463_v6 = vld [vmem:[%s2812_s24 + $0x4] sm:$0xf]  ;;  %v528_v7 = vmax.bf16 %v462_v5, %v258_v0  ;;  %v598_v8 = vshrl.u32 %v258_v0, 16  ;;  %v601_v9 = vshll.u32 %v258_v0, 16  ;;  %v607_v10 = vshll.u32 %v259_v1, 16 }
  0x14   : > { %v611_v11 = vshrl.u32 %v259_v1, 16  ;;  %v617_v12 = vshll.u32 %v2817_v2, 16  ;;  %v627_v13 = vshrl.u32 %v2820_v3, 16  ;;  %v2836_v14 = vld [vmem:[%s2826_s27] sm:$0xf]  ;;  %v630_v17 = vshll.u32 %v2820_v3, 16 }
  0x15   : > { %v600_v15 = vrot.slane %v598_v8, 4  ;;  %v603_v16 = vrot.slane %v601_v9, 5  ;;  %v636_v18 = vshll.u32 %v2829_v4, 16  ;;  %v2841_v19 = vld [vmem:[%s2826_s27 + $0x4] sm:$0xf]  ;;  %v529_v20 = vmax.bf16 %v463_v6, %v259_v1 }
  0x16   : > { %v609_v21 = vrot.slane %v607_v10, 5  ;;  %v613_v22 = vrot.slane %v611_v11, 4  ;;  %v629_v23 = vrot.slane %v627_v13, 4  ;;  %v2844_v24 = vld [vmem:[%s2806_s21 + $0x14] sm:$0xf]  ;;  %v632_v26 = vrot.slane %v630_v17, 5 }
  0x17   : > { %v604_v25 = vor.u32 %v603_v16, %v600_v15  ;;  %v638_v27 = vrot.slane %v636_v18, 5  ;;  %v640_v28 = vshrl.u32 %v2829_v4, 16  ;;  %v2853_v31 = vrot.slane %v617_v12, 5  ;;  %v2859_v38 = vld [vmem:[%s2826_s27 + $0x8] sm:$0xf] }
  0x18   : > { %v614_v30 = vor.u32 %v613_v22, %v609_v21  ;;  %v1730_v32 = vshrl.u32 %v2836_v14, 16  ;;  %v1733_v33 = vshll.u32 %v2836_v14, 16  ;;  %v633_v35 = vor.u32 %v632_v26, %v629_v23  ;;  %v464_v51 = vld [vmem:[%s2812_s24 + $0x8] sm:$0x7]  ;;  %v327_v55 = vld [vmem:[%s2867_s30] sm:$0xf] }
  0x19   : > { %v605_v34 = vrot.slane %v604_v25, 4  ;;  %v642_v36 = vrot.slane %v640_v28, 4  ;;  %v1739_v37 = vshll.u32 %v2841_v19, 16  ;;  %v646_v40 = vshll.u32 %v2844_v24, 16  ;;  %v328_v60 = vld [vmem:[%s2867_s30 + $0x4] sm:$0xf] }
  0x1a   : > { %v615_v39 = vrot.slane %v614_v30, 4  ;;  %v1732_v41 = vrot.slane %v1730_v32, 4  ;;  %v1735_v42 = vrot.slane %v1733_v33, 5  ;;  %v634_v44 = vrot.slane %v633_v35, 4  ;;  %v2881_v61 = vld [vmem:[%s2867_s30 + $0xc] sm:$0xf] }
  0x1b   : > { %v610_v43 = vsel %vm2849_vm2, %v605_v34, %v609_v21  ;;  %v643_v45 = vor.u32 %v642_v36, %v638_v27  ;;  %v1741_v46 = vrot.slane %v1739_v37, 5  ;;  %v1743_v50 = vshrl.u32 %v2841_v19, 16  ;;  %v2894_v9 = vld [vmem:[%s2806_s21 + $0x18] sm:$0xf]  ;;  %v465_v10 = vld [vmem:[%s2812_s24 + $0xc] sm:$0xf] }
  0x1c   : > { %v620_v47 = vsel %vm2849_vm2, %v615_v39, %v2853_v31  ;;  %v1301_v48 = vmax.bf16 %v610_v43, %v528_v7  ;;  %v1736_v49 = vor.u32 %v1735_v42, %v1732_v41  ;;  %v1749_v54 = vshll.u32 %v2859_v38, 16  ;;  %v2900_v15 = vld [vmem:[%s2812_s24 + $0x18] sm:$0xf]  ;;  %v2903_v16 = vld [vmem:[%s2867_s30 + $0x10] sm:$0xf] }
  0x1d   : > { %v644_v52 = vrot.slane %v643_v45, 4  ;;  %v1302_v53 = vmax.bf16 %v620_v47, %v529_v20  ;;  %v648_v56 = vrot.slane %v646_v40, 5  ;;  %v1745_v59 = vrot.slane %v1743_v50, 4  ;;  %v2908_v22 = vld [vmem:[%s2812_s24 + $0x24] sm:$0xf] }
  0x1e   : > { %v1367_v57 = vmax.bf16 %v1301_v48, %v2820_v3  ;;  %v1737_v58 = vrot.slane %v1736_v49, 4  ;;  %v639_v62 = vsel %vm2849_vm2, %v634_v44, %v638_v27  ;;  %v530_v0 = vmax.bf16 %v464_v51, %v2817_v2  ;;  %v2912_v27 = vld [vmem:[%s2806_s21 + $0x1c] sm:$0xf]  ;;  %v2917_v33 = vld [vmem:[%s2806_s21 + $0x24] sm:$0xf] }
  0x1f   : > { %v1368_v63 = vmax.bf16 %v1302_v53, %v2829_v4  ;;  %v621_v1 = vshrl.u32 %v2817_v2, 16  ;;  %v2890_v5 = vsel %vm2849_vm2, %v644_v52, %v648_v56  ;;  %v1746_v7 = vor.u32 %v1745_v59, %v1741_v46  ;;  %v2937_v50 = vld [vmem:[%s2806_s21 + $0x28] sm:$0xf] }
  0x20   : > { %v1465_v6 = vmax.bf16 %v1367_v57, %v639_v62  ;;  %v650_v8 = vshrl.u32 %v2844_v24, 16  ;;  %v1751_v12 = vrot.slane %v1749_v54, 5  ;;  %v1753_v2 = vshrl.u32 %v2859_v38, 16  ;;  %v329_v53 = vld [vmem:[%s2867_s30 + $0x8] sm:$0x7] }
  0x21   : > { %v1466_v11 = vmax.bf16 %v1368_v63, %v2890_v5  ;;  %v623_v13 = vrot.slane %v621_v1, 4  ;;  %v1742_v18 = vsel %vm2849_vm2, %v1737_v58, %v1741_v46  ;;  %v1747_v20 = vrot.slane %v1746_v7, 4  ;;  %v2932_v46 = vld [vmem:[%s2826_s27 + $0xc] sm:$0xf] }
  0x22   : > { %v1531_v17 = vmax.bf16 %v1465_v6, %v327_v55  ;;  %v652_v21 = vrot.slane %v650_v8, 4  ;;  %v1755_v26 = vrot.slane %v1753_v2, 4  ;;  %v531_v28 = vmax.bf16 %v465_v10, %v2820_v3 }
  0x23   : > { %v1532_v23 = vmax.bf16 %v1466_v11, %v328_v60  ;;  %v624_v25 = vor.u32 %v623_v13, %v2853_v31  ;;  %v534_v34 = vmax.bf16 %v2900_v15, %v2894_v9  ;;  %v656_v35 = vshrl.u32 %v2894_v9, 16 }
  0x24   : > { %v1597_v30 = vmax.bf16 %v1531_v17, %v2881_v61  ;;  %v653_v32 = vor.u32 %v652_v21, %v648_v56  ;;  %v537_v37 = vmax.bf16 %v2908_v22, %v2917_v33  ;;  %v659_v3 = vshll.u32 %v2894_v9, 16  ;;  %v2952_v56 = vld [vmem:[%s2826_s27 + $0x10] sm:$0xf]  ;;  %v2966_v17 = vld [vmem:[%s2812_s24 + $0x1c] sm:$0xf] }
  0x25   : > { %v1598_v36 = vmax.bf16 %v1532_v23, %v2903_v16  ;;  %v625_v31 = vrot.slane %v624_v25, 4  ;;  %v1752_v40 = vsel %vm2849_vm2, %v1747_v20, %v1751_v12  ;;  %v658_v41 = vrot.slane %v656_v35, 4  ;;  %v2972_v25 = vld [vmem:[%s2806_s21 + $0x20] sm:$0xf] }
  0x26   : > { %v1663_v39 = vmax.bf16 %v1597_v30, %v2836_v14  ;;  %v665_v42 = vshll.u32 %v2912_v27, 16  ;;  %v1756_v45 = vor.u32 %v1755_v26, %v1751_v12  ;;  %v661_v47 = vrot.slane %v659_v3, 5  ;;  %v466_v12 = vld [vmem:[%s2812_s24 + $0x10] sm:$0xf]  ;;  %v2979_v3 = vld [vmem:[%s2806_s21 + $0x2c] sm:$0xf] }
  0x27   : > { %v1664_v43 = vmax.bf16 %v1598_v36, %v2841_v19  ;;  %v1303_v44 = vmax.bf16 %v625_v31, %v530_v0  ;;  %v2934_v49 = vrot.slane %v653_v32, 4  ;;  %v685_v14 = vshrl.u32 %v2917_v33, 16 }
  0x28   : > { %v2433_v48 = vmax.bf16 %v1742_v18, %v1663_v39  ;;  %v688_v51 = vshll.u32 %v2917_v33, 16  ;;  %v662_v19 = vor.u32 %v661_v47, %v658_v41  ;;  %v2943_v55 = vrot.slane %v665_v42, 5  ;;  %v2969_v18 = vld [vmem:[%s2867_s30 + $0x14] sm:$0x7] }
  0x29   : > { %v2434_v52 = vmax.bf16 %v1752_v40, %v1664_v43  ;;  %v1369_v54 = vmax.bf16 %v1303_v44, %v2844_v24  ;;  %v687_v57 = vrot.slane %v685_v14, 4  ;;  %v1304_v59 = vmax.bf16 %v639_v62, %v531_v28  ;;  %v333_v40 = vld [vmem:[%s2867_s30 + $0x18] sm:$0xf] }
  0x2a   : > { %v690_v58 = vrot.slane %v688_v51, 5  ;;  %v1759_v60 = vshrl.u32 %v2932_v46, 16  ;;  %v663_v1 = vrot.slane %v662_v19, 4  ;;  %v694_v6 = vshll.u32 %v2937_v50, 16 }
  0x2b   : > { %v2723_v63 = vcombine.low %v2433_v48, %v2434_v52  ;;  %v1467_v0 = vmax.bf16 %v1369_v54, %v2934_v49  ;;  %v1370_v8 = vmax.bf16 %v1304_v59, %v2894_v9  ;;  %v1762_v11 = vshll.u32 %v2932_v46, 16  ;;  %v467_v52 = vld [vmem:[%s2812_s24 + $0x14] sm:$0x7] }
  0x2c   : > { %v691_v7 = vor.u32 %v690_v58, %v687_v57  ;;  %v1761_v10 = vrot.slane %v1759_v60, 4  ;;  %v1757_v13 = vrot.slane %v1756_v45, 4  ;;  %v668_v2 = vsel %vm2849_vm2, %v663_v1, %v2943_v55  ;;  %v2993_v45 = vld [vmem:[%s2826_s27 + $0x14] sm:$0xf] }
  0x2d   : > { %2672 = vst [vmem:[%s2949_s7] sm:$0xff] %v2723_v63   ;;  %v1533_v62 = vmax.bf16 %v1467_v0, %v329_v53  ;;  %v1768_v15 = vshll.u32 %v2952_v56, 16  ;;  %v1307_v20 = vmax.bf16 %v668_v2, %v534_v34  ;;  %v1468_v21 = vmax.bf16 %v1370_v8, %v668_v2  ;;  %v3013_v8 = vld [vmem:[%s2812_s24 + $0x28] sm:$0xf] }
  0x2e   : > { %v692_v9 = vrot.slane %v691_v7, 4  ;;  %v1764_v23 = vrot.slane %v1762_v11, 5  ;;  %v696_v28 = vrot.slane %v694_v6, 5  ;;  %v532_v32 = vmax.bf16 %v466_v12, %v2829_v4  ;;  %v3010_v7 = vld [vmem:[%s2867_s30 + $0x24] sm:$0xf] }
  0x2f   : > { %v1599_v26 = vmax.bf16 %v1533_v62, %v2969_v18  ;;  %v1770_v30 = vrot.slane %v1768_v15, 5  ;;  %v1373_v35 = vmax.bf16 %v1307_v20, %v2917_v33  ;;  %v1534_v36 = vmax.bf16 %v1468_v21, %v2881_v61  ;;  %v3065_v33 = vld [vmem:[%s2806_s21 + $0x34] sm:$0xf] }
  0x30   : > { %v1765_v31 = vor.u32 %v1764_v23, %v1761_v10  ;;  %v535_v34 = vmax.bf16 %v2966_v17, %v2912_v27  ;;  %v2987_v41 = vsel %vm2849_vm2, %v692_v9, %v696_v28  ;;  %v669_v4 = vshrl.u32 %v2912_v27, 16  ;;  %v402_v9 = vld [vmem:[%s2826_s27 + $0x18] sm:$0xf] }
  0x31   : > { %v1665_v39 = vmax.bf16 %v1599_v26, %v2859_v38  ;;  %v675_v42 = vshll.u32 %v2972_v25, 16  ;;  %v1471_v61 = vmax.bf16 %v1373_v35, %v2987_v41  ;;  %v1600_v43 = vmax.bf16 %v1534_v36, %v333_v40  ;;  %v403_v35 = vld [vmem:[%s2826_s27 + $0x1c] sm:$0xf] }
  0x32   : > { %v1766_v44 = vrot.slane %v1765_v31, 4  ;;  %v698_v47 = vshrl.u32 %v2937_v50, 16  ;;  %v671_v38 = vrot.slane %v669_v4, 4  ;;  %v704_v51 = vshll.u32 %v2979_v3, 16  ;;  %v334_v4 = vld [vmem:[%s2867_s30 + $0x1c] sm:$0xf] }
  0x33   : > { %v2435_v48 = vmax.bf16 %v1757_v13, %v1665_v39  ;;  %v677_v14 = vrot.slane %v675_v42, 5  ;;  %v1537_v53 = vmax.bf16 %v1471_v61, %v333_v40  ;;  %v1666_v54 = vmax.bf16 %v1600_v43, %v2932_v46  ;;  %v3037_v43 = vld [vmem:[%s2826_s27 + $0x20] sm:$0xf] }
  0x34   : > { %v1771_v19 = vsel %vm2849_vm2, %v1766_v44, %v1770_v30  ;;  %v700_v57 = vrot.slane %v698_v47, 4  ;;  %v672_v58 = vor.u32 %v671_v38, %v2943_v55  ;;  %v3003_v59 = vrot.slane %v704_v51, 5 }
  0x35   : > { %2501 = vst [vmem:[%s2949_s7 + $0x8] sm:$0x7] %v2435_v48  ;;  %v1305_v60 = vmax.bf16 %v2890_v5, %v532_v32  ;;  %v1772_v63 = vshrl.u32 %v2952_v56, 16  ;;  %v2436_v0 = vmax.bf16 %v1771_v19, %v1666_v54  ;;  %v1778_v6 = vshll.u32 %v2993_v45, 16 }
  0x36   : > { %v701_v1 = vor.u32 %v700_v57, %v696_v28  ;;  %v533_v46 = vmax.bf16 %v467_v52, %v2844_v24  ;;  %v673_v10 = vrot.slane %v672_v58, 4  ;;  %v679_v12 = vshrl.u32 %v2972_v25, 16  ;;  %v3041_v52 = vld [vmem:[%s2867_s30 + $0x28] sm:$0xf] }
  0x37   : > { %v1371_v55 = vmax.bf16 %v1305_v60, %v2912_v27  ;;  %v1774_v11 = vrot.slane %v1772_v63, 4  ;;  %2502 = vst [vmem:[%s2949_s7 + $0xc] sm:$0xf] %v2436_v0  ;;  %v1780_v62 = vrot.slane %v1778_v6, 5  ;;  %v1782_v2 = vshrl.u32 %v2993_v45, 16 }
  0x38   : > { %v702_v5 = vrot.slane %v701_v1, 4  ;;  %v1306_v13 = vmax.bf16 %v2934_v49, %v533_v46  ;;  %v678_v24 = vsel %vm2849_vm2, %v673_v10, %v677_v14  ;;  %v681_v17 = vrot.slane %v679_v12, 4 }
  0x39   : > { %v1775_v15 = vor.u32 %v1774_v11, %v1770_v30  ;;  %v1603_v27 = vmax.bf16 %v1537_v53, %v3010_v7  ;;  %v538_v20 = vmax.bf16 %v3013_v8, %v2937_v50  ;;  %v1308_v49 = vmax.bf16 %v678_v24, %v535_v34  ;;  %v335_v8 = vld [vmem:[%s2867_s30 + $0x20] sm:$0x7] }
  0x3a   : > { %v707_v21 = vsel %vm2849_vm2, %v702_v5, %v3003_v59  ;;  %v1469_v23 = vmax.bf16 %v1371_v55, %v678_v24  ;;  %v682_v28 = vor.u32 %v681_v17, %v677_v14  ;;  %v1372_v32 = vmax.bf16 %v1306_v13, %v2972_v25  ;;  %v270_v24 = vld [vmem:[%s2806_s21 + $0x30] sm:$0xf] }
  0x3b   : > { %v1776_v26 = vrot.slane %v1775_v15, 4  ;;  %v1784_v30 = vrot.slane %v1782_v2, 4  ;;  %v1374_v36 = vmax.bf16 %v1308_v49, %v2937_v50  ;;  %v1669_v39 = vmax.bf16 %v1603_v27, %v402_v9  ;;  %v470_v50 = vld [vmem:[%s2812_s24 + $0x20] sm:$0x7] }
  0x3c   : > { %v1535_v31 = vmax.bf16 %v1469_v23, %v2903_v16  ;;  %v1788_v40 = vshrl.u32 %v402_v9, 16  ;;  %v683_v34 = vrot.slane %v682_v28, 4  ;;  %v1791_v44 = vshll.u32 %v402_v9, 16  ;;  %v3070_v23 = vld [vmem:[%s2806_s21 + $0x3c] sm:$0xf] }
  0x3d   : > { %v1781_v42 = vsel %vm2849_vm2, %v1776_v26, %v1780_v62  ;;  %v1785_v61 = vor.u32 %v1784_v30, %v1780_v62  ;;  %v1472_v47 = vmax.bf16 %v1374_v36, %v707_v21  ;;  %v1797_v14 = vshll.u32 %v403_v35, 16  ;;  %v3076_v26 = vld [vmem:[%s2812_s24 + $0x3c] sm:$0xf]  ;;  %v3081_v36 = vld [vmem:[%s2806_s21 + $0x40] sm:$0xf] }
  0x3e   : > { %v1601_v48 = vmax.bf16 %v1535_v31, %v334_v4  ;;  %v1790_v38 = vrot.slane %v1788_v40, 4  ;;  %v1470_v51 = vmax.bf16 %v1372_v32, %v683_v34  ;;  %v1793_v53 = vrot.slane %v1791_v44, 5 }
  0x3f   : > { %v1786_v16 = vrot.slane %v1785_v61, 4  ;;  %v1801_v54 = vshrl.u32 %v403_v35, 16  ;;  %v1538_v19 = vmax.bf16 %v1472_v47, %v334_v4  ;;  %v1799_v58 = vrot.slane %v1797_v14, 5 }
  0x40   : > { %v1667_v57 = vmax.bf16 %v1601_v48, %v2952_v56  ;;  %v1807_v60 = vshll.u32 %v3037_v43, 16  ;;  %v1536_v63 = vmax.bf16 %v1470_v51, %v2969_v18  ;;  %v1794_v0 = vor.u32 %v1793_v53, %v1790_v38  ;;  %v3094_v38 = vld [vmem:[%s2826_s27 + $0x28] sm:$0xf] }
  0x41   : > { %v1803_v1 = vrot.slane %v1801_v54, 4  ;;  %v536_v6 = vmax.bf16 %v470_v50, %v2972_v25  ;;  %v1604_v10 = vmax.bf16 %v1538_v19, %v3041_v52  ;;  %v708_v11 = vshrl.u32 %v2979_v3, 16 }
  0x42   : > { %v2437_v46 = vmax.bf16 %v1781_v42, %v1667_v57  ;;  %v1809_v55 = vrot.slane %v1807_v60, 5  ;;  %v1602_v56 = vmax.bf16 %v1536_v63, %v335_v8  ;;  %v1795_v12 = vrot.slane %v1794_v0, 4  ;;  %v3105_v60 = vld [vmem:[%s2867_s30 + $0x2c] sm:$0x7] }
  0x43   : > { %v1804_v5 = vor.u32 %v1803_v1, %v1799_v58  ;;  %v1309_v62 = vmax.bf16 %v683_v34, %v536_v6  ;;  %v3054_v18 = vmax.bf16 %v2987_v41, %v537_v37  ;;  %v1670_v25 = vmax.bf16 %v1604_v10, %v403_v35 }
  0x44   : > { %2503 = vst [vmem:[%s2949_s7 + $0x10] sm:$0xf] %v2437_v46  ;;  %v710_v13 = vrot.slane %v708_v11, 4  ;;  %v1811_v2 = vshrl.u32 %v3037_v43, 16  ;;  %v3059_v15 = vmax.bf16 %v707_v21, %v538_v20  ;;  %v1668_v17 = vmax.bf16 %v1602_v56, %v2993_v45  ;;  %v474_v21 = vld [vmem:[%s2812_s24 + $0x30] sm:$0xf] }
  0x45   : > { %v1800_v9 = vsel %vm2849_vm2, %v1795_v12, %v1799_v58  ;;  %v1805_v22 = vrot.slane %v1804_v5, 4  ;;  %v1375_v27 = vmax.bf16 %v1309_v62, %v2979_v3  ;;  %v714_v28 = vshrl.u32 %v270_v24, 16  ;;  %v3102_v58 = vld [vmem:[%s2812_s24 + $0x34] sm:$0xf]  ;;  %v3110_v11 = vld [vmem:[%s2806_s21 + $0x38] sm:$0xf] }
  0x46   : > { %v2439_v37 = vmax.bf16 %v1800_v9, %v1669_v39  ;;  %v711_v41 = vor.u32 %v710_v13, %v3003_v59  ;;  %v1813_v49 = vrot.slane %v1811_v2, 4  ;;  %v2438_v20 = vmax.bf16 %v1786_v16, %v1668_v17  ;;  %v3086_v39 = vld [vmem:[%s2826_s27 + $0x24] sm:$0xf] }
  0x47   : > { %v1810_v45 = vsel %vm2849_vm2, %v1805_v22, %v1809_v55  ;;  %v717_v32 = vshll.u32 %v270_v24, 16  ;;  %v723_v31 = vshll.u32 %v3065_v33, 16  ;;  %v716_v40 = vrot.slane %v714_v28, 4 }
  0x48   : > { %v2440_v30 = vmax.bf16 %v1810_v45, %v1670_v25  ;;  %v3078_v35 = vrot.slane %v711_v41, 4  ;;  %v1814_v59 = vor.u32 %v1813_v49, %v1809_v55  ;;  %2504 = vst [vmem:[%s2949_s7 + $0x14] sm:$0x7] %v2438_v20  ;;  %v743_v42 = vshrl.u32 %v3070_v23, 16  ;;  %v3129_v45 = vld [vmem:[%s2806_s21 + $0x44] sm:$0xf] }
  0x49   : > { %v719_v4 = vrot.slane %v717_v32, 5  ;;  %v746_v34 = vshll.u32 %v3070_v23, 16  ;;  %v540_v47 = vmax.bf16 %v474_v21, %v270_v24  ;;  %v543_v48 = vmax.bf16 %v3076_v26, %v3070_v23  ;;  %v3132_v26 = vld [vmem:[%s2826_s27 + $0x2c] sm:$0xf] }
  0x4a   : > { %v2724_v61 = vcombine.low %v2439_v37, %v2440_v30  ;;  %v1473_v44 = vmax.bf16 %v1375_v27, %v3078_v35  ;;  %v745_v50 = vrot.slane %v743_v42, 4  ;;  %v752_v16 = vshll.u32 %v3081_v36, 16  ;;  %v339_v27 = vld [vmem:[%s2867_s30 + $0x30] sm:$0xf] }
  0x4b   : > { %v720_v14 = vor.u32 %v719_v4, %v716_v40  ;;  %v748_v51 = vrot.slane %v746_v34, 5  ;;  %v1376_v54 = vmax.bf16 %v3054_v18, %v270_v24  ;;  %v1817_v19 = vshrl.u32 %v3086_v39, 16  ;;  %v3118_v24 = vld [vmem:[%s2812_s24 + $0x40] sm:$0xf] }
  0x4c   : > { %2725 = vst [vmem:[%s2949_s7 + $0x18] sm:$0xff] %v2724_v61   ;;  %v1539_v53 = vmax.bf16 %v1473_v44, %v335_v8  ;;  %v1820_v57 = vshll.u32 %v3086_v39, 16  ;;  %v1815_v63 = vrot.slane %v1814_v59, 4  ;;  %v725_v1 = vrot.slane %v723_v31, 5 }
  0x4d   : > { %v721_v0 = vrot.slane %v720_v14, 4  ;;  %v749_v6 = vor.u32 %v748_v51, %v745_v50  ;;  %v1819_v10 = vrot.slane %v1817_v19, 4  ;;  %v1826_v8 = vshll.u32 %v3094_v38, 16 }
  0x4e   : > { %v1605_v46 = vmax.bf16 %v1539_v53, %v3105_v60  ;;  %v1822_v55 = vrot.slane %v1820_v57, 5  ;;  %v754_v5 = vrot.slane %v752_v16, 5  ;;  %v541_v62 = vmax.bf16 %v3102_v58, %v3065_v33  ;;  %v3152_v58 = vld [vmem:[%s2867_s30 + $0x3c] sm:$0xf] }
  0x4f   : > { %v726_v56 = vsel %vm2849_vm2, %v721_v0, %v725_v1  ;;  %v750_v12 = vrot.slane %v749_v6, 4  ;;  %v727_v9 = vshrl.u32 %v3065_v33, 16  ;;  %v733_v22 = vshll.u32 %v3110_v11, 16 }
  0x50   : > { %v1671_v18 = vmax.bf16 %v1605_v46, %v3037_v43  ;;  %v1313_v25 = vmax.bf16 %v726_v56, %v540_v47  ;;  %v1474_v13 = vmax.bf16 %v1376_v54, %v726_v56  ;;  %v1823_v2 = vor.u32 %v1822_v55, %v1819_v10 }
  0x51   : > { %v755_v17 = vsel %vm2849_vm2, %v750_v12, %v754_v5  ;;  %v756_v37 = vshrl.u32 %v3081_v36, 16  ;;  %v1828_v20 = vrot.slane %v1826_v8, 5  ;;  %v544_v28 = vmax.bf16 %v3118_v24, %v3081_v36 }
  0x52   : > { %v2441_v41 = vmax.bf16 %v1815_v63, %v1671_v18  ;;  %v1379_v43 = vmax.bf16 %v1313_v25, %v3070_v23  ;;  %v1540_v49 = vmax.bf16 %v1474_v13, %v3010_v7  ;;  %v1824_v21 = vrot.slane %v1823_v2, 4  ;;  %v473_v23 = vld [vmem:[%s2812_s24 + $0x2c] sm:$0x7]  ;;  %v409_v25 = vld [vmem:[%s2826_s27 + $0x34] sm:$0xf] }
  0x53   : > { %v729_v32 = vrot.slane %v727_v9, 4  ;;  %v758_v30 = vrot.slane %v756_v37, 4  ;;  %v3137_v59 = vmax.bf16 %v755_v17, %v543_v48  ;;  %v735_v4 = vrot.slane %v733_v22, 5  ;;  %v340_v2 = vld [vmem:[%s2867_s30 + $0x34] sm:$0xf] }
  0x54   : > { %2507 = vst [vmem:[%s2949_s7 + $0x20] sm:$0x7] %v2441_v41  ;;  %v1477_v31 = vmax.bf16 %v1379_v43, %v755_v17  ;;  %v1606_v40 = vmax.bf16 %v1540_v49, %v339_v27  ;;  %v1829_v7 = vsel %vm2849_vm2, %v1824_v21, %v1828_v20  ;;  %v1830_v61 = vshrl.u32 %v3094_v38, 16  ;;  %v3173_v22 = vld [vmem:[%s2826_s27 + $0x38] sm:$0xf] }
  0x55   : > { %v730_v42 = vor.u32 %v729_v32, %v725_v1  ;;  %v759_v34 = vor.u32 %v758_v30, %v754_v5  ;;  %v762_v47 = vshll.u32 %v3129_v45, 16  ;;  %v1377_v48 = vmax.bf16 %v3059_v15, %v3065_v33  ;;  %v408_v1 = vld [vmem:[%s2826_s27 + $0x30] sm:$0xf] }
  0x56   : > { %v1672_v44 = vmax.bf16 %v1606_v40, %v3086_v39  ;;  %v1836_v14 = vshll.u32 %v3132_v26, 16  ;;  %v1543_v50 = vmax.bf16 %v1477_v31, %v339_v27  ;;  %v1832_v16 = vrot.slane %v1830_v61, 4 }
  0x57   : > { %v731_v51 = vrot.slane %v730_v42, 4  ;;  %v539_v53 = vmax.bf16 %v473_v23, %v2979_v3  ;;  %v760_v19 = vrot.slane %v759_v34, 4  ;;  %v737_v57 = vshrl.u32 %v3110_v11, 16 }
  0x58   : > { %v2442_v54 = vmax.bf16 %v1829_v7, %v1672_v44  ;;  %v1840_v39 = vshrl.u32 %v3132_v26, 16  ;;  %v1833_v15 = vor.u32 %v1832_v16, %v1828_v20  ;;  %v1838_v33 = vrot.slane %v1836_v14, 5  ;;  %v3177_v20 = vld [vmem:[%s2867_s30 + $0x40] sm:$0xf] }
  0x59   : > { %v736_v63 = vsel %vm2849_vm2, %v731_v51, %v735_v4  ;;  %v1312_v0 = vmax.bf16 %v3078_v35, %v539_v53  ;;  %v3159_v3 = vrot.slane %v762_v47, 5  ;;  %v739_v10 = vrot.slane %v737_v57, 4  ;;  %v3185_v51 = vld [vmem:[%s2867_s30 + $0x38] sm:$0x7] }
  0x5a   : > { %2508 = vst [vmem:[%s2949_s7 + $0x24] sm:$0xf] %v2442_v54  ;;  %v1314_v6 = vmax.bf16 %v736_v63, %v541_v62  ;;  %v1475_v46 = vmax.bf16 %v1377_v48, %v736_v63  ;;  %v1834_v55 = vrot.slane %v1833_v15, 4  ;;  %v1842_v56 = vrot.slane %v1840_v39, 4  ;;  %v276_v39 = vld [vmem:[%s2806_s21 + $0x48] sm:$0xf] }
  0x5b   : > { %v1378_v8 = vmax.bf16 %v1312_v0, %v3110_v11  ;;  %v1609_v12 = vmax.bf16 %v1543_v50, %v3152_v58  ;;  %v740_v18 = vor.u32 %v739_v10, %v735_v4  ;;  %v1846_v13 = vshrl.u32 %v408_v1, 16 }
  0x5c   : > { %v1380_v5 = vmax.bf16 %v1314_v6, %v3081_v36  ;;  %v1541_v35 = vmax.bf16 %v1475_v46, %v3041_v52  ;;  %v765_v62 = vsel %vm2849_vm2, %v760_v19, %v3159_v3  ;;  %v1839_v17 = vsel %vm2849_vm2, %v1834_v55, %v1838_v33  ;;  %v476_v52 = vld [vmem:[%s2812_s24 + $0x38] sm:$0x7] }
  0x5d   : > { %v1843_v9 = vor.u32 %v1842_v56, %v1838_v33  ;;  %v1849_v37 = vshll.u32 %v408_v1, 16  ;;  %v741_v43 = vrot.slane %v740_v18, 4  ;;  %v1848_v49 = vrot.slane %v1846_v13, 4  ;;  %v3212_v56 = vld [vmem:[%s2812_s24 + $0x54] sm:$0xf] }
  0x5e   : > { %v1478_v41 = vmax.bf16 %v1380_v5, %v765_v62  ;;  %v1607_v27 = vmax.bf16 %v1541_v35, %v340_v2  ;;  %v1675_v21 = vmax.bf16 %v1609_v12, %v408_v1  ;;  %v1855_v30 = vshll.u32 %v409_v25, 16  ;;  %v3200_v1 = vld [vmem:[%s2806_s21 + $0x4c] sm:$0xf] }
  0x5f   : > { %v1851_v32 = vrot.slane %v1849_v37, 5  ;;  %v1859_v31 = vshrl.u32 %v409_v25, 16  ;;  %v1476_v23 = vmax.bf16 %v1378_v8, %v741_v43  ;;  %v1865_v7 = vshll.u32 %v3173_v22, 16  ;;  %v3205_v8 = vld [vmem:[%s2806_s21 + $0x54] sm:$0xf] }
  0x60   : > { %v1544_v40 = vmax.bf16 %v1478_v41, %v340_v2  ;;  %v1673_v4 = vmax.bf16 %v1607_v27, %v3094_v38  ;;  %v1857_v34 = vrot.slane %v1855_v30, 5  ;;  %v542_v44 = vmax.bf16 %v476_v52, %v3110_v11  ;;  %v3230_v52 = vld [vmem:[%s2826_s27 + $0x40] sm:$0xf] }
  0x61   : > { %v1852_v42 = vor.u32 %v1851_v32, %v1848_v49  ;;  %v1861_v61 = vrot.slane %v1859_v31, 4  ;;  %v1542_v48 = vmax.bf16 %v1476_v23, %v3105_v60  ;;  %v1867_v50 = vrot.slane %v1865_v7, 5  ;;  %v3238_v7 = vld [vmem:[%s2812_s24 + $0x4c] sm:$0xf] }
  0x62   : > { %v2443_v47 = vmax.bf16 %v1839_v17, %v1673_v4  ;;  %v1610_v14 = vmax.bf16 %v1544_v40, %v3177_v20  ;;  %v766_v53 = vshrl.u32 %v3129_v45, 16  ;;  %v1315_v54 = vmax.bf16 %v741_v43, %v542_v44 }
  0x63   : > { %v1853_v38 = vrot.slane %v1852_v42, 4  ;;  %v1862_v16 = vor.u32 %v1861_v61, %v1857_v34  ;;  %v1608_v19 = vmax.bf16 %v1542_v48, %v3185_v51  ;;  %v1844_v57 = vrot.slane %v1843_v9, 4  ;;  %v3241_v42 = vld [vmem:[%s2867_s30 + $0x44] sm:$0x7] }
  0x64   : > { %2509 = vst [vmem:[%s2949_s7 + $0x28] sm:$0xf] %v2443_v47  ;;  %v1676_v11 = vmax.bf16 %v1610_v14, %v409_v25  ;;  %v1869_v60 = vshrl.u32 %v3173_v22, 16  ;;  %v3195_v63 = vmax.bf16 %v765_v62, %v544_v28  ;;  %v768_v0 = vrot.slane %v766_v53, 4  ;;  %v480_v28 = vld [vmem:[%s2812_s24 + $0x48] sm:$0xf] }
  0x65   : > { %v1858_v15 = vsel %vm2849_vm2, %v1853_v38, %v1857_v34  ;;  %v1863_v33 = vrot.slane %v1862_v16, 4  ;;  %v1674_v6 = vmax.bf16 %v1608_v19, %v3132_v26  ;;  %v1381_v10 = vmax.bf16 %v1315_v54, %v3129_v45  ;;  %v3215_v25 = vld [vmem:[%s2806_s21 + $0x58] sm:$0xf]  ;;  %v3221_v62 = vld [vmem:[%s2826_s27 + $0x3c] sm:$0xf] }
  0x66   : > { %v2445_v46 = vmax.bf16 %v1858_v15, %v1675_v21  ;;  %v1871_v55 = vrot.slane %v1869_v60, 4  ;;  %v769_v24 = vor.u32 %v768_v0, %v3159_v3  ;;  %v772_v12 = vshrl.u32 %v276_v39, 16  ;;  %v3245_v16 = vld [vmem:[%s2806_s21 + $0x50] sm:$0xf] }
  0x67   : > { %v1868_v36 = vsel %vm2849_vm2, %v1863_v33, %v1867_v50  ;;  %v775_v5 = vshll.u32 %v276_v39, 16  ;;  %v2444_v35 = vmax.bf16 %v1844_v57, %v1674_v6  ;;  %v781_v13 = vshll.u32 %v3200_v1, 16 }
  0x68   : > { %v2446_v26 = vmax.bf16 %v1868_v36, %v1676_v11  ;;  %v1872_v18 = vor.u32 %v1871_v55, %v1867_v50  ;;  %v3218_v2 = vrot.slane %v769_v24, 4  ;;  %v774_v17 = vrot.slane %v772_v12, 4 }
  0x69   : > { %v777_v3 = vrot.slane %v775_v5, 5  ;;  %v801_v9 = vshrl.u32 %v3205_v8, 16  ;;  %2510 = vst [vmem:[%s2949_s7 + $0x2c] sm:$0x7] %v2444_v35  ;;  %v546_v41 = vmax.bf16 %v480_v28, %v276_v39  ;;  %v549_v27 = vmax.bf16 %v3212_v56, %v3205_v8  ;;  %v345_v28 = vld [vmem:[%s2867_s30 + $0x48] sm:$0xf] }
  0x6a   : > { %v2726_v37 = vcombine.low %v2445_v46, %v2446_v26  ;;  %v804_v43 = vshll.u32 %v3205_v8, 16  ;;  %v1479_v49 = vmax.bf16 %v1381_v10, %v3218_v2  ;;  %v810_v30 = vshll.u32 %v3215_v25, 16  ;;  %v3266_v56 = vld [vmem:[%s2826_s27 + $0x44] sm:$0xf] }
  0x6b   : > { %v778_v21 = vor.u32 %v777_v3, %v774_v17  ;;  %v803_v32 = vrot.slane %v801_v9, 4  ;;  %v1382_v40 = vmax.bf16 %v3137_v59, %v276_v39  ;;  %v1875_v4 = vshrl.u32 %v3221_v62, 16  ;;  %v3254_v39 = vld [vmem:[%s2812_s24 + $0x58] sm:$0xf] }
  0x6c   : > { %2727 = vst [vmem:[%s2949_s7 + $0x30] sm:$0xff] %v2726_v37   ;;  %v806_v31 = vrot.slane %v804_v43, 5  ;;  %v1878_v23 = vshll.u32 %v3221_v62, 16  ;;  %v1545_v34 = vmax.bf16 %v1479_v49, %v3185_v51  ;;  %v1873_v61 = vrot.slane %v1872_v18, 4 }
  0x6d   : > { %v779_v44 = vrot.slane %v778_v21, 4  ;;  %v783_v47 = vrot.slane %v781_v13, 5  ;;  %v812_v14 = vrot.slane %v810_v30, 5  ;;  %v1877_v50 = vrot.slane %v1875_v4, 4  ;;  %v3273_v13 = vld [vmem:[%s2806_s21 + $0x5c] sm:$0xf] }
  0x6e   : > { %v807_v48 = vor.u32 %v806_v31, %v803_v32  ;;  %v1880_v38 = vrot.slane %v1878_v23, 5  ;;  %v1611_v59 = vmax.bf16 %v1545_v34, %v3241_v42  ;;  %v1884_v54 = vshll.u32 %v3230_v52, 16 }
  0x6f   : > { %v784_v53 = vsel %vm2849_vm2, %v779_v44, %v783_v47  ;;  %v547_v51 = vmax.bf16 %v3238_v7, %v3200_v1  ;;  %v785_v33 = vshrl.u32 %v3200_v1, 16  ;;  %v791_v0 = vshll.u32 %v3245_v16, 16 }
  0x70   : > { %v808_v19 = vrot.slane %v807_v48, 4  ;;  %v1319_v57 = vmax.bf16 %v784_v53, %v546_v41  ;;  %v1480_v11 = vmax.bf16 %v1382_v40, %v784_v53  ;;  %v1881_v60 = vor.u32 %v1880_v38, %v1877_v50 }
  0x71   : > { %v1677_v15 = vmax.bf16 %v1611_v59, %v3173_v22  ;;  %v814_v6 = vshrl.u32 %v3215_v25, 16  ;;  %v1886_v22 = vrot.slane %v1884_v54, 5  ;;  %v550_v12 = vmax.bf16 %v3254_v39, %v3215_v25 }
  0x72   : > { %v813_v46 = vsel %vm2849_vm2, %v808_v19, %v812_v14  ;;  %v1385_v10 = vmax.bf16 %v1319_v57, %v3205_v8  ;;  %v1546_v55 = vmax.bf16 %v1480_v11, %v3152_v58  ;;  %v1882_v36 = vrot.slane %v1881_v60, 4  ;;  %v479_v8 = vld [vmem:[%s2812_s24 + $0x44] sm:$0x7]  ;;  %v3302_v57 = vld [vmem:[%s2826_s27 + $0x4c] sm:$0xf] }
  0x73   : > { %v2447_v24 = vmax.bf16 %v1873_v61, %v1677_v15  ;;  %v787_v5 = vrot.slane %v785_v33, 4  ;;  %v3270_v35 = vmax.bf16 %v813_v46, %v549_v27  ;;  %v816_v17 = vrot.slane %v814_v6, 4  ;;  %v3292_v61 = vld [vmem:[%s2867_s30 + $0x54] sm:$0xf]  ;;  %v346_v11 = vld [vmem:[%s2867_s30 + $0x4c] sm:$0xf] }
  0x74   : > { %v1483_v26 = vmax.bf16 %v1385_v10, %v813_v46  ;;  %v1612_v18 = vmax.bf16 %v1546_v55, %v345_v28  ;;  %v1887_v58 = vsel %vm2849_vm2, %v1882_v36, %v1886_v22  ;;  %v793_v9 = vrot.slane %v791_v0, 5  ;;  %v482_v36 = vld [vmem:[%s2812_s24 + $0x50] sm:$0x7] }
  0x75   : > { %2513 = vst [vmem:[%s2949_s7 + $0x38] sm:$0x7] %v2447_v24  ;;  %v788_v3 = vor.u32 %v787_v5, %v783_v47  ;;  %v1888_v37 = vshrl.u32 %v3230_v52, 16  ;;  %v817_v43 = vor.u32 %v816_v17, %v812_v14  ;;  %v1383_v27 = vmax.bf16 %v3195_v63, %v3200_v1  ;;  %v414_v14 = vld [vmem:[%s2826_s27 + $0x48] sm:$0xf] }
  0x76   : > { %v1678_v41 = vmax.bf16 %v1612_v18, %v3221_v62  ;;  %v1894_v49 = vshll.u32 %v3266_v56, 16  ;;  %v820_v32 = vshll.u32 %v3273_v13, 16  ;;  %v545_v31 = vmax.bf16 %v479_v8, %v3129_v45  ;;  %v3316_v24 = vld [vmem:[%s2867_s30 + $0x58] sm:$0xf] }
  0x77   : > { %v789_v21 = vrot.slane %v788_v3, 4  ;;  %v1890_v30 = vrot.slane %v1888_v37, 4  ;;  %v1549_v40 = vmax.bf16 %v1483_v26, %v345_v28  ;;  %v818_v23 = vrot.slane %v817_v43, 4 }
  0x78   : > { %v2448_v4 = vmax.bf16 %v1887_v58, %v1678_v41  ;;  %v795_v62 = vshrl.u32 %v3245_v16, 16  ;;  %v1318_v63 = vmax.bf16 %v3218_v2, %v545_v31  ;;  %v1898_v1 = vshrl.u32 %v3266_v56, 16 }
  0x79   : > { %v794_v7 = vsel %vm2849_vm2, %v789_v21, %v793_v9  ;;  %v1891_v34 = vor.u32 %v1890_v30, %v1886_v22  ;;  %v1896_v47 = vrot.slane %v1894_v49, 5  ;;  %v3296_v50 = vrot.slane %v820_v32, 5  ;;  %v3326_v32 = vld [vmem:[%s2867_s30 + $0x50] sm:$0x7] }
  0x7a   : > { %2514 = vst [vmem:[%s2949_s7 + $0x3c] sm:$0xf] %v2448_v4  ;;  %v1320_v44 = vmax.bf16 %v794_v7, %v547_v51  ;;  %v1481_v45 = vmax.bf16 %v1383_v27, %v794_v7  ;;  %v797_v48 = vrot.slane %v795_v62, 4  ;;  %v1384_v59 = vmax.bf16 %v1318_v63, %v3245_v16  ;;  %v282_v62 = vld [vmem:[%s2806_s21 + $0x60] sm:$0xf] }
  0x7b   : > { %v1892_v38 = vrot.slane %v1891_v34, 4  ;;  %v1900_v53 = vrot.slane %v1898_v1, 4  ;;  %v1615_v51 = vmax.bf16 %v1549_v40, %v3292_v61  ;;  %v823_v60 = vsel %vm2849_vm2, %v818_v23, %v3296_v50 }
  0x7c   : > { %v1386_v2 = vmax.bf16 %v1320_v44, %v3215_v25  ;;  %v1547_v54 = vmax.bf16 %v1481_v45, %v3177_v20  ;;  %v798_v19 = vor.u32 %v797_v48, %v793_v9  ;;  %v1904_v33 = vshrl.u32 %v414_v14, 16  ;;  %v3312_v20 = vld [vmem:[%s2826_s27 + $0x50] sm:$0xf]  ;;  %v3342_v44 = vld [vmem:[%s2806_s21 + $0x64] sm:$0xf] }
  0x7d   : > { %v1897_v15 = vsel %vm2849_vm2, %v1892_v38, %v1896_v47  ;;  %v1907_v0 = vshll.u32 %v414_v14, 16  ;;  %v1901_v55 = vor.u32 %v1900_v53, %v1896_v47  ;;  %v1681_v28 = vmax.bf16 %v1615_v51, %v414_v14  ;;  %v486_v45 = vld [vmem:[%s2812_s24 + $0x60] sm:$0xf] }
  0x7e   : > { %v1484_v6 = vmax.bf16 %v1386_v2, %v823_v60  ;;  %v1613_v46 = vmax.bf16 %v1547_v54, %v346_v11  ;;  %v799_v10 = vrot.slane %v798_v19, 4  ;;  %v1906_v22 = vrot.slane %v1904_v33, 4 }
  0x7f   : > { %v1909_v5 = vrot.slane %v1907_v0, 5  ;;  %v1913_v26 = vshll.u32 %v3302_v57, 16  ;;  %v1917_v58 = vshrl.u32 %v3302_v57, 16  ;;  %v1923_v37 = vshll.u32 %v3312_v20, 16 }
  0x80   : > { %v1550_v18 = vmax.bf16 %v1484_v6, %v346_v11  ;;  %v1679_v17 = vmax.bf16 %v1613_v46, %v3230_v52  ;;  %v1482_v8 = vmax.bf16 %v1384_v59, %v799_v10  ;;  %v548_v41 = vmax.bf16 %v482_v36, %v3245_v16  ;;  %v3352_v59 = vld [vmem:[%s2812_s24 + $0x6c] sm:$0xf] }
  0x81   : > { %v1910_v3 = vor.u32 %v1909_v5, %v1906_v22  ;;  %v1915_v9 = vrot.slane %v1913_v26, 5  ;;  %v1919_v21 = vrot.slane %v1917_v58, 4  ;;  %v1902_v52 = vrot.slane %v1901_v55, 4  ;;  %v3376_v26 = vld [vmem:[%s2867_s30 + $0x5c] sm:$0x7] }
  0x82   : > { %v2449_v43 = vmax.bf16 %v1897_v15, %v1679_v17  ;;  %v1548_v27 = vmax.bf16 %v1482_v8, %v3241_v42  ;;  %v1616_v49 = vmax.bf16 %v1550_v18, %v3316_v24  ;;  %v824_v31 = vshrl.u32 %v3273_v13, 16 }
  0x83   : > { %v1911_v30 = vrot.slane %v1910_v3, 4  ;;  %v1321_v40 = vmax.bf16 %v799_v10, %v548_v41  ;;  %v1920_v23 = vor.u32 %v1919_v21, %v1915_v9  ;;  %v1925_v16 = vrot.slane %v1923_v37, 5 }
  0x84   : > { %2515 = vst [vmem:[%s2949_s7 + $0x40] sm:$0xf] %v2449_v43  ;;  %v1614_v4 = vmax.bf16 %v1548_v27, %v3326_v32  ;;  %v1927_v42 = vshrl.u32 %v3312_v20, 16  ;;  %v3336_v7 = vmax.bf16 %v823_v60, %v550_v12  ;;  %v1682_v34 = vmax.bf16 %v1616_v49, %v3302_v57  ;;  %v3349_v12 = vld [vmem:[%s2806_s21 + $0x6c] sm:$0xf] }
  0x85   : > { %v1916_v63 = vsel %vm2849_vm2, %v1911_v30, %v1915_v9  ;;  %v826_v1 = vrot.slane %v824_v31, 4  ;;  %v1921_v48 = vrot.slane %v1920_v23, 4  ;;  %v1387_v14 = vmax.bf16 %v1321_v40, %v3273_v13  ;;  %v487_v43 = vld [vmem:[%s2812_s24 + $0x64] sm:$0xf]  ;;  %v3386_v30 = vld [vmem:[%s2806_s21 + $0x68] sm:$0xf] }
  0x86   : > { %v1680_v47 = vmax.bf16 %v1614_v4, %v3266_v56  ;;  %v1929_v38 = vrot.slane %v1927_v42, 4  ;;  %v2451_v25 = vmax.bf16 %v1916_v63, %v1681_v28  ;;  %v830_v53 = vshrl.u32 %v282_v62, 16  ;;  %v3357_v56 = vld [vmem:[%s2806_s21 + $0x70] sm:$0xf]  ;;  %v3372_v28 = vld [vmem:[%s2826_s27 + $0x58] sm:$0xf] }
  0x87   : > { %v827_v39 = vor.u32 %v826_v1, %v3296_v50  ;;  %v833_v2 = vshll.u32 %v282_v62, 16  ;;  %v1926_v19 = vsel %vm2849_vm2, %v1921_v48, %v1925_v16  ;;  %v552_v57 = vmax.bf16 %v486_v45, %v282_v62  ;;  %v3363_v50 = vld [vmem:[%s2826_s27 + $0x54] sm:$0xf]  ;;  %v3394_v63 = vld [vmem:[%s2812_s24 + $0x70] sm:$0xf] }
  0x88   : > { %v2450_v54 = vmax.bf16 %v1902_v52, %v1680_v47  ;;  %v839_v51 = vshll.u32 %v3342_v44, 16  ;;  %v2452_v11 = vmax.bf16 %v1926_v19, %v1682_v34  ;;  %v832_v15 = vrot.slane %v830_v53, 4 }
  0x89   : > { %v3360_v60 = vrot.slane %v827_v39, 4  ;;  %v835_v33 = vrot.slane %v833_v2, 5  ;;  %v1930_v0 = vor.u32 %v1929_v38, %v1925_v16  ;;  %v555_v6 = vmax.bf16 %v3352_v59, %v3349_v12  ;;  %v3401_v38 = vld [vmem:[%s2806_s21 + $0x74] sm:$0xf]  ;;  %v351_v39 = vld [vmem:[%s2867_s30 + $0x60] sm:$0xf] }
  0x8a   : > { %2516 = vst [vmem:[%s2949_s7 + $0x44] sm:$0x7] %v2450_v54  ;;  %v859_v46 = vshrl.u32 %v3349_v12, 16  ;;  %v862_v10 = vshll.u32 %v3349_v12, 16  ;;  %v2728_v55 = vcombine.low %v2451_v25, %v2452_v11  ;;  %v868_v5 = vshll.u32 %v3357_v56, 16 }
  0x8b   : > { %v1485_v36 = vmax.bf16 %v1387_v14, %v3360_v60  ;;  %v836_v22 = vor.u32 %v835_v33, %v832_v15  ;;  %v1388_v8 = vmax.bf16 %v3270_v35, %v282_v62  ;;  %v1933_v58 = vshrl.u32 %v3363_v50, 16  ;;  %v485_v15 = vld [vmem:[%s2812_s24 + $0x5c] sm:$0x7] }
  0x8c   : > { %v861_v18 = vrot.slane %v859_v46, 4  ;;  %v864_v17 = vrot.slane %v862_v10, 5  ;;  %2729 = vst [vmem:[%s2949_s7 + $0x48] sm:$0xff] %v2728_v55   ;;  %v841_v37 = vrot.slane %v839_v51, 5  ;;  %v1936_v41 = vshll.u32 %v3363_v50, 16 }
  0x8d   : > { %v1551_v3 = vmax.bf16 %v1485_v36, %v3326_v32  ;;  %v837_v9 = vrot.slane %v836_v22, 4  ;;  %v1931_v27 = vrot.slane %v1930_v0, 4  ;;  %v1935_v21 = vrot.slane %v1933_v58, 4  ;;  %v3408_v51 = vld [vmem:[%s2826_s27 + $0x5c] sm:$0xf] }
  0x8e   : > { %v865_v49 = vor.u32 %v864_v17, %v861_v18  ;;  %v1942_v52 = vshll.u32 %v3372_v28, 16  ;;  %v870_v32 = vrot.slane %v868_v5, 5  ;;  %v1938_v40 = vrot.slane %v1936_v41, 5 }
  0x8f   : > { %v1617_v35 = vmax.bf16 %v1551_v3, %v3376_v26  ;;  %v842_v31 = vsel %vm2849_vm2, %v837_v9, %v841_v37  ;;  %v553_v42 = vmax.bf16 %v487_v43, %v3342_v44  ;;  %v843_v1 = vshrl.u32 %v3342_v44, 16 }
  0x90   : > { %v866_v4 = vrot.slane %v865_v49, 4  ;;  %v1325_v23 = vmax.bf16 %v842_v31, %v552_v57  ;;  %v1486_v16 = vmax.bf16 %v1388_v8, %v842_v31  ;;  %v1939_v34 = vor.u32 %v1938_v40, %v1935_v21 }
  0x91   : > { %v1683_v62 = vmax.bf16 %v1617_v35, %v3312_v20  ;;  %v849_v45 = vshll.u32 %v3386_v30, 16  ;;  %v1944_v14 = vrot.slane %v1942_v52, 5  ;;  %v872_v25 = vshrl.u32 %v3357_v56, 16  ;;  %v420_v35 = vld [vmem:[%s2826_s27 + $0x60] sm:$0xf] }
  0x92   : > { %v1391_v47 = vmax.bf16 %v1325_v23, %v3349_v12  ;;  %v1552_v48 = vmax.bf16 %v1486_v16, %v3292_v61  ;;  %v871_v53 = vsel %vm2849_vm2, %v866_v4, %v870_v32  ;;  %v1940_v2 = vrot.slane %v1939_v34, 4 }
  0x93   : > { %v2453_v20 = vmax.bf16 %v1931_v27, %v1683_v62  ;;  %v845_v54 = vrot.slane %v843_v1, 4  ;;  %v556_v11 = vmax.bf16 %v3394_v63, %v3357_v56  ;;  %v874_v61 = vrot.slane %v872_v25, 4  ;;  %v3431_v27 = vld [vmem:[%s2867_s30 + $0x6c] sm:$0xf]  ;;  %v352_v62 = vld [vmem:[%s2867_s30 + $0x64] sm:$0xf] }
  0x94   : > { %v1489_v19 = vmax.bf16 %v1391_v47, %v871_v53  ;;  %v1618_v57 = vmax.bf16 %v1552_v48, %v351_v39  ;;  %v1945_v33 = vsel %vm2849_vm2, %v1940_v2, %v1944_v14  ;;  %v851_v46 = vrot.slane %v849_v45, 5  ;;  %v3452_v25 = vld [vmem:[%s2826_s27 + $0x68] sm:$0xf] }
  0x95   : > { %2519 = vst [vmem:[%s2949_s7 + $0x50] sm:$0x7] %v2453_v20  ;;  %v846_v0 = vor.u32 %v845_v54, %v841_v37  ;;  %v878_v10 = vshll.u32 %v3401_v38, 16  ;;  %v875_v36 = vor.u32 %v874_v61, %v870_v32  ;;  %v1389_v22 = vmax.bf16 %v3336_v7, %v3342_v44 }
  0x96   : > { %v1684_v55 = vmax.bf16 %v1618_v57, %v3363_v50  ;;  %v1946_v5 = vshrl.u32 %v3372_v28, 16  ;;  %v1555_v18 = vmax.bf16 %v1489_v19, %v351_v39  ;;  %v1952_v8 = vshll.u32 %v3408_v51, 16  ;;  %v3456_v39 = vld [vmem:[%s2867_s30 + $0x70] sm:$0xf] }
  0x97   : > { %v847_v17 = vrot.slane %v846_v0, 4  ;;  %v551_v58 = vmax.bf16 %v485_v15, %v3273_v13  ;;  %v876_v9 = vrot.slane %v875_v36, 4  ;;  %v853_v50 = vshrl.u32 %v3386_v30, 16 }
  0x98   : > { %v2454_v3 = vmax.bf16 %v1945_v33, %v1684_v55  ;;  %v1948_v37 = vrot.slane %v1946_v5, 4  ;;  %v3426_v43 = vrot.slane %v878_v10, 5  ;;  %v1956_v44 = vshrl.u32 %v3408_v51, 16 }
  0x99   : > { %v852_v41 = vsel %vm2849_vm2, %v847_v17, %v851_v46  ;;  %v1324_v7 = vmax.bf16 %v3360_v60, %v551_v58  ;;  %v1954_v52 = vrot.slane %v1952_v8, 5  ;;  %v3438_v31 = vmax.bf16 %v871_v53, %v555_v6  ;;  %v421_v6 = vld [vmem:[%s2826_s27 + $0x64] sm:$0xf]  ;;  %v353_v58 = vld [vmem:[%s2867_s30 + $0x68] sm:$0x7] }
  0x9a   : > { %2520 = vst [vmem:[%s2949_s7 + $0x54] sm:$0xf] %v2454_v3  ;;  %v1326_v49 = vmax.bf16 %v852_v41, %v553_v42  ;;  %v1487_v13 = vmax.bf16 %v1389_v22, %v852_v41  ;;  %v1949_v21 = vor.u32 %v1948_v37, %v1944_v14  ;;  %v881_v60 = vsel %vm2849_vm2, %v876_v9, %v3426_v43 }
  0x9b   : > { %v855_v32 = vrot.slane %v853_v50, 4  ;;  %v1958_v40 = vrot.slane %v1956_v44, 4  ;;  %v1621_v42 = vmax.bf16 %v1555_v18, %v3431_v27  ;;  %v1390_v59 = vmax.bf16 %v1324_v7, %v3386_v30  ;;  %v3468_v50 = vld [vmem:[%s2806_s21 + $0x78] sm:$0xf] }
  0x9c   : > { %v1392_v4 = vmax.bf16 %v1326_v49, %v3357_v56  ;;  %v1553_v23 = vmax.bf16 %v1487_v13, %v3316_v24  ;;  %v1950_v16 = vrot.slane %v1949_v21, 4  ;;  %v1962_v34 = vshrl.u32 %v420_v35, 16  ;;  %v488_v24 = vld [vmem:[%s2812_s24 + $0x68] sm:$0x7]  ;;  %v492_v49 = vld [vmem:[%s2812_s24 + $0x78] sm:$0xf] }
  0x9d   : > { %v856_v12 = vor.u32 %v855_v32, %v851_v46  ;;  %v1965_v1 = vshll.u32 %v420_v35, 16  ;;  %v1959_v14 = vor.u32 %v1958_v40, %v1954_v52  ;;  %v1687_v53 = vmax.bf16 %v1621_v42, %v420_v35  ;;  %v3479_v32 = vld [vmem:[%s2806_s21 + $0x7c] sm:$0xf]  ;;  %v3488_v42 = vld [vmem:[%s2812_s24 + $0x84] sm:$0xf] }
  0x9e   : > { %v1490_v45 = vmax.bf16 %v1392_v4, %v881_v60  ;;  %v1619_v47 = vmax.bf16 %v1553_v23, %v352_v62  ;;  %v1955_v48 = vsel %vm2849_vm2, %v1950_v16, %v1954_v52  ;;  %v1964_v2 = vrot.slane %v1962_v34, 4  ;;  %v3485_v16 = vld [vmem:[%s2806_s21 + $0x84] sm:$0xf] }
  0x9f   : > { %v857_v20 = vrot.slane %v856_v12, 4  ;;  %v1967_v54 = vrot.slane %v1965_v1, 5  ;;  %v1971_v61 = vshll.u32 %v421_v6, 16  ;;  %v1975_v15 = vshrl.u32 %v421_v6, 16 }
  0xa0   : > { %v1556_v19 = vmax.bf16 %v1490_v45, %v352_v62  ;;  %v1685_v57 = vmax.bf16 %v1619_v47, %v3372_v28  ;;  %v1981_v46 = vshll.u32 %v3452_v25, 16  ;;  %v554_v10 = vmax.bf16 %v488_v24, %v3386_v30 }
  0xa1   : > { %v1488_v33 = vmax.bf16 %v1390_v59, %v857_v20  ;;  %v1968_v0 = vor.u32 %v1967_v54, %v1964_v2  ;;  %v1973_v22 = vrot.slane %v1971_v61, 5  ;;  %v1977_v5 = vrot.slane %v1975_v15, 4  ;;  %v3512_v54 = vld [vmem:[%s2826_s27 + $0x70] sm:$0xf] }
  0xa2   : > { %v2455_v55 = vmax.bf16 %v1955_v48, %v1685_v57  ;;  %v1622_v36 = vmax.bf16 %v1556_v19, %v3456_v39  ;;  %v1960_v17 = vrot.slane %v1959_v14, 4  ;;  %v882_v8 = vshrl.u32 %v3401_v38, 16 }
  0xa3   : > { %v1554_v18 = vmax.bf16 %v1488_v33, %v3376_v26  ;;  %v1969_v28 = vrot.slane %v1968_v0, 4  ;;  %v1978_v3 = vor.u32 %v1977_v5, %v1973_v22  ;;  %v1983_v9 = vrot.slane %v1981_v46, 5 }
  0xa4   : > { %2521 = vst [vmem:[%s2949_s7 + $0x58] sm:$0xf] %v2455_v55  ;;  %v1327_v37 = vmax.bf16 %v857_v20, %v554_v10  ;;  %v1985_v30 = vshrl.u32 %v3452_v25, 16  ;;  %v1688_v7 = vmax.bf16 %v1622_v36, %v421_v6  ;;  %v884_v44 = vrot.slane %v882_v8, 4  ;;  %v3501_v6 = vld [vmem:[%s2826_s27 + $0x6c] sm:$0xf] }
  0xa5   : > { %v1620_v41 = vmax.bf16 %v1554_v18, %v353_v58  ;;  %v1974_v26 = vsel %vm2849_vm2, %v1969_v28, %v1973_v22  ;;  %v3476_v13 = vmax.bf16 %v881_v60, %v556_v11  ;;  %v1979_v21 = vrot.slane %v1978_v3, 4  ;;  %v3494_v60 = vld [vmem:[%s2806_s21 + $0x88] sm:$0xf]  ;;  %v3520_v10 = vld [vmem:[%s2806_s21 + $0x80] sm:$0xf] }
  0xa6   : > { %v2457_v52 = vmax.bf16 %v1974_v26, %v1687_v53  ;;  %v1987_v35 = vrot.slane %v1985_v30, 4  ;;  %v885_v4 = vor.u32 %v884_v44, %v3426_v43  ;;  %v1393_v23 = vmax.bf16 %v1327_v37, %v3401_v38  ;;  %v493_v55 = vld [vmem:[%s2812_s24 + $0x7c] sm:$0xf]  ;;  %v3524_v36 = vld [vmem:[%s2867_s30 + $0x74] sm:$0x7] }
  0xa7   : > { %v1686_v40 = vmax.bf16 %v1620_v41, %v3408_v51  ;;  %v888_v56 = vshrl.u32 %v3468_v50, 16  ;;  %v1984_v63 = vsel %vm2849_vm2, %v1979_v21, %v1983_v9  ;;  %v558_v62 = vmax.bf16 %v492_v49, %v3468_v50  ;;  %v3536_v21 = vld [vmem:[%s2806_s21 + $0x8c] sm:$0xf] }
  0xa8   : > { %v1988_v11 = vor.u32 %v1987_v35, %v1983_v9  ;;  %v891_v51 = vshll.u32 %v3468_v50, 16  ;;  %v2458_v12 = vmax.bf16 %v1984_v63, %v1688_v7  ;;  %v3498_v59 = vrot.slane %v885_v4, 4 }
  0xa9   : > { %v2456_v43 = vmax.bf16 %v1960_v17, %v1686_v40  ;;  %v890_v34 = vrot.slane %v888_v56, 4  ;;  %v561_v1 = vmax.bf16 %v3488_v42, %v3485_v16  ;;  %v897_v47 = vshll.u32 %v3479_v32, 16 }
  0xaa   : > { %v893_v45 = vrot.slane %v891_v51, 5  ;;  %v917_v48 = vshrl.u32 %v3485_v16, 16  ;;  %v2730_v14 = vcombine.low %v2457_v52, %v2458_v12  ;;  %v1491_v24 = vmax.bf16 %v1393_v23, %v3498_v59  ;;  %v357_v23 = vld [vmem:[%s2867_s30 + $0x78] sm:$0xf] }
  0xab   : > { %2522 = vst [vmem:[%s2949_s7 + $0x5c] sm:$0x7] %v2456_v43  ;;  %v920_v20 = vshll.u32 %v3485_v16, 16  ;;  %v926_v53 = vshll.u32 %v3494_v60, 16  ;;  %v1989_v2 = vrot.slane %v1988_v11, 4  ;;  %v1991_v61 = vshrl.u32 %v3501_v6, 16 }
  0xac   : > { %v894_v19 = vor.u32 %v893_v45, %v890_v34  ;;  %v919_v57 = vrot.slane %v917_v48, 4  ;;  %2731 = vst [vmem:[%s2949_s7 + $0x60] sm:$0xff] %v2730_v14   ;;  %v1557_v15 = vmax.bf16 %v1491_v24, %v353_v58  ;;  %v1394_v0 = vmax.bf16 %v3438_v31, %v3468_v50  ;;  %v496_v31 = vld [vmem:[%s2812_s24 + $0x88] sm:$0xf]  ;;  %v491_v14 = vld [vmem:[%s2812_s24 + $0x74] sm:$0x7] }
  0xad   : > { %v922_v33 = vrot.slane %v920_v20, 5  ;;  %v1994_v46 = vshll.u32 %v3501_v6, 16  ;;  %v899_v5 = vrot.slane %v897_v47, 5  ;;  %v928_v18 = vrot.slane %v926_v53, 5 }
  0xae   : > { %v895_v22 = vrot.slane %v894_v19, 4  ;;  %v1993_v17 = vrot.slane %v1991_v61, 4  ;;  %v1623_v28 = vmax.bf16 %v1557_v15, %v3524_v36  ;;  %v2000_v3 = vshll.u32 %v3512_v54, 16 }
  0xaf   : > { %v923_v8 = vor.u32 %v922_v33, %v919_v57  ;;  %v1996_v58 = vrot.slane %v1994_v46, 5  ;;  %v559_v37 = vmax.bf16 %v493_v55, %v3479_v32  ;;  %v901_v30 = vshrl.u32 %v3479_v32, 16 }
  0xb0   : > { %v900_v9 = vsel %vm2849_vm2, %v895_v22, %v899_v5  ;;  %v907_v50 = vshll.u32 %v3520_v10, 16  ;;  %v1689_v41 = vmax.bf16 %v1623_v28, %v3452_v25  ;;  %v562_v52 = vmax.bf16 %v496_v31, %v3494_v60 }
  0xb1   : > { %v924_v7 = vrot.slane %v923_v8, 4  ;;  %v1331_v26 = vmax.bf16 %v900_v9, %v558_v62  ;;  %v1492_v44 = vmax.bf16 %v1394_v0, %v900_v9  ;;  %v1997_v49 = vor.u32 %v1996_v58, %v1993_v17  ;;  %v3544_v62 = vld [vmem:[%s2826_s27 + $0x74] sm:$0xf] }
  0xb2   : > { %v903_v35 = vrot.slane %v901_v30, 4  ;;  %v930_v40 = vshrl.u32 %v3494_v60, 16  ;;  %v2459_v4 = vmax.bf16 %v1989_v2, %v1689_v41  ;;  %v2002_v25 = vrot.slane %v2000_v3, 5  ;;  %v427_v41 = vld [vmem:[%s2826_s27 + $0x7c] sm:$0xf] }
  0xb3   : > { %v1397_v56 = vmax.bf16 %v1331_v26, %v3485_v16  ;;  %v1558_v63 = vmax.bf16 %v1492_v44, %v3431_v27  ;;  %v1998_v11 = vrot.slane %v1997_v49, 4  ;;  %v909_v43 = vrot.slane %v907_v50, 5  ;;  %v358_v16 = vld [vmem:[%s2867_s30 + $0x7c] sm:$0xf]  ;;  %v3589_v44 = vld [vmem:[%s2867_s30 + $0x88] sm:$0xf] }
  0xb4   : > { %v904_v51 = vor.u32 %v903_v35, %v899_v5  ;;  %v932_v12 = vrot.slane %v930_v40, 4  ;;  %2525 = vst [vmem:[%s2949_s7 + $0x68] sm:$0x7] %v2459_v4  ;;  %v929_v34 = vsel %vm2849_vm2, %v924_v7, %v928_v18  ;;  %v936_v47 = vshll.u32 %v3536_v21, 16  ;;  %v3592_v49 = vld [vmem:[%s2826_s27 + $0x80] sm:$0xf] }
  0xb5   : > { %v1624_v45 = vmax.bf16 %v1558_v63, %v357_v23  ;;  %v1395_v48 = vmax.bf16 %v3476_v13, %v3479_v32  ;;  %v2003_v27 = vsel %vm2849_vm2, %v1998_v11, %v2002_v25  ;;  %v2004_v53 = vshrl.u32 %v3512_v54, 16 }
  0xb6   : > { %v905_v24 = vrot.slane %v904_v51, 4  ;;  %v933_v20 = vor.u32 %v932_v12, %v928_v18  ;;  %v1495_v2 = vmax.bf16 %v1397_v56, %v929_v34  ;;  %v3557_v57 = vrot.slane %v936_v47, 5  ;;  %v494_v51 = vld [vmem:[%s2812_s24 + $0x80] sm:$0x7] }
  0xb7   : > { %v1690_v19 = vmax.bf16 %v1624_v45, %v3501_v6  ;;  %v2010_v61 = vshll.u32 %v3544_v62, 16  ;;  %v2006_v15 = vrot.slane %v2004_v53, 4  ;;  %v557_v33 = vmax.bf16 %v491_v14, %v3401_v38  ;;  %v426_v38 = vld [vmem:[%s2826_s27 + $0x78] sm:$0xf] }
  0xb8   : > { %v910_v13 = vsel %vm2849_vm2, %v905_v24, %v909_v43  ;;  %v934_v32 = vrot.slane %v933_v20, 4  ;;  %v3566_v0 = vmax.bf16 %v929_v34, %v561_v1  ;;  %v911_v18 = vshrl.u32 %v3520_v10, 16 }
  0xb9   : > { %v2460_v46 = vmax.bf16 %v2003_v27, %v1690_v19  ;;  %v1332_v6 = vmax.bf16 %v910_v13, %v559_v37  ;;  %v1493_v55 = vmax.bf16 %v1395_v48, %v910_v13  ;;  %v2007_v5 = vor.u32 %v2006_v15, %v2002_v25  ;;  %v3582_v37 = vld [vmem:[%s2867_s30 + $0x84] sm:$0xf]  ;;  %v359_v15 = vld [vmem:[%s2867_s30 + $0x80] sm:$0x7] }
  0xba   : > { %v939_v22 = vsel %vm2849_vm2, %v934_v32, %v3557_v57  ;;  %v1330_v17 = vmax.bf16 %v3498_v59, %v557_v33  ;;  %v1561_v28 = vmax.bf16 %v1495_v2, %v357_v23  ;;  %v2014_v8 = vshrl.u32 %v3544_v62, 16  ;;  %v3605_v32 = vld [vmem:[%s2806_s21 + $0x90] sm:$0xf] }
  0xbb   : > { %2526 = vst [vmem:[%s2949_s7 + $0x6c] sm:$0xf] %v2460_v46  ;;  %v1398_v42 = vmax.bf16 %v1332_v6, %v3494_v60  ;;  %v1559_v1 = vmax.bf16 %v1493_v55, %v3456_v39  ;;  %v3579_v58 = vmax.bf16 %v939_v22, %v562_v52  ;;  %v2008_v3 = vrot.slane %v2007_v5, 4 }
  0xbc   : > { %v2012_v31 = vrot.slane %v2010_v61, 5  ;;  %v913_v9 = vrot.slane %v911_v18, 4  ;;  %v2016_v50 = vrot.slane %v2014_v8, 4  ;;  %v2020_v7 = vshrl.u32 %v426_v38, 16 }
  0xbd   : > { %v1496_v59 = vmax.bf16 %v1398_v42, %v939_v22  ;;  %v1625_v30 = vmax.bf16 %v1559_v1, %v358_v16  ;;  %v1396_v26 = vmax.bf16 %v1330_v17, %v3520_v10  ;;  %v2023_v52 = vshll.u32 %v426_v38, 16  ;;  %v498_v22 = vld [vmem:[%s2812_s24 + $0x90] sm:$0xf]  ;;  %v3617_v42 = vld [vmem:[%s2806_s21 + $0x9c] sm:$0xf] }
  0xbe   : > { %v2013_v60 = vsel %vm2849_vm2, %v2008_v3, %v2012_v31  ;;  %v914_v39 = vor.u32 %v913_v9, %v909_v43  ;;  %v1627_v4 = vmax.bf16 %v1561_v28, %v3582_v37  ;;  %v2022_v23 = vrot.slane %v2020_v7, 4 }
  0xbf   : > { %v1562_v35 = vmax.bf16 %v1496_v59, %v358_v16  ;;  %v1691_v40 = vmax.bf16 %v1625_v30, %v3512_v54  ;;  %v2025_v63 = vrot.slane %v2023_v52, 5  ;;  %v2029_v25 = vshll.u32 %v427_v41, 16  ;;  %v3614_v16 = vld [vmem:[%s2806_s21 + $0x94] sm:$0xf] }
  0xc0   : > { %v915_v56 = vrot.slane %v914_v39, 4  ;;  %v2033_v11 = vshrl.u32 %v427_v41, 16  ;;  %v2017_v12 = vor.u32 %v2016_v50, %v2012_v31  ;;  %v2039_v45 = vshll.u32 %v3592_v49, 16  ;;  %v3624_v31 = vld [vmem:[%s2812_s24 + $0x9c] sm:$0xf] }
  0xc1   : > { %v2461_v43 = vmax.bf16 %v2013_v60, %v1691_v40  ;;  %v1628_v34 = vmax.bf16 %v1562_v35, %v3589_v44  ;;  %v2026_v48 = vor.u32 %v2025_v63, %v2022_v23  ;;  %v2031_v54 = vrot.slane %v2029_v25, 5  ;;  %v3634_v60 = vld [vmem:[%s2826_s27 + $0x84] sm:$0xf] }
  0xc2   : > { %v1494_v47 = vmax.bf16 %v1396_v26, %v915_v56  ;;  %v2035_v14 = vrot.slane %v2033_v11, 4  ;;  %v1693_v27 = vmax.bf16 %v1627_v4, %v426_v38  ;;  %v2041_v24 = vrot.slane %v2039_v45, 5  ;;  %v3640_v4 = vld [vmem:[%s2826_s27 + $0x88] sm:$0xf] }
  0xc3   : > { %2527 = vst [vmem:[%s2949_s7 + $0x70] sm:$0xf] %v2461_v43  ;;  %v560_v20 = vmax.bf16 %v494_v51, %v3520_v10  ;;  %v940_v53 = vshrl.u32 %v3536_v21, 16  ;;  %v2027_v19 = vrot.slane %v2026_v48, 4  ;;  %v2043_v13 = vshrl.u32 %v3592_v49, 16 }
  0xc4   : > { %v1560_v2 = vmax.bf16 %v1494_v47, %v3524_v36  ;;  %v2036_v61 = vor.u32 %v2035_v14, %v2031_v54  ;;  %v2018_v33 = vrot.slane %v2017_v12, 4  ;;  %v1694_v46 = vmax.bf16 %v1628_v34, %v427_v41  ;;  %v3631_v41 = vld [vmem:[%s2806_s21 + $0xa0] sm:$0xf]  ;;  %v499_v47 = vld [vmem:[%s2812_s24 + $0x94] sm:$0xf] }
  0xc5   : > { %v942_v6 = vrot.slane %v940_v53, 4  ;;  %v1333_v55 = vmax.bf16 %v915_v56, %v560_v20  ;;  %v2032_v5 = vsel %vm2849_vm2, %v2027_v19, %v2031_v54  ;;  %v2045_v18 = vrot.slane %v2043_v13, 4  ;;  %v3654_v48 = vld [vmem:[%s2867_s30 + $0x8c] sm:$0x7]  ;;  %v3659_v19 = vld [vmem:[%s2806_s21 + $0x98] sm:$0xf] }
  0xc6   : > { %v1626_v10 = vmax.bf16 %v1560_v2, %v359_v15  ;;  %v2037_v36 = vrot.slane %v2036_v61, 4  ;;  %v2463_v17 = vmax.bf16 %v2032_v5, %v1693_v27  ;;  %v946_v1 = vshrl.u32 %v3605_v32, 16  ;;  %v3670_v5 = vld [vmem:[%s2812_s24 + $0xa0] sm:$0xf] }
  0xc7   : > { %v943_v38 = vor.u32 %v942_v6, %v3557_v57  ;;  %v1399_v28 = vmax.bf16 %v1333_v55, %v3536_v21  ;;  %v564_v9 = vmax.bf16 %v498_v22, %v3605_v32  ;;  %v949_v57 = vshll.u32 %v3605_v32, 16  ;;  %v3667_v22 = vld [vmem:[%s2806_s21 + $0xa4] sm:$0xf] }
  0xc8   : > { %v1692_v8 = vmax.bf16 %v1626_v10, %v3544_v62  ;;  %v2042_v3 = vsel %vm2849_vm2, %v2037_v36, %v2041_v24  ;;  %v2046_v50 = vor.u32 %v2045_v18, %v2041_v24  ;;  %v948_v7 = vrot.slane %v946_v1, 4 }
  0xc9   : > { %v2464_v59 = vmax.bf16 %v2042_v3, %v1694_v46  ;;  %v3628_v30 = vrot.slane %v943_v38, 4  ;;  %v951_v39 = vrot.slane %v949_v57, 5  ;;  %v955_v26 = vshll.u32 %v3614_v16, 16 }
  0xca   : > { %v2462_v62 = vmax.bf16 %v2018_v33, %v1692_v8  ;;  %v975_v52 = vshrl.u32 %v3617_v42, 16  ;;  %v567_v23 = vmax.bf16 %v3624_v31, %v3617_v42  ;;  %v978_v56 = vshll.u32 %v3617_v42, 16  ;;  %v363_v8 = vld [vmem:[%s2867_s30 + $0x90] sm:$0xf] }
  0xcb   : > { %v2732_v35 = vcombine.low %v2463_v17, %v2464_v59  ;;  %v1497_v40 = vmax.bf16 %v1399_v28, %v3628_v30  ;;  %v952_v63 = vor.u32 %v951_v39, %v948_v7  ;;  %v984_v11 = vshll.u32 %v3631_v41, 16  ;;  %v497_v39 = vld [vmem:[%s2812_s24 + $0x8c] sm:$0x7] }
  0xcc   : > { %2528 = vst [vmem:[%s2949_s7 + $0x74] sm:$0x7] %v2462_v62  ;;  %v977_v25 = vrot.slane %v975_v52, 4  ;;  %v1400_v51 = vmax.bf16 %v3566_v0, %v3605_v32  ;;  %v980_v12 = vrot.slane %v978_v56, 5  ;;  %v2049_v34 = vshrl.u32 %v3634_v60, 16 }
  0xcd   : > { %2733 = vst [vmem:[%s2949_s7 + $0x78] sm:$0xff] %v2732_v35   ;;  %v1563_v43 = vmax.bf16 %v1497_v40, %v359_v15  ;;  %v2052_v45 = vshll.u32 %v3634_v60, 16  ;;  %v2047_v54 = vrot.slane %v2046_v50, 4  ;;  %v953_v14 = vrot.slane %v952_v63, 4  ;;  %v3681_v50 = vld [vmem:[%s2826_s27 + $0x8c] sm:$0xf] }
  0xce   : > { %v957_v27 = vrot.slane %v955_v26, 5  ;;  %v2058_v24 = vshll.u32 %v3640_v4, 16  ;;  %v981_v20 = vor.u32 %v980_v12, %v977_v25  ;;  %v2051_v53 = vrot.slane %v2049_v34, 4 }
  0xcf   : > { %v1629_v0 = vmax.bf16 %v1563_v43, %v3654_v48  ;;  %v2054_v2 = vrot.slane %v2052_v45, 5  ;;  %v986_v13 = vrot.slane %v984_v11, 5  ;;  %v565_v32 = vmax.bf16 %v499_v47, %v3614_v16 }
  0xd0   : > { %v958_v61 = vsel %vm2849_vm2, %v953_v14, %v957_v27  ;;  %v959_v15 = vshrl.u32 %v3614_v16, 16  ;;  %v982_v46 = vrot.slane %v981_v20, 4  ;;  %v965_v18 = vshll.u32 %v3659_v19, 16  ;;  %v432_v20 = vld [vmem:[%s2826_s27 + $0x90] sm:$0xf] }
  0xd1   : > { %v1695_v33 = vmax.bf16 %v1629_v0, %v3592_v49  ;;  %v1337_v6 = vmax.bf16 %v958_v61, %v564_v9  ;;  %v1498_v55 = vmax.bf16 %v1400_v51, %v958_v61  ;;  %v2055_v10 = vor.u32 %v2054_v2, %v2051_v53 }
  0xd2   : > { %v961_v36 = vrot.slane %v959_v15, 4  ;;  %v988_v17 = vshrl.u32 %v3631_v41, 16  ;;  %v2060_v1 = vrot.slane %v2058_v24, 5  ;;  %v987_v3 = vsel %vm2849_vm2, %v982_v46, %v986_v13 }
  0xd3   : > { %v2465_v38 = vmax.bf16 %v2047_v54, %v1695_v33  ;;  %v1403_v28 = vmax.bf16 %v1337_v6, %v3617_v42  ;;  %v1564_v49 = vmax.bf16 %v1498_v55, %v3582_v37  ;;  %v2056_v31 = vrot.slane %v2055_v10, 4  ;;  %v3720_v55 = vld [vmem:[%s2867_s30 + $0xa0] sm:$0xf] }
  0xd4   : > { %v962_v9 = vor.u32 %v961_v36, %v957_v27  ;;  %v967_v57 = vrot.slane %v965_v18, 5  ;;  %v568_v7 = vmax.bf16 %v3670_v5, %v3631_v41  ;;  %v990_v62 = vrot.slane %v988_v17, 4  ;;  %v364_v27 = vld [vmem:[%s2867_s30 + $0x94] sm:$0xf] }
  0xd5   : > { %2531 = vst [vmem:[%s2949_s7 + $0x80] sm:$0x7] %v2465_v38  ;;  %v1630_v59 = vmax.bf16 %v1564_v49, %v363_v8  ;;  %v994_v42 = vshll.u32 %v3667_v22, 16  ;;  %v2061_v37 = vsel %vm2849_vm2, %v2056_v31, %v2060_v1  ;;  %v1401_v52 = vmax.bf16 %v3579_v58, %v3614_v16  ;;  %v3726_v38 = vld [vmem:[%s2826_s27 + $0x98] sm:$0xf] }
  0xd6   : > { %v963_v26 = vrot.slane %v962_v9, 4  ;;  %v2062_v35 = vshrl.u32 %v3640_v4, 16  ;;  %v3692_v40 = vmax.bf16 %v987_v3, %v567_v23  ;;  %v1501_v56 = vmax.bf16 %v1403_v28, %v987_v3  ;;  %v500_v31 = vld [vmem:[%s2812_s24 + $0x98] sm:$0x7] }
  0xd7   : > { %v1696_v63 = vmax.bf16 %v1630_v59, %v3634_v60  ;;  %v991_v25 = vor.u32 %v990_v62, %v986_v13  ;;  %v2068_v43 = vshll.u32 %v3681_v50, 16  ;;  %v563_v12 = vmax.bf16 %v497_v39, %v3536_v21  ;;  %v3713_v13 = vld [vmem:[%s2867_s30 + $0x9c] sm:$0xf] }
  0xd8   : > { %v968_v11 = vsel %vm2849_vm2, %v963_v26, %v967_v57  ;;  %v2064_v51 = vrot.slane %v2062_v35, 4  ;;  %v3699_v45 = vrot.slane %v994_v42, 5  ;;  %v969_v60 = vshrl.u32 %v3659_v19, 16 }
  0xd9   : > { %v2466_v58 = vmax.bf16 %v2061_v37, %v1696_v63  ;;  %v992_v16 = vrot.slane %v991_v25, 4  ;;  %v1338_v34 = vmax.bf16 %v968_v11, %v565_v32  ;;  %v1499_v23 = vmax.bf16 %v1401_v52, %v968_v11 }
  0xda   : > { %v2065_v47 = vor.u32 %v2064_v51, %v2060_v1  ;;  %v1336_v54 = vmax.bf16 %v3628_v30, %v563_v12  ;;  %v1567_v14 = vmax.bf16 %v1501_v56, %v363_v8  ;;  %v2072_v0 = vshrl.u32 %v3681_v50, 16  ;;  %v365_v51 = vld [vmem:[%s2867_s30 + $0x98] sm:$0x7] }
  0xdb   : > { %2532 = vst [vmem:[%s2949_s7 + $0x84] sm:$0xf] %v2466_v58  ;;  %v1404_v24 = vmax.bf16 %v1338_v34, %v3631_v41  ;;  %v1565_v21 = vmax.bf16 %v1499_v23, %v3589_v44  ;;  %v997_v53 = vsel %vm2849_vm2, %v992_v16, %v3699_v45  ;;  %v2070_v61 = vrot.slane %v2068_v43, 5  ;;  %v433_v44 = vld [vmem:[%s2826_s27 + $0x94] sm:$0xf] }
  0xdc   : > { %v2066_v2 = vrot.slane %v2065_v47, 4  ;;  %v971_v30 = vrot.slane %v969_v60, 4  ;;  %v1402_v41 = vmax.bf16 %v1336_v54, %v3659_v19  ;;  %v2074_v33 = vrot.slane %v2072_v0, 4  ;;  %v3739_v34 = vld [vmem:[%s2806_s21 + $0xa8] sm:$0xf] }
  0xdd   : > { %v1502_v32 = vmax.bf16 %v1404_v24, %v997_v53  ;;  %v1631_v15 = vmax.bf16 %v1565_v21, %v364_v27  ;;  %v2078_v10 = vshrl.u32 %v432_v20, 16  ;;  %v2081_v5 = vshll.u32 %v432_v20, 16  ;;  %v3744_v60 = vld [vmem:[%s2806_s21 + $0xb4] sm:$0xf]  ;;  %v504_v54 = vld [vmem:[%s2812_s24 + $0xa8] sm:$0xf] }
  0xde   : > { %v2071_v46 = vsel %vm2849_vm2, %v2066_v2, %v2070_v61  ;;  %v972_v6 = vor.u32 %v971_v30, %v967_v57  ;;  %v3722_v36 = vmax.bf16 %v997_v53, %v568_v7  ;;  %v1633_v28 = vmax.bf16 %v1567_v14, %v3713_v13  ;;  %v3750_v0 = vld [vmem:[%s2806_s21 + $0xac] sm:$0xf]  ;;  %v3754_v2 = vld [vmem:[%s2812_s24 + $0xb4] sm:$0xf] }
  0xdf   : > { %v1568_v18 = vmax.bf16 %v1502_v32, %v364_v27  ;;  %v1697_v17 = vmax.bf16 %v1631_v15, %v3640_v4  ;;  %v2080_v1 = vrot.slane %v2078_v10, 4  ;;  %v2083_v8 = vrot.slane %v2081_v5, 5 }
  0xe0   : > { %v973_v49 = vrot.slane %v972_v6, 4  ;;  %v2087_v3 = vshll.u32 %v433_v44, 16  ;;  %v2075_v57 = vor.u32 %v2074_v33, %v2070_v61  ;;  %v2091_v7 = vshrl.u32 %v433_v44, 16 }
  0xe1   : > { %v2467_v9 = vmax.bf16 %v2071_v46, %v1697_v17  ;;  %v1634_v59 = vmax.bf16 %v1568_v18, %v3720_v55  ;;  %v2084_v42 = vor.u32 %v2083_v8, %v2080_v1  ;;  %v2097_v4 = vshll.u32 %v3726_v38, 16  ;;  %v3768_v46 = vld [vmem:[%s2826_s27 + $0x9c] sm:$0xf]  ;;  %v3776_v1 = vld [vmem:[%s2867_s30 + $0xa4] sm:$0x7] }
  0xe2   : > { %v1500_v62 = vmax.bf16 %v1402_v41, %v973_v49  ;;  %v2089_v39 = vrot.slane %v2087_v3, 5  ;;  %v1699_v37 = vmax.bf16 %v1633_v28, %v432_v20  ;;  %v2093_v26 = vrot.slane %v2091_v7, 4 }
  0xe3   : > { %2533 = vst [vmem:[%s2949_s7 + $0x88] sm:$0xf] %v2467_v9  ;;  %v566_v52 = vmax.bf16 %v500_v31, %v3659_v19  ;;  %v998_v35 = vshrl.u32 %v3667_v22, 16  ;;  %v2085_v63 = vrot.slane %v2084_v42, 4  ;;  %v2099_v25 = vrot.slane %v2097_v4, 5 }
  0xe4   : > { %v1566_v56 = vmax.bf16 %v1500_v62, %v3654_v48  ;;  %v2101_v11 = vshrl.u32 %v3726_v38, 16  ;;  %v2076_v43 = vrot.slane %v2075_v57, 4  ;;  %v2094_v12 = vor.u32 %v2093_v26, %v2089_v39  ;;  %v3781_v57 = vld [vmem:[%s2826_s27 + $0xa0] sm:$0xf]  ;;  %v505_v42 = vld [vmem:[%s2812_s24 + $0xac] sm:$0xf] }
  0xe5   : > { %v1000_v58 = vrot.slane %v998_v35, 4  ;;  %v1339_v16 = vmax.bf16 %v973_v49, %v566_v52  ;;  %v1700_v23 = vmax.bf16 %v1634_v59, %v433_v44  ;;  %v2090_v47 = vsel %vm2849_vm2, %v2085_v63, %v2089_v39  ;;  %v3790_v52 = vld [vmem:[%s2806_s21 + $0xb0] sm:$0xf] }
  0xe6   : > { %v1632_v19 = vmax.bf16 %v1566_v56, %v365_v51  ;;  %v2103_v48 = vrot.slane %v2101_v11, 4  ;;  %v2095_v14 = vrot.slane %v2094_v12, 4  ;;  %v2469_v27 = vmax.bf16 %v2090_v47, %v1699_v37 }
  0xe7   : > { %v1001_v24 = vor.u32 %v1000_v58, %v3699_v45  ;;  %v1405_v21 = vmax.bf16 %v1339_v16, %v3667_v22  ;;  %v1004_v61 = vshrl.u32 %v3739_v34, 16  ;;  %v1007_v30 = vshll.u32 %v3739_v34, 16  ;;  %v3763_v45 = vld [vmem:[%s2806_s21 + $0xb8] sm:$0xf] }
  0xe8   : > { %v1698_v20 = vmax.bf16 %v1632_v19, %v3681_v50  ;;  %v2104_v53 = vor.u32 %v2103_v48, %v2099_v25  ;;  %v2100_v32 = vsel %vm2849_vm2, %v2095_v14, %v2099_v25  ;;  %v570_v41 = vmax.bf16 %v504_v54, %v3739_v34  ;;  %v3801_v48 = vld [vmem:[%s2812_s24 + $0xb8] sm:$0xf] }
  0xe9   : > { %v3760_v15 = vrot.slane %v1001_v24, 4  ;;  %v1033_v50 = vshrl.u32 %v3744_v60, 16  ;;  %v2470_v44 = vmax.bf16 %v2100_v32, %v1700_v23  ;;  %v1006_v6 = vrot.slane %v1004_v61, 4  ;;  %v3804_v24 = vld [vmem:[%s2806_s21 + $0xbc] sm:$0xf] }
  0xea   : > { %v2468_v33 = vmax.bf16 %v2076_v43, %v1698_v20  ;;  %v1013_v10 = vshll.u32 %v3750_v0, 16  ;;  %v2105_v18 = vrot.slane %v2104_v53, 4  ;;  %v573_v17 = vmax.bf16 %v3754_v2, %v3744_v60  ;;  %v369_v20 = vld [vmem:[%s2867_s30 + $0xa8] sm:$0xf] }
  0xeb   : > { %v1503_v5 = vmax.bf16 %v1405_v21, %v3760_v15  ;;  %v1009_v28 = vrot.slane %v1007_v30, 5  ;;  %v2734_v49 = vcombine.low %v2469_v27, %v2470_v44  ;;  %v1035_v8 = vrot.slane %v1033_v50, 4  ;;  %v3816_v50 = vld [vmem:[%s2826_s27 + $0xa4] sm:$0xf] }
  0xec   : > { %2534 = vst [vmem:[%s2949_s7 + $0x8c] sm:$0x7] %v2468_v33  ;;  %v1036_v3 = vshll.u32 %v3744_v60, 16  ;;  %v1042_v31 = vshll.u32 %v3763_v45, 16  ;;  %v2107_v7 = vshrl.u32 %v3768_v46, 16  ;;  %v2110_v62 = vshll.u32 %v3768_v46, 16 }
  0xed   : > { %v1569_v9 = vmax.bf16 %v1503_v5, %v365_v51  ;;  %v1010_v59 = vor.u32 %v1009_v28, %v1006_v6  ;;  %2735 = vst [vmem:[%s2949_s7 + $0x90] sm:$0xff] %v2734_v49   ;;  %v1015_v39 = vrot.slane %v1013_v10, 5  ;;  %v1406_v26 = vmax.bf16 %v3692_v40, %v3739_v34  ;;  %v503_v6 = vld [vmem:[%s2812_s24 + $0xa4] sm:$0x7] }
  0xee   : > { %v1038_v4 = vrot.slane %v1036_v3, 5  ;;  %v1044_v37 = vrot.slane %v1042_v31, 5  ;;  %v2109_v63 = vrot.slane %v2107_v7, 4  ;;  %v2112_v25 = vrot.slane %v2110_v62, 5 }
  0xef   : > { %v1635_v35 = vmax.bf16 %v1569_v9, %v3776_v1  ;;  %v1011_v56 = vrot.slane %v1010_v59, 4  ;;  %v2116_v51 = vshll.u32 %v3781_v57, 16  ;;  %v571_v43 = vmax.bf16 %v505_v42, %v3750_v0 }
  0xf0   : > { %v1039_v11 = vor.u32 %v1038_v4, %v1035_v8  ;;  %v1017_v12 = vshrl.u32 %v3750_v0, 16  ;;  %v2113_v16 = vor.u32 %v2112_v25, %v2109_v63  ;;  %v1023_v34 = vshll.u32 %v3790_v52, 16 }
  0xf1   : > { %v1701_v58 = vmax.bf16 %v1635_v35, %v3726_v38  ;;  %v1016_v40 = vsel %vm2849_vm2, %v1011_v56, %v1015_v39  ;;  %v1046_v21 = vshrl.u32 %v3763_v45, 16  ;;  %v574_v33 = vmax.bf16 %v3801_v48, %v3763_v45  ;;  %v438_v56 = vld [vmem:[%s2826_s27 + $0xa8] sm:$0xf] }
  0xf2   : > { %v1040_v19 = vrot.slane %v1039_v11, 4  ;;  %v1343_v23 = vmax.bf16 %v1016_v40, %v570_v41  ;;  %v1504_v47 = vmax.bf16 %v1406_v26, %v1016_v40  ;;  %v1019_v54 = vrot.slane %v1017_v12, 4 }
  0xf3   : > { %v2471_v14 = vmax.bf16 %v2105_v18, %v1701_v58  ;;  %v2114_v27 = vrot.slane %v2113_v16, 4  ;;  %v1025_v38 = vrot.slane %v1023_v34, 5  ;;  %v2118_v41 = vrot.slane %v2116_v51, 5  ;;  %v3846_v51 = vld [vmem:[%s2867_s30 + $0xb4] sm:$0xf] }
  0xf4   : > { %v1045_v53 = vsel %vm2849_vm2, %v1040_v19, %v1044_v37  ;;  %v1409_v2 = vmax.bf16 %v1343_v23, %v3744_v60  ;;  %v1570_v61 = vmax.bf16 %v1504_v47, %v3713_v13  ;;  %v1020_v30 = vor.u32 %v1019_v54, %v1015_v39  ;;  %v439_v16 = vld [vmem:[%s2826_s27 + $0xac] sm:$0xf]  ;;  %v3854_v54 = vld [vmem:[%s2867_s30 + $0xb8] sm:$0xf] }
  0xf5   : > { %2537 = vst [vmem:[%s2949_s7 + $0x98] sm:$0x7] %v2471_v14  ;;  %v3813_v32 = vmax.bf16 %v1045_v53, %v573_v17  ;;  %v1048_v44 = vrot.slane %v1046_v21, 4  ;;  %v1052_v18 = vshll.u32 %v3804_v24, 16  ;;  %v1407_v60 = vmax.bf16 %v3722_v36, %v3750_v0  ;;  %v3857_v14 = vld [vmem:[%s2826_s27 + $0xb0] sm:$0xf] }
  0xf6   : > { %v1636_v10 = vmax.bf16 %v1570_v61, %v369_v20  ;;  %v1021_v5 = vrot.slane %v1020_v30, 4  ;;  %v1507_v13 = vmax.bf16 %v1409_v2, %v1045_v53  ;;  %v2119_v17 = vsel %vm2849_vm2, %v2114_v27, %v2118_v41  ;;  %v506_v2 = vld [vmem:[%s2812_s24 + $0xb0] sm:$0x7] }
  0xf7   : > { %v1049_v28 = vor.u32 %v1048_v44, %v1044_v37  ;;  %v2120_v49 = vshrl.u32 %v3781_v57, 16  ;;  %v2126_v31 = vshll.u32 %v3816_v50, 16  ;;  %v569_v9 = vmax.bf16 %v503_v6, %v3667_v22  ;;  %v370_v37 = vld [vmem:[%s2867_s30 + $0xac] sm:$0xf] }
  0xf8   : > { %v1702_v8 = vmax.bf16 %v1636_v10, %v3768_v46  ;;  %v1026_v3 = vsel %vm2849_vm2, %v1021_v5, %v1025_v38  ;;  %v3832_v42 = vrot.slane %v1052_v18, 5  ;;  %v1027_v39 = vshrl.u32 %v3790_v52, 16 }
  0xf9   : > { %v1050_v36 = vrot.slane %v1049_v28, 4  ;;  %v1344_v0 = vmax.bf16 %v1026_v3, %v571_v43  ;;  %v1505_v59 = vmax.bf16 %v1407_v60, %v1026_v3  ;;  %v2122_v7 = vrot.slane %v2120_v49, 4  ;;  %v371_v3 = vld [vmem:[%s2867_s30 + $0xb0] sm:$0x7] }
  0xfa   : > { %v2472_v62 = vmax.bf16 %v2119_v17, %v1702_v8  ;;  %v1342_v46 = vmax.bf16 %v3760_v15, %v569_v9  ;;  %v1573_v4 = vmax.bf16 %v1507_v13, %v369_v20  ;;  %v2128_v25 = vrot.slane %v2126_v31, 5 }
  0xfb   : > { %v1410_v26 = vmax.bf16 %v1344_v0, %v3763_v45  ;;  %v1571_v35 = vmax.bf16 %v1505_v59, %v3720_v55  ;;  %v2123_v22 = vor.u32 %v2122_v7, %v2118_v41  ;;  %v1055_v63 = vsel %vm2849_vm2, %v1050_v36, %v3832_v42  ;;  %v3872_v59 = vld [vmem:[%s2806_s21 + $0xc0] sm:$0xf] }
  0xfc   : > { %2538 = vst [vmem:[%s2949_s7 + $0x9c] sm:$0xf] %v2472_v62  ;;  %v1029_v11 = vrot.slane %v1027_v39, 4  ;;  %v2130_v15 = vshrl.u32 %v3816_v50, 16  ;;  %v1408_v55 = vmax.bf16 %v1342_v46, %v3790_v52  ;;  %v2136_v34 = vshrl.u32 %v438_v56, 16 }
  0xfd   : > { %v1508_v43 = vmax.bf16 %v1410_v26, %v1055_v63  ;;  %v1637_v45 = vmax.bf16 %v1571_v35, %v370_v37  ;;  %v2124_v12 = vrot.slane %v2123_v22, 4  ;;  %v2139_v19 = vshll.u32 %v438_v56, 16  ;;  %v3877_v39 = vld [vmem:[%s2806_s21 + $0xc4] sm:$0xf]  ;;  %v3880_v46 = vld [vmem:[%s2806_s21 + $0xcc] sm:$0xf] }
  0xfe   : > { %v1030_v58 = vor.u32 %v1029_v11, %v1025_v38  ;;  %v2132_v40 = vrot.slane %v2130_v15, 4  ;;  %v1639_v27 = vmax.bf16 %v1573_v4, %v3846_v51  ;;  %v2138_v38 = vrot.slane %v2136_v34, 4 }
  0xff   : > { %v1574_v23 = vmax.bf16 %v1508_v43, %v370_v37  ;;  %v1703_v47 = vmax.bf16 %v1637_v45, %v3781_v57  ;;  %v2129_v48 = vsel %vm2849_vm2, %v2124_v12, %v2128_v25  ;;  %v2141_v53 = vrot.slane %v2139_v19, 5  ;;  %v3894_v12 = vld [vmem:[%s2806_s21 + $0xd0] sm:$0xf] }
 0x100   : > { %v1031_v21 = vrot.slane %v1030_v58, 4  ;;  %v2133_v20 = vor.u32 %v2132_v40, %v2128_v25  ;;  %v3861_v61 = vmax.bf16 %v1055_v63, %v574_v33  ;;  %v2145_v57 = vshll.u32 %v439_v16, 16  ;;  %v510_v63 = vld [vmem:[%s2812_s24 + $0xc0] sm:$0xf]  ;;  %v3887_v25 = vld [vmem:[%s2812_s24 + $0xcc] sm:$0xf] }
 0x101   : > { %v2473_v30 = vmax.bf16 %v2129_v48, %v1703_v47  ;;  %v2149_v41 = vshrl.u32 %v439_v16, 16  ;;  %v1640_v6 = vmax.bf16 %v1574_v23, %v3854_v54  ;;  %v2142_v10 = vor.u32 %v2141_v53, %v2138_v38 }
 0x102   : > { %v1506_v44 = vmax.bf16 %v1408_v55, %v1031_v21  ;;  %v2155_v5 = vshll.u32 %v3857_v14, 16  ;;  %v1705_v18 = vmax.bf16 %v1639_v27, %v438_v56  ;;  %v2147_v60 = vrot.slane %v2145_v57, 5 }
 0x103   : > { %2539 = vst [vmem:[%s2949_s7 + $0xa0] sm:$0xf] %v2473_v30  ;;  %v2151_v13 = vrot.slane %v2149_v41, 4  ;;  %v572_v17 = vmax.bf16 %v506_v2, %v3790_v52  ;;  %v2134_v28 = vrot.slane %v2133_v20, 4  ;;  %v2143_v49 = vrot.slane %v2142_v10, 4 }
 0x104   : > { %v1572_v33 = vmax.bf16 %v1506_v44, %v3776_v1  ;;  %v1056_v8 = vshrl.u32 %v3804_v24, 16  ;;  %v2157_v9 = vrot.slane %v2155_v5, 5  ;;  %v2159_v0 = vshrl.u32 %v3857_v14, 16  ;;  %v3909_v20 = vld [vmem:[%s2826_s27 + $0xb8] sm:$0xf] }
 0x105   : > { %v2152_v31 = vor.u32 %v2151_v13, %v2147_v60  ;;  %v1345_v36 = vmax.bf16 %v1031_v21, %v572_v17  ;;  %v1706_v62 = vmax.bf16 %v1640_v6, %v439_v16  ;;  %v2148_v52 = vsel %vm2849_vm2, %v2143_v49, %v2147_v60  ;;  %v3901_v16 = vld [vmem:[%s2826_s27 + $0xb4] sm:$0xf]  ;;  %v511_v44 = vld [vmem:[%s2812_s24 + $0xc4] sm:$0xf]  ;;  %v3920_v60 = vld [vmem:[%s2806_s21 + $0xc8] sm:$0xf] }
 0x106   : > { %v1638_v7 = vmax.bf16 %v1572_v33, %v371_v3  ;;  %v1058_v1 = vrot.slane %v1056_v8, 4  ;;  %v2475_v37 = vmax.bf16 %v2148_v52, %v1705_v18  ;;  %v2161_v35 = vrot.slane %v2159_v0, 4  ;;  %v3923_v13 = vld [vmem:[%s2867_s30 + $0xbc] sm:$0x7]  ;;  %v3931_v0 = vld [vmem:[%s2812_s24 + $0xd0] sm:$0xf] }
 0x107   : > { %v2153_v4 = vrot.slane %v2152_v31, 4  ;;  %v1411_v26 = vmax.bf16 %v1345_v36, %v3804_v24  ;;  %v1062_v11 = vshrl.u32 %v3872_v59, 16  ;;  %v1065_v15 = vshll.u32 %v3872_v59, 16 }
 0x108   : > { %v1704_v22 = vmax.bf16 %v1638_v7, %v3816_v50  ;;  %v1059_v56 = vor.u32 %v1058_v1, %v3832_v42  ;;  %v2162_v45 = vor.u32 %v2161_v35, %v2157_v9  ;;  %v1071_v55 = vshll.u32 %v3877_v39, 16  ;;  %v3937_v35 = vld [vmem:[%s2806_s21 + $0xd4] sm:$0xf] }
 0x109   : > { %v2158_v43 = vsel %vm2849_vm2, %v2153_v4, %v2157_v9  ;;  %v1091_v50 = vshrl.u32 %v3880_v46, 16  ;;  %v1064_v34 = vrot.slane %v1062_v11, 4  ;;  %v576_v19 = vmax.bf16 %v510_v63, %v3872_v59  ;;  %v375_v11 = vld [vmem:[%s2867_s30 + $0xc0] sm:$0xf] }
 0x10a   : > { %v2474_v42 = vmax.bf16 %v2134_v28, %v1704_v22  ;;  %v2476_v58 = vmax.bf16 %v2158_v43, %v1706_v62  ;;  %v3898_v40 = vrot.slane %v1059_v56, 4  ;;  %v579_v23 = vmax.bf16 %v3887_v25, %v3880_v46 }
 0x10b   : > { %v1067_v47 = vrot.slane %v1065_v15, 5  ;;  %v1093_v48 = vrot.slane %v1091_v50, 4  ;;  %v1094_v38 = vshll.u32 %v3880_v46, 16  ;;  %v1100_v53 = vshll.u32 %v3894_v12, 16 }
 0x10c   : > { %2540 = vst [vmem:[%s2949_s7 + $0xa4] sm:$0x7] %v2474_v42  ;;  %v2736_v27 = vcombine.low %v2475_v37, %v2476_v58  ;;  %v1509_v21 = vmax.bf16 %v1411_v26, %v3898_v40  ;;  %v2163_v2 = vrot.slane %v2162_v45, 4  ;;  %v2165_v57 = vshrl.u32 %v3901_v16, 16 }
 0x10d   : > { %v1068_v30 = vor.u32 %v1067_v47, %v1064_v34  ;;  %v2168_v41 = vshll.u32 %v3901_v16, 16  ;;  %v1073_v10 = vrot.slane %v1071_v55, 5  ;;  %v1096_v5 = vrot.slane %v1094_v38, 5  ;;  %v3948_v55 = vld [vmem:[%s2826_s27 + $0xbc] sm:$0xf] }
 0x10e   : > { %2737 = vst [vmem:[%s2949_s7 + $0xa8] sm:$0xff] %v2736_v27   ;;  %v1575_v6 = vmax.bf16 %v1509_v21, %v371_v3  ;;  %v1412_v18 = vmax.bf16 %v3813_v32, %v3872_v59  ;;  %v2167_v33 = vrot.slane %v2165_v57, 4  ;;  %v2174_v49 = vshll.u32 %v3909_v20, 16  ;;  %v509_v34 = vld [vmem:[%s2812_s24 + $0xbc] sm:$0x7] }
 0x10f   : > { %v1069_v17 = vrot.slane %v1068_v30, 4  ;;  %v2170_v28 = vrot.slane %v2168_v41, 5  ;;  %v1097_v31 = vor.u32 %v1096_v5, %v1093_v48  ;;  %v1102_v3 = vrot.slane %v1100_v53, 5 }
 0x110   : > { %v1641_v8 = vmax.bf16 %v1575_v6, %v3923_v13  ;;  %v577_v9 = vmax.bf16 %v511_v44, %v3877_v39  ;;  %v1075_v59 = vshrl.u32 %v3877_v39, 16  ;;  %v1081_v7 = vshll.u32 %v3920_v60, 16 }
 0x111   : > { %v1074_v32 = vsel %vm2849_vm2, %v1069_v17, %v1073_v10  ;;  %v2171_v36 = vor.u32 %v2170_v28, %v2167_v33  ;;  %v1098_v52 = vrot.slane %v1097_v31, 4  ;;  %v2176_v26 = vrot.slane %v2174_v49, 5  ;;  %v3974_v17 = vld [vmem:[%s2826_s27 + $0xc0] sm:$0xf]  ;;  %v3983_v31 = vld [vmem:[%s2867_s30 + $0xcc] sm:$0xf] }
 0x112   : > { %v1707_v62 = vmax.bf16 %v1641_v8, %v3857_v14  ;;  %v1349_v1 = vmax.bf16 %v1074_v32, %v576_v19  ;;  %v1510_v4 = vmax.bf16 %v1412_v18, %v1074_v32  ;;  %v1077_v22 = vrot.slane %v1075_v59, 4 }
 0x113   : > { %v2172_v37 = vrot.slane %v2171_v36, 4  ;;  %v1104_v56 = vshrl.u32 %v3894_v12, 16  ;;  %v580_v14 = vmax.bf16 %v3931_v0, %v3894_v12  ;;  %v1103_v45 = vsel %vm2849_vm2, %v1098_v52, %v1102_v3 }
 0x114   : > { %v2477_v63 = vmax.bf16 %v2163_v2, %v1707_v62  ;;  %v1415_v15 = vmax.bf16 %v1349_v1, %v3880_v46  ;;  %v1576_v43 = vmax.bf16 %v1510_v4, %v3846_v51  ;;  %v1078_v50 = vor.u32 %v1077_v22, %v1073_v10  ;;  %v445_v62 = vld [vmem:[%s2826_s27 + $0xc4] sm:$0xf]  ;;  %v3994_v1 = vld [vmem:[%s2867_s30 + $0xd0] sm:$0xf]  ;;  %v3997_v4 = vld [vmem:[%s2826_s27 + $0xc8] sm:$0xf] }
 0x115   : > { %v1083_v42 = vrot.slane %v1081_v7, 5  ;;  %v1106_v58 = vrot.slane %v1104_v56, 4  ;;  %v2177_v47 = vsel %vm2849_vm2, %v2172_v37, %v2176_v26  ;;  %v1110_v48 = vshll.u32 %v3937_v35, 16 }
 0x116   : > { %2543 = vst [vmem:[%s2949_s7 + $0xb0] sm:$0x7] %v2477_v63  ;;  %v1642_v19 = vmax.bf16 %v1576_v43, %v375_v11  ;;  %v1413_v51 = vmax.bf16 %v3861_v61, %v3877_v39  ;;  %v1513_v27 = vmax.bf16 %v1415_v15, %v1103_v45  ;;  %v1079_v21 = vrot.slane %v1078_v50, 4  ;;  %v512_v15 = vld [vmem:[%s2812_s24 + $0xc8] sm:$0x7] }
 0x117   : > { %v1107_v38 = vor.u32 %v1106_v58, %v1102_v3  ;;  %v2178_v53 = vshrl.u32 %v3909_v20, 16  ;;  %v3961_v2 = vmax.bf16 %v1103_v45, %v579_v23  ;;  %v2184_v57 = vshll.u32 %v3948_v55, 16 }
 0x118   : > { %v1708_v30 = vmax.bf16 %v1642_v19, %v3901_v16  ;;  %v575_v41 = vmax.bf16 %v509_v34, %v3804_v24  ;;  %v1084_v61 = vsel %vm2849_vm2, %v1079_v21, %v1083_v42  ;;  %v3968_v44 = vrot.slane %v1110_v48, 5 }
 0x119   : > { %v1108_v39 = vrot.slane %v1107_v38, 4  ;;  %v2180_v6 = vrot.slane %v2178_v53, 4  ;;  %v1350_v25 = vmax.bf16 %v1084_v61, %v577_v9  ;;  %v1511_v23 = vmax.bf16 %v1413_v51, %v1084_v61 }
 0x11a   : > { %v2478_v46 = vmax.bf16 %v2177_v47, %v1708_v30  ;;  %v1085_v10 = vshrl.u32 %v3920_v60, 16  ;;  %v1579_v16 = vmax.bf16 %v1513_v27, %v375_v11  ;;  %v1348_v18 = vmax.bf16 %v3898_v40, %v575_v41  ;;  %v376_v40 = vld [vmem:[%s2867_s30 + $0xc4] sm:$0xf]  ;;  %v377_v30 = vld [vmem:[%s2867_s30 + $0xc8] sm:$0x7] }
 0x11b   : > { %v2181_v5 = vor.u32 %v2180_v6, %v2176_v26  ;;  %v2188_v24 = vshrl.u32 %v3948_v55, 16  ;;  %v1113_v33 = vsel %vm2849_vm2, %v1108_v39, %v3968_v44  ;;  %v1416_v28 = vmax.bf16 %v1350_v25, %v3894_v12  ;;  %v4013_v6 = vld [vmem:[%s2806_s21 + $0xd8] sm:$0xf] }
 0x11c   : > { %2544 = vst [vmem:[%s2949_s7 + $0xb4] sm:$0xf] %v2478_v46  ;;  %v1577_v49 = vmax.bf16 %v1511_v23, %v3854_v54  ;;  %v1087_v8 = vrot.slane %v1085_v10, 4  ;;  %v2186_v9 = vrot.slane %v2184_v57, 5  ;;  %v1414_v32 = vmax.bf16 %v1348_v18, %v3920_v60  ;;  %v516_v23 = vld [vmem:[%s2812_s24 + $0xd8] sm:$0xf] }
 0x11d   : > { %v2182_v3 = vrot.slane %v2181_v5, 4  ;;  %v2190_v36 = vrot.slane %v2188_v24, 4  ;;  %v1514_v0 = vmax.bf16 %v1416_v28, %v1113_v33  ;;  %v2194_v12 = vshrl.u32 %v3974_v17, 16  ;;  %v4020_v24 = vld [vmem:[%s2806_s21 + $0xdc] sm:$0xf] }
 0x11e   : > { %v1643_v59 = vmax.bf16 %v1577_v49, %v376_v40  ;;  %v1088_v7 = vor.u32 %v1087_v8, %v1083_v42  ;;  %v3989_v52 = vmax.bf16 %v1113_v33, %v580_v14  ;;  %v1645_v37 = vmax.bf16 %v1579_v16, %v3983_v31  ;;  %v4025_v49 = vld [vmem:[%s2806_s21 + $0xe4] sm:$0xf] }
 0x11f   : > { %v2187_v54 = vsel %vm2849_vm2, %v2182_v3, %v2186_v9  ;;  %v2197_v26 = vshll.u32 %v3974_v17, 16  ;;  %v1580_v22 = vmax.bf16 %v1514_v0, %v376_v40  ;;  %v2196_v11 = vrot.slane %v2194_v12, 4  ;;  %v4028_v8 = vld [vmem:[%s2812_s24 + $0xe4] sm:$0xf] }
 0x120   : > { %v1709_v56 = vmax.bf16 %v1643_v59, %v3909_v20  ;;  %v1089_v63 = vrot.slane %v1088_v7, 4  ;;  %v2191_v43 = vor.u32 %v2190_v36, %v2186_v9  ;;  %v2203_v45 = vshll.u32 %v445_v62, 16  ;;  %v4041_v7 = vld [vmem:[%s2826_s27 + $0xcc] sm:$0xf] }
 0x121   : > { %v2199_v14 = vrot.slane %v2197_v26, 5  ;;  %v2207_v50 = vshrl.u32 %v445_v62, 16  ;;  %v1646_v34 = vmax.bf16 %v1580_v22, %v3994_v1  ;;  %v2213_v19 = vshll.u32 %v3997_v4, 16 }
 0x122   : > { %v2479_v42 = vmax.bf16 %v2187_v54, %v1709_v56  ;;  %v1512_v58 = vmax.bf16 %v1414_v32, %v1089_v63  ;;  %v2205_v48 = vrot.slane %v2203_v45, 5  ;;  %v578_v20 = vmax.bf16 %v512_v15, %v3920_v60  ;;  %v4034_v32 = vld [vmem:[%s2806_s21 + $0xe8] sm:$0xf] }
 0x123   : > { %v2200_v47 = vor.u32 %v2199_v14, %v2196_v11  ;;  %v2209_v51 = vrot.slane %v2207_v50, 4  ;;  %v1711_v21 = vmax.bf16 %v1645_v37, %v3974_v17  ;;  %v2215_v38 = vrot.slane %v2213_v19, 5 }
 0x124   : > { %2545 = vst [vmem:[%s2949_s7 + $0xb8] sm:$0xf] %v2479_v42  ;;  %v1578_v27 = vmax.bf16 %v1512_v58, %v3923_v13  ;;  %v1114_v53 = vshrl.u32 %v3937_v35, 16  ;;  %v1351_v61 = vmax.bf16 %v1089_v63, %v578_v20  ;;  %v2217_v39 = vshrl.u32 %v3997_v4, 16 }
 0x125   : > { %v2201_v57 = vrot.slane %v2200_v47, 4  ;;  %v2210_v41 = vor.u32 %v2209_v51, %v2205_v48  ;;  %v2192_v46 = vrot.slane %v2191_v43, 4  ;;  %v1712_v25 = vmax.bf16 %v1646_v34, %v445_v62  ;;  %v4052_v43 = vld [vmem:[%s2826_s27 + $0xd0] sm:$0xf]  ;;  %v4060_v47 = vld [vmem:[%s2806_s21 + $0xe0] sm:$0xf] }
 0x126   : > { %v1644_v60 = vmax.bf16 %v1578_v27, %v377_v30  ;;  %v1116_v13 = vrot.slane %v1114_v53, 4  ;;  %v1417_v5 = vmax.bf16 %v1351_v61, %v3937_v35  ;;  %v2219_v18 = vrot.slane %v2217_v39, 4  ;;  %v4064_v51 = vld [vmem:[%s2867_s30 + $0xd4] sm:$0x7] }
 0x127   : > { %v2206_v10 = vsel %vm2849_vm2, %v2201_v57, %v2205_v48  ;;  %v2211_v16 = vrot.slane %v2210_v41, 4  ;;  %v1120_v40 = vshrl.u32 %v4013_v6, 16  ;;  %v582_v36 = vmax.bf16 %v516_v23, %v4013_v6  ;;  %v517_v48 = vld [vmem:[%s2812_s24 + $0xdc] sm:$0xf] }
 0x128   : > { %v1710_v17 = vmax.bf16 %v1644_v60, %v3948_v55  ;;  %v2481_v33 = vmax.bf16 %v2206_v10, %v1711_v21  ;;  %v1117_v28 = vor.u32 %v1116_v13, %v3968_v44  ;;  %v2220_v9 = vor.u32 %v2219_v18, %v2215_v38 }
 0x129   : > { %v2216_v3 = vsel %vm2849_vm2, %v2211_v16, %v2215_v38  ;;  %v1123_v55 = vshll.u32 %v4013_v6, 16  ;;  %v1122_v62 = vrot.slane %v1120_v40, 4  ;;  %v585_v12 = vmax.bf16 %v4028_v8, %v4025_v49  ;;  %v4076_v16 = vld [vmem:[%s2806_s21 + $0xec] sm:$0xf] }
 0x12a   : > { %v2480_v0 = vmax.bf16 %v2192_v46, %v1710_v17  ;;  %v2482_v44 = vmax.bf16 %v2216_v3, %v1712_v25  ;;  %v4038_v59 = vrot.slane %v1117_v28, 4  ;;  %v1129_v37 = vshll.u32 %v4020_v24, 16  ;;  %v381_v28 = vld [vmem:[%s2867_s30 + $0xd8] sm:$0xf] }
 0x12b   : > { %v1125_v54 = vrot.slane %v1123_v55, 5  ;;  %v1149_v26 = vshrl.u32 %v4025_v49, 16  ;;  %v1152_v63 = vshll.u32 %v4025_v49, 16  ;;  %v1158_v11 = vshll.u32 %v4034_v32, 16 }
 0x12c   : > { %2546 = vst [vmem:[%s2949_s7 + $0xbc] sm:$0x7] %v2480_v0  ;;  %v2738_v22 = vcombine.low %v2481_v33, %v2482_v44  ;;  %v1515_v56 = vmax.bf16 %v1417_v5, %v4038_v59  ;;  %v2221_v15 = vrot.slane %v2220_v9, 4  ;;  %v2223_v50 = vshrl.u32 %v4041_v7, 16 }
 0x12d   : > { %v1126_v14 = vor.u32 %v1125_v54, %v1122_v62  ;;  %v1151_v45 = vrot.slane %v1149_v26, 4  ;;  %v1154_v58 = vrot.slane %v1152_v63, 5  ;;  %v1418_v34 = vmax.bf16 %v3961_v2, %v4013_v6  ;;  %v520_v2 = vld [vmem:[%s2812_s24 + $0xe8] sm:$0xf] }
 0x12e   : > { %2739 = vst [vmem:[%s2949_s7 + $0xc0] sm:$0xff] %v2738_v22   ;;  %v1581_v42 = vmax.bf16 %v1515_v56, %v377_v30  ;;  %v2226_v19 = vshll.u32 %v4041_v7, 16  ;;  %v1131_v27 = vrot.slane %v1129_v37, 5  ;;  %v1160_v21 = vrot.slane %v1158_v11, 5  ;;  %v515_v22 = vld [vmem:[%s2812_s24 + $0xd4] sm:$0x7] }
 0x12f   : > { %v1127_v20 = vrot.slane %v1126_v14, 4  ;;  %v2225_v38 = vrot.slane %v2223_v50, 4  ;;  %v1155_v57 = vor.u32 %v1154_v58, %v1151_v45  ;;  %v2232_v41 = vshll.u32 %v4052_v43, 16 }
 0x130   : > { %v1647_v53 = vmax.bf16 %v1581_v42, %v4064_v51  ;;  %v2228_v30 = vrot.slane %v2226_v19, 5  ;;  %v583_v39 = vmax.bf16 %v517_v48, %v4020_v24  ;;  %v1133_v6 = vshrl.u32 %v4020_v24, 16 }
 0x131   : > { %v1132_v61 = vsel %vm2849_vm2, %v1127_v20, %v1131_v27  ;;  %v1139_v60 = vshll.u32 %v4060_v47, 16  ;;  %v1156_v25 = vrot.slane %v1155_v57, 4  ;;  %v586_v5 = vmax.bf16 %v520_v2, %v4034_v32 }
 0x132   : > { %v1713_v46 = vmax.bf16 %v1647_v53, %v3997_v4  ;;  %v1355_v13 = vmax.bf16 %v1132_v61, %v582_v36  ;;  %v1516_v23 = vmax.bf16 %v1418_v34, %v1132_v61  ;;  %v2229_v10 = vor.u32 %v2228_v30, %v2225_v38  ;;  %v4084_v36 = vld [vmem:[%s2826_s27 + $0xd4] sm:$0xf] }
 0x133   : > { %v1135_v18 = vrot.slane %v1133_v6, 4  ;;  %v1162_v17 = vshrl.u32 %v4034_v32, 16  ;;  %v2234_v4 = vrot.slane %v2232_v41, 5  ;;  %v1141_v0 = vrot.slane %v1139_v60, 5 }
 0x134   : > { %v2483_v33 = vmax.bf16 %v2221_v15, %v1713_v46  ;;  %v1421_v40 = vmax.bf16 %v1355_v13, %v4025_v49  ;;  %v1582_v3 = vmax.bf16 %v1516_v23, %v3983_v31  ;;  %v2230_v9 = vrot.slane %v2229_v10, 4  ;;  %v382_v49 = vld [vmem:[%s2867_s30 + $0xdc] sm:$0xf]  ;;  %v4129_v23 = vld [vmem:[%s2867_s30 + $0xe8] sm:$0xf] }
 0x135   : > { %v1136_v55 = vor.u32 %v1135_v18, %v1131_v27  ;;  %v1164_v44 = vrot.slane %v1162_v17, 4  ;;  %v1161_v62 = vsel %vm2849_vm2, %v1156_v25, %v1160_v21  ;;  %v1168_v37 = vshll.u32 %v4076_v16, 16  ;;  %v451_v46 = vld [vmem:[%s2826_s27 + $0xdc] sm:$0xf]  ;;  %v4132_v10 = vld [vmem:[%s2826_s27 + $0xe0] sm:$0xf] }
 0x136   : > { %2549 = vst [vmem:[%s2949_s7 + $0xc8] sm:$0x7] %v2483_v33  ;;  %v1648_v54 = vmax.bf16 %v1582_v3, %v381_v28  ;;  %v1419_v26 = vmax.bf16 %v3989_v52, %v4020_v24  ;;  %v2235_v31 = vsel %vm2849_vm2, %v2230_v9, %v2234_v4  ;;  %v2236_v11 = vshrl.u32 %v4052_v43, 16 }
 0x137   : > { %v1137_v56 = vrot.slane %v1136_v55, 4  ;;  %v1165_v63 = vor.u32 %v1164_v44, %v1160_v21  ;;  %v1519_v15 = vmax.bf16 %v1421_v40, %v1161_v62  ;;  %v4097_v45 = vrot.slane %v1168_v37, 5  ;;  %v518_v55 = vld [vmem:[%s2812_s24 + $0xe0] sm:$0x7] }
 0x138   : > { %v1714_v14 = vmax.bf16 %v1648_v54, %v4041_v7  ;;  %v2242_v50 = vshll.u32 %v4084_v36, 16  ;;  %v2238_v42 = vrot.slane %v2236_v11, 4  ;;  %v581_v58 = vmax.bf16 %v515_v22, %v3937_v35  ;;  %v450_v35 = vld [vmem:[%s2826_s27 + $0xd8] sm:$0xf] }
 0x139   : > { %v1142_v52 = vsel %vm2849_vm2, %v1137_v56, %v1141_v0  ;;  %v1166_v24 = vrot.slane %v1165_v63, 4  ;;  %v4106_v34 = vmax.bf16 %v1161_v62, %v585_v12  ;;  %v1143_v21 = vshrl.u32 %v4060_v47, 16 }
 0x13a   : > { %v2484_v19 = vmax.bf16 %v2235_v31, %v1714_v14  ;;  %v1356_v7 = vmax.bf16 %v1142_v52, %v583_v39  ;;  %v1517_v48 = vmax.bf16 %v1419_v26, %v1142_v52  ;;  %v2239_v27 = vor.u32 %v2238_v42, %v2234_v4  ;;  %v4122_v39 = vld [vmem:[%s2867_s30 + $0xe4] sm:$0xf]  ;;  %v383_v42 = vld [vmem:[%s2867_s30 + $0xe0] sm:$0x7] }
 0x13b   : > { %v1171_v20 = vsel %vm2849_vm2, %v1166_v24, %v4097_v45  ;;  %v1354_v38 = vmax.bf16 %v4038_v59, %v581_v58  ;;  %v1585_v53 = vmax.bf16 %v1519_v15, %v381_v28  ;;  %v2246_v57 = vshrl.u32 %v4084_v36, 16  ;;  %v4145_v24 = vld [vmem:[%s2806_s21 + $0xf0] sm:$0xf] }
 0x13c   : > { %2550 = vst [vmem:[%s2949_s7 + $0xcc] sm:$0xf] %v2484_v19  ;;  %v1422_v8 = vmax.bf16 %v1356_v7, %v4034_v32  ;;  %v1583_v12 = vmax.bf16 %v1517_v48, %v3994_v1  ;;  %v4119_v30 = vmax.bf16 %v1171_v20, %v586_v5  ;;  %v2240_v41 = vrot.slane %v2239_v27, 4 }
 0x13d   : > { %v2244_v2 = vrot.slane %v2242_v50, 5  ;;  %v1145_v61 = vrot.slane %v1143_v21, 4  ;;  %v2248_v60 = vrot.slane %v2246_v57, 4  ;;  %v2252_v25 = vshrl.u32 %v450_v35, 16 }
 0x13e   : > { %v1520_v59 = vmax.bf16 %v1422_v8, %v1171_v20  ;;  %v1649_v6 = vmax.bf16 %v1583_v12, %v382_v49  ;;  %v1420_v13 = vmax.bf16 %v1354_v38, %v4060_v47  ;;  %v2255_v5 = vshll.u32 %v450_v35, 16  ;;  %v522_v20 = vld [vmem:[%s2812_s24 + $0xf0] sm:$0xf]  ;;  %v4157_v8 = vld [vmem:[%s2806_s21 + $0xfc] sm:$0xf] }
 0x13f   : > { %v2245_v32 = vsel %vm2849_vm2, %v2240_v41, %v2244_v2  ;;  %v1146_v1 = vor.u32 %v1145_v61, %v1141_v0  ;;  %v1651_v33 = vmax.bf16 %v1585_v53, %v4122_v39  ;;  %v2254_v28 = vrot.slane %v2252_v25, 4 }
 0x140   : > { %v1586_v18 = vmax.bf16 %v1520_v59, %v382_v49  ;;  %v1715_v17 = vmax.bf16 %v1649_v6, %v4052_v43  ;;  %v2257_v3 = vrot.slane %v2255_v5, 5  ;;  %v2261_v4 = vshll.u32 %v451_v46, 16  ;;  %v4154_v49 = vld [vmem:[%s2806_s21 + $0xf4] sm:$0xf] }
 0x141   : > { %v1147_v40 = vrot.slane %v1146_v1, 4  ;;  %v2265_v9 = vshrl.u32 %v451_v46, 16  ;;  %v2249_v44 = vor.u32 %v2248_v60, %v2244_v2  ;;  %v2271_v54 = vshll.u32 %v4132_v10, 16  ;;  %v4164_v2 = vld [vmem:[%s2812_s24 + $0xfc] sm:$0xf] }
 0x142   : > { %v2485_v0 = vmax.bf16 %v2245_v32, %v1715_v17  ;;  %v1652_v62 = vmax.bf16 %v1586_v18, %v4129_v23  ;;  %v2258_v26 = vor.u32 %v2257_v3, %v2254_v28  ;;  %v2263_v43 = vrot.slane %v2261_v4, 5  ;;  %v4174_v32 = vld [vmem:[%s2826_s27 + $0xe4] sm:$0xf] }
 0x143   : > { %v1518_v37 = vmax.bf16 %v1420_v13, %v1147_v40  ;;  %v2267_v22 = vrot.slane %v2265_v9, 4  ;;  %v1717_v31 = vmax.bf16 %v1651_v33, %v450_v35  ;;  %v2273_v56 = vrot.slane %v2271_v54, 5  ;;  %v4180_v33 = vld [vmem:[%s2826_s27 + $0xe8] sm:$0xf] }
 0x144   : > { %2551 = vst [vmem:[%s2949_s7 + $0xd0] sm:$0xf] %v2485_v0  ;;  %v584_v63 = vmax.bf16 %v518_v55, %v4060_v47  ;;  %v1172_v11 = vshrl.u32 %v4076_v16, 16  ;;  %v2259_v14 = vrot.slane %v2258_v26, 4  ;;  %v2275_v52 = vshrl.u32 %v4132_v10, 16 }
 0x145   : > { %v1584_v15 = vmax.bf16 %v1518_v37, %v4064_v51  ;;  %v2268_v50 = vor.u32 %v2267_v22, %v2263_v43  ;;  %v2250_v58 = vrot.slane %v2249_v44, 4  ;;  %v1718_v19 = vmax.bf16 %v1652_v62, %v451_v46  ;;  %v4171_v46 = vld [vmem:[%s2806_s21 + $0x100] sm:$0xf]  ;;  %v523_v37 = vld [vmem:[%s2812_s24 + $0xf4] sm:$0xf] }
 0x146   : > { %v1174_v7 = vrot.slane %v1172_v11, 4  ;;  %v1357_v48 = vmax.bf16 %v1147_v40, %v584_v63  ;;  %v2264_v27 = vsel %vm2849_vm2, %v2259_v14, %v2263_v43  ;;  %v2277_v21 = vrot.slane %v2275_v52, 4  ;;  %v4194_v26 = vld [vmem:[%s2867_s30 + $0xec] sm:$0x7]  ;;  %v4199_v14 = vld [vmem:[%s2806_s21 + $0xf8] sm:$0xf] }
 0x147   : > { %v1650_v47 = vmax.bf16 %v1584_v15, %v383_v42  ;;  %v2269_v51 = vrot.slane %v2268_v50, 4  ;;  %v2487_v38 = vmax.bf16 %v2264_v27, %v1717_v31  ;;  %v1178_v12 = vshrl.u32 %v4145_v24, 16 }
 0x148   : > { %v1175_v35 = vor.u32 %v1174_v7, %v4097_v45  ;;  %v1423_v53 = vmax.bf16 %v1357_v48, %v4076_v16  ;;  %v588_v61 = vmax.bf16 %v522_v20, %v4145_v24  ;;  %v1181_v45 = vshll.u32 %v4145_v24, 16 }
 0x149   : > { %v1716_v57 = vmax.bf16 %v1650_v47, %v4084_v36  ;;  %v2274_v41 = vsel %vm2849_vm2, %v2269_v51, %v2273_v56  ;;  %v2278_v60 = vor.u32 %v2277_v21, %v2273_v56  ;;  %v1180_v25 = vrot.slane %v1178_v12, 4  ;;  %v4207_v47 = vld [vmem:[%s2806_s21 + $0x104] sm:$0xf]  ;;  %v387_v12 = vld [vmem:[%s2867_s30 + $0xf0] sm:$0xf] }
 0x14a   : > { %v2488_v59 = vmax.bf16 %v2274_v41, %v1718_v19  ;;  %v4168_v6 = vrot.slane %v1175_v35, 4  ;;  %v1183_v1 = vrot.slane %v1181_v45, 5  ;;  %v1187_v13 = vshll.u32 %v4154_v49, 16 }
 0x14b   : > { %v2486_v36 = vmax.bf16 %v2250_v58, %v1716_v57  ;;  %v1207_v5 = vshrl.u32 %v4157_v8, 16  ;;  %v591_v28 = vmax.bf16 %v4164_v2, %v4157_v8  ;;  %v1210_v40 = vshll.u32 %v4157_v8, 16 }
 0x14c   : > { %v2740_v18 = vcombine.low %v2487_v38, %v2488_v59  ;;  %v1521_v17 = vmax.bf16 %v1423_v53, %v4168_v6  ;;  %v1184_v3 = vor.u32 %v1183_v1, %v1180_v25  ;;  %v1216_v9 = vshll.u32 %v4171_v46, 16 }
 0x14d   : > { %2552 = vst [vmem:[%s2949_s7 + $0xd4] sm:$0x7] %v2486_v36  ;;  %v1209_v4 = vrot.slane %v1207_v5, 4  ;;  %v1424_v55 = vmax.bf16 %v4106_v34, %v4145_v24  ;;  %v1212_v44 = vrot.slane %v1210_v40, 5  ;;  %v2281_v62 = vshrl.u32 %v4174_v32, 16 }
 0x14e   : > { %2741 = vst [vmem:[%s2949_s7 + $0xd8] sm:$0xff] %v2740_v18   ;;  %v1587_v0 = vmax.bf16 %v1521_v17, %v383_v42  ;;  %v2284_v54 = vshll.u32 %v4174_v32, 16  ;;  %v2279_v43 = vrot.slane %v2278_v60, 4  ;;  %v1185_v22 = vrot.slane %v1184_v3, 4  ;;  %v4221_v36 = vld [vmem:[%s2826_s27 + $0xec] sm:$0xf] }
 0x14f   : > { %v1189_v31 = vrot.slane %v1187_v13, 5  ;;  %v2290_v56 = vshll.u32 %v4180_v33, 16  ;;  %v1213_v34 = vor.u32 %v1212_v44, %v1209_v4  ;;  %v2283_v11 = vrot.slane %v2281_v62, 4  ;;  %v521_v5 = vld [vmem:[%s2812_s24 + $0xec] sm:$0x7] }
 0x150   : > { %v1653_v63 = vmax.bf16 %v1587_v0, %v4194_v26  ;;  %v2286_v15 = vrot.slane %v2284_v54, 5  ;;  %v1218_v52 = vrot.slane %v1216_v9, 5  ;;  %v589_v24 = vmax.bf16 %v523_v37, %v4154_v49 }
 0x151   : > { %v1190_v50 = vsel %vm2849_vm2, %v1185_v22, %v1189_v31  ;;  %v1191_v42 = vshrl.u32 %v4154_v49, 16  ;;  %v1214_v19 = vrot.slane %v1213_v34, 4  ;;  %v1197_v51 = vshll.u32 %v4199_v14, 16 }
 0x152   : > { %v1719_v58 = vmax.bf16 %v1653_v63, %v4132_v10  ;;  %v1361_v7 = vmax.bf16 %v1190_v50, %v588_v61  ;;  %v1522_v48 = vmax.bf16 %v1424_v55, %v1190_v50  ;;  %v2287_v20 = vor.u32 %v2286_v15, %v2283_v11  ;;  %v4217_v61 = vld [vmem:[%s2812_s24 + $0x100] sm:$0xf]  ;;  %v4242_v63 = vld [vmem:[%s2867_s30 + $0xfc] sm:$0xf]  ;;  %v456_v50 = vld [vmem:[%s2826_s27 + $0xf0] sm:$0xf] }
 0x153   : > { %v1193_v27 = vrot.slane %v1191_v42, 4  ;;  %v1220_v21 = vshrl.u32 %v4171_v46, 16  ;;  %v2292_v53 = vrot.slane %v2290_v56, 5  ;;  %v1219_v57 = vsel %vm2849_vm2, %v1214_v19, %v1218_v52 }
 0x154   : > { %v2489_v38 = vmax.bf16 %v2279_v43, %v1719_v58  ;;  %v1427_v35 = vmax.bf16 %v1361_v7, %v4157_v8  ;;  %v1588_v10 = vmax.bf16 %v1522_v48, %v4122_v39  ;;  %v2288_v41 = vrot.slane %v2287_v20, 4  ;;  %v457_v48 = vld [vmem:[%s2826_s27 + $0xf4] sm:$0xf] }
 0x155   : > { %v1194_v45 = vor.u32 %v1193_v27, %v1189_v31  ;;  %v1199_v59 = vrot.slane %v1197_v51, 5  ;;  %v1222_v1 = vrot.slane %v1220_v21, 4  ;;  %v1226_v13 = vshll.u32 %v4207_v47, 16  ;;  %v4262_v21 = vld [vmem:[%s2867_s30 + $0x100] sm:$0xf] }
 0x156   : > { %2555 = vst [vmem:[%s2949_s7 + $0xe0] sm:$0x7] %v2489_v38  ;;  %v1525_v60 = vmax.bf16 %v1427_v35, %v1219_v57  ;;  %v1654_v25 = vmax.bf16 %v1588_v10, %v387_v12  ;;  %v2293_v39 = vsel %vm2849_vm2, %v2288_v41, %v2292_v53  ;;  %v1425_v17 = vmax.bf16 %v4119_v30, %v4154_v49 }
 0x157   : > { %v1195_v18 = vrot.slane %v1194_v45, 4  ;;  %v2294_v40 = vshrl.u32 %v4180_v33, 16  ;;  %v592_v9 = vmax.bf16 %v4217_v61, %v4171_v46  ;;  %v1223_v55 = vor.u32 %v1222_v1, %v1218_v52  ;;  %v388_v52 = vld [vmem:[%s2867_s30 + $0xf4] sm:$0xf]  ;;  %v4271_v45 = vld [vmem:[%s2826_s27 + $0xf8] sm:$0xf] }
 0x158   : > { %v1591_v3 = vmax.bf16 %v1525_v60, %v387_v12  ;;  %v1720_v4 = vmax.bf16 %v1654_v25, %v4174_v32  ;;  %v2300_v62 = vshll.u32 %v4221_v36, 16  ;;  %v587_v30 = vmax.bf16 %v521_v5, %v4076_v16 }
 0x159   : > { %v1200_v0 = vsel %vm2849_vm2, %v1195_v18, %v1199_v59  ;;  %v2296_v44 = vrot.slane %v2294_v40, 4  ;;  %v1224_v54 = vrot.slane %v1223_v55, 4  ;;  %v4237_v32 = vrot.slane %v1226_v13, 5  ;;  %v524_v13 = vld [vmem:[%s2812_s24 + $0xf8] sm:$0x7] }
 0x15a   : > { %v2490_v49 = vmax.bf16 %v2293_v39, %v1720_v4  ;;  %v1362_v37 = vmax.bf16 %v1200_v0, %v589_v24  ;;  %v1523_v43 = vmax.bf16 %v1425_v17, %v1200_v0  ;;  %v1201_v31 = vshrl.u32 %v4199_v14, 16  ;;  %v4280_v55 = vld [vmem:[%s2806_s21 + $0x108] sm:$0xf] }
 0x15b   : > { %v2297_v22 = vor.u32 %v2296_v44, %v2292_v53  ;;  %v1360_v56 = vmax.bf16 %v4168_v6, %v587_v30  ;;  %v2302_v11 = vrot.slane %v2300_v62, 5  ;;  %v2304_v15 = vshrl.u32 %v4221_v36, 16 }
 0x15c   : > { %2556 = vst [vmem:[%s2949_s7 + $0xe4] sm:$0xf] %v2490_v49  ;;  %v1428_v34 = vmax.bf16 %v1362_v37, %v4171_v46  ;;  %v1589_v16 = vmax.bf16 %v1523_v43, %v4129_v23  ;;  %v4253_v24 = vsel %vm2849_vm2, %v1224_v54, %v4237_v32  ;;  %v1203_v42 = vrot.slane %v1201_v31, 4  ;;  %v389_v49 = vld [vmem:[%s2867_s30 + $0xf8] sm:$0x7] }
 0x15d   : > { %v2298_v6 = vrot.slane %v2297_v22, 4  ;;  %v1426_v58 = vmax.bf16 %v1360_v56, %v4199_v14  ;;  %v2306_v23 = vrot.slane %v2304_v15, 4  ;;  %v1657_v20 = vmax.bf16 %v1591_v3, %v4242_v63 }
 0x15e   : > { %v1526_v19 = vmax.bf16 %v1428_v34, %v4253_v24  ;;  %v1655_v7 = vmax.bf16 %v1589_v16, %v388_v52  ;;  %v1204_v51 = vor.u32 %v1203_v42, %v1199_v59  ;;  %v2310_v38 = vshrl.u32 %v456_v50, 16  ;;  %v4288_v34 = vld [vmem:[%s2806_s21 + $0x10c] sm:$0xf]  ;;  %v4291_v16 = vld [vmem:[%s2826_s27 + $0xfc] sm:$0xf] }
 0x15f   : > { %v2303_v27 = vsel %vm2849_vm2, %v2298_v6, %v2302_v11  ;;  %v2313_v35 = vshll.u32 %v456_v50, 16  ;;  %v4267_v10 = vmax.bf16 %v1219_v57, %v591_v28  ;;  %v2307_v41 = vor.u32 %v2306_v23, %v2302_v11 }
 0x160   : > { %v1592_v53 = vmax.bf16 %v1526_v19, %v388_v52  ;;  %v1721_v12 = vmax.bf16 %v1655_v7, %v4180_v33  ;;  %v1205_v60 = vrot.slane %v1204_v51, 4  ;;  %v2312_v25 = vrot.slane %v2310_v38, 4 }
 0x161   : > { %v2315_v1 = vrot.slane %v2313_v35, 5  ;;  %v2319_v59 = vshll.u32 %v457_v48, 16  ;;  %v1723_v18 = vmax.bf16 %v1657_v20, %v456_v50  ;;  %v2323_v8 = vshrl.u32 %v457_v48, 16 }
 0x162   : > { %v2491_v5 = vmax.bf16 %v2303_v27, %v1721_v12  ;;  %v1658_v39 = vmax.bf16 %v1592_v53, %v4262_v21  ;;  %v1524_v2 = vmax.bf16 %v1426_v58, %v1205_v60  ;;  %v2329_v33 = vshll.u32 %v4271_v45, 16 }
 0x163   : > { %v2316_v28 = vor.u32 %v2315_v1, %v2312_v25  ;;  %v2321_v57 = vrot.slane %v2319_v59, 5  ;;  %v2308_v17 = vrot.slane %v2307_v41, 4  ;;  %v2325_v40 = vrot.slane %v2323_v8, 4 }
 0x164   : > { %2557 = vst [vmem:[%s2949_s7 + $0xe8] sm:$0xf] %v2491_v5  ;;  %v590_v3 = vmax.bf16 %v524_v13, %v4199_v14  ;;  %v1230_v4 = vshrl.u32 %v4207_v47, 16  ;;  %v1590_v0 = vmax.bf16 %v1524_v2, %v4194_v26  ;;  %v2331_v62 = vrot.slane %v2329_v33, 5  ;;  %v461_v5 = vld [vmem:[%s2826_s27 + $0x104] sm:$0xf] }
 0x165   : > { %v2317_v44 = vrot.slane %v2316_v28, 4  ;;  %v2333_v30 = vshrl.u32 %v4271_v45, 16  ;;  %v1724_v54 = vmax.bf16 %v1658_v39, %v457_v48  ;;  %v2326_v37 = vor.u32 %v2325_v40, %v2321_v57  ;;  %v4301_v48 = vld [vmem:[%s2826_s27 + $0x100] sm:$0xf] }
 0x166   : > { %v1232_v43 = vrot.slane %v1230_v4, 4  ;;  %v1363_v22 = vmax.bf16 %v1205_v60, %v590_v3  ;;  %v1656_v31 = vmax.bf16 %v1590_v0, %v389_v49  ;;  %v1434_v26 = vshrl.u32 %v4280_v55, 16  ;;  %v326_v60 = vld [vmem:[%s2806_s21 + $0x110] sm:$0xf] }
 0x167   : > { %v2322_v14 = vsel %vm2849_vm2, %v2317_v44, %v2321_v57  ;;  %v2335_v56 = vrot.slane %v2333_v30, 4  ;;  %v2327_v11 = vrot.slane %v2326_v37, 4  ;;  %v1437_v19 = vshll.u32 %v4280_v55, 16 }
 0x168   : > { %v2493_v15 = vmax.bf16 %v2322_v14, %v1723_v18  ;;  %v1233_v50 = vor.u32 %v1232_v43, %v4237_v32  ;;  %v1429_v52 = vmax.bf16 %v1363_v22, %v4207_v47  ;;  %v1722_v6 = vmax.bf16 %v1656_v31, %v4221_v36 }
 0x169   : > { %v2336_v42 = vor.u32 %v2335_v56, %v2331_v62  ;;  %v1436_v58 = vrot.slane %v1434_v26, 4  ;;  %v2332_v7 = vsel %vm2849_vm2, %v2327_v11, %v2331_v62  ;;  %v1443_v20 = vshll.u32 %v4288_v34, 16 }
 0x16a   : > { %v1234_v23 = vrot.slane %v1233_v50, 4  ;;  %v2339_v32 = vshrl.u32 %v4291_v16, 16  ;;  %v1365_v36 = vmax.bf16 %v4253_v24, %v592_v9  ;;  %v2492_v27 = vmax.bf16 %v2308_v17, %v1722_v6  ;;  %v527_v9 = vld [vmem:[%s2812_s24 + $0x104] sm:$0x7] }
 0x16b   : > { %v2494_v51 = vmax.bf16 %v2332_v7, %v1724_v54  ;;  %v1439_v38 = vrot.slane %v1437_v19, 5  ;;  %v1430_v53 = vmax.bf16 %v4267_v10, %v4280_v55  ;;  %v2342_v41 = vshll.u32 %v4291_v16, 16  ;;  %v392_v10 = vld [vmem:[%s2867_s30 + $0x104] sm:$0x7]  ;;  %v393_v54 = vld [vmem:[%s2867_s30 + $0x108] sm:$0xf] }
 0x16c   : > { %v1527_v35 = vmax.bf16 %v1429_v52, %v1234_v23  ;;  %v2341_v12 = vrot.slane %v2339_v32, 4  ;;  %2558 = vst [vmem:[%s2949_s7 + $0xec] sm:$0x7] %v2492_v27  ;;  %v2337_v1 = vrot.slane %v2336_v42, 4  ;;  %v2348_v61 = vshll.u32 %v4301_v48, 16 }
 0x16d   : > { %v2742_v25 = vcombine.low %v2493_v15, %v2494_v51  ;;  %v1440_v46 = vor.u32 %v1439_v38, %v1436_v58  ;;  %v1445_v59 = vrot.slane %v1443_v20, 5  ;;  %v2344_v13 = vrot.slane %v2342_v41, 5  ;;  %v394_v19 = vld [vmem:[%s2867_s30 + $0x10c] sm:$0xf] }
 0x16e   : > { %v1593_v24 = vmax.bf16 %v1527_v35, %v389_v49  ;;  %v1447_v39 = vshrl.u32 %v4288_v34, 16  ;;  %v1431_v8 = vmax.bf16 %v1365_v36, %v4288_v34  ;;  %v1453_v2 = vshll.u32 %v326_v60, 16  ;;  %v395_v35 = vld [vmem:[%s2867_s30 + $0x110] sm:$0x7] }
 0x16f   : > { %2743 = vst [vmem:[%s2949_s7 + $0xf0] sm:$0xff] %v2742_v25   ;;  %v1441_v18 = vrot.slane %v1440_v46, 4  ;;  %v2352_v28 = vshrl.u32 %v4301_v48, 16  ;;  %v2345_v33 = vor.u32 %v2344_v13, %v2341_v12  ;;  %v2350_v17 = vrot.slane %v2348_v61, 5 }
 0x170   : > { %v1659_v57 = vmax.bf16 %v1593_v24, %v392_v10  ;;  %v1449_v40 = vrot.slane %v1447_v39, 4  ;;  %v2358_v55 = vshll.u32 %v461_v5, 16  ;;  %v593_v0 = vmax.bf16 %v527_v9, %v4207_v47 }
 0x171   : > { %v1446_v3 = vsel %vm2849_vm2, %v1441_v18, %v1445_v59  ;;  %v2354_v4 = vrot.slane %v2352_v28, 4  ;;  %v2346_v30 = vrot.slane %v2345_v33, 4  ;;  %v1455_v37 = vrot.slane %v1453_v2, 5 }
 0x172   : > { %v1725_v44 = vmax.bf16 %v1659_v57, %v4271_v45  ;;  %v1528_v62 = vmax.bf16 %v1446_v3, %v1430_v53  ;;  %v1450_v49 = vor.u32 %v1449_v40, %v1445_v59  ;;  %v1366_v43 = vmax.bf16 %v1234_v23, %v593_v0 }
 0x173   : > { %v1457_v22 = vshrl.u32 %v326_v60, 16  ;;  %v2362_v31 = vshrl.u32 %v461_v5, 16  ;;  %v2355_v26 = vor.u32 %v2354_v4, %v2350_v17  ;;  %v2351_v47 = vsel %vm2849_vm2, %v2346_v30, %v2350_v17 }
 0x174   : > { %v2495_v14 = vmax.bf16 %v2337_v1, %v1725_v44  ;;  %v1594_v56 = vmax.bf16 %v1528_v62, %v4242_v63  ;;  %v1451_v34 = vrot.slane %v1450_v49, 4  ;;  %v2360_v50 = vrot.slane %v2358_v55, 5 }
 0x175   : > { %v1459_v11 = vrot.slane %v1457_v22, 4  ;;  %v1432_v6 = vmax.bf16 %v1366_v43, %v326_v60  ;;  %v2364_v58 = vrot.slane %v2362_v31, 4  ;;  %v2356_v7 = vrot.slane %v2355_v26, 4 }
 0x176   : > { %2561 = vst [vmem:[%s2949_s7 + $0xf8] sm:$0x7] %v2495_v14  ;;  %v1660_v15 = vmax.bf16 %v1594_v56, %v393_v54  ;;  %v1456_v45 = vsel %vm2849_vm2, %v1451_v34, %v1455_v37 }
 0x177   : > { %v1529_v52 = vmax.bf16 %v1456_v45, %v1431_v8  ;;  %v1460_v42 = vor.u32 %v1459_v11, %v1455_v37  ;;  %v2365_v51 = vor.u32 %v2364_v58, %v2360_v50  ;;  %v2361_v38 = vsel %vm2849_vm2, %v2356_v7, %v2360_v50 }
 0x178   : > { %v1726_v63 = vmax.bf16 %v1660_v15, %v4291_v16 }
 0x179   : > { %v1595_v23 = vmax.bf16 %v1529_v52, %v4262_v21  ;;  %v1461_v20 = vrot.slane %v1460_v42, 4  ;;  %v2366_v60 = vrot.slane %v2365_v51, 4 }
 0x17a   : > { %v2496_v32 = vmax.bf16 %v2351_v47, %v1726_v63 }
 0x17b   : > { %v1661_v36 = vmax.bf16 %v1595_v23, %v394_v19  ;;  %v1530_v27 = vmax.bf16 %v1461_v20, %v1432_v6 }
 0x17c   : > { %2562 = vst [vmem:[%s2949_s7 + $0xfc] sm:$0xf] %v2496_v32 }
 0x17d   : > { %v1727_v53 = vmax.bf16 %v1661_v36, %v4301_v48  ;;  %v1596_v12 = vmax.bf16 %v1530_v27, %v392_v10 }
 0x17f   : > { %v2497_v16 = vmax.bf16 %v2361_v38, %v1727_v53  ;;  %v1662_v41 = vmax.bf16 %v1596_v12, %v395_v35 }
 0x181   : > { %2563 = vst [vmem:[%s2949_s7 + $0x100] sm:$0xf] %v2497_v16  ;;  %v1728_v25 = vmax.bf16 %v1662_v41, %v461_v5 }
 0x183   : > { %v2498_v21 = vmax.bf16 %v2366_v60, %v1728_v25 }
 0x185   : > { %2564 = vst [vmem:[%s2949_s7 + $0x104] sm:$0x7] %v2498_v21 }
 0x186 PF: > { %s14_s15 = sadd.s32 1, %s2760_s15  }
 0x187   : > { %p11_p4 = scmp.ge.s32.totalorder %s14_s15, 4  }
 0x189   :  { %13 = sbr.rel (!%p11_p4) target bundleno = 1 (0x1), region = 75 }

// kernel: onet_forward.10
= control target key start
LH: loop header
LB: loop body
LE: loop exit
PB: predicated region body
PF: predicated region fallthrough
CT: control target
= control target key end

     0   :  { %v4075_v0 = vmov 0   ;;  %vm1119_vm0 = vcmask 261120   ;;  %s5319_s1 = inlined_call_operand.vmem [shape: bf16[288,128], index: 1, kind: input, shape index: {}]   ;;  %s5320_s0 = inlined_call_operand.vmem [shape: bf16[800,288], index: 0, kind: input, shape index: {}]   ;;  %s5321_s2 = inlined_call_operand.vmem [shape: f32[1,128], index: 2, kind: input, shape index: {}]   ;;  %s5322_s3 = inlined_call_operand.vmem [shape: f32[1,128], index: 3, kind: input, shape index: {}]   ;;  %s5323_s4 = inlined_call_operand.vmem [shape: bf16[800,128], index: 4, kind: output, shape index: {}]  }
   0x1   :  { %1270 = vmatprep.subr.bf16.mxu0 %v4075_v0  ;;  %3822 = vmatprep.subr.bf16.mxu1 %v4075_v0  ;;  %v3855_v1 = vld [vmem:[%s5319_s1] sm:$0xff]   ;;  %v3856_v2 = vld [vmem:[%s5319_s1 + $0x8] sm:$0xff]   ;;  %v3857_v3 = vld [vmem:[%s5319_s1 + $0x10] sm:$0xff]  }
   0x2   :  { %1271 = vmatpush1.bf16.msra.mxu0 %v3855_v1  ;;  %3838 = vmatpush1.bf16.msra.mxu1 %v3855_v1  ;;  %v3858_v4 = vld [vmem:[%s5319_s1 + $0x18] sm:$0xff]   ;;  %v3859_v5 = vld [vmem:[%s5319_s1 + $0x20] sm:$0xff]   ;;  %v3860_v7 = vld [vmem:[%s5319_s1 + $0x28] sm:$0xff]  }
   0x3   :  { %1272 = vmatprep.subr.bf16.mxu0 %v4075_v0  ;;  %3823 = vmatprep.subr.bf16.mxu1 %v4075_v0  ;;  %v3873_v6 = vld [vmem:[%s5320_s0 + $0x4] ss:$12 sps:$4 sm:$0xff]   ;;  %v3876_v8 = vld [vmem:[%s5320_s0 + $0x394] ss:$12 sps:$4 sm:$0xff]   ;;  %v3862_v10 = vld [vmem:[%s5319_s1 + $0x38] sm:$0xff]  }
   0x4   :  { %1302 = vmatprep.mubr.bf16.mxu0 %v3873_v6  ;;  %1606 = vmatprep.mubr.bf16.mxu1 %v3876_v8  ;;  %v3861_v9 = vld [vmem:[%s5319_s1 + $0x30] sm:$0xff]   ;;  %v3863_v11 = vld [vmem:[%s5319_s1 + $0x40] sm:$0xff]   ;;  %v3864_v12 = vld [vmem:[%s5319_s1 + $0x48] sm:$0xff]  }
   0x5   :  { %v3865_v13 = vld [vmem:[%s5319_s1 + $0x50] sm:$0xff]   ;;  %v3866_v14 = vld [vmem:[%s5319_s1 + $0x58] sm:$0xff]   ;;  %v3867_v15 = vld [vmem:[%s5319_s1 + $0x60] sm:$0xff]  }
   0x6   :  { %1273 = vmatpush1.bf16.msra.mxu0 %v3856_v2  ;;  %3839 = vmatpush1.bf16.msra.mxu1 %v3856_v2  ;;  %v3868_v16 = vld [vmem:[%s5319_s1 + $0x68] sm:$0xff]   ;;  %v3869_v17 = vld [vmem:[%s5319_s1 + $0x70] sm:$0xff]   ;;  %v3870_v18 = vld [vmem:[%s5319_s1 + $0x78] sm:$0xff]  }
   0x7   :  { %1274 = vmatprep.subr.bf16.mxu0 %v4075_v0  ;;  %3824 = vmatprep.subr.bf16.mxu1 %v4075_v0  ;;  %v3871_v19 = vld [vmem:[%s5320_s0] ss:$12 sps:$4 sm:$0xff]   ;;  %v3874_v21 = vld [vmem:[%s5320_s0 + $0x390] ss:$12 sps:$4 sm:$0xff]   ;;  %v3881_v25 = vld [vmem:[%s5320_s0 + $0x18] ss:$12 sps:$4 sm:$0xff]  }
   0x8   :  { %v3883_v20 = vld [vmem:[%s5319_s1 + $0x80] sm:$0xff]   ;;  %v3877_v22 = vld [vmem:[%s5320_s0 + $0x1c] ss:$12 sps:$4 sm:$0xff]   ;;  %v3879_v23 = vld [vmem:[%s5320_s0 + $0x3ac] ss:$12 sps:$4 sm:$0xff]  }
   0x9   :  { %v3920_v24 = vld [vmem:[%s5319_s1 + $0x88] sm:$0xff]   ;;  %v3884_v27 = vld [vmem:[%s5320_s0 + $0x34] ss:$12 sps:$4 sm:$0xff]   ;;  %v3886_v28 = vld [vmem:[%s5320_s0 + $0x3c4] ss:$12 sps:$4 sm:$0xff]  }
   0xa   :  { %1275 = vmatpush1.bf16.msra.mxu0 %v3857_v3  ;;  %3840 = vmatpush1.bf16.msra.mxu1 %v3857_v3  ;;  %v3882_v26 = vld [vmem:[%s5320_s0 + $0x3a8] ss:$12 sps:$4 sm:$0xff]   ;;  %v3888_v29 = vld [vmem:[%s5320_s0 + $0x30] ss:$12 sps:$4 sm:$0xff]   ;;  %v3889_v30 = vld [vmem:[%s5320_s0 + $0x3c0] ss:$12 sps:$4 sm:$0xff]  }
   0xb   :  { %1276 = vmatprep.subr.bf16.mxu0 %v4075_v0  ;;  %3825 = vmatprep.subr.bf16.mxu1 %v4075_v0  ;;  %v3890_v31 = vld [vmem:[%s5320_s0 + $0x4c] ss:$12 sps:$4 sm:$0xff]   ;;  %v3892_v32 = vld [vmem:[%s5320_s0 + $0x3dc] ss:$12 sps:$4 sm:$0xff]   ;;  %v3896_v35 = vld [vmem:[%s5320_s0 + $0x64] ss:$12 sps:$4 sm:$0xff]  }
   0xc   :  { %v3894_v33 = vld [vmem:[%s5320_s0 + $0x48] ss:$12 sps:$4 sm:$0xff]   ;;  %v3895_v34 = vld [vmem:[%s5320_s0 + $0x3d8] ss:$12 sps:$4 sm:$0xff]   ;;  %v3900_v37 = vld [vmem:[%s5320_s0 + $0x60] ss:$12 sps:$4 sm:$0xff]  }
   0xd   :  { %v3898_v36 = vld [vmem:[%s5320_s0 + $0x3f4] ss:$12 sps:$4 sm:$0xff]   ;;  %v3901_v38 = vld [vmem:[%s5320_s0 + $0x3f0] ss:$12 sps:$4 sm:$0xff]   ;;  %v3904_v40 = vld [vmem:[%s5320_s0 + $0x40c] ss:$12 sps:$4 sm:$0xff]  }
   0xe   :  { %1277 = vmatpush1.bf16.msra.mxu0 %v3858_v4  ;;  %3841 = vmatpush1.bf16.msra.mxu1 %v3858_v4  ;;  %v3902_v39 = vld [vmem:[%s5320_s0 + $0x7c] ss:$12 sps:$4 sm:$0xff]   ;;  %v3906_v41 = vld [vmem:[%s5320_s0 + $0x78] ss:$12 sps:$4 sm:$0xff]   ;;  %v3908_v43 = vld [vmem:[%s5320_s0 + $0x94] ss:$12 sps:$4 sm:$0xff]  }
   0xf   :  { %1278 = vmatprep.subr.bf16.mxu0 %v4075_v0  ;;  %3826 = vmatprep.subr.bf16.mxu1 %v4075_v0  ;;  %v3907_v42 = vld [vmem:[%s5320_s0 + $0x408] ss:$12 sps:$4 sm:$0xff]   ;;  %v3910_v44 = vld [vmem:[%s5320_s0 + $0x424] ss:$12 sps:$4 sm:$0xff]   ;;  %v3913_v46 = vld [vmem:[%s5320_s0 + $0x420] ss:$12 sps:$4 sm:$0xff]  }
  0x10   :  { %v3912_v45 = vld [vmem:[%s5320_s0 + $0x90] ss:$12 sps:$4 sm:$0xff]   ;;  %v3914_v47 = vld [vmem:[%s5320_s0 + $0xac] ss:$12 sps:$4 sm:$0xff]   ;;  %v3918_v49 = vld [vmem:[%s5320_s0 + $0xa8] ss:$12 sps:$4 sm:$0xff]  }
  0x11   :  { %v3916_v48 = vld [vmem:[%s5320_s0 + $0x43c] ss:$12 sps:$4 sm:$0xff]   ;;  %v3919_v50 = vld [vmem:[%s5320_s0 + $0x438] ss:$12 sps:$4 sm:$0xff]   ;;  %v3923_v52 = vld [vmem:[%s5320_s0 + $0x454] ss:$12 sps:$4 sm:$0xff]  }
  0x12   :  { %1279 = vmatpush1.bf16.msra.mxu0 %v3859_v5  ;;  %3842 = vmatpush1.bf16.msra.mxu1 %v3859_v5  ;;  %v3921_v51 = vld [vmem:[%s5320_s0 + $0xc4] ss:$12 sps:$4 sm:$0xff]   ;;  %v3925_v53 = vld [vmem:[%s5320_s0 + $0xc0] ss:$12 sps:$4 sm:$0xff]   ;;  %v3927_v55 = vld [vmem:[%s5320_s0 + $0xdc] ss:$12 sps:$4 sm:$0xff]  }
  0x13   :  { %1280 = vmatprep.subr.bf16.mxu0 %v4075_v0  ;;  %3827 = vmatprep.subr.bf16.mxu1 %v4075_v0  ;;  %v3926_v54 = vld [vmem:[%s5320_s0 + $0x450] ss:$12 sps:$4 sm:$0xff]   ;;  %v3929_v56 = vld [vmem:[%s5320_s0 + $0x46c] ss:$12 sps:$4 sm:$0xff]   ;;  %v3932_v58 = vld [vmem:[%s5320_s0 + $0x468] ss:$12 sps:$4 sm:$0xff]  }
  0x14   :  { %v3931_v57 = vld [vmem:[%s5320_s0 + $0xd8] ss:$12 sps:$4 sm:$0xff]   ;;  %v3933_v59 = vld [vmem:[%s5320_s0 + $0xf4] ss:$12 sps:$4 sm:$0xff]   ;;  %v3937_v61 = vld [vmem:[%s5320_s0 + $0xf0] ss:$12 sps:$4 sm:$0xff]  }
  0x15   :  { %v3935_v60 = vld [vmem:[%s5320_s0 + $0x484] ss:$12 sps:$4 sm:$0xff]   ;;  %v3938_v62 = vld [vmem:[%s5320_s0 + $0x480] ss:$12 sps:$4 sm:$0xff]   ;;  %v3943_v1 = vld [vmem:[%s5320_s0 + $0x108] ss:$12 sps:$4 sm:$0xff]  }
  0x16   :  { %1281 = vmatpush1.bf16.msra.mxu0 %v3860_v7  ;;  %3843 = vmatpush1.bf16.msra.mxu1 %v3860_v7  ;;  %v3939_v63 = vld [vmem:[%s5320_s0 + $0x10c] ss:$12 sps:$4 sm:$0xff]   ;;  %v3945_v3 = vld [vmem:[%s5320_s0 + $0x124] ss:$12 sps:$4 sm:$0xff]   ;;  %v3947_v4 = vld [vmem:[%s5320_s0 + $0x8] ss:$12 sps:$4 sm:$0xff]  }
  0x17   :  { %1282 = vmatprep.subr.bf16.mxu0 %v4075_v0  ;;  %3828 = vmatprep.subr.bf16.mxu1 %v4075_v0  ;;  %v3944_v2 = vld [vmem:[%s5320_s0 + $0x498] ss:$12 sps:$4 sm:$0xff]   ;;  %v3948_v5 = vld [vmem:[%s5320_s0 + $0x120] ss:$12 sps:$4 sm:$0xff]   ;;  %v3950_v7 = vld [vmem:[%s5320_s0 + $0x13c] ss:$12 sps:$4 sm:$0xff]  }
  0x18   :  { %v3949_v6 = vld [vmem:[%s5320_s0 + $0x20] ss:$12 sps:$4 sm:$0xff]   ;;  %v3952_v8 = vld [vmem:[%s5320_s0 + $0x38] ss:$12 sps:$4 sm:$0xff]  }
  0x1a   :  { %1283 = vmatpush1.bf16.msra.mxu0 %v3861_v9  ;;  %3844 = vmatpush1.bf16.msra.mxu1 %v3861_v9  ;;  %v3953_v9 = vld [vmem:[%s5320_s0 + $0x138] ss:$12 sps:$4 sm:$0xff]  }
  0x1b   :  { %1284 = vmatprep.subr.bf16.mxu0 %v4075_v0  ;;  %3829 = vmatprep.subr.bf16.mxu1 %v4075_v0 }
  0x1e   :  { %1285 = vmatpush1.bf16.msra.mxu0 %v3862_v10  ;;  %3845 = vmatpush1.bf16.msra.mxu1 %v3862_v10  ;;  %v3954_v10 = vld [vmem:[%s5320_s0 + $0x50] ss:$12 sps:$4 sm:$0xff]  }
  0x1f   :  { %1286 = vmatprep.subr.bf16.mxu0 %v4075_v0  ;;  %3830 = vmatprep.subr.bf16.mxu1 %v4075_v0 }
  0x22   :  { %1287 = vmatpush1.bf16.msra.mxu0 %v3863_v11  ;;  %3846 = vmatpush1.bf16.msra.mxu1 %v3863_v11  ;;  %v3955_v11 = vld [vmem:[%s5320_s0 + $0x154] ss:$12 sps:$4 sm:$0xff]  }
  0x23   :  { %1288 = vmatprep.subr.bf16.mxu0 %v4075_v0  ;;  %3831 = vmatprep.subr.bf16.mxu1 %v4075_v0 }
  0x26   :  { %1289 = vmatpush1.bf16.msra.mxu0 %v3864_v12  ;;  %3847 = vmatpush1.bf16.msra.mxu1 %v3864_v12  ;;  %v3957_v12 = vld [vmem:[%s5320_s0 + $0x68] ss:$12 sps:$4 sm:$0xff]  }
  0x27   :  { %1290 = vmatprep.subr.bf16.mxu0 %v4075_v0  ;;  %3832 = vmatprep.subr.bf16.mxu1 %v4075_v0 }
  0x2a   :  { %1291 = vmatpush1.bf16.msra.mxu0 %v3865_v13  ;;  %3848 = vmatpush1.bf16.msra.mxu1 %v3865_v13  ;;  %v3958_v13 = vld [vmem:[%s5320_s0 + $0x150] ss:$12 sps:$4 sm:$0xff]  }
  0x2b   :  { %1292 = vmatprep.subr.bf16.mxu0 %v4075_v0  ;;  %3833 = vmatprep.subr.bf16.mxu1 %v4075_v0 }
  0x2e   :  { %1293 = vmatpush1.bf16.msra.mxu0 %v3866_v14  ;;  %3849 = vmatpush1.bf16.msra.mxu1 %v3866_v14  ;;  %v3959_v14 = vld [vmem:[%s5320_s0 + $0x80] ss:$12 sps:$4 sm:$0xff]  }
  0x2f   :  { %1294 = vmatprep.subr.bf16.mxu0 %v4075_v0  ;;  %3834 = vmatprep.subr.bf16.mxu1 %v4075_v0 }
  0x32   :  { %1295 = vmatpush1.bf16.msra.mxu0 %v3867_v15  ;;  %3850 = vmatpush1.bf16.msra.mxu1 %v3867_v15  ;;  %v3960_v15 = vld [vmem:[%s5320_s0 + $0x16c] ss:$12 sps:$4 sm:$0xff]  }
  0x33   :  { %1296 = vmatprep.subr.bf16.mxu0 %v4075_v0  ;;  %3835 = vmatprep.subr.bf16.mxu1 %v4075_v0 }
  0x36   :  { %1297 = vmatpush1.bf16.msra.mxu0 %v3868_v16  ;;  %3851 = vmatpush1.bf16.msra.mxu1 %v3868_v16  ;;  %v3962_v16 = vld [vmem:[%s5320_s0 + $0x98] ss:$12 sps:$4 sm:$0xff]  }
  0x37   :  { %1298 = vmatprep.subr.bf16.mxu0 %v4075_v0  ;;  %3836 = vmatprep.subr.bf16.mxu1 %v4075_v0 }
  0x3a   :  { %1299 = vmatpush1.bf16.msra.mxu0 %v3869_v17  ;;  %3852 = vmatpush1.bf16.msra.mxu1 %v3869_v17  ;;  %v3963_v17 = vld [vmem:[%s5320_s0 + $0x168] ss:$12 sps:$4 sm:$0xff]  }
  0x3b   :  { %1300 = vmatprep.subr.bf16.mxu0 %v4075_v0  ;;  %3837 = vmatprep.subr.bf16.mxu1 %v4075_v0  ;;  %v3941_v0 = vld [vmem:[%s5320_s0 + $0x49c] ss:$12 sps:$4 sm:$0xff]  }
  0x3e   :  { %1301 = vmatpush1.bf16.msra.mxu0 %v3870_v18  ;;  %3853 = vmatpush1.bf16.msra.mxu1 %v3870_v18  ;;  %v3964_v18 = vld [vmem:[%s5320_s0 + $0xb0] ss:$12 sps:$4 sm:$0xff]  }
  0x3f   :  { %3718 = vmatprep.subr.bf16.mxu1 %v3883_v20 }
  0x41   :  { %1303 = vmatmul.mubr.bf16.vlgmr.msra.gmra.mrb[0].mxu0 %v3871_v19  ;;  %1607 = vmatmul.mubr.bf16.vlgmr.msra.gmra.mrb[0].mxu1 %v3874_v21  ;;  %v3965_v19 = vld [vmem:[%s5320_s0 + $0x184] ss:$12 sps:$4 sm:$0xff]   ;;  %v3968_v21 = vld [vmem:[%s5320_s0 + $0x180] ss:$12 sps:$4 sm:$0xff]  }
  0x42   :  { %1310 = vmatprep.mubr.bf16.mxu0 %v3877_v22  ;;  %1614 = vmatprep.mubr.bf16.mxu1 %v3879_v23  ;;  %v3969_v22 = vld [vmem:[%s5320_s0 + $0xe0] ss:$12 sps:$4 sm:$0xff]   ;;  %v3970_v23 = vld [vmem:[%s5320_s0 + $0x19c] ss:$12 sps:$4 sm:$0xff]  }
  0x43   :  { %3719 = vmatpush3.bf16.msra.mxu1 %v3883_v20  ;;  %v3967_v20 = vld [vmem:[%s5320_s0 + $0xc8] ss:$12 sps:$4 sm:$0xff]  }
  0x44   :  { %3720 = vmatprep.subr.bf16.mxu1 %v3920_v24 }
  0x47   :  { %3721 = vmatpush3.bf16.msra.mxu1 %v3920_v24  ;;  %v3972_v24 = vld [vmem:[%s5320_s0 + $0xf8] ss:$12 sps:$4 sm:$0xff]  }
  0x49   :  { %1311 = vmatmul.mubr.bf16.gmra.mrb[4].mxu0 %v3881_v25  ;;  %1615 = vmatmul.mubr.bf16.gmra.mrb[4].mxu1 %v3882_v26  ;;  %v3973_v25 = vld [vmem:[%s5320_s0 + $0x198] ss:$12 sps:$4 sm:$0xff]   ;;  %v3974_v26 = vld [vmem:[%s5320_s0 + $0x110] ss:$12 sps:$4 sm:$0xff]  }
  0x4a   :  { %1318 = vmatprep.mubr.bf16.mxu0 %v3884_v27  ;;  %1622 = vmatprep.mubr.bf16.mxu1 %v3886_v28  ;;  %v3975_v27 = vld [vmem:[%s5320_s0 + $0x1b4] ss:$12 sps:$4 sm:$0xff]  }
  0x4b   :  { %v3977_v28 = vld [vmem:[%s5320_s0 + $0x128] ss:$12 sps:$4 sm:$0xff]  }
  0x51   :  { %1319 = vmatmul.mubr.bf16.gmra.mrb[8].mxu0 %v3888_v29  ;;  %1623 = vmatmul.mubr.bf16.gmra.mrb[8].mxu1 %v3889_v30  ;;  %v3978_v29 = vld [vmem:[%s5320_s0 + $0x1b0] ss:$12 sps:$4 sm:$0xff]   ;;  %v3979_v30 = vld [vmem:[%s5320_s0 + $0x140] ss:$12 sps:$4 sm:$0xff]  }
  0x52   :  { %1326 = vmatprep.mubr.bf16.mxu0 %v3890_v31  ;;  %1630 = vmatprep.mubr.bf16.mxu1 %v3892_v32  ;;  %v3980_v31 = vld [vmem:[%s5320_s0 + $0x1cc] ss:$12 sps:$4 sm:$0xff]  }
  0x53   :  { %v3982_v32 = vld [vmem:[%s5320_s0 + $0x158] ss:$12 sps:$4 sm:$0xff]  }
  0x59   :  { %1327 = vmatmul.mubr.bf16.gmra.mrb[12].mxu0 %v3894_v33  ;;  %1631 = vmatmul.mubr.bf16.gmra.mrb[12].mxu1 %v3895_v34  ;;  %v3983_v33 = vld [vmem:[%s5320_s0 + $0x1c8] ss:$12 sps:$4 sm:$0xff]   ;;  %v3984_v34 = vld [vmem:[%s5320_s0 + $0x170] ss:$12 sps:$4 sm:$0xff]  }
  0x5a   :  { %1334 = vmatprep.mubr.bf16.mxu0 %v3896_v35  ;;  %1638 = vmatprep.mubr.bf16.mxu1 %v3898_v36  ;;  %v3985_v35 = vld [vmem:[%s5320_s0 + $0x1e4] ss:$12 sps:$4 sm:$0xff]   ;;  %v3987_v36 = vld [vmem:[%s5320_s0 + $0x188] ss:$12 sps:$4 sm:$0xff]  }
  0x61   :  { %1335 = vmatmul.mubr.bf16.gmra.mrb[16].mxu0 %v3900_v37  ;;  %1639 = vmatmul.mubr.bf16.gmra.mrb[16].mxu1 %v3901_v38  ;;  %v3988_v37 = vld [vmem:[%s5320_s0 + $0x1e0] ss:$12 sps:$4 sm:$0xff]  }
  0x62   :  { %1342 = vmatprep.mubr.bf16.mxu0 %v3902_v39  ;;  %1646 = vmatprep.mubr.bf16.mxu1 %v3904_v40  ;;  %v3989_v38 = vld [vmem:[%s5320_s0 + $0x1a0] ss:$12 sps:$4 sm:$0xff]   ;;  %v3990_v39 = vld [vmem:[%s5320_s0 + $0x1fc] ss:$12 sps:$4 sm:$0xff]   ;;  %v3992_v40 = vld [vmem:[%s5320_s0 + $0x1b8] ss:$12 sps:$4 sm:$0xff]  }
  0x69   :  { %1343 = vmatmul.mubr.bf16.gmra.mrb[20].mxu0 %v3906_v41  ;;  %1647 = vmatmul.mubr.bf16.gmra.mrb[20].mxu1 %v3907_v42  ;;  %v3993_v41 = vld [vmem:[%s5320_s0 + $0x1f8] ss:$12 sps:$4 sm:$0xff]   ;;  %v3994_v42 = vld [vmem:[%s5320_s0 + $0x1d0] ss:$12 sps:$4 sm:$0xff]  }
  0x6a   :  { %1350 = vmatprep.mubr.bf16.mxu0 %v3908_v43  ;;  %1654 = vmatprep.mubr.bf16.mxu1 %v3910_v44  ;;  %v3995_v43 = vld [vmem:[%s5320_s0 + $0x214] ss:$12 sps:$4 sm:$0xff]  }
  0x6b   :  { %v3997_v44 = vld [vmem:[%s5320_s0 + $0x1e8] ss:$12 sps:$4 sm:$0xff]  }
  0x71   :  { %1351 = vmatmul.mubr.bf16.gmra.mrb[24].mxu0 %v3912_v45  ;;  %1655 = vmatmul.mubr.bf16.gmra.mrb[24].mxu1 %v3913_v46  ;;  %v3998_v45 = vld [vmem:[%s5320_s0 + $0x210] ss:$12 sps:$4 sm:$0xff]   ;;  %v3999_v46 = vld [vmem:[%s5320_s0 + $0x200] ss:$12 sps:$4 sm:$0xff]  }
  0x72   :  { %1358 = vmatprep.mubr.bf16.mxu0 %v3914_v47  ;;  %1662 = vmatprep.mubr.bf16.mxu1 %v3916_v48  ;;  %v4000_v47 = vld [vmem:[%s5320_s0 + $0x22c] ss:$12 sps:$4 sm:$0xff]  }
  0x73   :  { %v4002_v48 = vld [vmem:[%s5320_s0 + $0x218] ss:$12 sps:$4 sm:$0xff]  }
  0x79   :  { %1359 = vmatmul.mubr.bf16.gmra.mrb[28].mxu0 %v3918_v49  ;;  %1663 = vmatmul.mubr.bf16.gmra.mrb[28].mxu1 %v3919_v50  ;;  %v4003_v49 = vld [vmem:[%s5320_s0 + $0x228] ss:$12 sps:$4 sm:$0xff]   ;;  %v4004_v50 = vld [vmem:[%s5320_s0 + $0x230] ss:$12 sps:$4 sm:$0xff]  }
  0x7a   :  { %1366 = vmatprep.mubr.bf16.mxu0 %v3921_v51  ;;  %1670 = vmatprep.mubr.bf16.mxu1 %v3923_v52  ;;  %v4005_v51 = vld [vmem:[%s5320_s0 + $0x244] ss:$12 sps:$4 sm:$0xff]   ;;  %v4007_v52 = vld [vmem:[%s5320_s0 + $0x248] ss:$12 sps:$4 sm:$0xff]  }
  0x81   :  { %1367 = vmatmul.mubr.bf16.gmra.mrb[32].mxu0 %v3925_v53  ;;  %1671 = vmatmul.mubr.bf16.gmra.mrb[32].mxu1 %v3926_v54  ;;  %v4008_v53 = vld [vmem:[%s5320_s0 + $0x240] ss:$12 sps:$4 sm:$0xff]  }
  0x82   :  { %1374 = vmatprep.mubr.bf16.mxu0 %v3927_v55  ;;  %1678 = vmatprep.mubr.bf16.mxu1 %v3929_v56  ;;  %v4009_v54 = vld [vmem:[%s5320_s0 + $0x260] ss:$12 sps:$4 sm:$0xff]   ;;  %v4010_v55 = vld [vmem:[%s5320_s0 + $0x25c] ss:$12 sps:$4 sm:$0xff]   ;;  %v4012_v56 = vld [vmem:[%s5320_s0 + $0x278] ss:$12 sps:$4 sm:$0xff]  }
  0x89   :  { %1375 = vmatmul.mubr.bf16.gmra.mrb[36].mxu0 %v3931_v57  ;;  %1679 = vmatmul.mubr.bf16.gmra.mrb[36].mxu1 %v3932_v58  ;;  %v4013_v57 = vld [vmem:[%s5320_s0 + $0x258] ss:$12 sps:$4 sm:$0xff]   ;;  %v4014_v58 = vld [vmem:[%s5320_s0 + $0x290] ss:$12 sps:$4 sm:$0xff]  }
  0x8a   :  { %1382 = vmatprep.mubr.bf16.mxu0 %v3933_v59  ;;  %1686 = vmatprep.mubr.bf16.mxu1 %v3935_v60  ;;  %v4015_v59 = vld [vmem:[%s5320_s0 + $0x274] ss:$12 sps:$4 sm:$0xff]  }
  0x8b   :  { %v4017_v60 = vld [vmem:[%s5320_s0 + $0x2a8] ss:$12 sps:$4 sm:$0xff]  }
  0x91   :  { %1383 = vmatmul.mubr.bf16.gmra.mrb[40].mxu0 %v3937_v61  ;;  %1687 = vmatmul.mubr.bf16.gmra.mrb[40].mxu1 %v3938_v62  ;;  %v4018_v61 = vld [vmem:[%s5320_s0 + $0x270] ss:$12 sps:$4 sm:$0xff]   ;;  %v4019_v62 = vld [vmem:[%s5320_s0 + $0x2c0] ss:$12 sps:$4 sm:$0xff]  }
  0x92   :  { %1390 = vmatprep.mubr.bf16.mxu0 %v3939_v63  ;;  %1694 = vmatprep.mubr.bf16.mxu1 %v3941_v0  ;;  %v4020_v63 = vld [vmem:[%s5320_s0 + $0x28c] ss:$12 sps:$4 sm:$0xff]  }
  0x93   :  { %v4022_v0 = vld [vmem:[%s5320_s0 + $0x2d8] ss:$12 sps:$4 sm:$0xff]  }
  0x99   :  { %1391 = vmatmul.mubr.bf16.gmra.mrb[44].mxu0 %v3943_v1  ;;  %1695 = vmatmul.mubr.bf16.gmra.mrb[44].mxu1 %v3944_v2 }
  0x9a   :  { %1398 = vmatprep.mubr.bf16.mxu0 %v3945_v3  ;;  %3722 = vmatprep.mubr.msk.bf16.mxu1 %vm1119_vm0, %v3947_v4  ;;  %v4023_v4 = vld [vmem:[%s5320_s0 + $0x288] ss:$12 sps:$4 sm:$0xff]  }
  0xa1   :  { %1399 = vmatmul.mubr.bf16.gmra.mrb[48].mxu0 %v3948_v5  ;;  %3723 = vmatmul.mubr.msk.bf16.vlgmr.msra.gmra.mrb[48].mxu1 %vm1119_vm0, %v3949_v6  ;;  %v4024_v5 = vld [vmem:[%s5320_s0 + $0x2f0] ss:$12 sps:$4 sm:$0xff]  }
  0xa2   :  { %1406 = vmatprep.mubr.bf16.mxu0 %v3950_v7  ;;  %3726 = vmatprep.mubr.msk.bf16.mxu1 %vm1119_vm0, %v3952_v8 }
  0xa9   :  { %1407 = vmatmul.mubr.bf16.gmra.mrb[52].mxu0 %v3953_v9  ;;  %3727 = vmatmul.mubr.msk.bf16.gmra.mrb[52].mxu1 %vm1119_vm0, %v3954_v10  ;;  %v4025_v9 = vld [vmem:[%s5320_s0 + $0x2a4] ss:$12 sps:$4 sm:$0xff]   ;;  %v4027_v10 = vld [vmem:[%s5320_s0 + $0x308] ss:$12 sps:$4 sm:$0xff]  }
  0xaa   :  { %1414 = vmatprep.mubr.bf16.mxu0 %v3955_v11  ;;  %3730 = vmatprep.mubr.msk.bf16.mxu1 %vm1119_vm0, %v3957_v12 }
  0xb1   :  { %1415 = vmatmul.mubr.bf16.gmra.mrb[56].mxu0 %v3958_v13  ;;  %3731 = vmatmul.mubr.msk.bf16.gmra.mrb[56].mxu1 %vm1119_vm0, %v3959_v14 }
  0xb2   :  { %1422 = vmatprep.mubr.bf16.mxu0 %v3960_v15  ;;  %3734 = vmatprep.mubr.msk.bf16.mxu1 %vm1119_vm0, %v3962_v16  ;;  %v4028_v16 = vld [vmem:[%s5320_s0 + $0x2a0] ss:$12 sps:$4 sm:$0xff]  }
  0xb9   :  { %1423 = vmatmul.mubr.bf16.gmra.mrb[60].mxu0 %v3963_v17  ;;  %3735 = vmatmul.mubr.msk.bf16.gmra.mrb[60].mxu1 %vm1119_vm0, %v3964_v18  ;;  %v4029_v17 = vld [vmem:[%s5320_s0 + $0x320] ss:$12 sps:$4 sm:$0xff]  }
  0xba   :  { %1430 = vmatprep.mubr.bf16.mxu0 %v3965_v19  ;;  %3738 = vmatprep.mubr.msk.bf16.mxu1 %vm1119_vm0, %v3967_v20 }
  0xc1   :  { %1431 = vmatmul.mubr.bf16.gmra.mrb[64].mxu0 %v3968_v21  ;;  %3739 = vmatmul.mubr.msk.bf16.gmra.mrb[64].mxu1 %vm1119_vm0, %v3969_v22  ;;  %v4030_v21 = vld [vmem:[%s5320_s0 + $0x2bc] ss:$12 sps:$4 sm:$0xff]   ;;  %v4032_v22 = vld [vmem:[%s5320_s0 + $0x338] ss:$12 sps:$4 sm:$0xff]  }
  0xc2   :  { %1438 = vmatprep.mubr.bf16.mxu0 %v3970_v23  ;;  %3742 = vmatprep.mubr.msk.bf16.mxu1 %vm1119_vm0, %v3972_v24 }
  0xc9   :  { %1439 = vmatmul.mubr.bf16.gmra.mrb[68].mxu0 %v3973_v25  ;;  %3743 = vmatmul.mubr.msk.bf16.gmra.mrb[68].mxu1 %vm1119_vm0, %v3974_v26 }
  0xca   :  { %1446 = vmatprep.mubr.bf16.mxu0 %v3975_v27  ;;  %3746 = vmatprep.mubr.msk.bf16.mxu1 %vm1119_vm0, %v3977_v28  ;;  %v4033_v28 = vld [vmem:[%s5320_s0 + $0x2b8] ss:$12 sps:$4 sm:$0xff]  }
  0xd1   :  { %1447 = vmatmul.mubr.bf16.gmra.mrb[72].mxu0 %v3978_v29  ;;  %3747 = vmatmul.mubr.msk.bf16.gmra.mrb[72].mxu1 %vm1119_vm0, %v3979_v30  ;;  %v4034_v29 = vld [vmem:[%s5320_s0 + $0x350] ss:$12 sps:$4 sm:$0xff]  }
  0xd2   :  { %1454 = vmatprep.mubr.bf16.mxu0 %v3980_v31  ;;  %3750 = vmatprep.mubr.msk.bf16.mxu1 %vm1119_vm0, %v3982_v32 }
  0xd9   :  { %1455 = vmatmul.mubr.bf16.gmra.mrb[76].mxu0 %v3983_v33  ;;  %3751 = vmatmul.mubr.msk.bf16.gmra.mrb[76].mxu1 %vm1119_vm0, %v3984_v34  ;;  %v4035_v33 = vld [vmem:[%s5320_s0 + $0x2d4] ss:$12 sps:$4 sm:$0xff]  }
  0xda   :  { %1462 = vmatprep.mubr.bf16.mxu0 %v3985_v35  ;;  %3754 = vmatprep.mubr.msk.bf16.mxu1 %vm1119_vm0, %v3987_v36  ;;  %v4037_v34 = vld [vmem:[%s5320_s0 + $0x368] ss:$12 sps:$4 sm:$0xff]  }
  0xe1   :  { %1463 = vmatmul.mubr.bf16.gmra.mrb[80].mxu0 %v3988_v37  ;;  %3755 = vmatmul.mubr.msk.bf16.gmra.mrb[80].mxu1 %vm1119_vm0, %v3989_v38 }
  0xe2   :  { %1470 = vmatprep.mubr.bf16.mxu0 %v3990_v39  ;;  %3758 = vmatprep.mubr.msk.bf16.mxu1 %vm1119_vm0, %v3992_v40  ;;  %v4038_v40 = vld [vmem:[%s5320_s0 + $0x2d0] ss:$12 sps:$4 sm:$0xff]  }
  0xe9   :  { %1471 = vmatmul.mubr.bf16.gmra.mrb[84].mxu0 %v3993_v41  ;;  %3759 = vmatmul.mubr.msk.bf16.gmra.mrb[84].mxu1 %vm1119_vm0, %v3994_v42  ;;  %v4039_v41 = vld [vmem:[%s5320_s0 + $0x380] ss:$12 sps:$4 sm:$0xff]  }
  0xea   :  { %1478 = vmatprep.mubr.bf16.mxu0 %v3995_v43  ;;  %3762 = vmatprep.mubr.msk.bf16.mxu1 %vm1119_vm0, %v3997_v44 }
  0xf1   :  { %1479 = vmatmul.mubr.bf16.gmra.mrb[88].mxu0 %v3998_v45  ;;  %3763 = vmatmul.mubr.msk.bf16.gmra.mrb[88].mxu1 %vm1119_vm0, %v3999_v46  ;;  %v4040_v45 = vld [vmem:[%s5320_s0 + $0x2ec] ss:$12 sps:$4 sm:$0xff]  }
  0xf2   :  { %1486 = vmatprep.mubr.bf16.mxu0 %v4000_v47  ;;  %3766 = vmatprep.mubr.msk.bf16.mxu1 %vm1119_vm0, %v4002_v48  ;;  %v4042_v46 = vld [vmem:[%s5320_s0 + $0x398] ss:$12 sps:$4 sm:$0xff]  }
  0xf9   :  { %1487 = vmatmul.mubr.bf16.gmra.mrb[92].mxu0 %v4003_v49  ;;  %3767 = vmatmul.mubr.msk.bf16.gmra.mrb[92].mxu1 %vm1119_vm0, %v4004_v50 }
  0xfa   :  { %1494 = vmatprep.mubr.bf16.mxu0 %v4005_v51  ;;  %3770 = vmatprep.mubr.msk.bf16.mxu1 %vm1119_vm0, %v4007_v52  ;;  %v4043_v52 = vld [vmem:[%s5320_s0 + $0x2e8] ss:$12 sps:$4 sm:$0xff]  }
 0x101   :  { %1495 = vmatmul.mubr.bf16.gmra.mrb[96].mxu0 %v4008_v53  ;;  %3771 = vmatmul.mubr.msk.bf16.gmra.mrb[96].mxu1 %vm1119_vm0, %v4009_v54  ;;  %v4044_v53 = vld [vmem:[%s5320_s0 + $0x3b0] ss:$12 sps:$4 sm:$0xff]  }
 0x102   :  { %1502 = vmatprep.mubr.bf16.mxu0 %v4010_v55  ;;  %3774 = vmatprep.mubr.msk.bf16.mxu1 %vm1119_vm0, %v4012_v56 }
 0x109   :  { %1503 = vmatmul.mubr.bf16.gmra.mrb[100].mxu0 %v4013_v57  ;;  %3775 = vmatmul.mubr.msk.bf16.gmra.mrb[100].mxu1 %vm1119_vm0, %v4014_v58  ;;  %v4045_v57 = vld [vmem:[%s5320_s0 + $0x304] ss:$12 sps:$4 sm:$0xff]   ;;  %v4047_v58 = vld [vmem:[%s5320_s0 + $0x3c8] ss:$12 sps:$4 sm:$0xff]  }
 0x10a   :  { %1510 = vmatprep.mubr.bf16.mxu0 %v4015_v59  ;;  %3778 = vmatprep.mubr.msk.bf16.mxu1 %vm1119_vm0, %v4017_v60 }
 0x111   :  { %1511 = vmatmul.mubr.bf16.gmra.mrb[104].mxu0 %v4018_v61  ;;  %3779 = vmatmul.mubr.msk.bf16.gmra.mrb[104].mxu1 %vm1119_vm0, %v4019_v62 }
 0x112   :  { %1518 = vmatprep.mubr.bf16.mxu0 %v4020_v63  ;;  %3782 = vmatprep.mubr.msk.bf16.mxu1 %vm1119_vm0, %v4022_v0  ;;  %v4048_v0 = vld [vmem:[%s5320_s0 + $0x300] ss:$12 sps:$4 sm:$0xff]  }
 0x114   :  { %v4548_v1 = vpop.f32.mrb[0].mxu0  ;;  %v4550_v2 = vpop.f32.mrb[0].mxu1 }
 0x115   :  { %v1306_v3 = vpop.f32.mrb[1].mxu0  ;;  %v1610_v6 = vpop.f32.mrb[1].mxu1 }
 0x116   :  { %v4558_v7 = vpop.f32.mrb[2].mxu0  ;;  %v4560_v8 = vpop.f32.mrb[2].mxu1  ;;  %v4049_v3 = vld [vmem:[%s5320_s0 + $0x3e0] ss:$12 sps:$4 sm:$0xff]  }
 0x117   :  { %v1309_v11 = vpop.f32.mrb[3].mxu0  ;;  %v1613_v12 = vpop.f32.mrb[3].mxu1 }
 0x119   :  { %1519 = vmatmul.mubr.bf16.gmra.mrb[108].mxu0 %v4023_v4  ;;  %3783 = vmatmul.mubr.msk.bf16.gmra.mrb[108].mxu1 %vm1119_vm0, %v4024_v5 }
 0x11a   :  { %1526 = vmatprep.mubr.bf16.mxu0 %v4025_v9  ;;  %3786 = vmatprep.mubr.msk.bf16.mxu1 %vm1119_vm0, %v4027_v10  ;;  %v4050_v9 = vld [vmem:[%s5320_s0 + $0x31c] ss:$12 sps:$4 sm:$0xff]   ;;  %v4052_v10 = vld [vmem:[%s5320_s0 + $0x3f8] ss:$12 sps:$4 sm:$0xff]  }
 0x11c   :  { %v4570_v13 = vpop.f32.mrb[4].mxu0  ;;  %v4572_v14 = vpop.f32.mrb[4].mxu1 }
 0x11d   :  { %v1314_v15 = vpop.f32.mrb[5].mxu0  ;;  %v1618_v18 = vpop.f32.mrb[5].mxu1 }
 0x11e   :  { %v4580_v19 = vpop.f32.mrb[6].mxu0  ;;  %v4582_v20 = vpop.f32.mrb[6].mxu1  ;;  %v4053_v18 = vld [vmem:[%s5320_s0 + $0x318] ss:$12 sps:$4 sm:$0xff]  }
 0x11f   :  { %v1317_v23 = vpop.f32.mrb[7].mxu0  ;;  %v1621_v24 = vpop.f32.mrb[7].mxu1 }
 0x121   :  { %1527 = vmatmul.mubr.bf16.gmra.mrb[112].mxu0 %v4028_v16  ;;  %3787 = vmatmul.mubr.msk.bf16.gmra.mrb[112].mxu1 %vm1119_vm0, %v4029_v17 }
 0x122   :  { %1534 = vmatprep.mubr.bf16.mxu0 %v4030_v21  ;;  %3790 = vmatprep.mubr.msk.bf16.mxu1 %vm1119_vm0, %v4032_v22  ;;  %v4054_v21 = vld [vmem:[%s5320_s0 + $0x410] ss:$12 sps:$4 sm:$0xff]  }
 0x124   :  { %v4592_v25 = vpop.f32.mrb[8].mxu0  ;;  %v4594_v26 = vpop.f32.mrb[8].mxu1 }
 0x125   :  { %v1322_v27 = vpop.f32.mrb[9].mxu0  ;;  %v1626_v30 = vpop.f32.mrb[9].mxu1 }
 0x126   :  { %v4602_v31 = vpop.f32.mrb[10].mxu0  ;;  %v4604_v32 = vpop.f32.mrb[10].mxu1  ;;  %v4055_v27 = vld [vmem:[%s5320_s0 + $0x334] ss:$12 sps:$4 sm:$0xff]  }
 0x127   :  { %v1325_v35 = vpop.f32.mrb[11].mxu0  ;;  %v1629_v36 = vpop.f32.mrb[11].mxu1 }
 0x128   :  { %v4058_v36 = vld [vmem:[%s5320_s0 + $0x330] ss:$12 sps:$4 sm:$0xff]  }
 0x129   :  { %1535 = vmatmul.mubr.bf16.gmra.mrb[116].mxu0 %v4033_v28  ;;  %3791 = vmatmul.mubr.msk.bf16.gmra.mrb[116].mxu1 %vm1119_vm0, %v4034_v29  ;;  %v4057_v28 = vld [vmem:[%s5320_s0 + $0x428] ss:$12 sps:$4 sm:$0xff]  }
 0x12a   :  { %1542 = vmatprep.mubr.bf16.mxu0 %v4035_v33  ;;  %3794 = vmatprep.mubr.msk.bf16.mxu1 %vm1119_vm0, %v4037_v34 }
 0x12c   :  { %v4614_v37 = vpop.f32.mrb[12].mxu0  ;;  %v4616_v38 = vpop.f32.mrb[12].mxu1 }
 0x12d   :  { %v1330_v39 = vpop.f32.mrb[13].mxu0  ;;  %v1634_v42 = vpop.f32.mrb[13].mxu1 }
 0x12e   :  { %v4624_v43 = vpop.f32.mrb[14].mxu0  ;;  %v4626_v44 = vpop.f32.mrb[14].mxu1  ;;  %v4059_v39 = vld [vmem:[%s5320_s0 + $0x440] ss:$12 sps:$4 sm:$0xff]  }
 0x12f   :  { %v1333_v47 = vpop.f32.mrb[15].mxu0  ;;  %v1637_v48 = vpop.f32.mrb[15].mxu1 }
 0x131   :  { %1543 = vmatmul.mubr.bf16.gmra.mrb[120].mxu0 %v4038_v40  ;;  %3795 = vmatmul.mubr.msk.bf16.gmra.mrb[120].mxu1 %vm1119_vm0, %v4039_v41 }
 0x132   :  { %1550 = vmatprep.mubr.bf16.mxu0 %v4040_v45  ;;  %3798 = vmatprep.mubr.msk.bf16.mxu1 %vm1119_vm0, %v4042_v46  ;;  %v4060_v45 = vld [vmem:[%s5320_s0 + $0x34c] ss:$12 sps:$4 sm:$0xff]  }
 0x133   :  { %v4062_v46 = vld [vmem:[%s5320_s0 + $0x458] ss:$12 sps:$4 sm:$0xff]  }
 0x134   :  { %v4636_v49 = vpop.f32.mrb[16].mxu0  ;;  %v4638_v50 = vpop.f32.mrb[16].mxu1 }
 0x135   :  { %v1338_v51 = vpop.f32.mrb[17].mxu0  ;;  %v1642_v54 = vpop.f32.mrb[17].mxu1 }
 0x136   :  { %v4646_v55 = vpop.f32.mrb[18].mxu0  ;;  %v4648_v56 = vpop.f32.mrb[18].mxu1  ;;  %v4063_v54 = vld [vmem:[%s5320_s0 + $0x348] ss:$12 sps:$4 sm:$0xff]  }
 0x137   :  { %v1341_v59 = vpop.f32.mrb[19].mxu0  ;;  %v1645_v60 = vpop.f32.mrb[19].mxu1 }
 0x139   :  { %1551 = vmatmul.mubr.bf16.gmra.mrb[124].mxu0 %v4043_v52  ;;  %3799 = vmatmul.mubr.msk.bf16.gmra.mrb[124].mxu1 %vm1119_vm0, %v4044_v53 }
 0x13a   :  { %1558 = vmatprep.mubr.bf16.mxu0 %v4045_v57  ;;  %3802 = vmatprep.mubr.msk.bf16.mxu1 %vm1119_vm0, %v4047_v58  ;;  %v4064_v57 = vld [vmem:[%s5320_s0 + $0x470] ss:$12 sps:$4 sm:$0xff]  }
 0x13c   :  { %v4658_v61 = vpop.f32.mrb[20].mxu0  ;;  %v4660_v62 = vpop.f32.mrb[20].mxu1 }
 0x13d   :  { %v1346_v63 = vpop.f32.mrb[21].mxu0  ;;  %v1650_v4 = vpop.f32.mrb[21].mxu1 }
 0x13e   :  { %v4668_v5 = vpop.f32.mrb[22].mxu0  ;;  %v4670_v6 = vpop.f32.mrb[22].mxu1  ;;  %v4065_v63 = vld [vmem:[%s5320_s0 + $0x364] ss:$12 sps:$4 sm:$0xff]  }
 0x13f   :  { %v1349_v11 = vpop.f32.mrb[23].mxu0  ;;  %v1653_v12 = vpop.f32.mrb[23].mxu1 }
 0x140   :  { %v4068_v12 = vld [vmem:[%s5320_s0 + $0x360] ss:$12 sps:$4 sm:$0xff]  }
 0x141   :  { %1559 = vmatmul.mubr.bf16.gmra.mrb[128].mxu0 %v4048_v0  ;;  %3803 = vmatmul.mubr.msk.bf16.gmra.mrb[128].mxu1 %vm1119_vm0, %v4049_v3  ;;  %v4067_v0 = vld [vmem:[%s5320_s0 + $0x488] ss:$12 sps:$4 sm:$0xff]  }
 0x142   :  { %1566 = vmatprep.mubr.bf16.mxu0 %v4050_v9  ;;  %3806 = vmatprep.mubr.msk.bf16.mxu1 %vm1119_vm0, %v4052_v10 }
 0x144   :  { %v4680_v15 = vpop.f32.mrb[24].mxu0  ;;  %v4682_v16 = vpop.f32.mrb[24].mxu1 }
 0x145   :  { %v1354_v17 = vpop.f32.mrb[25].mxu0  ;;  %v1658_v22 = vpop.f32.mrb[25].mxu1 }
 0x146   :  { %v4690_v23 = vpop.f32.mrb[26].mxu0  ;;  %v4692_v24 = vpop.f32.mrb[26].mxu1  ;;  %v4069_v17 = vld [vmem:[%s5320_s0 + $0x4a0] ss:$12 sps:$4 sm:$0xff]  }
 0x147   :  { %v1357_v29 = vpop.f32.mrb[27].mxu0  ;;  %v1661_v30 = vpop.f32.mrb[27].mxu1 }
 0x149   :  { %1567 = vmatmul.mubr.bf16.gmra.mrb[132].mxu0 %v4053_v18  ;;  %3807 = vmatmul.mubr.msk.bf16.gmra.mrb[132].mxu1 %vm1119_vm0, %v4054_v21 }
 0x14a   :  { %1574 = vmatprep.mubr.bf16.mxu0 %v4055_v27  ;;  %3810 = vmatprep.mubr.msk.bf16.mxu1 %vm1119_vm0, %v4057_v28  ;;  %v4070_v27 = vld [vmem:[%s5320_s0 + $0x37c] ss:$12 sps:$4 sm:$0xff]  }
 0x14c   :  { %v4702_v33 = vpop.f32.mrb[28].mxu0  ;;  %v4704_v34 = vpop.f32.mrb[28].mxu1 }
 0x14d   :  { %v1362_v35 = vpop.f32.mrb[29].mxu0  ;;  %v1666_v40 = vpop.f32.mrb[29].mxu1 }
 0x14e   :  { %v4712_v41 = vpop.f32.mrb[30].mxu0  ;;  %v4714_v42 = vpop.f32.mrb[30].mxu1 }
 0x14f   :  { %v1365_v47 = vpop.f32.mrb[31].mxu0  ;;  %v1669_v48 = vpop.f32.mrb[31].mxu1 }
 0x151   :  { %1575 = vmatmul.mubr.bf16.gmra.mrb[136].mxu0 %v4058_v36  ;;  %3811 = vmatmul.mubr.msk.bf16.gmra.mrb[136].mxu1 %vm1119_vm0, %v4059_v39  ;;  %v4072_v39 = vld [vmem:[%s5320_s0 + $0x378] ss:$12 sps:$4 sm:$0xff]  }
 0x152   :  { %1582 = vmatprep.mubr.bf16.mxu0 %v4060_v45  ;;  %3814 = vmatprep.mubr.msk.bf16.mxu1 %vm1119_vm0, %v4062_v46 }
 0x154   :  { %v4724_v51 = vpop.f32.mrb[32].mxu0  ;;  %v4726_v52 = vpop.f32.mrb[32].mxu1 }
 0x155   :  { %v1370_v53 = vpop.f32.mrb[33].mxu0  ;;  %v1674_v58 = vpop.f32.mrb[33].mxu1 }
 0x156   :  { %v4734_v59 = vpop.f32.mrb[34].mxu0  ;;  %v4736_v60 = vpop.f32.mrb[34].mxu1 }
 0x157   :  { %v1373_v3 = vpop.f32.mrb[35].mxu0  ;;  %v1677_v4 = vpop.f32.mrb[35].mxu1 }
 0x159   :  { %1583 = vmatmul.mubr.bf16.gmra.mrb[140].mxu0 %v4063_v54  ;;  %3815 = vmatmul.mubr.msk.bf16.gmra.mrb[140].mxu1 %vm1119_vm0, %v4064_v57 }
 0x15a   :  { %1590 = vmatprep.mubr.bf16.mxu0 %v4065_v63  ;;  %3818 = vmatprep.mubr.msk.bf16.mxu1 %vm1119_vm0, %v4067_v0 }
 0x15c   :  { %v4746_v9 = vpop.f32.mrb[36].mxu0  ;;  %v4748_v10 = vpop.f32.mrb[36].mxu1 }
 0x15d   :  { %5324 = vst [vmem:[#allocation2_spill] sm:$0xff] %v4748_v10  ;;  %v1378_v11 = vpop.f32.mrb[37].mxu0  ;;  %v1682_v18 = vpop.f32.mrb[37].mxu1 }
 0x15e   :  { %v4756_v21 = vpop.f32.mrb[38].mxu0  ;;  %v4758_v22 = vpop.f32.mrb[38].mxu1  ;;  %v4786_v11 = vld [vmem:[%s5321_s2] ss:$0 sm:$0xff] }
 0x15f   :  { %5325 = vst [vmem:[#allocation3_spill] sm:$0xff] %v4758_v22  ;;  %v1381_v28 = vpop.f32.mrb[39].mxu0  ;;  %v1685_v29 = vpop.f32.mrb[39].mxu1 }
 0x160   :  { %v4797_v28 = vld [vmem:[%s5322_s3] ss:$0 sm:$0xff]  ;;  %v1316_v29 = vadd.f32 %v4786_v11, %v4580_v19 }
 0x161   :  { %1591 = vmatmul.mubr.bf16.gmra.mrb[144].mxu0 %v4068_v12  ;;  %3819 = vmatmul.mubr.msk.bf16.gmra.mrb[144].mxu1 %vm1119_vm0, %v4069_v17  ;;  %v1313_v12 = vadd.f32 %v4786_v11, %v4570_v13  ;;  %v1305_v17 = vadd.f32 %v4786_v11, %v4548_v1  ;;  %v1308_v13 = vadd.f32 %v4786_v11, %v4558_v7 }
 0x162   :  { %1598 = vmatprep.mubr.bf16.mxu0 %v4070_v27 }
 0x164   :  { %v4764_v30 = vpop.f32.mrb[40].mxu0  ;;  %v4766_v35 = vpop.f32.mrb[40].mxu1 }
 0x165   :  { %5326 = vst [vmem:[#allocation4_spill] sm:$0xff] %v4766_v35  ;;  %v1386_v36 = vpop.f32.mrb[41].mxu0  ;;  %v1690_v40 = vpop.f32.mrb[41].mxu1 }
 0x166   :  { %v4771_v45 = vpop.f32.mrb[42].mxu0  ;;  %v4773_v46 = vpop.f32.mrb[42].mxu1 }
 0x167   :  { %5327 = vst [vmem:[#allocation5_spill] sm:$0xff] %v4773_v46  ;;  %v1389_v47 = vpop.f32.mrb[43].mxu0  ;;  %v1693_v48 = vpop.f32.mrb[43].mxu1 }
 0x169   :  { %1599 = vmatmul.mubr.bf16.gmra.mrb[148].mxu0 %v4072_v39 }
 0x16c   :  { %v4775_v53 = vpop.f32.mrb[44].mxu0  ;;  %v4777_v54 = vpop.f32.mrb[44].mxu1 }
 0x16d   :  { %5328 = vst [vmem:[#allocation6_spill] sm:$0xff] %v4777_v54  ;;  %v1394_v57 = vpop.f32.mrb[45].mxu0  ;;  %v1698_v58 = vpop.f32.mrb[45].mxu1 }
 0x16e   :  { %v4779_v63 = vpop.f32.mrb[46].mxu0  ;;  %v4781_v0 = vpop.f32.mrb[46].mxu1 }
 0x16f   :  { %5329 = vst [vmem:[#allocation7_spill] sm:$0xff] %v4781_v0  ;;  %v1397_v3 = vpop.f32.mrb[47].mxu0  ;;  %v1701_v4 = vpop.f32.mrb[47].mxu1 }
 0x174   :  { %v4792_v18 = vpop.f32.mrb[48].mxu0  ;;  %v3724_v27 = vpop.f32.mrb[48].mxu1 }
 0x175   :  { %v1746_v36 = vadd.f32 %v3724_v27, %v1313_v12  ;;  %v1402_v39 = vpop.f32.mrb[49].mxu0  ;;  %v1737_v40 = vpop.f32.mrb[49].mxu1  ;;  %v1329_v12 = vadd.f32 %v4786_v11, %v4614_v37  ;;  %v1324_v37 = vadd.f32 %v4786_v11, %v4602_v31 }
 0x176   :  { %v1738_v47 = vadd.f32 %v1737_v40, %v1305_v17  ;;  %v4803_v48 = vpop.f32.mrb[50].mxu0  ;;  %v3725_v1 = vpop.f32.mrb[50].mxu1 }
 0x177   :  { %v2245_v57 = vmul.f32 %v4797_v28, %v1746_v36  ;;  %v1749_v58 = vadd.f32 %v3725_v1, %v1316_v29  ;;  %v1405_v3 = vpop.f32.mrb[51].mxu0  ;;  %v1740_v4 = vpop.f32.mrb[51].mxu1  ;;  %vm2138_vm1 = vcmp.ge.f32.partialorder %v1746_v36, 0.0  ;;  %v1321_v29 = vadd.f32 %v4786_v11, %v4592_v25 }
 0x178   :  { %v2243_v46 = vmul.f32 %v4797_v28, %v1738_v47  ;;  %v1741_v0 = vadd.f32 %v1740_v4, %v1308_v13  ;;  %vm2136_vm2 = vcmp.ge.f32.partialorder %v1738_v47, 0.0  ;;  %v1332_v4 = vadd.f32 %v4786_v11, %v4624_v43 }
 0x179   :  { %vm2139_vm3 = vcmp.ge.f32.partialorder %v1749_v58, 0.0  ;;  %v2246_v19 = vmul.f32 %v4797_v28, %v1749_v58  ;;  %v2345_v17 = vsel %vm2138_vm1, %v1746_v36, %v2245_v57 }
 0x17a   :  { %vm2137_vm4 = vcmp.ge.f32.partialorder %v1741_v0, 0.0  ;;  %v2244_v7 = vmul.f32 %v4797_v28, %v1741_v0  ;;  %v2343_v39 = vsel %vm2136_vm2, %v1738_v47, %v2243_v46 }
 0x17b   :  { %v2346_v27 = vsel %vm2139_vm3, %v1749_v58, %v2246_v19  ;;  %v1345_v19 = vadd.f32 %v4786_v11, %v4658_v61  ;;  %v1340_v61 = vadd.f32 %v4786_v11, %v4646_v55 }
 0x17c   :  { %v3375_v40 = vpack.c.bf16 %v2346_v27, %v2345_v17  ;;  %v2344_v1 = vsel %vm2137_vm4, %v1741_v0, %v2244_v7  ;;  %v4813_v3 = vpop.f32.mrb[52].mxu0  ;;  %v3728_v13 = vpop.f32.mrb[52].mxu1 }
 0x17d   :  { %v3370_v54 = vpack.c.bf16 %v2344_v1, %v2343_v39  ;;  %v1762_v35 = vadd.f32 %v3728_v13, %v1329_v12  ;;  %v1410_v22 = vpop.f32.mrb[53].mxu0  ;;  %v1753_v10 = vpop.f32.mrb[53].mxu1  ;;  %v1337_v12 = vadd.f32 %v4786_v11, %v4636_v49  ;;  %v1348_v1 = vadd.f32 %v4786_v11, %v4668_v5 }
 0x17e   :  { %3617 = vst [vmem:[%s5323_s4 + $0x8] sm:$0xff] %v3375_v40   ;;  %v1754_v25 = vadd.f32 %v1753_v10, %v1321_v29  ;;  %v4822_v46 = vpop.f32.mrb[54].mxu0  ;;  %v3729_v0 = vpop.f32.mrb[54].mxu1 }
 0x17f   :  { %3371 = vst [vmem:[%s5323_s4] sm:$0xff] %v3370_v54   ;;  %v2249_v43 = vmul.f32 %v4797_v28, %v1762_v35  ;;  %v1765_v36 = vadd.f32 %v3729_v0, %v1332_v4  ;;  %v1413_v22 = vpop.f32.mrb[55].mxu0  ;;  %v1756_v47 = vpop.f32.mrb[55].mxu1  ;;  %vm2142_vm5 = vcmp.ge.f32.partialorder %v1762_v35, 0.0 }
 0x180   :  { %v2247_v31 = vmul.f32 %v4797_v28, %v1754_v25  ;;  %v1757_v57 = vadd.f32 %v1756_v47, %v1324_v37  ;;  %vm2140_vm6 = vcmp.ge.f32.partialorder %v1754_v25, 0.0 }
 0x181   :  { %vm2143_vm7 = vcmp.ge.f32.partialorder %v1765_v36, 0.0  ;;  %v2250_v10 = vmul.f32 %v4797_v28, %v1765_v36  ;;  %v2349_v54 = vsel %vm2142_vm5, %v1762_v35, %v2249_v43 }
 0x182   :  { %vm2141_vm8 = vcmp.ge.f32.partialorder %v1757_v57, 0.0  ;;  %v2248_v58 = vmul.f32 %v4797_v28, %v1757_v57  ;;  %v2347_v17 = vsel %vm2140_vm6, %v1754_v25, %v2247_v31 }
 0x183   :  { %v2350_v7 = vsel %vm2143_vm7, %v1765_v36, %v2250_v10  ;;  %v1361_v10 = vadd.f32 %v4786_v11, %v4702_v33  ;;  %v1356_v33 = vadd.f32 %v4786_v11, %v4690_v23 }
 0x184   :  { %v3385_v27 = vpack.c.bf16 %v2350_v7, %v2349_v54  ;;  %v2348_v29 = vsel %vm2141_vm8, %v1757_v57, %v2248_v58  ;;  %v4835_v39 = vpop.f32.mrb[56].mxu0  ;;  %v3732_v40 = vpop.f32.mrb[56].mxu1  ;;  %v1353_v54 = vadd.f32 %v4786_v11, %v4680_v15 }
 0x185   :  { %v3380_v13 = vpack.c.bf16 %v2348_v29, %v2347_v17  ;;  %v1778_v4 = vadd.f32 %v3732_v40, %v1345_v19  ;;  %v1418_v37 = vpop.f32.mrb[57].mxu0  ;;  %v1769_v0 = vpop.f32.mrb[57].mxu1  ;;  %v1364_v40 = vadd.f32 %v4786_v11, %v4712_v41 }
 0x186   :  { %3619 = vst [vmem:[%s5323_s4 + $0x18] sm:$0xff] %v3385_v27   ;;  %v1770_v49 = vadd.f32 %v1769_v0, %v1337_v12  ;;  %v4844_v35 = vpop.f32.mrb[58].mxu0  ;;  %v3733_v25 = vpop.f32.mrb[58].mxu1 }
 0x187   :  { %3618 = vst [vmem:[%s5323_s4 + $0x10] sm:$0xff] %v3380_v13   ;;  %v2253_v5 = vmul.f32 %v4797_v28, %v1778_v4  ;;  %v1781_v43 = vadd.f32 %v3733_v25, %v1348_v1  ;;  %v1421_v36 = vpop.f32.mrb[59].mxu0  ;;  %v1772_v22 = vpop.f32.mrb[59].mxu1  ;;  %vm2146_vm9 = vcmp.ge.f32.partialorder %v1778_v4, 0.0 }
 0x188   :  { %v2251_v55 = vmul.f32 %v4797_v28, %v1770_v49  ;;  %v1773_v47 = vadd.f32 %v1772_v22, %v1340_v61  ;;  %vm2144_vm10 = vcmp.ge.f32.partialorder %v1770_v49, 0.0 }
 0x189   :  { %vm2147_vm11 = vcmp.ge.f32.partialorder %v1781_v43, 0.0  ;;  %v2254_v31 = vmul.f32 %v4797_v28, %v1781_v43  ;;  %v2353_v58 = vsel %vm2146_vm9, %v1778_v4, %v2253_v5 }
 0x18a   :  { %vm2145_vm12 = vcmp.ge.f32.partialorder %v1773_v47, 0.0  ;;  %v2252_v57 = vmul.f32 %v4797_v28, %v1773_v47  ;;  %v2351_v7 = vsel %vm2144_vm10, %v1770_v49, %v2251_v55  ;;  %v1377_v55 = vadd.f32 %v4786_v11, %v4746_v9 }
 0x18b   :  { %v2354_v19 = vsel %vm2147_vm11, %v1781_v43, %v2254_v31  ;;  %v1372_v9 = vadd.f32 %v4786_v11, %v4734_v59 }
 0x18c   :  { %v3395_v12 = vpack.c.bf16 %v2354_v19, %v2353_v58  ;;  %v2352_v17 = vsel %vm2145_vm12, %v1773_v47, %v2252_v57  ;;  %v4857_v27 = vpop.f32.mrb[60].mxu0  ;;  %v3736_v29 = vpop.f32.mrb[60].mxu1  ;;  %v1369_v57 = vadd.f32 %v4786_v11, %v4724_v51 }
 0x18d   :  { %v3390_v1 = vpack.c.bf16 %v2352_v17, %v2351_v7  ;;  %v1794_v13 = vadd.f32 %v3736_v29, %v1361_v10  ;;  %v1426_v37 = vpop.f32.mrb[61].mxu0  ;;  %v1785_v0 = vpop.f32.mrb[61].mxu1 }
 0x18e   :  { %3621 = vst [vmem:[%s5323_s4 + $0x28] sm:$0xff] %v3395_v12   ;;  %v1786_v15 = vadd.f32 %v1785_v0, %v1353_v54  ;;  %v4866_v4 = vpop.f32.mrb[62].mxu0  ;;  %v3737_v61 = vpop.f32.mrb[62].mxu1  ;;  %v1380_v12 = vadd.f32 %v4786_v11, %v4756_v21 }
 0x18f   :  { %3620 = vst [vmem:[%s5323_s4 + $0x20] sm:$0xff] %v3390_v1   ;;  %v2257_v41 = vmul.f32 %v4797_v28, %v1794_v13  ;;  %v1797_v49 = vadd.f32 %v3737_v61, %v1364_v40  ;;  %v1429_v25 = vpop.f32.mrb[63].mxu0  ;;  %v1788_v5 = vpop.f32.mrb[63].mxu1  ;;  %vm2150_vm13 = vcmp.ge.f32.partialorder %v1794_v13, 0.0 }
 0x190   :  { %v2255_v23 = vmul.f32 %v4797_v28, %v1786_v15  ;;  %v1789_v43 = vadd.f32 %v1788_v5, %v1356_v33  ;;  %vm2148_vm14 = vcmp.ge.f32.partialorder %v1786_v15, 0.0  ;;  %v1393_v25 = vadd.f32 %v4786_v11, %v4775_v53 }
 0x191   :  { %vm2151_vm15 = vcmp.ge.f32.partialorder %v1797_v49, 0.0  ;;  %v2258_v36 = vmul.f32 %v4797_v28, %v1797_v49  ;;  %v2357_v47 = vsel %vm2150_vm13, %v1794_v13, %v2257_v41  ;;  %v1388_v53 = vadd.f32 %v4786_v11, %v4771_v45 }
 0x192   :  { %vm2149_vm0 = vcmp.ge.f32.partialorder %v1789_v43, 0.0  ;;  %v2256_v22 = vmul.f32 %v4797_v28, %v1789_v43  ;;  %v2355_v10 = vsel %vm2148_vm14, %v1786_v15, %v2255_v23 }
 0x193   :  { %v2358_v31 = vsel %vm2151_vm15, %v1797_v49, %v2258_v36 }
 0x194   :  { %v3405_v58 = vpack.c.bf16 %v2358_v31, %v2357_v47  ;;  %v2356_v19 = vsel %vm2149_vm0, %v1789_v43, %v2256_v22  ;;  %v4879_v54 = vpop.f32.mrb[64].mxu0  ;;  %v3740_v7 = vpop.f32.mrb[64].mxu1  ;;  %v1385_v43 = vadd.f32 %v4786_v11, %v4764_v30 }
 0x195   :  { %v3400_v17 = vpack.c.bf16 %v2356_v19, %v2355_v10  ;;  %v1810_v29 = vadd.f32 %v3740_v7, %v1377_v55  ;;  %v1434_v40 = vpop.f32.mrb[65].mxu0  ;;  %v1801_v1 = vpop.f32.mrb[65].mxu1 }
 0x196   :  { %3623 = vst [vmem:[%s5323_s4 + $0x38] sm:$0xff] %v3405_v58   ;;  %v1802_v51 = vadd.f32 %v1801_v1, %v1369_v57  ;;  %v4888_v13 = vpop.f32.mrb[66].mxu0  ;;  %v3741_v37 = vpop.f32.mrb[66].mxu1  ;;  %v1396_v57 = vadd.f32 %v4786_v11, %v4779_v63 }
 0x197   :  { %3622 = vst [vmem:[%s5323_s4 + $0x30] sm:$0xff] %v3400_v17   ;;  %v2261_v21 = vmul.f32 %v4797_v28, %v1810_v29  ;;  %v1813_v0 = vadd.f32 %v3741_v37, %v1380_v12  ;;  %v1437_v33 = vpop.f32.mrb[67].mxu0  ;;  %v1804_v15 = vpop.f32.mrb[67].mxu1  ;;  %vm2154_vm1 = vcmp.ge.f32.partialorder %v1810_v29, 0.0 }
 0x198   :  { %v2259_v59 = vmul.f32 %v4797_v28, %v1802_v51  ;;  %v1805_v61 = vadd.f32 %v1804_v15, %v1372_v9  ;;  %vm2152_vm2 = vcmp.ge.f32.partialorder %v1802_v51, 0.0  ;;  %v1401_v15 = vadd.f32 %v4786_v11, %v4792_v18 }
 0x199   :  { %vm2155_vm3 = vcmp.ge.f32.partialorder %v1813_v0, 0.0  ;;  %v2262_v41 = vmul.f32 %v4797_v28, %v1813_v0  ;;  %v2361_v5 = vsel %vm2154_vm1, %v1810_v29, %v2261_v21  ;;  %v1409_v21 = vadd.f32 %v4786_v11, %v4813_v3 }
 0x19a   :  { %vm2153_vm4 = vcmp.ge.f32.partialorder %v1805_v61, 0.0  ;;  %v2260_v49 = vmul.f32 %v4797_v28, %v1805_v61  ;;  %v2359_v36 = vsel %vm2152_vm2, %v1802_v51, %v2259_v59  ;;  %v1404_v3 = vadd.f32 %v4786_v11, %v4803_v48 }
 0x19b   :  { %v2362_v23 = vsel %vm2155_vm3, %v1813_v0, %v2262_v41 }
 0x19c   :  { %v3415_v22 = vpack.c.bf16 %v2362_v23, %v2361_v5  ;;  %v2360_v55 = vsel %vm2153_vm4, %v1805_v61, %v2260_v49  ;;  %v4901_v47 = vpop.f32.mrb[68].mxu0  ;;  %v3744_v31 = vpop.f32.mrb[68].mxu1  ;;  %v1412_v5 = vadd.f32 %v4786_v11, %v4822_v46 }
 0x19d   :  { %v3410_v10 = vpack.c.bf16 %v2360_v55, %v2359_v36  ;;  %v1826_v58 = vadd.f32 %v3744_v31, %v1393_v25  ;;  %v1442_v19 = vpop.f32.mrb[69].mxu0  ;;  %v1817_v7 = vpop.f32.mrb[69].mxu1 }
 0x19e   :  { %3625 = vst [vmem:[%s5323_s4 + $0x48] sm:$0xff] %v3415_v22   ;;  %v1818_v30 = vadd.f32 %v1817_v7, %v1385_v43  ;;  %v4910_v12 = vpop.f32.mrb[70].mxu0  ;;  %v3745_v17 = vpop.f32.mrb[70].mxu1 }
 0x19f   :  { %3624 = vst [vmem:[%s5323_s4 + $0x40] sm:$0xff] %v3410_v10   ;;  %v2265_v63 = vmul.f32 %v4797_v28, %v1826_v58  ;;  %v1829_v29 = vadd.f32 %v3745_v17, %v1396_v57  ;;  %v1445_v40 = vpop.f32.mrb[71].mxu0  ;;  %v1820_v1 = vpop.f32.mrb[71].mxu1  ;;  %vm2158_vm5 = vcmp.ge.f32.partialorder %v1826_v58, 0.0 }
 0x1a0   :  { %v2263_v45 = vmul.f32 %v4797_v28, %v1818_v30  ;;  %v1821_v9 = vadd.f32 %v1820_v1, %v1388_v53  ;;  %vm2156_vm6 = vcmp.ge.f32.partialorder %v1818_v30, 0.0 }
 0x1a1   :  { %vm2159_vm7 = vcmp.ge.f32.partialorder %v1829_v29, 0.0  ;;  %v2266_v51 = vmul.f32 %v4797_v28, %v1829_v29  ;;  %v2365_v0 = vsel %vm2158_vm5, %v1826_v58, %v2265_v63 }
 0x1a2   :  { %vm2157_vm8 = vcmp.ge.f32.partialorder %v1821_v9, 0.0  ;;  %v2264_v37 = vmul.f32 %v4797_v28, %v1821_v9  ;;  %v2363_v59 = vsel %vm2156_vm6, %v1818_v30, %v2263_v45  ;;  %v1425_v30 = vadd.f32 %v4786_v11, %v4857_v27 }
 0x1a3   :  { %v2366_v33 = vsel %vm2159_vm7, %v1829_v29, %v2266_v51  ;;  %v1417_v29 = vadd.f32 %v4786_v11, %v4835_v39  ;;  %v1420_v27 = vadd.f32 %v4786_v11, %v4844_v35 }
 0x1a4   :  { %v3425_v61 = vpack.c.bf16 %v2366_v33, %v2365_v0  ;;  %v2364_v41 = vsel %vm2157_vm8, %v1821_v9, %v2264_v37  ;;  %v4923_v49 = vpop.f32.mrb[72].mxu0  ;;  %v3748_v25 = vpop.f32.mrb[72].mxu1  ;;  %v1428_v37 = vadd.f32 %v4786_v11, %v4866_v4 }
 0x1a5   :  { %v3420_v23 = vpack.c.bf16 %v2364_v41, %v2363_v59  ;;  %v1842_v43 = vadd.f32 %v3748_v25, %v1409_v21  ;;  %v1450_v36 = vpop.f32.mrb[73].mxu0  ;;  %v1833_v22 = vpop.f32.mrb[73].mxu1 }
 0x1a6   :  { %3627 = vst [vmem:[%s5323_s4 + $0x58] sm:$0xff] %v3425_v61   ;;  %v1834_v18 = vadd.f32 %v1833_v22, %v1401_v15  ;;  %v4932_v55 = vpop.f32.mrb[74].mxu0  ;;  %v3749_v31 = vpop.f32.mrb[74].mxu1  ;;  %v1441_v22 = vadd.f32 %v4786_v11, %v4901_v47  ;;  %v1436_v47 = vadd.f32 %v4786_v11, %v4888_v13 }
 0x1a7   :  { %3626 = vst [vmem:[%s5323_s4 + $0x50] sm:$0xff] %v3420_v23   ;;  %v2269_v46 = vmul.f32 %v4797_v28, %v1842_v43  ;;  %v1845_v57 = vadd.f32 %v3749_v31, %v1412_v5  ;;  %v1453_v10 = vpop.f32.mrb[75].mxu0  ;;  %v1836_v58 = vpop.f32.mrb[75].mxu1  ;;  %vm2162_vm9 = vcmp.ge.f32.partialorder %v1842_v43, 0.0  ;;  %v1433_v31 = vadd.f32 %v4786_v11, %v4879_v54 }
 0x1a8   :  { %v2267_v48 = vmul.f32 %v4797_v28, %v1834_v18  ;;  %v1837_v19 = vadd.f32 %v1836_v58, %v1404_v3  ;;  %vm2160_vm10 = vcmp.ge.f32.partialorder %v1834_v18, 0.0 }
 0x1a9   :  { %vm2163_vm11 = vcmp.ge.f32.partialorder %v1845_v57, 0.0  ;;  %v2270_v7 = vmul.f32 %v4797_v28, %v1845_v57  ;;  %v2369_v17 = vsel %vm2162_vm9, %v1842_v43, %v2269_v46 }
 0x1aa   :  { %vm2161_vm12 = vcmp.ge.f32.partialorder %v1837_v19, 0.0  ;;  %v2268_v53 = vmul.f32 %v4797_v28, %v1837_v19  ;;  %v2367_v40 = vsel %vm2160_vm10, %v1834_v18, %v2267_v48 }
 0x1ab   :  { %v2370_v63 = vsel %vm2163_vm11, %v1845_v57, %v2270_v7 }
 0x1ac   :  { %v3435_v1 = vpack.c.bf16 %v2370_v63, %v2369_v17  ;;  %v2368_v45 = vsel %vm2161_vm12, %v1837_v19, %v2268_v53  ;;  %v1456_v9 = vpop.f32.mrb[76].mxu0  ;;  %v3752_v51 = vpop.f32.mrb[76].mxu1  ;;  %v1444_v19 = vadd.f32 %v4786_v11, %v4910_v12 }
 0x1ad   :  { %v3430_v21 = vpack.c.bf16 %v2368_v45, %v2367_v40  ;;  %v1858_v0 = vadd.f32 %v3752_v51, %v1425_v30  ;;  %v1458_v33 = vpop.f32.mrb[77].mxu0  ;;  %v1849_v15 = vpop.f32.mrb[77].mxu1 }
 0x1ae   :  { %3629 = vst [vmem:[%s5323_s4 + $0x68] sm:$0xff] %v3435_v1   ;;  %v1850_v39 = vadd.f32 %v1849_v15, %v1417_v29  ;;  %v1459_v59 = vpop.f32.mrb[78].mxu0  ;;  %v3753_v61 = vpop.f32.mrb[78].mxu1 }
 0x1af   :  { %3628 = vst [vmem:[%s5323_s4 + $0x60] sm:$0xff] %v3430_v21   ;;  %v2273_v4 = vmul.f32 %v4797_v28, %v1858_v0  ;;  %v1861_v41 = vadd.f32 %v3753_v61, %v1428_v37  ;;  %v1461_v25 = vpop.f32.mrb[79].mxu0  ;;  %v1852_v5 = vpop.f32.mrb[79].mxu1  ;;  %vm2166_vm13 = vcmp.ge.f32.partialorder %v1858_v0, 0.0 }
 0x1b0   :  { %v2271_v23 = vmul.f32 %v4797_v28, %v1850_v39  ;;  %v1853_v35 = vadd.f32 %v1852_v5, %v1420_v27  ;;  %vm2164_vm14 = vcmp.ge.f32.partialorder %v1850_v39, 0.0  ;;  %v1449_v27 = vadd.f32 %v4786_v11, %v4923_v49 }
 0x1b1   :  { %vm2167_vm15 = vcmp.ge.f32.partialorder %v1861_v41, 0.0  ;;  %v2274_v43 = vmul.f32 %v4797_v28, %v1861_v41  ;;  %v2373_v3 = vsel %vm2166_vm13, %v1858_v0, %v2273_v4  ;;  %v1457_v0 = vadd.f32 %v4786_v11, %v1456_v9 }
 0x1b2   :  { %vm2165_vm0 = vcmp.ge.f32.partialorder %v1853_v35, 0.0  ;;  %v2272_v36 = vmul.f32 %v4797_v28, %v1853_v35  ;;  %v2371_v46 = vsel %vm2164_vm14, %v1850_v39, %v2271_v23  ;;  %v1460_v5 = vadd.f32 %v4786_v11, %v1459_v59 }
 0x1b3   :  { %v2374_v18 = vsel %vm2167_vm15, %v1861_v41, %v2274_v43 }
 0x1b4   :  { %v3445_v57 = vpack.c.bf16 %v2374_v18, %v2373_v3  ;;  %v2372_v10 = vsel %vm2165_vm0, %v1853_v35, %v2272_v36  ;;  %v1464_v58 = vpop.f32.mrb[80].mxu0  ;;  %v3756_v48 = vpop.f32.mrb[80].mxu1 }
 0x1b5   :  { %v3440_v7 = vpack.c.bf16 %v2372_v10, %v2371_v46  ;;  %v1874_v53 = vadd.f32 %v3756_v48, %v1441_v22  ;;  %v1466_v30 = vpop.f32.mrb[81].mxu0  ;;  %v1865_v17 = vpop.f32.mrb[81].mxu1  ;;  %v1452_v22 = vadd.f32 %v4786_v11, %v4932_v55 }
 0x1b6   :  { %3631 = vst [vmem:[%s5323_s4 + $0x78] sm:$0xff] %v3445_v57   ;;  %v1866_v54 = vadd.f32 %v1865_v17, %v1433_v31  ;;  %v1467_v63 = vpop.f32.mrb[82].mxu0  ;;  %v3757_v29 = vpop.f32.mrb[82].mxu1  ;;  %v1465_v30 = vadd.f32 %v4786_v11, %v1464_v58 }
 0x1b7   :  { %3630 = vst [vmem:[%s5323_s4 + $0x70] sm:$0xff] %v3440_v7   ;;  %v2277_v12 = vmul.f32 %v4797_v28, %v1874_v53  ;;  %v1877_v40 = vadd.f32 %v3757_v29, %v1444_v19  ;;  %v1469_v1 = vpop.f32.mrb[83].mxu0  ;;  %v1868_v45 = vpop.f32.mrb[83].mxu1  ;;  %vm2170_vm1 = vcmp.ge.f32.partialorder %v1874_v53, 0.0 }
 0x1b8   :  { %v2275_v51 = vmul.f32 %v4797_v28, %v1866_v54  ;;  %v1869_v13 = vadd.f32 %v1868_v45, %v1436_v47  ;;  %vm2168_vm2 = vcmp.ge.f32.partialorder %v1866_v54, 0.0 }
 0x1b9   :  { %vm2171_vm3 = vcmp.ge.f32.partialorder %v1877_v40, 0.0  ;;  %v2278_v37 = vmul.f32 %v4797_v28, %v1877_v40  ;;  %v2377_v33 = vsel %vm2170_vm1, %v1874_v53, %v2277_v12 }
 0x1ba   :  { %vm2169_vm4 = vcmp.ge.f32.partialorder %v1869_v13, 0.0  ;;  %v2276_v21 = vmul.f32 %v4797_v28, %v1869_v13  ;;  %v2375_v39 = vsel %vm2168_vm2, %v1866_v54, %v2275_v51 }
 0x1bb   :  { %v2378_v15 = vsel %vm2171_vm3, %v1877_v40, %v2278_v37  ;;  %v1468_v37 = vadd.f32 %v4786_v11, %v1467_v63 }
 0x1bc   :  { %v3455_v61 = vpack.c.bf16 %v2378_v15, %v2377_v33  ;;  %v2376_v4 = vsel %vm2169_vm4, %v1869_v13, %v2276_v21  ;;  %v1472_v41 = vpop.f32.mrb[84].mxu0  ;;  %v3760_v25 = vpop.f32.mrb[84].mxu1 }
 0x1bd   :  { %v3450_v23 = vpack.c.bf16 %v2376_v4, %v2375_v39  ;;  %v1890_v35 = vadd.f32 %v3760_v25, %v1457_v0  ;;  %v1474_v43 = vpop.f32.mrb[85].mxu0  ;;  %v1881_v36 = vpop.f32.mrb[85].mxu1  ;;  %v1473_v19 = vadd.f32 %v4786_v11, %v1472_v41 }
 0x1be   :  { %3633 = vst [vmem:[%s5323_s4 + $0x88] sm:$0xff] %v3455_v61   ;;  %v1882_v9 = vadd.f32 %v1881_v36, %v1449_v27  ;;  %v1475_v49 = vpop.f32.mrb[86].mxu0  ;;  %v3761_v3 = vpop.f32.mrb[86].mxu1 }
 0x1bf   :  { %3632 = vst [vmem:[%s5323_s4 + $0x80] sm:$0xff] %v3450_v23   ;;  %v2281_v59 = vmul.f32 %v4797_v28, %v1890_v35  ;;  %v1893_v18 = vadd.f32 %v3761_v3, %v1460_v5  ;;  %v1477_v31 = vpop.f32.mrb[87].mxu0  ;;  %v1884_v46 = vpop.f32.mrb[87].mxu1  ;;  %vm2174_vm5 = vcmp.ge.f32.partialorder %v1890_v35, 0.0  ;;  %v1476_v40 = vadd.f32 %v4786_v11, %v1475_v49 }
 0x1c0   :  { %v2279_v57 = vmul.f32 %v4797_v28, %v1882_v9  ;;  %v1885_v55 = vadd.f32 %v1884_v46, %v1452_v22  ;;  %vm2172_vm6 = vcmp.ge.f32.partialorder %v1882_v9, 0.0 }
 0x1c1   :  { %vm2175_vm7 = vcmp.ge.f32.partialorder %v1893_v18, 0.0  ;;  %v2282_v10 = vmul.f32 %v4797_v28, %v1893_v18  ;;  %v2381_v7 = vsel %vm2174_vm5, %v1890_v35, %v2281_v59 }
 0x1c2   :  { %vm2173_vm8 = vcmp.ge.f32.partialorder %v1885_v55, 0.0  ;;  %v2280_v48 = vmul.f32 %v4797_v28, %v1885_v55  ;;  %v2379_v17 = vsel %vm2172_vm6, %v1882_v9, %v2279_v57 }
 0x1c3   :  { %v2382_v53 = vsel %vm2175_vm7, %v1893_v18, %v2282_v10 }
 0x1c4   :  { %v3465_v47 = vpack.c.bf16 %v2382_v53, %v2381_v7  ;;  %v2380_v54 = vsel %vm2173_vm8, %v1885_v55, %v2280_v48  ;;  %v1480_v29 = vpop.f32.mrb[88].mxu0  ;;  %v3764_v12 = vpop.f32.mrb[88].mxu1 }
 0x1c5   :  { %v3460_v1 = vpack.c.bf16 %v2380_v54, %v2379_v17  ;;  %v1906_v45 = vadd.f32 %v3764_v12, %v1473_v19  ;;  %v1482_v51 = vpop.f32.mrb[89].mxu0  ;;  %v1897_v13 = vpop.f32.mrb[89].mxu1  ;;  %v1481_v23 = vadd.f32 %v4786_v11, %v1480_v29 }
 0x1c6   :  { %3635 = vst [vmem:[%s5323_s4 + $0x98] sm:$0xff] %v3465_v47   ;;  %v1898_v21 = vadd.f32 %v1897_v13, %v1465_v30  ;;  %v1483_v0 = vpop.f32.mrb[90].mxu0  ;;  %v3765_v58 = vpop.f32.mrb[90].mxu1 }
 0x1c7   :  { %3634 = vst [vmem:[%s5323_s4 + $0x90] sm:$0xff] %v3460_v1   ;;  %v2285_v33 = vmul.f32 %v4797_v28, %v1906_v45  ;;  %v1909_v15 = vadd.f32 %v3765_v58, %v1476_v40  ;;  %v1485_v27 = vpop.f32.mrb[91].mxu0  ;;  %v1900_v39 = vpop.f32.mrb[91].mxu1  ;;  %vm2178_vm9 = vcmp.ge.f32.partialorder %v1906_v45, 0.0  ;;  %v1484_v31 = vadd.f32 %v4786_v11, %v1483_v0 }
 0x1c8   :  { %v2283_v61 = vmul.f32 %v4797_v28, %v1898_v21  ;;  %v1901_v63 = vadd.f32 %v1900_v39, %v1468_v37  ;;  %vm2176_vm10 = vcmp.ge.f32.partialorder %v1898_v21, 0.0 }
 0x1c9   :  { %vm2179_vm11 = vcmp.ge.f32.partialorder %v1909_v15, 0.0  ;;  %v2286_v4 = vmul.f32 %v4797_v28, %v1909_v15  ;;  %v2385_v25 = vsel %vm2178_vm9, %v1906_v45, %v2285_v33 }
 0x1ca   :  { %vm2177_vm12 = vcmp.ge.f32.partialorder %v1901_v63, 0.0  ;;  %v2284_v41 = vmul.f32 %v4797_v28, %v1901_v63  ;;  %v2383_v35 = vsel %vm2176_vm10, %v1898_v21, %v2283_v61 }
 0x1cb   :  { %v2386_v5 = vsel %vm2179_vm11, %v1909_v15, %v2286_v4 }
 0x1cc   :  { %v3475_v43 = vpack.c.bf16 %v2386_v5, %v2385_v25  ;;  %v2384_v36 = vsel %vm2177_vm12, %v1901_v63, %v2284_v41  ;;  %v1488_v22 = vpop.f32.mrb[92].mxu0  ;;  %v3768_v9 = vpop.f32.mrb[92].mxu1 }
 0x1cd   :  { %v3470_v49 = vpack.c.bf16 %v2384_v36, %v2383_v35  ;;  %v1489_v3 = vadd.f32 %v4786_v11, %v1488_v22  ;;  %v1490_v59 = vpop.f32.mrb[93].mxu0  ;;  %v1913_v18 = vpop.f32.mrb[93].mxu1 }
 0x1ce   :  { %3637 = vst [vmem:[%s5323_s4 + $0xa8] sm:$0xff] %v3475_v43   ;;  %v1914_v46 = vadd.f32 %v1913_v18, %v1481_v23  ;;  %v1491_v57 = vpop.f32.mrb[94].mxu0  ;;  %v3769_v55 = vpop.f32.mrb[94].mxu1 }
 0x1cf   :  { %3636 = vst [vmem:[%s5323_s4 + $0xa0] sm:$0xff] %v3470_v49   ;;  %v1922_v10 = vadd.f32 %v3768_v9, %v1489_v3  ;;  %v1492_v48 = vadd.f32 %v4786_v11, %v1491_v57  ;;  %v1493_v19 = vpop.f32.mrb[95].mxu0  ;;  %v1916_v7 = vpop.f32.mrb[95].mxu1 }
 0x1d0   :  { %v2287_v53 = vmul.f32 %v4797_v28, %v1914_v46  ;;  %v1917_v30 = vadd.f32 %v1916_v7, %v1484_v31  ;;  %vm2180_vm13 = vcmp.ge.f32.partialorder %v1914_v46, 0.0 }
 0x1d1   :  { %v2289_v17 = vmul.f32 %v4797_v28, %v1922_v10  ;;  %v1925_v47 = vadd.f32 %v3769_v55, %v1492_v48  ;;  %vm2182_vm14 = vcmp.ge.f32.partialorder %v1922_v10, 0.0 }
 0x1d2   :  { %vm2181_vm15 = vcmp.ge.f32.partialorder %v1917_v30, 0.0  ;;  %v2288_v54 = vmul.f32 %v4797_v28, %v1917_v30  ;;  %v2387_v12 = vsel %vm2180_vm13, %v1914_v46, %v2287_v53 }
 0x1d3   :  { %vm2183_vm0 = vcmp.ge.f32.partialorder %v1925_v47, 0.0  ;;  %v2290_v29 = vmul.f32 %v4797_v28, %v1925_v47  ;;  %v2389_v51 = vsel %vm2182_vm14, %v1922_v10, %v2289_v17 }
 0x1d4   :  { %v2388_v40 = vsel %vm2181_vm15, %v1917_v30, %v2288_v54  ;;  %v1496_v1 = vpop.f32.mrb[96].mxu0  ;;  %v3772_v45 = vpop.f32.mrb[96].mxu1 }
 0x1d5   :  { %v2390_v13 = vsel %vm2183_vm0, %v1925_v47, %v2290_v29  ;;  %v3480_v37 = vpack.c.bf16 %v2388_v40, %v2387_v12  ;;  %v1497_v21 = vadd.f32 %v4786_v11, %v1496_v1  ;;  %v1498_v0 = vpop.f32.mrb[97].mxu0  ;;  %v1929_v58 = vpop.f32.mrb[97].mxu1 }
 0x1d6   :  { %v3485_v33 = vpack.c.bf16 %v2390_v13, %v2389_v51  ;;  %v1499_v15 = vpop.f32.mrb[98].mxu0  ;;  %v3773_v27 = vpop.f32.mrb[98].mxu1 }
 0x1d7   :  { %3638 = vst [vmem:[%s5323_s4 + $0xb0] sm:$0xff] %v3480_v37   ;;  %v1500_v39 = vadd.f32 %v4786_v11, %v1499_v15  ;;  %v1930_v61 = vadd.f32 %v1929_v58, %v1497_v21  ;;  %v1501_v63 = vpop.f32.mrb[99].mxu0  ;;  %v1932_v4 = vpop.f32.mrb[99].mxu1 }
 0x1d8   :  { %3639 = vst [vmem:[%s5323_s4 + $0xb8] sm:$0xff] %v3485_v33  }
 0x1d9   :  { %v2291_v41 = vmul.f32 %v4797_v28, %v1930_v61  ;;  %v1933_v25 = vadd.f32 %v1932_v4, %v1500_v39  ;;  %vm2184_vm1 = vcmp.ge.f32.partialorder %v1930_v61, 0.0 }
 0x1db   :  { %vm2185_vm2 = vcmp.ge.f32.partialorder %v1933_v25, 0.0  ;;  %v2292_v5 = vmul.f32 %v4797_v28, %v1933_v25  ;;  %v2391_v43 = vsel %vm2184_vm1, %v1930_v61, %v2291_v41 }
 0x1dc   :  { %v1504_v23 = vpop.f32.mrb[100].mxu0  ;;  %v3776_v35 = vpop.f32.mrb[100].mxu1 }
 0x1dd   :  { %v2392_v36 = vsel %vm2185_vm2, %v1933_v25, %v2292_v5  ;;  %v1505_v22 = vadd.f32 %v4786_v11, %v1504_v23  ;;  %v1506_v9 = vpop.f32.mrb[101].mxu0  ;;  %v1945_v49 = vpop.f32.mrb[101].mxu1 }
 0x1de   :  { %v3490_v3 = vpack.c.bf16 %v2392_v36, %v2391_v43  ;;  %v1507_v59 = vpop.f32.mrb[102].mxu0  ;;  %v3777_v18 = vpop.f32.mrb[102].mxu1 }
 0x1df   :  { %v1938_v31 = vadd.f32 %v3772_v45, %v1505_v22  ;;  %v1508_v46 = vadd.f32 %v4786_v11, %v1507_v59  ;;  %v1509_v57 = vpop.f32.mrb[103].mxu0  ;;  %v1948_v55 = vpop.f32.mrb[103].mxu1 }
 0x1e0   :  { %3640 = vst [vmem:[%s5323_s4 + $0xc0] sm:$0xff] %v3490_v3  }
 0x1e1   :  { %v2293_v10 = vmul.f32 %v4797_v28, %v1938_v31  ;;  %v1941_v48 = vadd.f32 %v3773_v27, %v1508_v46  ;;  %vm2186_vm3 = vcmp.ge.f32.partialorder %v1938_v31, 0.0 }
 0x1e3   :  { %vm2187_vm4 = vcmp.ge.f32.partialorder %v1941_v48, 0.0  ;;  %v2294_v19 = vmul.f32 %v4797_v28, %v1941_v48  ;;  %v2393_v30 = vsel %vm2186_vm3, %v1938_v31, %v2293_v10 }
 0x1e4   :  { %v1512_v7 = vpop.f32.mrb[104].mxu0  ;;  %v5038_v53 = vpop.f32.mrb[104].mxu1 }
 0x1e5   :  { %v2394_v17 = vsel %vm2187_vm4, %v1941_v48, %v2294_v19  ;;  %v1513_v47 = vadd.f32 %v4786_v11, %v1512_v7  ;;  %v1514_v54 = vpop.f32.mrb[105].mxu0  ;;  %v1961_v29 = vpop.f32.mrb[105].mxu1 }
 0x1e6   :  { %v3495_v12 = vpack.c.bf16 %v2394_v17, %v2393_v30  ;;  %v1515_v40 = vpop.f32.mrb[106].mxu0  ;;  %v5041_v1 = vpop.f32.mrb[106].mxu1 }
 0x1e7   :  { %v1946_v45 = vadd.f32 %v1945_v49, %v1513_v47  ;;  %v1516_v51 = vadd.f32 %v4786_v11, %v1515_v40  ;;  %v1517_v13 = vpop.f32.mrb[107].mxu0  ;;  %v1964_v37 = vpop.f32.mrb[107].mxu1 }
 0x1e8   :  { %3641 = vst [vmem:[%s5323_s4 + $0xc8] sm:$0xff] %v3495_v12  }
 0x1e9   :  { %v2295_v21 = vmul.f32 %v4797_v28, %v1946_v45  ;;  %v1949_v0 = vadd.f32 %v1948_v55, %v1516_v51  ;;  %vm2188_vm5 = vcmp.ge.f32.partialorder %v1946_v45, 0.0 }
 0x1eb   :  { %vm2189_vm6 = vcmp.ge.f32.partialorder %v1949_v0, 0.0  ;;  %v2296_v58 = vmul.f32 %v4797_v28, %v1949_v0  ;;  %v2395_v27 = vsel %vm2188_vm5, %v1946_v45, %v2295_v21 }
 0x1ec   :  { %v1520_v33 = vpop.f32.mrb[108].mxu0  ;;  %v5049_v15 = vpop.f32.mrb[108].mxu1 }
 0x1ed   :  { %v2396_v39 = vsel %vm2189_vm6, %v1949_v0, %v2296_v58  ;;  %v1521_v61 = vadd.f32 %v4786_v11, %v1520_v33  ;;  %v1522_v63 = vpop.f32.mrb[109].mxu0  ;;  %v5052_v4 = vpop.f32.mrb[109].mxu1 }
 0x1ee   :  { %v3500_v41 = vpack.c.bf16 %v2396_v39, %v2395_v27  ;;  %v1523_v25 = vpop.f32.mrb[110].mxu0  ;;  %v5054_v5 = vpop.f32.mrb[110].mxu1 }
 0x1ef   :  { %v1954_v23 = vadd.f32 %v3776_v35, %v1521_v61  ;;  %v1524_v43 = vadd.f32 %v4786_v11, %v1523_v25  ;;  %v1525_v36 = vpop.f32.mrb[111].mxu0  ;;  %v5057_v22 = vpop.f32.mrb[111].mxu1 }
 0x1f0   :  { %3642 = vst [vmem:[%s5323_s4 + $0xd0] sm:$0xff] %v3500_v41  }
 0x1f1   :  { %v2297_v9 = vmul.f32 %v4797_v28, %v1954_v23  ;;  %v1957_v49 = vadd.f32 %v3777_v18, %v1524_v43  ;;  %vm2190_vm7 = vcmp.ge.f32.partialorder %v1954_v23, 0.0 }
 0x1f3   :  { %vm2191_vm8 = vcmp.ge.f32.partialorder %v1957_v49, 0.0  ;;  %v2298_v3 = vmul.f32 %v4797_v28, %v1957_v49  ;;  %v2397_v35 = vsel %vm2190_vm7, %v1954_v23, %v2297_v9 }
 0x1f4   :  { %v1528_v59 = vpop.f32.mrb[112].mxu0  ;;  %v5064_v31 = vpop.f32.mrb[112].mxu1 }
 0x1f5   :  { %v2398_v46 = vsel %vm2191_vm8, %v1957_v49, %v2298_v3  ;;  %v1529_v57 = vadd.f32 %v4786_v11, %v1528_v59  ;;  %v1530_v55 = vpop.f32.mrb[113].mxu0  ;;  %v5067_v10 = vpop.f32.mrb[113].mxu1 }
 0x1f6   :  { %v3505_v48 = vpack.c.bf16 %v2398_v46, %v2397_v35  ;;  %v1531_v19 = vpop.f32.mrb[114].mxu0  ;;  %v5069_v7 = vpop.f32.mrb[114].mxu1 }
 0x1f7   :  { %v1962_v30 = vadd.f32 %v1961_v29, %v1529_v57  ;;  %v1532_v18 = vadd.f32 %v4786_v11, %v1531_v19  ;;  %v1533_v17 = vpop.f32.mrb[115].mxu0  ;;  %v5072_v47 = vpop.f32.mrb[115].mxu1 }
 0x1f8   :  { %3643 = vst [vmem:[%s5323_s4 + $0xd8] sm:$0xff] %v3505_v48  }
 0x1f9   :  { %v2299_v54 = vmul.f32 %v4797_v28, %v1962_v30  ;;  %v1965_v12 = vadd.f32 %v1964_v37, %v1532_v18  ;;  %vm2192_vm9 = vcmp.ge.f32.partialorder %v1962_v30, 0.0 }
 0x1fb   :  { %vm2193_vm10 = vcmp.ge.f32.partialorder %v1965_v12, 0.0  ;;  %v2300_v40 = vmul.f32 %v4797_v28, %v1965_v12  ;;  %v2399_v29 = vsel %vm2192_vm9, %v1962_v30, %v2299_v54 }
 0x1fc   :  { %v1536_v45 = vpop.f32.mrb[116].mxu0  ;;  %v5079_v51 = vpop.f32.mrb[116].mxu1 }
 0x1fd   :  { %v2400_v13 = vsel %vm2193_vm10, %v1965_v12, %v2300_v40  ;;  %v1537_v21 = vadd.f32 %v4786_v11, %v1536_v45  ;;  %v1538_v0 = vpop.f32.mrb[117].mxu0  ;;  %v5082_v58 = vpop.f32.mrb[117].mxu1 }
 0x1fe   :  { %v3510_v33 = vpack.c.bf16 %v2400_v13, %v2399_v29  ;;  %v1539_v27 = vpop.f32.mrb[118].mxu0  ;;  %v5084_v39 = vpop.f32.mrb[118].mxu1 }
 0x1ff   :  { %v1970_v37 = vadd.f32 %v5038_v53, %v1537_v21  ;;  %v1540_v61 = vadd.f32 %v4786_v11, %v1539_v27  ;;  %v1541_v63 = vpop.f32.mrb[119].mxu0  ;;  %v5088_v41 = vpop.f32.mrb[119].mxu1 }
 0x200   :  { %3644 = vst [vmem:[%s5323_s4 + $0xe0] sm:$0xff] %v3510_v33  }
 0x201   :  { %v2301_v25 = vmul.f32 %v4797_v28, %v1970_v37  ;;  %v1973_v23 = vadd.f32 %v5041_v1, %v1540_v61  ;;  %vm2194_vm11 = vcmp.ge.f32.partialorder %v1970_v37, 0.0 }
 0x203   :  { %vm2195_vm12 = vcmp.ge.f32.partialorder %v1973_v23, 0.0  ;;  %v2302_v43 = vmul.f32 %v4797_v28, %v1973_v23  ;;  %v2401_v53 = vsel %vm2194_vm11, %v1970_v37, %v2301_v25  ;;  %v5107_v28 = vld [vmem:[%s5321_s2] ss:$0 sm:$0xff] }
 0x204   :  { %v1544_v36 = vpop.f32.mrb[120].mxu0  ;;  %v5096_v9 = vpop.f32.mrb[120].mxu1  ;;  %v1617_v17 = vadd.f32 %v5107_v28, %v4572_v14  ;;  %v1609_v12 = vadd.f32 %v5107_v28, %v4550_v2  ;;  %v1612_v40 = vadd.f32 %v5107_v28, %v4560_v8  ;;  %v1620_v45 = vadd.f32 %v5107_v28, %v4582_v20 }
 0x205   :  { %v2402_v49 = vsel %vm2195_vm12, %v1973_v23, %v2302_v43  ;;  %v1545_v3 = vadd.f32 %v4786_v11, %v1544_v36  ;;  %v1546_v59 = vpop.f32.mrb[121].mxu0  ;;  %v5099_v35 = vpop.f32.mrb[121].mxu1  ;;  %v5118_v11 = vld [vmem:[%s5322_s3] ss:$0 sm:$0xff]  ;;  %v1625_v29 = vadd.f32 %v5107_v28, %v4594_v26  ;;  %v5136_v2 = vadd.f32 %v5107_v28, %v4604_v32 }
 0x206   :  { %v3515_v46 = vpack.c.bf16 %v2402_v49, %v2401_v53  ;;  %v1547_v57 = vpop.f32.mrb[122].mxu0  ;;  %v5101_v55 = vpop.f32.mrb[122].mxu1  ;;  %v1633_v8 = vadd.f32 %v5107_v28, %v4616_v38  ;;  %v1636_v25 = vadd.f32 %v5107_v28, %v4626_v44  ;;  %v5153_v59 = vadd.f32 %v5107_v28, %v4638_v50 }
 0x207   :  { %v1978_v1 = vadd.f32 %v5052_v4, %v1545_v3  ;;  %v1548_v48 = vadd.f32 %v5107_v28, %v1547_v57  ;;  %v1549_v19 = vpop.f32.mrb[123].mxu0  ;;  %v5110_v30 = vpop.f32.mrb[123].mxu1  ;;  %v5158_v57 = vadd.f32 %v5107_v28, %v4648_v56 }
 0x208   :  { %3645 = vst [vmem:[%s5323_s4 + $0xe8] sm:$0xff] %v3515_v46  }
 0x209   :  { %v2303_v4 = vmul.f32 %v5118_v11, %v1978_v1  ;;  %v1981_v18 = vadd.f32 %v5057_v22, %v1548_v48  ;;  %vm2196_vm13 = vcmp.ge.f32.partialorder %v1978_v1, 0.0 }
 0x20b   :  { %vm2197_vm14 = vcmp.ge.f32.partialorder %v1981_v18, 0.0  ;;  %v2304_v54 = vmul.f32 %v5118_v11, %v1981_v18  ;;  %v2403_v21 = vsel %vm2196_vm13, %v1978_v1, %v2303_v4 }
 0x20c   :  { %v1552_v22 = vpop.f32.mrb[124].mxu0  ;;  %v3800_v13 = vpop.f32.mrb[124].mxu1 }
 0x20d   :  { %v2404_v0 = vsel %vm2197_vm14, %v1981_v18, %v2304_v54  ;;  %v1553_v14 = vadd.f32 %v5107_v28, %v1552_v22  ;;  %v2050_v33 = vadd.f32 %v3800_v13, %v1617_v17  ;;  %v1554_v27 = vpop.f32.mrb[125].mxu0  ;;  %v2041_v37 = vpop.f32.mrb[125].mxu1 }
 0x20e   :  { %v3520_v20 = vpack.c.bf16 %v2404_v0, %v2403_v21  ;;  %v2042_v61 = vadd.f32 %v2041_v37, %v1609_v12  ;;  %v1555_v63 = vpop.f32.mrb[126].mxu0  ;;  %v3801_v26 = vpop.f32.mrb[126].mxu1 }
 0x20f   :  { %v1986_v23 = vadd.f32 %v5049_v15, %v1553_v14  ;;  %vm2214_vm15 = vcmp.ge.f32.partialorder %v2050_v33, 0.0  ;;  %v1556_v43 = vadd.f32 %v5107_v28, %v1555_v63  ;;  %v1557_v36 = vpop.f32.mrb[127].mxu0  ;;  %v2044_v53 = vpop.f32.mrb[127].mxu1  ;;  %v2321_v32 = vmul.f32 %v5118_v11, %v2050_v33 }
 0x210   :  { %3646 = vst [vmem:[%s5323_s4 + $0xf0] sm:$0xff] %v3520_v20   ;;  %v2319_v38 = vmul.f32 %v5118_v11, %v2042_v61  ;;  %v2053_v49 = vadd.f32 %v3801_v26, %v1620_v45  ;;  %v2045_v3 = vadd.f32 %v2044_v53, %v1612_v40  ;;  %vm2212_vm1 = vcmp.ge.f32.partialorder %v2042_v61, 0.0 }
 0x211   :  { %vm2198_vm0 = vcmp.ge.f32.partialorder %v1986_v23, 0.0  ;;  %v2305_v44 = vmul.f32 %v5118_v11, %v1986_v23  ;;  %v1989_v15 = vadd.f32 %v5054_v5, %v1556_v43  ;;  %v2421_v5 = vsel %vm2214_vm15, %v2050_v33, %v2321_v32 }
 0x212   :  { %vm2215_vm2 = vcmp.ge.f32.partialorder %v2053_v49, 0.0  ;;  %v2322_v46 = vmul.f32 %v5118_v11, %v2053_v49  ;;  %vm2213_vm3 = vcmp.ge.f32.partialorder %v2045_v3, 0.0  ;;  %v2320_v48 = vmul.f32 %v5118_v11, %v2045_v3 }
 0x213   :  { %vm2199_vm4 = vcmp.ge.f32.partialorder %v1989_v15, 0.0  ;;  %v2306_v1 = vmul.f32 %v5118_v11, %v1989_v15  ;;  %v2405_v19 = vsel %vm2198_vm0, %v1986_v23, %v2305_v44  ;;  %v2419_v4 = vsel %vm2212_vm1, %v2042_v61, %v2319_v38 }
 0x214   :  { %v2422_v18 = vsel %vm2215_vm2, %v2053_v49, %v2322_v46  ;;  %v1560_v50 = vpop.f32.mrb[128].mxu0  ;;  %v3804_v17 = vpop.f32.mrb[128].mxu1  ;;  %v2420_v40 = vsel %vm2213_vm3, %v2045_v3, %v2320_v48  ;;  %v1649_v33 = vadd.f32 %v5107_v28, %v4660_v62 }
 0x215   :  { %v2406_v54 = vsel %vm2199_vm4, %v1989_v15, %v2306_v1  ;;  %v3565_v12 = vpack.c.bf16 %v2422_v18, %v2421_v5  ;;  %v1561_v45 = vadd.f32 %v5107_v28, %v1560_v50  ;;  %v1562_v22 = vpop.f32.mrb[129].mxu0  ;;  %v2057_v56 = vpop.f32.mrb[129].mxu1  ;;  %v3560_v21 = vpack.c.bf16 %v2420_v40, %v2419_v4 }
 0x216   :  { %v3525_v13 = vpack.c.bf16 %v2406_v54, %v2405_v19  ;;  %v2066_v0 = vadd.f32 %v3804_v17, %v1633_v8  ;;  %v2058_v14 = vadd.f32 %v2057_v56, %v1625_v29  ;;  %v1563_v27 = vpop.f32.mrb[130].mxu0  ;;  %v3805_v37 = vpop.f32.mrb[130].mxu1  ;;  %v1652_v8 = vadd.f32 %v5107_v28, %v4670_v6 }
 0x217   :  { %3655 = vst [vmem:[%s5323_s4 + $0x138] sm:$0xff] %v3565_v12   ;;  %v1994_v20 = vadd.f32 %v5067_v10, %v1561_v45  ;;  %v1564_v61 = vadd.f32 %v5107_v28, %v1563_v27  ;;  %v2069_v63 = vadd.f32 %v3805_v37, %v1636_v25  ;;  %v1565_v26 = vpop.f32.mrb[131].mxu0  ;;  %v2060_v23 = vpop.f32.mrb[131].mxu1  ;;  %v5175_v29 = vadd.f32 %v5107_v28, %v4682_v16 }
 0x218   :  { %3647 = vst [vmem:[%s5323_s4 + $0xf8] sm:$0xff] %v3525_v13   ;;  %3654 = vst [vmem:[%s5323_s4 + $0x130] sm:$0xff] %v3560_v21   ;;  %vm2218_vm5 = vcmp.ge.f32.partialorder %v2066_v0, 0.0  ;;  %v2325_v62 = vmul.f32 %v5118_v11, %v2066_v0  ;;  %v5188_v16 = vadd.f32 %v5107_v28, %v4692_v24  ;;  %v2323_v25 = vmul.f32 %v5118_v11, %v2058_v14 }
 0x219   :  { %vm2200_vm6 = vcmp.ge.f32.partialorder %v1994_v20, 0.0  ;;  %v2307_v10 = vmul.f32 %v5118_v11, %v1994_v20  ;;  %v1997_v6 = vadd.f32 %v5072_v47, %v1564_v61  ;;  %vm2219_vm7 = vcmp.ge.f32.partialorder %v2069_v63, 0.0 }
 0x21a   :  { %v2326_v43 = vmul.f32 %v5118_v11, %v2069_v63  ;;  %v2061_v36 = vadd.f32 %v2060_v23, %v5136_v2  ;;  %v2425_v53 = vsel %vm2218_vm5, %v2066_v0, %v2325_v62  ;;  %vm2216_vm8 = vcmp.ge.f32.partialorder %v2058_v14, 0.0 }
 0x21b   :  { %vm2201_vm9 = vcmp.ge.f32.partialorder %v1997_v6, 0.0  ;;  %v2308_v32 = vmul.f32 %v5118_v11, %v1997_v6  ;;  %v2407_v38 = vsel %vm2200_vm6, %v1994_v20, %v2307_v10  ;;  %v2423_v2 = vsel %vm2216_vm8, %v2058_v14, %v2323_v25 }
 0x21c   :  { %v2426_v49 = vsel %vm2219_vm7, %v2069_v63, %v2326_v43  ;;  %vm2217_vm10 = vcmp.ge.f32.partialorder %v2061_v36, 0.0  ;;  %v2324_v47 = vmul.f32 %v5118_v11, %v2061_v36  ;;  %v1568_v3 = vpop.f32.mrb[132].mxu0  ;;  %v3808_v44 = vpop.f32.mrb[132].mxu1  ;;  %v1665_v54 = vadd.f32 %v5107_v28, %v4704_v34 }
 0x21d   :  { %v2408_v24 = vsel %vm2201_vm9, %v1997_v6, %v2308_v32  ;;  %v3575_v15 = vpack.c.bf16 %v2426_v49, %v2425_v53  ;;  %v1569_v46 = vadd.f32 %v5107_v28, %v1568_v3  ;;  %v2082_v1 = vadd.f32 %v3808_v44, %v1649_v33  ;;  %v1570_v48 = vpop.f32.mrb[133].mxu0  ;;  %v2073_v19 = vpop.f32.mrb[133].mxu1 }
 0x21e   :  { %v3530_v5 = vpack.c.bf16 %v2408_v24, %v2407_v38  ;;  %v2424_v4 = vsel %vm2217_vm10, %v2061_v36, %v2324_v47  ;;  %v2074_v18 = vadd.f32 %v2073_v19, %v5153_v59  ;;  %v1571_v50 = vpop.f32.mrb[134].mxu0  ;;  %v3809_v17 = vpop.f32.mrb[134].mxu1  ;;  %v1668_v21 = vadd.f32 %v5107_v28, %v4714_v42  ;;  %v5331_v48 = vld [vmem:[#allocation3_spill] sm:$0xff] }
 0x21f   :  { %3657 = vst [vmem:[%s5323_s4 + $0x148] sm:$0xff] %v3575_v15   ;;  %v3570_v12 = vpack.c.bf16 %v2424_v4, %v2423_v2  ;;  %v2002_v40 = vadd.f32 %v5064_v31, %v1569_v46  ;;  %v2329_v45 = vmul.f32 %v5118_v11, %v2082_v1  ;;  %v1573_v22 = vpop.f32.mrb[135].mxu0  ;;  %v2076_v56 = vpop.f32.mrb[135].mxu1  ;;  %vm2222_vm11 = vcmp.ge.f32.partialorder %v2082_v1, 0.0  ;;  %v5330_v46 = vld [vmem:[#allocation2_spill] sm:$0xff] }
 0x220   :  { %3648 = vst [vmem:[%s5323_s4 + $0x100] sm:$0xff] %v3530_v5   ;;  %v2327_v59 = vmul.f32 %v5118_v11, %v2074_v18  ;;  %v1572_v34 = vadd.f32 %v5107_v28, %v1571_v50  ;;  %v2085_v13 = vadd.f32 %v3809_v17, %v1652_v8  ;;  %v5213_v31 = vadd.f32 %v5107_v28, %v4726_v52 }
 0x221   :  { %3656 = vst [vmem:[%s5323_s4 + $0x140] sm:$0xff] %v3570_v12   ;;  %vm2220_vm12 = vcmp.ge.f32.partialorder %v2074_v18, 0.0  ;;  %v2077_v0 = vadd.f32 %v2076_v56, %v5158_v57  ;;  %v2309_v14 = vmul.f32 %v5118_v11, %v2002_v40  ;;  %vm2202_vm14 = vcmp.ge.f32.partialorder %v2002_v40, 0.0 }
 0x222   :  { %v2005_v27 = vadd.f32 %v5069_v7, %v1572_v34  ;;  %vm2223_vm13 = vcmp.ge.f32.partialorder %v2085_v13, 0.0  ;;  %v2330_v37 = vmul.f32 %v5118_v11, %v2085_v13  ;;  %v2429_v42 = vsel %vm2222_vm11, %v2082_v1, %v2329_v45 }
 0x223   :  { %vm2221_vm15 = vcmp.ge.f32.partialorder %v2077_v0, 0.0  ;;  %v2328_v52 = vmul.f32 %v5118_v11, %v2077_v0  ;;  %v2427_v33 = vsel %vm2220_vm12, %v2074_v18, %v2327_v59  ;;  %v2409_v6 = vsel %vm2202_vm14, %v2002_v40, %v2309_v14 }
 0x224   :  { %vm2203_vm0 = vcmp.ge.f32.partialorder %v2005_v27, 0.0  ;;  %v2310_v20 = vmul.f32 %v5118_v11, %v2005_v27  ;;  %v2430_v61 = vsel %vm2223_vm13, %v2085_v13, %v2330_v37  ;;  %v1576_v63 = vpop.f32.mrb[136].mxu0  ;;  %v3812_v26 = vpop.f32.mrb[136].mxu1  ;;  %v1676_v38 = vadd.f32 %v5107_v28, %v4736_v60 }
 0x225   :  { %v3585_v57 = vpack.c.bf16 %v2430_v61, %v2429_v42  ;;  %v2428_v23 = vsel %vm2221_vm15, %v2077_v0, %v2328_v52  ;;  %v1577_v8 = vadd.f32 %v5107_v28, %v1576_v63  ;;  %v2098_v7 = vadd.f32 %v3812_v26, %v1665_v54  ;;  %v1578_v62 = vpop.f32.mrb[137].mxu0  ;;  %v2089_v10 = vpop.f32.mrb[137].mxu1  ;;  %v5332_v42 = vld [vmem:[#allocation4_spill] sm:$0xff] }
 0x226   :  { %v2410_v25 = vsel %vm2203_vm0, %v2005_v27, %v2310_v20  ;;  %v3580_v43 = vpack.c.bf16 %v2428_v23, %v2427_v33  ;;  %v2090_v36 = vadd.f32 %v2089_v10, %v5175_v29  ;;  %v1579_v53 = vpop.f32.mrb[138].mxu0  ;;  %v3813_v32 = vpop.f32.mrb[138].mxu1  ;;  %v1681_v1 = vadd.f32 %v5107_v28, %v5330_v46  ;;  %v5334_v62 = vld [vmem:[#allocation7_spill] sm:$0xff] }
 0x227   :  { %v3535_v49 = vpack.c.bf16 %v2410_v25, %v2409_v6  ;;  %3659 = vst [vmem:[%s5323_s4 + $0x158] sm:$0xff] %v3585_v57   ;;  %v2010_v47 = vadd.f32 %v5082_v58, %v1577_v8  ;;  %v2333_v3 = vmul.f32 %v5118_v11, %v2098_v7  ;;  %v1581_v44 = vpop.f32.mrb[139].mxu0  ;;  %v2092_v24 = vpop.f32.mrb[139].mxu1  ;;  %vm2226_vm1 = vcmp.ge.f32.partialorder %v2098_v7, 0.0  ;;  %v5333_v8 = vld [vmem:[#allocation6_spill] sm:$0xff] }
 0x228   :  { %3658 = vst [vmem:[%s5323_s4 + $0x150] sm:$0xff] %v3580_v43   ;;  %v2331_v29 = vmul.f32 %v5118_v11, %v2090_v36  ;;  %v1580_v60 = vadd.f32 %v5107_v28, %v1579_v53  ;;  %v2101_v15 = vadd.f32 %v3813_v32, %v1668_v21  ;;  %v1684_v58 = vadd.f32 %v5107_v28, %v5331_v48 }
 0x229   :  { %3649 = vst [vmem:[%s5323_s4 + $0x108] sm:$0xff] %v3535_v49   ;;  %vm2224_vm2 = vcmp.ge.f32.partialorder %v2090_v36, 0.0  ;;  %v2093_v19 = vadd.f32 %v2092_v24, %v5188_v16  ;;  %v2311_v2 = vmul.f32 %v5118_v11, %v2010_v47  ;;  %vm2204_vm4 = vcmp.ge.f32.partialorder %v2010_v47, 0.0 }
 0x22a   :  { %v2013_v5 = vadd.f32 %v5088_v41, %v1580_v60  ;;  %vm2227_vm3 = vcmp.ge.f32.partialorder %v2101_v15, 0.0  ;;  %v2334_v4 = vmul.f32 %v5118_v11, %v2101_v15  ;;  %v2433_v18 = vsel %vm2226_vm1, %v2098_v7, %v2333_v3 }
 0x22b   :  { %vm2225_vm5 = vcmp.ge.f32.partialorder %v2093_v19, 0.0  ;;  %v2332_v50 = vmul.f32 %v5118_v11, %v2093_v19  ;;  %v2431_v17 = vsel %vm2224_vm2, %v2090_v36, %v2331_v29  ;;  %v2411_v13 = vsel %vm2204_vm4, %v2010_v47, %v2311_v2 }
 0x22c   :  { %vm2205_vm6 = vcmp.ge.f32.partialorder %v2013_v5, 0.0  ;;  %v2312_v54 = vmul.f32 %v5118_v11, %v2013_v5  ;;  %v2434_v12 = vsel %vm2227_vm3, %v2101_v15, %v2334_v4  ;;  %v1584_v40 = vpop.f32.mrb[140].mxu0  ;;  %v3816_v45 = vpop.f32.mrb[140].mxu1  ;;  %v1689_v52 = vadd.f32 %v5107_v28, %v5332_v42 }
 0x22d   :  { %v3595_v16 = vpack.c.bf16 %v2434_v12, %v2433_v18  ;;  %v2432_v22 = vsel %vm2225_vm5, %v2093_v19, %v2332_v50  ;;  %v1585_v56 = vadd.f32 %v5107_v28, %v1584_v40  ;;  %v2114_v41 = vadd.f32 %v3816_v45, %v1681_v1  ;;  %v1586_v59 = vpop.f32.mrb[141].mxu0  ;;  %v2105_v34 = vpop.f32.mrb[141].mxu1 }
 0x22e   :  { %v2412_v21 = vsel %vm2205_vm6, %v2013_v5, %v2312_v54  ;;  %v3590_v0 = vpack.c.bf16 %v2432_v22, %v2431_v17  ;;  %v2106_v14 = vadd.f32 %v2105_v34, %v5213_v31  ;;  %v1587_v27 = vpop.f32.mrb[142].mxu0  ;;  %v3817_v37 = vpop.f32.mrb[142].mxu1  ;;  %v1697_v7 = vadd.f32 %v5107_v28, %v5333_v8  ;;  %v5335_v5 = vld [vmem:[#allocation5_spill] sm:$0xff] }
 0x22f   :  { %v3540_v33 = vpack.c.bf16 %v2412_v21, %v2411_v13  ;;  %3661 = vst [vmem:[%s5323_s4 + $0x168] sm:$0xff] %v3595_v16   ;;  %v2018_v20 = vadd.f32 %v5079_v51, %v1585_v56  ;;  %v2337_v61 = vmul.f32 %v5118_v11, %v2114_v41  ;;  %v1589_v63 = vpop.f32.mrb[143].mxu0  ;;  %v2108_v26 = vpop.f32.mrb[143].mxu1  ;;  %vm2230_vm7 = vcmp.ge.f32.partialorder %v2114_v41, 0.0 }
 0x230   :  { %3660 = vst [vmem:[%s5323_s4 + $0x160] sm:$0xff] %v3590_v0   ;;  %v2335_v31 = vmul.f32 %v5118_v11, %v2106_v14  ;;  %v1588_v57 = vadd.f32 %v5107_v28, %v1587_v27  ;;  %v2117_v23 = vadd.f32 %v3817_v37, %v1684_v58  ;;  %v1700_v51 = vadd.f32 %v5107_v28, %v5334_v62 }
 0x231   :  { %3650 = vst [vmem:[%s5323_s4 + $0x110] sm:$0xff] %v3540_v33   ;;  %vm2228_vm8 = vcmp.ge.f32.partialorder %v2106_v14, 0.0  ;;  %v2109_v10 = vadd.f32 %v2108_v26, %v1676_v38  ;;  %v2313_v6 = vmul.f32 %v5118_v11, %v2018_v20  ;;  %vm2206_vm10 = vcmp.ge.f32.partialorder %v2018_v20, 0.0 }
 0x232   :  { %v2021_v25 = vadd.f32 %v5084_v39, %v1588_v57  ;;  %vm2231_vm9 = vcmp.ge.f32.partialorder %v2117_v23, 0.0  ;;  %v2338_v43 = vmul.f32 %v5118_v11, %v2117_v23  ;;  %v2437_v36 = vsel %vm2230_vm7, %v2114_v41, %v2337_v61 }
 0x233   :  { %vm2229_vm11 = vcmp.ge.f32.partialorder %v2109_v10, 0.0  ;;  %v2336_v53 = vmul.f32 %v5118_v11, %v2109_v10  ;;  %v2435_v32 = vsel %vm2228_vm8, %v2106_v14, %v2335_v31  ;;  %v2413_v46 = vsel %vm2206_vm10, %v2018_v20, %v2313_v6 }
 0x234   :  { %vm2207_vm12 = vcmp.ge.f32.partialorder %v2021_v25, 0.0  ;;  %v2314_v49 = vmul.f32 %v5118_v11, %v2021_v25  ;;  %v2438_v47 = vsel %vm2231_vm9, %v2117_v23, %v2338_v43  ;;  %v1592_v3 = vpop.f32.mrb[144].mxu0  ;;  %v3820_v44 = vpop.f32.mrb[144].mxu1  ;;  %v1692_v4 = vadd.f32 %v5107_v28, %v5335_v5 }
 0x235   :  { %v3605_v38 = vpack.c.bf16 %v2438_v47, %v2437_v36  ;;  %v2436_v24 = vsel %vm2229_vm11, %v2109_v10, %v2336_v53  ;;  %v1593_v29 = vadd.f32 %v5107_v28, %v1592_v3  ;;  %v2130_v39 = vadd.f32 %v3820_v44, %v1697_v7  ;;  %v1594_v60 = vpop.f32.mrb[145].mxu0  ;;  %v2121_v15 = vpop.f32.mrb[145].mxu1 }
 0x236   :  { %v2414_v1 = vsel %vm2207_vm12, %v2021_v25, %v2314_v49  ;;  %v3600_v48 = vpack.c.bf16 %v2436_v24, %v2435_v32  ;;  %v2122_v58 = vadd.f32 %v2121_v15, %v1689_v52  ;;  %v1595_v19 = vpop.f32.mrb[146].mxu0  ;;  %v3821_v2 = vpop.f32.mrb[146].mxu1 }
 0x237   :  { %v3545_v18 = vpack.c.bf16 %v2414_v1, %v2413_v46  ;;  %3663 = vst [vmem:[%s5323_s4 + $0x178] sm:$0xff] %v3605_v38   ;;  %v2026_v50 = vadd.f32 %v5099_v35, %v1593_v29  ;;  %v1597_v17 = vpop.f32.mrb[147].mxu0  ;;  %v2124_v54 = vpop.f32.mrb[147].mxu1  ;;  %v2341_v12 = vmul.f32 %v5118_v11, %v2130_v39  ;;  %v1596_v40 = vadd.f32 %v5107_v28, %v1595_v19 }
 0x238   :  { %3662 = vst [vmem:[%s5323_s4 + $0x170] sm:$0xff] %v3600_v48   ;;  %v2133_v45 = vadd.f32 %v3821_v2, %v1700_v51  ;;  %vm2234_vm13 = vcmp.ge.f32.partialorder %v2130_v39, 0.0  ;;  %vm2232_vm14 = vcmp.ge.f32.partialorder %v2122_v58, 0.0  ;;  %v2339_v16 = vmul.f32 %v5118_v11, %v2122_v58 }
 0x239   :  { %3651 = vst [vmem:[%s5323_s4 + $0x118] sm:$0xff] %v3545_v18   ;;  %v2125_v35 = vadd.f32 %v2124_v54, %v1692_v4  ;;  %v2315_v22 = vmul.f32 %v5118_v11, %v2026_v50  ;;  %v2029_v56 = vadd.f32 %v5110_v30, %v1596_v40  ;;  %vm2208_vm0 = vcmp.ge.f32.partialorder %v2026_v50, 0.0 }
 0x23a   :  { %vm2235_vm15 = vcmp.ge.f32.partialorder %v2133_v45, 0.0  ;;  %v2342_v41 = vmul.f32 %v5118_v11, %v2133_v45  ;;  %v2441_v34 = vsel %vm2234_vm13, %v2130_v39, %v2341_v12  ;;  %v2439_v14 = vsel %vm2232_vm14, %v2122_v58, %v2339_v16 }
 0x23b   :  { %vm2233_vm1 = vcmp.ge.f32.partialorder %v2125_v35, 0.0  ;;  %v2340_v59 = vmul.f32 %v5118_v11, %v2125_v35  ;;  %vm2209_vm2 = vcmp.ge.f32.partialorder %v2029_v56, 0.0  ;;  %v2316_v13 = vmul.f32 %v5118_v11, %v2029_v56 }
 0x23c   :  { %v2442_v21 = vsel %vm2235_vm15, %v2133_v45, %v2342_v41  ;;  %v1600_v0 = vpop.f32.mrb[148].mxu0  ;;  %v2415_v30 = vsel %vm2208_vm0, %v2026_v50, %v2315_v22 }
 0x23d   :  { %v3615_v27 = vpack.c.bf16 %v2442_v21, %v2441_v34  ;;  %v2440_v37 = vsel %vm2233_vm1, %v2125_v35, %v2340_v59  ;;  %v1601_v42 = vadd.f32 %v5107_v28, %v1600_v0  ;;  %v1602_v52 = vpop.f32.mrb[149].mxu0  ;;  %v2416_v33 = vsel %vm2209_vm2, %v2029_v56, %v2316_v13 }
 0x23e   :  { %v3610_v20 = vpack.c.bf16 %v2440_v37, %v2439_v14  ;;  %v1603_v61 = vpop.f32.mrb[150].mxu0  ;;  %v3550_v63 = vpack.c.bf16 %v2416_v33, %v2415_v30 }
 0x23f   :  { %3665 = vst [vmem:[%s5323_s4 + $0x188] sm:$0xff] %v3615_v27   ;;  %v2034_v26 = vadd.f32 %v5096_v9, %v1601_v42  ;;  %v1604_v31 = vadd.f32 %v5107_v28, %v1603_v61  ;;  %v1605_v57 = vpop.f32.mrb[151].mxu0 }
 0x240   :  { %3664 = vst [vmem:[%s5323_s4 + $0x180] sm:$0xff] %v3610_v20   ;;  %3652 = vst [vmem:[%s5323_s4 + $0x120] sm:$0xff] %v3550_v63  }
 0x241   :  { %v2317_v23 = vmul.f32 %v5118_v11, %v2034_v26  ;;  %v2037_v8 = vadd.f32 %v5101_v55, %v1604_v31  ;;  %vm2210_vm3 = vcmp.ge.f32.partialorder %v2034_v26, 0.0 }
 0x243   :  { %vm2211_vm4 = vcmp.ge.f32.partialorder %v2037_v8, 0.0  ;;  %v2318_v7 = vmul.f32 %v5118_v11, %v2037_v8  ;;  %v2417_v9 = vsel %vm2210_vm3, %v2034_v26, %v2317_v23 }
 0x245   :  { %v2418_v62 = vsel %vm2211_vm4, %v2037_v8, %v2318_v7 }
 0x246   :  { %v3555_v28 = vpack.c.bf16 %v2418_v62, %v2417_v9 }
 0x248   :  { %3653 = vst [vmem:[%s5323_s4 + $0x128] sm:$0xff] %v3555_v28  }

// kernel: onet_forward.11
= control target key start
LH: loop header
LB: loop body
LE: loop exit
PB: predicated region body
PF: predicated region fallthrough
CT: control target
= control target key end

     0   :  { %s1057_s15 = smov 0   ;;  %s1458_s0 = inlined_call_operand.vmem [shape: bf16[2,10,10,128], index: 0, kind: input, shape index: {}]   ;;  %s1459_s1 = inlined_call_operand.vmem [shape: bf16[2,10,9,128], index: 1, kind: input, shape index: {}]   ;;  %s1460_s2 = inlined_call_operand.vmem [shape: bf16[2,9,10,128], index: 2, kind: input, shape index: {}]   ;;  %s1461_s3 = inlined_call_operand.vmem [shape: bf16[2,9,9,128], index: 3, kind: input, shape index: {}]   ;;  %s1462_s4 = inlined_call_operand.vmem [shape: bf16[2,9,9,128], index: 4, kind: output, shape index: {}]  }
   0x1 LB: > { %s991_s16 = sadd.s32 4294967295, %s1030_s15   ;;  %p995_p0 = scmp.ge.s32.totalorder %s1030_s15, 1  ;;  %s1030_s15 = sphi %s1057_s15, %s14_s15  }
   0x2   : > { %p192_p1 = scmp.lt.s32.totalorder %s1030_s15, 3 }
   0x4   : > { %p193_p2 = pnand %p995_p0, %p192_p1 }
   0x5   : > { %p233_p3 = scmp.lt.s32.totalorder (!%p193_p2), %s991_s16, 1  ;;  %vm352_vm0 = vsmask.f32 (!%p193_p2), 3328  ;;  %vm353_vm1 = vsmask.f32 (!%p193_p2), 7440  ;;  %vm862_vm3 = vcmask (!%p193_p2), 1040384  }
   0x6   : > { %196 = sbr.rel (%p193_p2) target bundleno = 117 (0x75), region = 36  ;;  %vm1119_vm2 = vmor (!%p193_p2), %vm352_vm0, %vm353_vm1  ;;  %vm863_vm4 = vsmask.f32 (!%p193_p2), 256 }
   0x7   : > { %vm1187_vm5 = vmand (!%p193_p2), %vm862_vm3, %vm863_vm4 }
   0xd   : > { %s1468_s16 = smov (!%p233_p3, %s991_s16), 1 }
   0xe   : > { %s1014_s17 = smul.u32 80, %s1468_s16 }
   0xf   : > { %s1069_s18 = smul.u32 72, %s1468_s16 }
  0x10   : > { %s1076_s21 = scalar_lea.vmem %s1458_s0, %s1014_s17  ;;  %s1139_s30 = scalar_lea.vmem %s1459_s1, %s1014_s17 }
  0x11   : > { %s1082_s24 = scalar_lea.vmem %s1460_s2, %s1069_s18  ;;  %s1088_s27 = scalar_lea.vmem %s1461_s3, %s1069_s18  ;;  %v258_v0 = vld [vmem:[%s1076_s21] sm:$0xf]  ;;  %v259_v1 = vld [vmem:[%s1076_s21 + $0x4] sm:$0x1]  ;;  %v1093_v2 = vld [vmem:[%s1076_s21 + $0x8] sm:$0xf] }
  0x12   : > { %v1096_v3 = vld [vmem:[%s1076_s21 + $0xc] sm:$0x1]  ;;  %v1099_v4 = vld [vmem:[%s1082_s24] sm:$0xf]  ;;  %v318_v6 = vld [vmem:[%s1088_s27 + $0x8] sm:$0xf]  ;;  %s1175_s7 = scalar_lea.vmem %s1462_s4, %s1069_s18 }
  0x13   : > { %v316_v5 = vld [vmem:[%s1088_s27] sm:$0xf]  ;;  %v356_v8 = vshrl.u32 %v258_v0, 16  ;;  %v359_v9 = vshll.u32 %v258_v0, 16  ;;  %v365_v10 = vshll.u32 %v259_v1, 16  ;;  %v336_v12 = vmax.bf16 %v318_v6, %v1093_v2 }
  0x14   : > { %v334_v7 = vmax.bf16 %v316_v5, %v258_v0  ;;  %v1104_v11 = vld [vmem:[%s1082_s24 + $0x4] sm:$0x1]  ;;  %v374_v13 = vshrl.u32 %v1093_v2, 16  ;;  %v377_v14 = vshll.u32 %v1093_v2, 16  ;;  %v383_v15 = vshll.u32 %v1096_v3, 16 }
  0x15   : > { %v358_v16 = vrot.slane %v356_v8, 4  ;;  %v361_v17 = vrot.slane %v359_v9, 5  ;;  %v367_v18 = vrot.slane %v365_v10, 5  ;;  %v664_v19 = vshrl.u32 %v1099_v4, 16  ;;  %v317_v24 = vld [vmem:[%s1088_s27 + $0x4] sm:$0x1] }
  0x16   : > { %v376_v20 = vrot.slane %v374_v13, 4  ;;  %v379_v21 = vrot.slane %v377_v14, 5  ;;  %v385_v22 = vrot.slane %v383_v15, 5  ;;  %v667_v23 = vshll.u32 %v1099_v4, 16  ;;  %v1115_v29 = vld [vmem:[%s1076_s21 + $0x10] sm:$0xf] }
  0x17   : > { %v362_v25 = vor.u32 %v361_v17, %v358_v16  ;;  %v666_v26 = vrot.slane %v664_v19, 4  ;;  %v673_v27 = vshll.u32 %v1104_v11, 16  ;;  %v335_v28 = vmax.bf16 %v317_v24, %v259_v1  ;;  %v1129_v43 = vld [vmem:[%s1076_s21 + $0x14] sm:$0x1]  ;;  %v1132_v44 = vld [vmem:[%s1082_s24 + $0x8] sm:$0xf] }
  0x18   : > { %v380_v31 = vor.u32 %v379_v21, %v376_v20  ;;  %v669_v32 = vrot.slane %v667_v23, 5  ;;  %v369_v33 = vshrl.u32 %v259_v1, 16  ;;  %v387_v34 = vshrl.u32 %v1096_v3, 16  ;;  %v320_v46 = vld [vmem:[%s1088_s27 + $0x10] sm:$0xf] }
  0x19   : > { %v363_v35 = vrot.slane %v362_v25, 4  ;;  %v1124_v36 = vrot.slane %v673_v27, 5  ;;  %v677_v37 = vshrl.u32 %v1104_v11, 16  ;;  %v392_v38 = vshrl.u32 %v1115_v29, 16  ;;  %v1150_v56 = vld [vmem:[%s1082_s24 + $0xc] sm:$0x1] }
  0x1a   : > { %v381_v39 = vrot.slane %v380_v31, 4  ;;  %v670_v40 = vor.u32 %v669_v32, %v666_v26  ;;  %v389_v41 = vrot.slane %v387_v34, 4  ;;  %v536_v42 = vmax.bf16 %v369_v33, %v335_v28  ;;  %v319_v59 = vld [vmem:[%s1088_s27 + $0xc] sm:$0x1]  ;;  %v279_v62 = vld [vmem:[%s1139_s30 + $0x4] sm:$0x1] }
  0x1b   : > { %v368_v45 = vsel %vm1119_vm2, %v363_v35, %v367_v18  ;;  %v394_v47 = vrot.slane %v392_v38, 4  ;;  %v395_v48 = vshll.u32 %v1115_v29, 16  ;;  %v401_v49 = vshll.u32 %v1129_v43, 16  ;;  %v278_v1 = vld [vmem:[%s1139_s30] sm:$0xf] }
  0x1c   : > { %v386_v50 = vsel %vm1119_vm2, %v381_v39, %v385_v22  ;;  %v535_v51 = vmax.bf16 %v368_v45, %v334_v7  ;;  %v671_v52 = vrot.slane %v670_v40, 4  ;;  %v390_v53 = vrot.slane %v389_v41, 4  ;;  %v281_v18 = vld [vmem:[%s1139_s30 + $0xc] sm:$0x1]  ;;  %v1169_v22 = vld [vmem:[%s1088_s27 + $0x18] sm:$0xf] }
  0x1d   : > { %v537_v54 = vmax.bf16 %v386_v50, %v336_v12  ;;  %v554_v55 = vmax.bf16 %v536_v42, %v1096_v3  ;;  %v338_v57 = vmax.bf16 %v320_v46, %v1115_v29  ;;  %v397_v58 = vrot.slane %v395_v48, 5  ;;  %v264_v27 = vld [vmem:[%s1076_s21 + $0x18] sm:$0xf]  ;;  %v865_v40 = vld [vmem:[%s1175_s7 + $0x4] sm:$0x1] }
  0x1e   : > { %v553_v60 = vmax.bf16 %v535_v51, %v1093_v2  ;;  %v676_v61 = vsel %vm1119_vm2, %v671_v52, %v1124_v36  ;;  %v403_v63 = vrot.slane %v401_v49, 5  ;;  %v682_v0 = vshrl.u32 %v1132_v44, 16  ;;  %v1193_v42 = vld [vmem:[%s1076_s21 + $0x1c] sm:$0x1]  ;;  %v1198_v48 = vld [vmem:[%s1139_s30 + $0x10] sm:$0xf] }
  0x1f   : > { %v592_v5 = vmax.bf16 %v554_v55, %v390_v53  ;;  %v398_v6 = vor.u32 %v397_v58, %v394_v47  ;;  %v555_v7 = vmax.bf16 %v537_v54, %v1115_v29  ;;  %v685_v8 = vshll.u32 %v1132_v44, 16  ;;  %v1208_v54 = vld [vmem:[%s1082_s24 + $0x14] sm:$0x1] }
  0x20   : > { %v591_v2 = vmax.bf16 %v553_v60, %v386_v50  ;;  %v684_v9 = vrot.slane %v682_v0, 4  ;;  %v691_v10 = vshll.u32 %v1150_v56, 16  ;;  %v337_v12 = vmax.bf16 %v319_v59, %v1096_v3  ;;  %v280_v3 = vld [vmem:[%s1139_s30 + $0x8] sm:$0xf]  ;;  %v1203_v50 = vld [vmem:[%s1082_s24 + $0x10] sm:$0xf] }
  0x21   : > { %v610_v13 = vmax.bf16 %v592_v5, %v279_v62  ;;  %v399_v14 = vrot.slane %v398_v6, 4  ;;  %v687_v15 = vrot.slane %v685_v8, 5  ;;  %v405_v16 = vshrl.u32 %v1129_v43, 16  ;;  %v321_v55 = vld [vmem:[%s1088_s27 + $0x14] sm:$0x1] }
  0x22   : > { %v609_v17 = vmax.bf16 %v591_v2, %v278_v1  ;;  %v693_v19 = vrot.slane %v691_v10, 5  ;;  %v538_v20 = vmax.bf16 %v390_v53, %v337_v12  ;;  %v695_v21 = vshrl.u32 %v1150_v56, 16  ;;  %v1223_v2 = vld [vmem:[%s1088_s27 + $0x20] sm:$0xf] }
  0x23   : > { %v628_v23 = vmax.bf16 %v610_v13, %v281_v18  ;;  %v404_v24 = vsel %vm1119_vm2, %v399_v14, %v403_v63  ;;  %v688_v25 = vor.u32 %v687_v15, %v684_v9  ;;  %v407_v26 = vrot.slane %v405_v16, 4  ;;  %v283_v63 = vld [vmem:[%s1139_s30 + $0x14] sm:$0x1] }
  0x24   : > { %v627_v28 = vmax.bf16 %v609_v17, %v280_v3  ;;  %v539_v29 = vmax.bf16 %v404_v24, %v338_v57  ;;  %v593_v31 = vmax.bf16 %v555_v7, %v404_v24  ;;  %v556_v32 = vmax.bf16 %v538_v20, %v1129_v43  ;;  %v266_v17 = vld [vmem:[%s1076_s21 + $0x20] sm:$0xf] }
  0x25   : > { %v646_v33 = vmax.bf16 %v628_v23, %v1104_v11  ;;  %v689_v34 = vrot.slane %v688_v25, 4  ;;  %v408_v35 = vrot.slane %v407_v26, 4  ;;  %v340_v36 = vmax.bf16 %v1169_v22, %v264_v27  ;;  %v1236_v26 = vld [vmem:[%s1076_s21 + $0x24] sm:$0x1] }
  0x26   : > { %v645_v38 = vmax.bf16 %v627_v28, %v1099_v4  ;;  %v611_v41 = vmax.bf16 %v593_v31, %v280_v3  ;;  %v410_v45 = vshrl.u32 %v264_v27, 16  ;;  %v413_v46 = vshll.u32 %v264_v27, 16 }
  0x27   : > { %v844_v47 = vmax.bf16 %v677_v37, %v646_v33  ;;  %v694_v4 = vsel %vm1119_vm2, %v689_v34, %v693_v19  ;;  %v594_v49 = vmax.bf16 %v556_v32, %v408_v35  ;;  %v419_v51 = vshll.u32 %v1193_v42, 16 }
  0x28   : > { %v843_v52 = vmax.bf16 %v676_v61, %v645_v38  ;;  %v629_v53 = vmax.bf16 %v611_v41, %v1198_v48  ;;  %v412_v11 = vrot.slane %v410_v45, 4  ;;  %v415_v37 = vrot.slane %v413_v46, 5  ;;  %v284_v38 = vld [vmem:[%s1139_s30 + $0x18] sm:$0xf] }
  0x29   : > { %v866_v57 = vsel %vm1187_vm5, %v844_v47, %v865_v40  ;;  %v612_v58 = vmax.bf16 %v594_v49, %v281_v18  ;;  %v421_v59 = vrot.slane %v419_v51, 5  ;;  %v557_v60 = vmax.bf16 %v539_v29, %v264_v27  ;;  %v869_v18 = vld [vmem:[%s1175_s7 + $0xc] sm:$0x1]  ;;  %v1240_v29 = vld [vmem:[%s1082_s24 + $0x18] sm:$0xf] }
  0x2a   : > { %861 = vst [vmem:[%s1175_s7] sm:$0xf] %v843_v52  ;;  %867 = vst [vmem:[%s1175_s7 + $0x4] sm:$0x1] %v866_v57  ;;  %v647_v62 = vmax.bf16 %v629_v53, %v1132_v44  ;;  %v416_v61 = vor.u32 %v415_v37, %v412_v11  ;;  %v700_v0 = vshrl.u32 %v1203_v50, 16  ;;  %v703_v1 = vshll.u32 %v1203_v50, 16 }
  0x2b   : > { %v630_v5 = vmax.bf16 %v612_v58, %v283_v63  ;;  %v709_v6 = vshll.u32 %v1208_v54, 16  ;;  %v339_v7 = vmax.bf16 %v321_v55, %v1129_v43  ;;  %v423_v8 = vshrl.u32 %v1193_v42, 16  ;;  %v285_v51 = vld [vmem:[%s1139_s30 + $0x1c] sm:$0x1] }
  0x2c   : > { %v845_v9 = vmax.bf16 %v694_v4, %v647_v62  ;;  %v417_v44 = vrot.slane %v416_v61, 4  ;;  %v702_v10 = vrot.slane %v700_v0, 4  ;;  %v705_v12 = vrot.slane %v703_v1, 5 }
  0x2d   : > { %v648_v13 = vmax.bf16 %v630_v5, %v1150_v56  ;;  %v711_v14 = vrot.slane %v709_v6, 5  ;;  %v425_v15 = vrot.slane %v423_v8, 4  ;;  %v540_v16 = vmax.bf16 %v408_v35, %v339_v7 }
  0x2e   : > { %868 = vst [vmem:[%s1175_s7 + $0x8] sm:$0xf] %v845_v9  ;;  %v422_v43 = vsel %vm1119_vm2, %v417_v44, %v421_v59  ;;  %v706_v19 = vor.u32 %v705_v12, %v702_v10  ;;  %v713_v20 = vshrl.u32 %v1208_v54, 16  ;;  %v342_v22 = vmax.bf16 %v1223_v2, %v266_v17  ;;  %v873_v44 = vld [vmem:[%s1175_s7 + $0x14] sm:$0x1] }
  0x2f   : > { %v846_v3 = vmax.bf16 %v695_v21, %v648_v13  ;;  %v541_v23 = vmax.bf16 %v422_v43, %v340_v36  ;;  %v595_v24 = vmax.bf16 %v557_v60, %v422_v43  ;;  %v426_v25 = vrot.slane %v425_v15, 4  ;;  %v1246_v21 = vld [vmem:[%s1082_s24 + $0x1c] sm:$0x1]  ;;  %v1262_v60 = vld [vmem:[%s1088_s27 + $0x28] sm:$0xf] }
  0x30   : > { %v707_v27 = vrot.slane %v706_v19, 4  ;;  %v558_v28 = vmax.bf16 %v540_v16, %v1193_v42  ;;  %v428_v31 = vshrl.u32 %v266_v17, 16  ;;  %v431_v32 = vshll.u32 %v266_v17, 16  ;;  %v323_v36 = vld [vmem:[%s1088_s27 + $0x1c] sm:$0x1] }
  0x31   : > { %v870_v33 = vsel %vm1187_vm5, %v846_v3, %v869_v18  ;;  %v613_v56 = vmax.bf16 %v595_v24, %v1198_v48  ;;  %v437_v34 = vshll.u32 %v1236_v26, 16  ;;  %v559_v35 = vmax.bf16 %v541_v23, %v266_v17  ;;  %v1274_v15 = vld [vmem:[%s1076_s21 + $0x2c] sm:$0x1]  ;;  %v1283_v23 = vld [vmem:[%s1082_s24 + $0x24] sm:$0x1] }
  0x32   : > { %871 = vst [vmem:[%s1175_s7 + $0xc] sm:$0x1] %v870_v33  ;;  %v712_v40 = vsel %vm1119_vm2, %v707_v27, %v711_v14  ;;  %v596_v41 = vmax.bf16 %v558_v28, %v426_v25  ;;  %v430_v45 = vrot.slane %v428_v31, 4  ;;  %v433_v46 = vrot.slane %v431_v32, 5  ;;  %v286_v27 = vld [vmem:[%s1139_s30 + $0x20] sm:$0xf] }
  0x33   : > { %v631_v47 = vmax.bf16 %v613_v56, %v284_v38  ;;  %v439_v4 = vrot.slane %v437_v34, 5  ;;  %v718_v49 = vshrl.u32 %v1240_v29, 16  ;;  %v721_v48 = vshll.u32 %v1240_v29, 16 }
  0x34   : > { %v614_v52 = vmax.bf16 %v596_v41, %v283_v63  ;;  %v434_v53 = vor.u32 %v433_v46, %v430_v45  ;;  %v727_v11 = vshll.u32 %v1246_v21, 16  ;;  %v341_v37 = vmax.bf16 %v323_v36, %v1193_v42  ;;  %v287_v36 = vld [vmem:[%s1139_s30 + $0x24] sm:$0x1] }
  0x35   : > { %v649_v55 = vmax.bf16 %v631_v47, %v1203_v50  ;;  %v720_v57 = vrot.slane %v718_v49, 4  ;;  %v723_v58 = vrot.slane %v721_v48, 5  ;;  %v441_v59 = vshrl.u32 %v1236_v26, 16  ;;  %v268_v50 = vld [vmem:[%s1076_s21 + $0x28] sm:$0xf] }
  0x36   : > { %v632_v62 = vmax.bf16 %v614_v52, %v285_v51  ;;  %v435_v61 = vrot.slane %v434_v53, 4  ;;  %v729_v0 = vrot.slane %v727_v11, 5  ;;  %v542_v63 = vmax.bf16 %v426_v25, %v341_v37  ;;  %v325_v25 = vld [vmem:[%s1088_s27 + $0x24] sm:$0x1]  ;;  %v1298_v48 = vld [vmem:[%s1088_s27 + $0x30] sm:$0xf] }
  0x37   : > { %v847_v1 = vmax.bf16 %v712_v40, %v649_v55  ;;  %v724_v5 = vor.u32 %v723_v58, %v720_v57  ;;  %v443_v6 = vrot.slane %v441_v59, 4  ;;  %v731_v42 = vshrl.u32 %v1246_v21, 16  ;;  %v877_v58 = vld [vmem:[%s1175_s7 + $0x1c] sm:$0x1] }
  0x38   : > { %v650_v7 = vmax.bf16 %v632_v62, %v1208_v54  ;;  %v440_v8 = vsel %vm1119_vm2, %v435_v61, %v439_v4  ;;  %v560_v2 = vmax.bf16 %v542_v63, %v1236_v26  ;;  %v344_v9 = vmax.bf16 %v1262_v60, %v268_v50  ;;  %v1277_v54 = vld [vmem:[%s1082_s24 + $0x20] sm:$0xf] }
  0x39   : > { %872 = vst [vmem:[%s1175_s7 + $0x10] sm:$0xf] %v847_v1  ;;  %v543_v10 = vmax.bf16 %v440_v8, %v342_v22  ;;  %v597_v12 = vmax.bf16 %v559_v35, %v440_v8  ;;  %v725_v13 = vrot.slane %v724_v5, 4  ;;  %v444_v14 = vrot.slane %v443_v6, 4  ;;  %v1310_v5 = vld [vmem:[%s1076_s21 + $0x34] sm:$0x1] }
  0x3a   : > { %v848_v16 = vmax.bf16 %v713_v20, %v650_v7  ;;  %v446_v17 = vshrl.u32 %v268_v50, 16  ;;  %v449_v18 = vshll.u32 %v268_v50, 16  ;;  %v455_v43 = vshll.u32 %v1274_v15, 16  ;;  %v1313_v6 = vld [vmem:[%s1082_s24 + $0x28] sm:$0xf] }
  0x3b   : > { %v615_v19 = vmax.bf16 %v597_v12, %v284_v38  ;;  %v730_v3 = vsel %vm1119_vm2, %v725_v13, %v729_v0  ;;  %v598_v22 = vmax.bf16 %v560_v2, %v444_v14  ;;  %v561_v24 = vmax.bf16 %v543_v10, %v268_v50  ;;  %v1316_v7 = vld [vmem:[%s1082_s24 + $0x2c] sm:$0x1] }
  0x3c   : > { %v874_v20 = vsel %vm1187_vm5, %v848_v16, %v873_v44  ;;  %v448_v28 = vrot.slane %v446_v17, 4  ;;  %v451_v31 = vrot.slane %v449_v18, 5  ;;  %v457_v32 = vrot.slane %v455_v43, 5  ;;  %v327_v13 = vld [vmem:[%s1088_s27 + $0x2c] sm:$0x1] }
  0x3d   : > { %875 = vst [vmem:[%s1175_s7 + $0x14] sm:$0x1] %v874_v20  ;;  %v633_v33 = vmax.bf16 %v615_v19, %v286_v27  ;;  %v616_v56 = vmax.bf16 %v598_v22, %v285_v51  ;;  %v736_v34 = vshrl.u32 %v1277_v54, 16  ;;  %v739_v35 = vshll.u32 %v1277_v54, 16 }
  0x3e   : > { %v452_v38 = vor.u32 %v451_v31, %v448_v28  ;;  %v745_v40 = vshll.u32 %v1283_v23, 16  ;;  %v343_v41 = vmax.bf16 %v325_v25, %v1236_v26  ;;  %v459_v45 = vshrl.u32 %v1274_v15, 16 }
  0x3f   : > { %v651_v46 = vmax.bf16 %v633_v33, %v1240_v29  ;;  %v634_v47 = vmax.bf16 %v616_v56, %v287_v36  ;;  %v738_v4 = vrot.slane %v736_v34, 4  ;;  %v741_v49 = vrot.slane %v739_v35, 5  ;;  %v270_v29 = vld [vmem:[%s1076_s21 + $0x30] sm:$0xf] }
  0x40   : > { %v453_v51 = vrot.slane %v452_v38, 4  ;;  %v747_v52 = vrot.slane %v745_v40, 5  ;;  %v461_v53 = vrot.slane %v459_v45, 4  ;;  %v544_v11 = vmax.bf16 %v444_v14, %v343_v41  ;;  %v288_v14 = vld [vmem:[%s1139_s30 + $0x28] sm:$0xf] }
  0x41   : > { %v849_v37 = vmax.bf16 %v730_v3, %v651_v46  ;;  %v652_v26 = vmax.bf16 %v634_v47, %v1246_v21  ;;  %v742_v55 = vor.u32 %v741_v49, %v738_v4  ;;  %v749_v57 = vshrl.u32 %v1283_v23, 16  ;;  %v289_v3 = vld [vmem:[%s1139_s30 + $0x2c] sm:$0x1]  ;;  %v1338_v45 = vld [vmem:[%s1076_s21 + $0x38] sm:$0xf] }
  0x42   : > { %v458_v59 = vsel %vm1119_vm2, %v453_v51, %v457_v32  ;;  %v462_v60 = vrot.slane %v461_v53, 4  ;;  %v562_v62 = vmax.bf16 %v544_v11, %v1274_v15  ;;  %v346_v61 = vmax.bf16 %v1298_v48, %v270_v29  ;;  %v1333_v32 = vld [vmem:[%s1088_s27 + $0x38] sm:$0xf]  ;;  %v881_v46 = vld [vmem:[%s1175_s7 + $0x24] sm:$0x1] }
  0x43   : > { %876 = vst [vmem:[%s1175_s7 + $0x18] sm:$0xf] %v849_v37  ;;  %v850_v0 = vmax.bf16 %v731_v42, %v652_v26  ;;  %v545_v63 = vmax.bf16 %v458_v59, %v344_v9  ;;  %v599_v21 = vmax.bf16 %v561_v24, %v458_v59  ;;  %v743_v1 = vrot.slane %v742_v55, 4  ;;  %v1349_v37 = vld [vmem:[%s1076_s21 + $0x3c] sm:$0x1] }
  0x44   : > { %v600_v50 = vmax.bf16 %v562_v62, %v462_v60  ;;  %v464_v8 = vshrl.u32 %v270_v29, 16  ;;  %v467_v2 = vshll.u32 %v270_v29, 16  ;;  %v473_v44 = vshll.u32 %v1310_v5, 16  ;;  %v1352_v26 = vld [vmem:[%s1082_s24 + $0x30] sm:$0xf] }
  0x45   : > { %v878_v42 = vsel %vm1187_vm5, %v850_v0, %v877_v58  ;;  %v617_v10 = vmax.bf16 %v599_v21, %v286_v27  ;;  %v748_v9 = vsel %vm1119_vm2, %v743_v1, %v747_v52  ;;  %v563_v12 = vmax.bf16 %v545_v63, %v270_v29  ;;  %v1358_v58 = vld [vmem:[%s1082_s24 + $0x34] sm:$0x1]  ;;  %v290_v1 = vld [vmem:[%s1139_s30 + $0x30] sm:$0xf] }
  0x46   : > { %879 = vst [vmem:[%s1175_s7 + $0x1c] sm:$0x1] %v878_v42  ;;  %v618_v16 = vmax.bf16 %v600_v50, %v287_v36  ;;  %v466_v17 = vrot.slane %v464_v8, 4  ;;  %v469_v18 = vrot.slane %v467_v2, 5  ;;  %v475_v43 = vrot.slane %v473_v44, 5 }
  0x47   : > { %v635_v19 = vmax.bf16 %v617_v10, %v288_v14  ;;  %v754_v22 = vshrl.u32 %v1313_v6, 16  ;;  %v757_v24 = vshll.u32 %v1313_v6, 16  ;;  %v763_v25 = vshll.u32 %v1316_v7, 16  ;;  %v329_v62 = vld [vmem:[%s1088_s27 + $0x34] sm:$0x1] }
  0x48   : > { %v636_v20 = vmax.bf16 %v618_v16, %v289_v3  ;;  %v470_v27 = vor.u32 %v469_v18, %v466_v17  ;;  %v345_v28 = vmax.bf16 %v327_v13, %v1274_v15  ;;  %v477_v31 = vshrl.u32 %v1310_v5, 16  ;;  %v291_v10 = vld [vmem:[%s1139_s30 + $0x34] sm:$0x1] }
  0x49   : > { %v653_v33 = vmax.bf16 %v635_v19, %v1277_v54  ;;  %v756_v56 = vrot.slane %v754_v22, 4  ;;  %v759_v34 = vrot.slane %v757_v24, 5  ;;  %v765_v35 = vrot.slane %v763_v25, 5  ;;  %v1379_v25 = vld [vmem:[%s1076_s21 + $0x40] sm:$0xf] }
  0x4a   : > { %v654_v36 = vmax.bf16 %v636_v20, %v1283_v23  ;;  %v471_v38 = vrot.slane %v470_v27, 4  ;;  %v479_v40 = vrot.slane %v477_v31, 4  ;;  %v546_v41 = vmax.bf16 %v462_v60, %v345_v28 }
  0x4b   : > { %v851_v15 = vmax.bf16 %v748_v9, %v653_v33  ;;  %v760_v47 = vor.u32 %v759_v34, %v756_v56  ;;  %v767_v4 = vshrl.u32 %v1316_v7, 16  ;;  %v348_v54 = vmax.bf16 %v1333_v32, %v1338_v45  ;;  %v885_v32 = vld [vmem:[%s1175_s7 + $0x2c] sm:$0x1] }
  0x4c   : > { %v852_v49 = vmax.bf16 %v749_v57, %v654_v36  ;;  %v476_v23 = vsel %vm1119_vm2, %v471_v38, %v475_v43  ;;  %v480_v48 = vrot.slane %v479_v40, 4  ;;  %v564_v51 = vmax.bf16 %v546_v41, %v1310_v5  ;;  %v1375_v43 = vld [vmem:[%s1088_s27 + $0x40] sm:$0xf] }
  0x4d   : > { %880 = vst [vmem:[%s1175_s7 + $0x20] sm:$0xf] %v851_v15  ;;  %v547_v52 = vmax.bf16 %v476_v23, %v346_v61  ;;  %v601_v53 = vmax.bf16 %v563_v12, %v476_v23  ;;  %v761_v11 = vrot.slane %v760_v47, 4  ;;  %v482_v55 = vshrl.u32 %v1338_v45, 16  ;;  %v1395_v15 = vld [vmem:[%s1082_s24 + $0x38] sm:$0xf] }
  0x4e   : > { %v882_v57 = vsel %vm1187_vm5, %v852_v49, %v881_v46  ;;  %v602_v29 = vmax.bf16 %v564_v51, %v480_v48  ;;  %v485_v59 = vshll.u32 %v1338_v45, 16  ;;  %v491_v60 = vshll.u32 %v1349_v37, 16  ;;  %v1401_v49 = vld [vmem:[%s1082_s24 + $0x3c] sm:$0x1] }
  0x4f   : > { %883 = vst [vmem:[%s1175_s7 + $0x24] sm:$0x1] %v882_v57  ;;  %v619_v61 = vmax.bf16 %v601_v53, %v288_v14  ;;  %v766_v0 = vsel %vm1119_vm2, %v761_v11, %v765_v35  ;;  %v484_v63 = vrot.slane %v482_v55, 4  ;;  %v565_v21 = vmax.bf16 %v547_v52, %v1338_v45  ;;  %v1392_v45 = vld [vmem:[%s1076_s21 + $0x44] sm:$0x1] }
  0x50   : > { %v620_v50 = vmax.bf16 %v602_v29, %v289_v3  ;;  %v487_v8 = vrot.slane %v485_v59, 5  ;;  %v493_v2 = vrot.slane %v491_v60, 5  ;;  %v772_v44 = vshrl.u32 %v1352_v26, 16  ;;  %v292_v55 = vld [vmem:[%s1139_s30 + $0x38] sm:$0xf] }
  0x51   : > { %v637_v42 = vmax.bf16 %v619_v61, %v290_v1  ;;  %v775_v9 = vshll.u32 %v1352_v26, 16  ;;  %v781_v12 = vshll.u32 %v1358_v58, 16  ;;  %v347_v13 = vmax.bf16 %v329_v62, %v1310_v5  ;;  %v293_v61 = vld [vmem:[%s1139_s30 + $0x3c] sm:$0x1] }
  0x52   : > { %v638_v14 = vmax.bf16 %v620_v50, %v291_v10  ;;  %v488_v16 = vor.u32 %v487_v8, %v484_v63  ;;  %v774_v17 = vrot.slane %v772_v44, 4  ;;  %v495_v18 = vshrl.u32 %v1349_v37, 16  ;;  %v276_v44 = vld [vmem:[%s1076_s21 + $0x48] sm:$0xf] }
  0x53   : > { %v655_v19 = vmax.bf16 %v637_v42, %v1313_v6  ;;  %v777_v3 = vrot.slane %v775_v9, 5  ;;  %v783_v22 = vrot.slane %v781_v12, 5  ;;  %v548_v24 = vmax.bf16 %v480_v48, %v347_v13 }
  0x54   : > { %v656_v20 = vmax.bf16 %v638_v14, %v1316_v7  ;;  %v489_v27 = vrot.slane %v488_v16, 4  ;;  %v497_v5 = vrot.slane %v495_v18, 4  ;;  %v785_v28 = vshrl.u32 %v1358_v58, 16  ;;  %v889_v18 = vld [vmem:[%s1175_s7 + $0x34] sm:$0x1] }
  0x55   : > { %v853_v31 = vmax.bf16 %v766_v0, %v655_v19  ;;  %v778_v33 = vor.u32 %v777_v3, %v774_v17  ;;  %v566_v6 = vmax.bf16 %v548_v24, %v1349_v37  ;;  %v350_v56 = vmax.bf16 %v1375_v43, %v1379_v25  ;;  %v277_v17 = vld [vmem:[%s1076_s21 + $0x4c] sm:$0x1] }
  0x56   : > { %v854_v34 = vmax.bf16 %v767_v4, %v656_v20  ;;  %v494_v7 = vsel %vm1119_vm2, %v489_v27, %v493_v2  ;;  %v498_v35 = vrot.slane %v497_v5, 4  ;;  %v500_v36 = vshrl.u32 %v1379_v25, 16 }
  0x57   : > { %884 = vst [vmem:[%s1175_s7 + $0x28] sm:$0xf] %v853_v31  ;;  %v549_v38 = vmax.bf16 %v494_v7, %v348_v54  ;;  %v603_v40 = vmax.bf16 %v565_v21, %v494_v7  ;;  %v779_v41 = vrot.slane %v778_v33, 4  ;;  %v503_v46 = vshll.u32 %v1379_v25, 16  ;;  %v331_v54 = vld [vmem:[%s1088_s27 + $0x3c] sm:$0x1] }
  0x58   : > { %v886_v47 = vsel %vm1187_vm5, %v854_v34, %v885_v32  ;;  %v604_v4 = vmax.bf16 %v566_v6, %v498_v35  ;;  %v502_v23 = vrot.slane %v500_v36, 4  ;;  %v509_v48 = vshll.u32 %v1392_v45, 16  ;;  %v333_v32 = vld [vmem:[%s1088_s27 + $0x44] sm:$0x1]  ;;  %v294_v7 = vld [vmem:[%s1139_s30 + $0x40] sm:$0xf] }
  0x59   : > { %887 = vst [vmem:[%s1175_s7 + $0x2c] sm:$0x1] %v886_v47  ;;  %v621_v51 = vmax.bf16 %v603_v40, %v290_v1  ;;  %v784_v52 = vsel %vm1119_vm2, %v779_v41, %v783_v22  ;;  %v505_v53 = vrot.slane %v503_v46, 5  ;;  %v567_v11 = vmax.bf16 %v549_v38, %v1379_v25  ;;  %v315_v40 = vld [vmem:[%s1082_s24 + $0x44] sm:$0x1] }
  0x5a   : > { %v622_v57 = vmax.bf16 %v604_v4, %v291_v10  ;;  %v511_v29 = vrot.slane %v509_v48, 5  ;;  %v790_v59 = vshrl.u32 %v1395_v15, 16  ;;  %v793_v60 = vshll.u32 %v1395_v15, 16 }
  0x5b   : > { %v639_v62 = vmax.bf16 %v621_v51, %v292_v55  ;;  %v506_v0 = vor.u32 %v505_v53, %v502_v23  ;;  %v799_v63 = vshll.u32 %v1401_v49, 16  ;;  %v349_v21 = vmax.bf16 %v331_v54, %v1349_v37  ;;  %v295_v51 = vld [vmem:[%s1139_s30 + $0x44] sm:$0x1] }
  0x5c   : > { %v640_v1 = vmax.bf16 %v622_v57, %v293_v61  ;;  %v792_v50 = vrot.slane %v790_v59, 4  ;;  %v795_v8 = vrot.slane %v793_v60, 5  ;;  %v513_v2 = vshrl.u32 %v1392_v45, 16 }
  0x5d   : > { %v657_v42 = vmax.bf16 %v639_v62, %v1352_v26  ;;  %v507_v10 = vrot.slane %v506_v0, 4  ;;  %v550_v9 = vmax.bf16 %v498_v35, %v349_v21  ;;  %v801_v14 = vrot.slane %v799_v63, 5  ;;  %v893_v0 = vld [vmem:[%s1175_s7 + $0x3c] sm:$0x1] }
  0x5e   : > { %v658_v12 = vmax.bf16 %v640_v1, %v1358_v58  ;;  %v796_v13 = vor.u32 %v795_v8, %v792_v50  ;;  %v515_v16 = vrot.slane %v513_v2, 4  ;;  %v572_v26 = vshrl.u32 %v276_v44, 16  ;;  %v314_v58 = vld [vmem:[%s1082_s24 + $0x40] sm:$0xf]  ;;  %v296_v50 = vld [vmem:[%s1139_s30 + $0x48] sm:$0xf] }
  0x5f   : > { %v855_v37 = vmax.bf16 %v784_v52, %v657_v42  ;;  %v512_v43 = vsel %vm1119_vm2, %v507_v10, %v511_v29  ;;  %v568_v19 = vmax.bf16 %v550_v9, %v1392_v45  ;;  %v575_v5 = vshll.u32 %v276_v44, 16 }
  0x60   : > { %v856_v3 = vmax.bf16 %v785_v28, %v658_v12  ;;  %v551_v22 = vmax.bf16 %v512_v43, %v350_v56  ;;  %v605_v24 = vmax.bf16 %v567_v11, %v512_v43  ;;  %v797_v25 = vrot.slane %v796_v13, 4 }
  0x61   : > { %888 = vst [vmem:[%s1175_s7 + $0x30] sm:$0xf] %v855_v37  ;;  %v516_v20 = vrot.slane %v515_v16, 4  ;;  %v574_v27 = vrot.slane %v572_v26, 4  ;;  %v581_v31 = vshll.u32 %v277_v17, 16  ;;  %v577_v56 = vrot.slane %v575_v5, 5 }
  0x62   : > { %v890_v33 = vsel %vm1187_vm5, %v856_v3, %v889_v18  ;;  %v623_v6 = vmax.bf16 %v605_v24, %v292_v55  ;;  %v569_v34 = vmax.bf16 %v551_v22, %v276_v44  ;;  %v808_v35 = vshrl.u32 %v314_v58, 16  ;;  %v297_v44 = vld [vmem:[%s1139_s30 + $0x4c] sm:$0x1]  ;;  %v897_v37 = vld [vmem:[%s1175_s7 + $0x44] sm:$0x1] }
  0x63   : > { %891 = vst [vmem:[%s1175_s7 + $0x34] sm:$0x1] %v890_v33  ;;  %v606_v28 = vmax.bf16 %v568_v19, %v516_v20  ;;  %v802_v38 = vsel %vm1119_vm2, %v797_v25, %v801_v14  ;;  %v811_v41 = vshll.u32 %v314_v58, 16  ;;  %v351_v46 = vmax.bf16 %v333_v32, %v1392_v45 }
  0x64   : > { %v641_v36 = vmax.bf16 %v623_v6, %v294_v7  ;;  %v578_v4 = vor.u32 %v577_v56, %v574_v27  ;;  %v583_v23 = vrot.slane %v581_v31, 5  ;;  %v810_v48 = vrot.slane %v808_v35, 4 }
  0x65   : > { %v624_v47 = vmax.bf16 %v606_v28, %v293_v61  ;;  %v813_v52 = vrot.slane %v811_v41, 5  ;;  %v552_v53 = vmax.bf16 %v516_v20, %v351_v46  ;;  %v585_v11 = vshrl.u32 %v277_v17, 16 }
  0x66   : > { %v659_v54 = vmax.bf16 %v641_v36, %v1395_v15  ;;  %v803_v57 = vshrl.u32 %v1401_v49, 16  ;;  %v579_v29 = vrot.slane %v578_v4, 4  ;;  %v817_v59 = vshll.u32 %v315_v40, 16 }
  0x67   : > { %v642_v55 = vmax.bf16 %v624_v47, %v295_v51  ;;  %v814_v60 = vor.u32 %v813_v52, %v810_v48  ;;  %v570_v62 = vmax.bf16 %v552_v53, %v277_v17  ;;  %v821_v13 = vshrl.u32 %v315_v40, 16 }
  0x68   : > { %v857_v45 = vmax.bf16 %v802_v38, %v659_v54  ;;  %v584_v15 = vsel %vm1119_vm2, %v579_v29, %v583_v23  ;;  %v819_v2 = vrot.slane %v817_v59, 5 }
  0x69   : > { %v660_v61 = vmax.bf16 %v642_v55, %v1401_v49  ;;  %v607_v63 = vmax.bf16 %v584_v15, %v569_v34  ;;  %v608_v21 = vmax.bf16 %v585_v11, %v570_v62  ;;  %v815_v8 = vrot.slane %v814_v60, 4 }
  0x6a   : > { %892 = vst [vmem:[%s1175_s7 + $0x38] sm:$0xf] %v857_v45 }
  0x6b   : > { %v858_v1 = vmax.bf16 %v803_v57, %v660_v61  ;;  %v625_v42 = vmax.bf16 %v607_v63, %v294_v7  ;;  %v626_v10 = vmax.bf16 %v608_v21, %v295_v51  ;;  %v820_v14 = vsel %vm1119_vm2, %v815_v8, %v819_v2 }
  0x6d   : > { %v894_v49 = vsel %vm1187_vm5, %v858_v1, %v893_v0  ;;  %v643_v9 = vmax.bf16 %v625_v42, %v296_v50  ;;  %v644_v12 = vmax.bf16 %v626_v10, %v297_v44 }
  0x6e   : > { %895 = vst [vmem:[%s1175_s7 + $0x3c] sm:$0x1] %v894_v49 }
  0x6f   : > { %v661_v16 = vmax.bf16 %v643_v9, %v314_v58  ;;  %v662_v17 = vmax.bf16 %v644_v12, %v315_v40 }
  0x71   : > { %v859_v18 = vmax.bf16 %v820_v14, %v661_v16  ;;  %v860_v43 = vmax.bf16 %v821_v13, %v662_v17 }
  0x73   : > { %896 = vst [vmem:[%s1175_s7 + $0x40] sm:$0xf] %v859_v18  ;;  %v898_v19 = vsel %vm1187_vm5, %v860_v43, %v897_v37 }
  0x74   : > { %899 = vst [vmem:[%s1175_s7 + $0x44] sm:$0x1] %v898_v19 }
  0x75 PF: > { %s14_s15 = sadd.s32 1, %s1030_s15  }
  0x76   : > { %p11_p4 = scmp.ge.s32.totalorder %s14_s15, 4  }
  0x78   :  { %13 = sbr.rel (!%p11_p4) target bundleno = 1 (0x1), region = 75 }

// kernel: onet_forward.13
= control target key start
LH: loop header
LB: loop body
LE: loop exit
PB: predicated region body
PF: predicated region fallthrough
CT: control target
= control target key end

     0   :  { %s527_s15 = smov 0   ;;  %s597_s0 = inlined_call_operand.vmem [shape: bf16[2,4,4,128], index: 0, kind: input, shape index: {}]   ;;  %s598_s1 = inlined_call_operand.vmem [shape: bf16[2,4,3,128], index: 1, kind: input, shape index: {}]   ;;  %s599_s2 = inlined_call_operand.vmem [shape: bf16[2,3,4,128], index: 2, kind: input, shape index: {}]   ;;  %s600_s3 = inlined_call_operand.vmem [shape: bf16[2,3,3,128], index: 3, kind: input, shape index: {}]   ;;  %s601_s4 = inlined_call_operand.vmem [shape: bf16[2,3,3,128], index: 4, kind: output, shape index: {}]  }
   0x1 LB: > { %s469_s16 = sadd.s32 4294967295, %s500_s15   ;;  %p473_p0 = scmp.ge.s32.totalorder %s500_s15, 1  ;;  %s500_s15 = sphi %s527_s15, %s14_s15  }
   0x2   : > { %p192_p1 = scmp.lt.s32.totalorder %s500_s15, 3 }
   0x4   : > { %p193_p2 = pnand %p473_p0, %p192_p1 }
   0x5   : > { %p233_p3 = scmp.lt.s32.totalorder (!%p193_p2), %s469_s16, 1  ;;  %vm366_vm0 = vcmask (!%p193_p2), 1041408   ;;  %vm367_vm1 = vsmask.f32 (!%p193_p2), 1280 }
   0x6   : > { %196 = sbr.rel (%p193_p2) target bundleno = 44 (0x2c), region = 36  ;;  %vm583_vm2 = vmand (!%p193_p2), %vm366_vm0, %vm367_vm1 }
   0xd   : > { %s605_s16 = smov (!%p233_p3, %s469_s16), 1 }
   0xe   : > { %s483_s17 = sshll.u32 %s605_s16, 3  ;;  %s539_s18 = smul.u32 6, %s605_s16 }
   0xf   : > { %s237_s21 = scalar_lea.vmem %s597_s0, %s483_s17  ;;  %s572_s30 = scalar_lea.vmem %s598_s1, %s483_s17 }
  0x10   : > { %s550_s24 = scalar_lea.vmem %s599_s2, %s539_s18  ;;  %s252_s27 = scalar_lea.vmem %s600_s3, %s539_s18  ;;  %v258_v0 = vld [vmem:[%s237_s21] sm:$0x3]  ;;  %v259_v1 = vld [vmem:[%s237_s21 + $0x2] sm:$0x3]  ;;  %v260_v13 = vld [vmem:[%s237_s21 + $0x4] sm:$0x3] }
  0x11   : > { %v557_v2 = vld [vmem:[%s550_s24] sm:$0x3]  ;;  %v276_v4 = vshrl.u32 %v258_v0, 16  ;;  %v279_v5 = vshll.u32 %v258_v0, 16  ;;  %v270_v6 = vld [vmem:[%s252_s27 + $0x2] sm:$0x3]  ;;  %s257_s7 = scalar_lea.vmem %s601_s4, %s539_s18 }
  0x12   : > { %v269_v3 = vld [vmem:[%s252_s27] sm:$0x3]  ;;  %v285_v7 = vshrl.u32 %v259_v1, 16  ;;  %v288_v8 = vshll.u32 %v259_v1, 16  ;;  %v334_v9 = vshrl.u32 %v557_v2, 16  ;;  %v337_v12 = vshll.u32 %v557_v2, 16 }
  0x13   : > { %v278_v10 = vrot.slane %v276_v4, 6  ;;  %v281_v11 = vrot.slane %v279_v5, 7  ;;  %v272_v14 = vmax.bf16 %v269_v3, %v258_v0  ;;  %v562_v17 = vld [vmem:[%s550_s24 + $0x2] sm:$0x3]  ;;  %v271_v18 = vld [vmem:[%s252_s27 + $0x4] sm:$0x3]  ;;  %v273_v25 = vmax.bf16 %v270_v6, %v259_v1 }
  0x14   : > { %v287_v15 = vrot.slane %v285_v7, 6  ;;  %v290_v16 = vrot.slane %v288_v8, 7  ;;  %v294_v20 = vshrl.u32 %v260_v13, 16  ;;  %v297_v21 = vshll.u32 %v260_v13, 16  ;;  %v261_v27 = vld [vmem:[%s237_s21 + $0x6] sm:$0x3] }
  0x15   : > { %v282_v19 = vor.u32 %v281_v11, %v278_v10  ;;  %v343_v22 = vshrl.u32 %v562_v17, 16  ;;  %v336_v24 = vrot.slane %v334_v9, 6  ;;  %v346_v26 = vshll.u32 %v562_v17, 16  ;;  %v268_v32 = vld [vmem:[%s550_s24 + $0x4] sm:$0x3] }
  0x16   : > { %v291_v23 = vor.u32 %v290_v16, %v287_v15  ;;  %v339_v29 = vrot.slane %v337_v12, 7  ;;  %v296_v30 = vrot.slane %v294_v20, 6  ;;  %v299_v31 = vrot.slane %v297_v21, 7  ;;  %v262_v48 = vld [vmem:[%s572_s30] sm:$0x3] }
  0x17   : > { %v283_v28 = vrot.slane %v282_v19, 2  ;;  %v345_v34 = vrot.slane %v343_v22, 6  ;;  %v274_v35 = vmax.bf16 %v271_v18, %v260_v13  ;;  %v312_v36 = vshrl.u32 %v261_v27, 16  ;;  %v263_v52 = vld [vmem:[%s572_s30 + $0x2] sm:$0x3] }
  0x18   : > { %v292_v33 = vrot.slane %v291_v23, 2  ;;  %v300_v38 = vor.u32 %v299_v31, %v296_v30  ;;  %v315_v39 = vshll.u32 %v261_v27, 16  ;;  %v352_v40 = vshrl.u32 %v268_v32, 16  ;;  %v264_v62 = vld [vmem:[%s572_s30 + $0x4] sm:$0x3] }
  0x19   : > { %v305_v37 = vmax.bf16 %v283_v28, %v272_v14  ;;  %v348_v42 = vrot.slane %v346_v26, 7  ;;  %v314_v43 = vrot.slane %v312_v36, 6  ;;  %v355_v44 = vshll.u32 %v268_v32, 16  ;;  %v265_v7 = vld [vmem:[%s572_s30 + $0x6] sm:$0x3] }
  0x1a   : > { %v306_v41 = vmax.bf16 %v292_v33, %v273_v25  ;;  %v301_v46 = vrot.slane %v300_v38, 2  ;;  %v317_v47 = vrot.slane %v315_v39, 7  ;;  %v340_v49 = vor.u32 %v339_v29, %v336_v24  ;;  %v369_v11 = vld [vmem:[%s257_s7] sm:$0x3]  ;;  %v372_v14 = vld [vmem:[%s257_s7 + $0x2] sm:$0x3] }
  0x1b   : > { %v308_v45 = vmax.bf16 %v305_v37, %v259_v1  ;;  %v354_v51 = vrot.slane %v352_v40, 6  ;;  %v357_v56 = vrot.slane %v355_v44, 7  ;;  %v349_v58 = vor.u32 %v348_v42, %v345_v34  ;;  %v375_v21 = vld [vmem:[%s257_s7 + $0x4] sm:$0x3] }
  0x1c   : > { %v309_v50 = vmax.bf16 %v306_v41, %v260_v13  ;;  %v307_v54 = vmax.bf16 %v301_v46, %v274_v35  ;;  %v318_v55 = vor.u32 %v317_v47, %v314_v43  ;;  %v341_v1 = vrot.slane %v340_v49, 2 }
  0x1d   : > { %v321_v53 = vmax.bf16 %v308_v45, %v292_v33  ;;  %v358_v4 = vor.u32 %v357_v56, %v354_v51  ;;  %v350_v6 = vrot.slane %v349_v58, 2 }
  0x1e   : > { %v322_v57 = vmax.bf16 %v309_v50, %v301_v46  ;;  %v310_v60 = vmax.bf16 %v307_v54, %v261_v27  ;;  %v319_v61 = vrot.slane %v318_v55, 2 }
  0x1f   : > { %v324_v59 = vmax.bf16 %v321_v53, %v262_v48  ;;  %v359_v16 = vrot.slane %v358_v4, 2 }
  0x20   : > { %v325_v63 = vmax.bf16 %v322_v57, %v263_v52  ;;  %v323_v3 = vmax.bf16 %v319_v61, %v310_v60 }
  0x21   : > { %v327_v0 = vmax.bf16 %v324_v59, %v263_v52 }
  0x22   : > { %v328_v5 = vmax.bf16 %v325_v63, %v264_v62  ;;  %v326_v9 = vmax.bf16 %v323_v3, %v264_v62 }
  0x23   : > { %v330_v8 = vmax.bf16 %v327_v0, %v557_v2 }
  0x24   : > { %v331_v12 = vmax.bf16 %v328_v5, %v562_v17  ;;  %v329_v15 = vmax.bf16 %v326_v9, %v265_v7 }
  0x25   : > { %v363_v13 = vmax.bf16 %v341_v1, %v330_v8 }
  0x26   : > { %v364_v18 = vmax.bf16 %v350_v6, %v331_v12  ;;  %v332_v20 = vmax.bf16 %v329_v15, %v268_v32 }
  0x27   : > { %v370_v19 = vsel %vm583_vm2, %v363_v13, %v369_v11 }
  0x28   : > { %371 = vst [vmem:[%s257_s7] sm:$0x3] %v370_v19  ;;  %v373_v2 = vsel %vm583_vm2, %v364_v18, %v372_v14  ;;  %v365_v22 = vmax.bf16 %v359_v16, %v332_v20 }
  0x29   : > { %374 = vst [vmem:[%s257_s7 + $0x2] sm:$0x3] %v373_v2 }
  0x2a   : > { %v376_v23 = vsel %vm583_vm2, %v365_v22, %v375_v21 }
  0x2b   : > { %377 = vst [vmem:[%s257_s7 + $0x4] sm:$0x3] %v376_v23 }
  0x2c PF: > { %s14_s15 = sadd.s32 1, %s500_s15  }
  0x2d   : > { %p11_p4 = scmp.ge.s32.totalorder %s14_s15, 4  }
  0x2f   :  { %13 = sbr.rel (!%p11_p4) target bundleno = 1 (0x1), region = 75 }

// kernel: onet_forward.14
= control target key start
LH: loop header
LB: loop body
LE: loop exit
PB: predicated region body
PF: predicated region fallthrough
CT: control target
= control target key end

     0   :  { %s362_s1 = inlined_call_operand.vmem [shape: bf16[256,128], index: 1, kind: input, shape index: {}]   ;;  %s363_s0 = inlined_call_operand.vmem [shape: bf16[8,256], index: 0, kind: input, shape index: {}]   ;;  %s364_s2 = inlined_call_operand.vmem [shape: f32[1,128], index: 2, kind: input, shape index: {}]   ;;  %s365_s3 = inlined_call_operand.vmem [shape: f32[1,128], index: 3, kind: input, shape index: {}]   ;;  %s366_s4 = inlined_call_operand.vmem [shape: bf16[8,128], index: 4, kind: output, shape index: {}]  }
   0x1   :  { %v259_v0 = vld [vmem:[%s362_s1 + $0x40] sm:$0xff]   ;;  %v261_v2 = vld [vmem:[%s362_s1 + $0x48] sm:$0xff]   ;;  %v263_v4 = vld [vmem:[%s362_s1 + $0x50] sm:$0xff]  }
   0x2   :  { %v260_v1 = vld [vmem:[%s362_s1] sm:$0xff]   ;;  %237 = vmatprep.subr.bf16.mxu0 %v259_v0  ;;  %v262_v3 = vld [vmem:[%s362_s1 + $0x8] sm:$0xff]   ;;  %v264_v5 = vld [vmem:[%s362_s1 + $0x10] sm:$0xff]  }
   0x3   :  { %238 = vmatpush3.bf16.msra.mxu0 %v260_v1  ;;  %v265_v6 = vld [vmem:[%s362_s1 + $0x58] sm:$0xff]   ;;  %v267_v8 = vld [vmem:[%s362_s1 + $0x60] sm:$0xff]   ;;  %v269_v10 = vld [vmem:[%s362_s1 + $0x68] sm:$0xff]  }
   0x4   :  { %239 = vmatprep.subr.bf16.mxu0 %v261_v2  ;;  %v266_v7 = vld [vmem:[%s362_s1 + $0x18] sm:$0xff]   ;;  %v268_v9 = vld [vmem:[%s362_s1 + $0x20] sm:$0xff]   ;;  %v270_v13 = vld [vmem:[%s362_s1 + $0x28] sm:$0xff]  }
   0x5   :  { %v18_v11 = vld [vmem:[%s363_s0] sm:$0xff]  ;;  %v271_v14 = vld [vmem:[%s362_s1 + $0x70] sm:$0xff]   ;;  %v273_v16 = vld [vmem:[%s362_s1 + $0x78] sm:$0xff]  }
   0x6   :  { %v219_v12 = vcombine.high %v18_v11, %v18_v11  ;;  %v272_v15 = vld [vmem:[%s362_s1 + $0x30] sm:$0xff]   ;;  %v274_v17 = vld [vmem:[%s362_s1 + $0x38] sm:$0xff]   ;;  %v218_v18 = vcombine.low %v18_v11, %v18_v11  ;;  %v217_v20 = vld [vmem:[%s364_s2] ss:$0 sm:$0xff] }
   0x7   :  { %240 = vmatpush3.bf16.msra.mxu0 %v262_v3  ;;  %v236_v24 = vld [vmem:[%s365_s3] ss:$0 sm:$0xff] }
   0x8   :  { %241 = vmatprep.subr.bf16.mxu0 %v263_v4  ;;  %193 = vmatprep.mubr.bf16.mxu0 %v219_v12 }
   0xb   :  { %242 = vmatpush3.bf16.msra.mxu0 %v264_v5 }
   0xc   :  { %243 = vmatprep.subr.bf16.mxu0 %v265_v6 }
   0xf   :  { %244 = vmatpush3.bf16.msra.mxu0 %v266_v7 }
  0x10   :  { %245 = vmatprep.subr.bf16.mxu0 %v267_v8 }
  0x13   :  { %246 = vmatpush3.bf16.msra.mxu0 %v268_v9 }
  0x14   :  { %247 = vmatprep.subr.bf16.mxu0 %v269_v10 }
  0x17   :  { %248 = vmatpush3.bf16.msra.mxu0 %v270_v13 }
  0x18   :  { %249 = vmatprep.subr.bf16.mxu0 %v271_v14 }
  0x1b   :  { %250 = vmatpush3.bf16.msra.mxu0 %v272_v15 }
  0x1c   :  { %251 = vmatprep.subr.bf16.mxu0 %v273_v16 }
  0x1f   :  { %252 = vmatpush3.bf16.msra.mxu0 %v274_v17 }
  0x22   :  { %194 = vmatmul.mubr.bf16.vlgmr.msra.gmra.mrb[0].mxu0 %v218_v18 }
  0xf5   :  { %v253_v19 = vpop.f32.mrb[0].mxu0 }
  0xf6   :  { %v254_v21 = vpop.f32.mrb[1].mxu0 }
  0xf7   :  { %v255_v22 = vadd.f32 %v254_v21, %v253_v19  ;;  %v256_v23 = vpop.f32.mrb[2].mxu0 }
  0xf8   :  { %v257_v25 = vpop.f32.mrb[3].mxu0 }
  0xf9   :  { %v196_v26 = vadd.f32 %v255_v22, %v217_v20 }
  0xfb   :  { %vm201_vm0 = vcmp.ge.f32.partialorder %v196_v26, 0.0  ;;  %v209_v27 = vmul.f32 %v236_v24, %v196_v26 }
  0xfd   :  { %v210_v28 = vsel %vm201_vm0, %v196_v26, %v209_v27 }
  0xfe   :  { %v211_v29 = vpack.c.bf16 %v210_v28, %v210_v28 }
 0x100   :  { %212 = vst [vmem:[%s366_s4] sm:$0xf] %v211_v29 }

// kernel: onet_forward.12
= control target key start
LH: loop header
LB: loop body
LE: loop exit
PB: predicated region body
PF: predicated region fallthrough
CT: control target
= control target key end

     0   :  { %v1318_v34 = vmov 0.0   ;;  %vm1319_vm0 = vmmov 0   ;;  %vm519_vm1 = vcmask 523264   ;;  %s1662_s1 = inlined_call_operand.vmem [shape: bf16[576,128], index: 1, kind: input, shape index: {}]   ;;  %s1663_s0 = inlined_call_operand.vmem [shape: bf16[98,576], index: 0, kind: input, shape index: {}]   ;;  %s1664_s2 = inlined_call_operand.vmem [shape: f32[1,128], index: 2, kind: input, shape index: {}]   ;;  %s1665_s3 = inlined_call_operand.vmem [shape: f32[1,128], index: 3, kind: input, shape index: {}]   ;;  %s1666_s4 = inlined_call_operand.vmem [shape: bf16[98,128], index: 4, kind: output, shape index: {}]  }
   0x1   :  { %v1235_v0 = vld [vmem:[%s1662_s1 + $0x40] sm:$0xff]   ;;  %v1239_v4 = vld [vmem:[%s1662_s1 + $0x48] sm:$0xff]   ;;  %v1243_v8 = vld [vmem:[%s1662_s1 + $0x50] sm:$0xff]  }
   0x2   :  { %v1236_v1 = vld [vmem:[%s1662_s1 + $0xc0] sm:$0xff]   ;;  %1062 = vmatprep.subr.bf16.mxu0 %v1235_v0  ;;  %v1240_v5 = vld [vmem:[%s1662_s1 + $0xc8] sm:$0xff]   ;;  %v1244_v9 = vld [vmem:[%s1662_s1 + $0xd0] sm:$0xff]  }
   0x3   :  { %v1237_v2 = vld [vmem:[%s1662_s1] sm:$0xff]   ;;  %1120 = vmatprep.subr.bf16.mxu1 %v1236_v1  ;;  %v1241_v6 = vld [vmem:[%s1662_s1 + $0x8] sm:$0xff]   ;;  %v1245_v10 = vld [vmem:[%s1662_s1 + $0x10] sm:$0xff]  }
   0x4   :  { %v1238_v3 = vld [vmem:[%s1662_s1 + $0x80] sm:$0xff]   ;;  %1063 = vmatpush3.bf16.msra.mxu0 %v1237_v2  ;;  %v1242_v7 = vld [vmem:[%s1662_s1 + $0x88] sm:$0xff]   ;;  %v1246_v11 = vld [vmem:[%s1662_s1 + $0x90] sm:$0xff]  }
   0x5   :  { %1121 = vmatpush3.bf16.msra.mxu1 %v1238_v3  ;;  %1064 = vmatprep.subr.bf16.mxu0 %v1239_v4  ;;  %v1247_v12 = vld [vmem:[%s1662_s1 + $0x58] sm:$0xff]   ;;  %v1251_v16 = vld [vmem:[%s1662_s1 + $0x60] sm:$0xff]   ;;  %v1255_v20 = vld [vmem:[%s1662_s1 + $0x68] sm:$0xff]  }
   0x6   :  { %1122 = vmatprep.subr.bf16.mxu1 %v1240_v5  ;;  %v1248_v13 = vld [vmem:[%s1662_s1 + $0xd8] sm:$0xff]   ;;  %v1252_v17 = vld [vmem:[%s1662_s1 + $0xe0] sm:$0xff]   ;;  %v1256_v21 = vld [vmem:[%s1662_s1 + $0xe8] sm:$0xff]  }
   0x7   :  { %v1249_v14 = vld [vmem:[%s1662_s1 + $0x18] sm:$0xff]   ;;  %v1253_v18 = vld [vmem:[%s1662_s1 + $0x20] sm:$0xff]   ;;  %v1257_v22 = vld [vmem:[%s1662_s1 + $0x28] sm:$0xff]  }
   0x8   :  { %1065 = vmatpush3.bf16.msra.mxu0 %v1241_v6  ;;  %v1250_v15 = vld [vmem:[%s1662_s1 + $0x98] sm:$0xff]   ;;  %v1254_v19 = vld [vmem:[%s1662_s1 + $0xa0] sm:$0xff]   ;;  %v1258_v23 = vld [vmem:[%s1662_s1 + $0xa8] sm:$0xff]  }
   0x9   :  { %1123 = vmatpush3.bf16.msra.mxu1 %v1242_v7  ;;  %1066 = vmatprep.subr.bf16.mxu0 %v1243_v8  ;;  %v1259_v24 = vld [vmem:[%s1662_s1 + $0x70] sm:$0xff]   ;;  %v1263_v28 = vld [vmem:[%s1662_s1 + $0x78] sm:$0xff]   ;;  %v1272_v36 = vld [vmem:[%s1663_s0 + $0xc] ss:$20 sps:$4 sm:$0xff]  }
   0xa   :  { %1124 = vmatprep.subr.bf16.mxu1 %v1244_v9  ;;  %v1260_v25 = vld [vmem:[%s1662_s1 + $0xf0] sm:$0xff]   ;;  %v1264_v29 = vld [vmem:[%s1662_s1 + $0xf8] sm:$0xff]   ;;  %v1273_v37 = vld [vmem:[%s1662_s1 + $0x100] sm:$0xff]   ;;  %661 = vmatprep.mubr.bf16.mxu1 %v1272_v36 }
   0xb   :  { %v1261_v26 = vld [vmem:[%s1662_s1 + $0x30] sm:$0xff]   ;;  %v1265_v30 = vld [vmem:[%s1662_s1 + $0x38] sm:$0xff]   ;;  %v1274_v38 = vld [vmem:[%s1663_s0 + $0x2c] ss:$20 sps:$4 sm:$0xff]  }
   0xc   :  { %1067 = vmatpush3.bf16.msra.mxu0 %v1245_v10  ;;  %v1262_v27 = vld [vmem:[%s1662_s1 + $0xb0] sm:$0xff]   ;;  %v1266_v31 = vld [vmem:[%s1662_s1 + $0xb8] sm:$0xff]   ;;  %v1284_v43 = vld [vmem:[%s1662_s1 + $0x108] sm:$0xff]  }
   0xd   :  { %1125 = vmatpush3.bf16.msra.mxu1 %v1246_v11  ;;  %1068 = vmatprep.subr.bf16.mxu0 %v1247_v12  ;;  %v1267_v32 = vld [vmem:[%s1663_s0] ss:$20 sps:$4 sm:$0xff]   ;;  %v1269_v33 = vld [vmem:[%s1663_s0 + $0x4] ss:$20 sps:$4 sm:$0xff]   ;;  %v1270_v35 = vld [vmem:[%s1663_s0 + $0x8] ss:$20 sps:$4 sm:$0xff]  }
   0xe   :  { %1126 = vmatprep.subr.bf16.mxu1 %v1248_v13  ;;  %573 = vmatprep.mubr.bf16.mxu0 %v1269_v33  ;;  %v1276_v39 = vld [vmem:[%s1663_s0 + $0x34] ss:$20 sps:$4 sm:$0xff]   ;;  %v1279_v41 = vld [vmem:[%s1663_s0 + $0x30] ss:$20 sps:$4 sm:$0xff]   ;;  %v1286_v47 = vld [vmem:[%s1663_s0 + $0x58] ss:$20 sps:$4 sm:$0xff]  }
   0xf   :  { %v1278_v40 = vld [vmem:[%s1663_s0 + $0x28] ss:$20 sps:$4 sm:$0xff]   ;;  %v1293_v45 = vld [vmem:[%s1662_s1 + $0x110] sm:$0xff]   ;;  %v1289_v49 = vld [vmem:[%s1663_s0 + $0x84] ss:$20 sps:$4 sm:$0xff]  }
  0x10   :  { %1069 = vmatpush3.bf16.msra.mxu0 %v1249_v14  ;;  %v1280_v42 = vld [vmem:[%s1663_s0 + $0x54] ss:$20 sps:$4 sm:$0xff]   ;;  %v1282_v44 = vld [vmem:[%s1663_s0 + $0x5c] ss:$20 sps:$4 sm:$0xff]   ;;  %v1291_v51 = vld [vmem:[%s1663_s0 + $0x78] ss:$20 sps:$4 sm:$0xff]  }
  0x11   :  { %1127 = vmatpush3.bf16.msra.mxu1 %v1250_v15  ;;  %1070 = vmatprep.subr.bf16.mxu0 %v1251_v16  ;;  %v1285_v46 = vld [vmem:[%s1663_s0 + $0x50] ss:$20 sps:$4 sm:$0xff]   ;;  %v1306_v50 = vld [vmem:[%s1662_s1 + $0x118] sm:$0xff]   ;;  %v1292_v52 = vld [vmem:[%s1663_s0 + $0x80] ss:$20 sps:$4 sm:$0xff]  }
  0x12   :  { %1128 = vmatprep.subr.bf16.mxu1 %v1252_v17  ;;  %v1287_v48 = vld [vmem:[%s1663_s0 + $0x7c] ss:$20 sps:$4 sm:$0xff]   ;;  %v1294_v53 = vld [vmem:[%s1663_s0 + $0xa4] ss:$20 sps:$4 sm:$0xff]   ;;  %v1296_v54 = vld [vmem:[%s1663_s0 + $0xac] ss:$20 sps:$4 sm:$0xff]  }
  0x13   :  { %v1298_v55 = vld [vmem:[%s1663_s0 + $0xa0] ss:$20 sps:$4 sm:$0xff]   ;;  %v1299_v56 = vld [vmem:[%s1663_s0 + $0xa8] ss:$20 sps:$4 sm:$0xff]   ;;  %v1305_v62 = vld [vmem:[%s1663_s0 + $0xd0] ss:$20 sps:$4 sm:$0xff]  }
  0x14   :  { %1071 = vmatpush3.bf16.msra.mxu0 %v1253_v18  ;;  %v1300_v57 = vld [vmem:[%s1663_s0 + $0xcc] ss:$20 sps:$4 sm:$0xff]   ;;  %v1302_v58 = vld [vmem:[%s1663_s0 + $0xd4] ss:$20 sps:$4 sm:$0xff]   ;;  %v55_v60 = vld [vmem:[%s1663_s0 + $0xf8] sm:$0x11] }
  0x15   :  { %1129 = vmatpush3.bf16.msra.mxu1 %v1254_v19  ;;  %1072 = vmatprep.subr.bf16.mxu0 %v1255_v20  ;;  %v54_v59 = vld [vmem:[%s1663_s0 + $0xf0] sm:$0x11]  ;;  %v1304_v61 = vld [vmem:[%s1663_s0 + $0xc8] ss:$20 sps:$4 sm:$0xff]   ;;  %v955_v0 = vcombine.high %v55_v60, %v55_v60  ;;  %v954_v2 = vcombine.low %v55_v60, %v55_v60  ;;  %v1313_v5 = vld [vmem:[%s1663_s0 + $0x38] ss:$20 sps:$4 sm:$0xff]  }
  0x16   :  { %1130 = vmatprep.subr.bf16.mxu1 %v1256_v21  ;;  %v953_v63 = vcombine.high %v54_v59, %v54_v59  ;;  %v952_v1 = vcombine.low %v54_v59, %v54_v59  ;;  %v1311_v3 = vld [vmem:[%s1663_s0 + $0x10] ss:$20 sps:$4 sm:$0xff]   ;;  %v1314_v6 = vld [vmem:[%s1663_s0 + $0xd8] ss:$20 sps:$4 sm:$0xff]   ;;  %v1315_v7 = vld [vmem:[%s1663_s0 + $0x60] ss:$20 sps:$4 sm:$0xff]  }
  0x17   :  { %v1312_v4 = vld [vmem:[%s1663_s0 + $0xb0] ss:$20 sps:$4 sm:$0xff]   ;;  %v1316_v8 = vld [vmem:[%s1663_s0 + $0x100] ss:$0 sps:$4 sm:$0x11]  }
  0x18   :  { %1073 = vmatpush3.bf16.msra.mxu0 %v1257_v22  ;;  %v1317_v9 = vld [vmem:[%s1663_s0 + $0x88] ss:$20 sps:$4 sm:$0xff]   ;;  %v1584_v11 = vld [vmem:[%s1664_s2] ss:$0 sm:$0xff] }
  0x19   :  { %1131 = vmatpush3.bf16.msra.mxu1 %v1258_v23  ;;  %1074 = vmatprep.subr.bf16.mxu0 %v1259_v24 }
  0x1a   :  { %1132 = vmatprep.subr.bf16.mxu1 %v1260_v25 }
  0x1c   :  { %1075 = vmatpush3.bf16.msra.mxu0 %v1261_v26 }
  0x1d   :  { %1133 = vmatpush3.bf16.msra.mxu1 %v1262_v27  ;;  %1076 = vmatprep.subr.bf16.mxu0 %v1263_v28 }
  0x1e   :  { %1134 = vmatprep.subr.bf16.mxu1 %v1264_v29 }
  0x20   :  { %1077 = vmatpush3.bf16.msra.mxu0 %v1265_v30 }
  0x21   :  { %1135 = vmatpush3.bf16.msra.mxu1 %v1266_v31  ;;  %1189 = vmatprep.subr.bf16.mxu0 %v1318_v34 }
  0x22   :  { %1225 = vmatprep.subr.bf16.mxu1 %v1318_v34 }
  0x23   :  { %574 = vmatmul.mubr.bf16.vlgmr.msra.gmra.mrb[0].mxu0 %v1267_v32 }
  0x24   :  { %662 = vmatmul.mubr.bf16.vlgmr.msra.gmra.mrb[0].mxu1 %v1270_v35  ;;  %1190 = vmatpush3.bf16.msra.mxu0 %v1273_v37 }
  0x25   :  { %581 = vmatprep.mubr.bf16.mxu0 %v1274_v38  ;;  %1229 = vmatpush3.bf16.msra.mxu1 %v1273_v37 }
  0x26   :  { %669 = vmatprep.mubr.bf16.mxu1 %v1276_v39  ;;  %1191 = vmatprep.subr.bf16.mxu0 %v1318_v34 }
  0x27   :  { %1226 = vmatprep.subr.bf16.mxu1 %v1318_v34 }
  0x28   :  { %1192 = vmatpush3.bf16.msra.mxu0 %v1284_v43 }
  0x29   :  { %1230 = vmatpush3.bf16.msra.mxu1 %v1284_v43  ;;  %1193 = vmatprep.subr.bf16.mxu0 %v1318_v34 }
  0x2a   :  { %1227 = vmatprep.subr.bf16.mxu1 %v1318_v34 }
  0x2b   :  { %582 = vmatmul.mubr.bf16.gmra.mrb[4].mxu0 %v1278_v40 }
  0x2c   :  { %670 = vmatmul.mubr.bf16.gmra.mrb[4].mxu1 %v1279_v41  ;;  %589 = vmatprep.mubr.bf16.mxu0 %v1280_v42 }
  0x2d   :  { %677 = vmatprep.mubr.bf16.mxu1 %v1282_v44  ;;  %1194 = vmatpush3.bf16.msra.mxu0 %v1293_v45 }
  0x2e   :  { %1231 = vmatpush3.bf16.msra.mxu1 %v1293_v45  ;;  %1195 = vmatprep.subr.bf16.mxu0 %v1318_v34 }
  0x2f   :  { %1228 = vmatprep.subr.bf16.mxu1 %v1318_v34 }
  0x31   :  { %1196 = vmatpush3.bf16.msra.mxu0 %v1306_v50 }
  0x32   :  { %1232 = vmatpush3.bf16.msra.mxu1 %v1306_v50 }
  0x33   :  { %590 = vmatmul.mubr.bf16.gmra.mrb[8].mxu0 %v1285_v46 }
  0x34   :  { %678 = vmatmul.mubr.bf16.gmra.mrb[8].mxu1 %v1286_v47  ;;  %597 = vmatprep.mubr.bf16.mxu0 %v1287_v48 }
  0x35   :  { %685 = vmatprep.mubr.bf16.mxu1 %v1289_v49 }
  0x3b   :  { %598 = vmatmul.mubr.bf16.gmra.mrb[12].mxu0 %v1291_v51 }
  0x3c   :  { %686 = vmatmul.mubr.bf16.gmra.mrb[12].mxu1 %v1292_v52  ;;  %605 = vmatprep.mubr.bf16.mxu0 %v1294_v53 }
  0x3d   :  { %693 = vmatprep.mubr.bf16.mxu1 %v1296_v54 }
  0x43   :  { %606 = vmatmul.mubr.bf16.gmra.mrb[16].mxu0 %v1298_v55 }
  0x44   :  { %694 = vmatmul.mubr.bf16.gmra.mrb[16].mxu1 %v1299_v56  ;;  %613 = vmatprep.mubr.bf16.mxu0 %v1300_v57 }
  0x45   :  { %701 = vmatprep.mubr.bf16.mxu1 %v1302_v58 }
  0x4b   :  { %614 = vmatmul.mubr.bf16.gmra.mrb[20].mxu0 %v1304_v61 }
  0x4c   :  { %702 = vmatmul.mubr.bf16.gmra.mrb[20].mxu1 %v1305_v62  ;;  %621 = vmatprep.mubr.bf16.mxu0 %v953_v63 }
  0x4d   :  { %709 = vmatprep.mubr.bf16.mxu1 %v955_v0 }
  0x53   :  { %622 = vmatmul.mubr.bf16.gmra.mrb[24].mxu0 %v952_v1 }
  0x54   :  { %710 = vmatmul.mubr.bf16.gmra.mrb[24].mxu1 %v954_v2  ;;  %1197 = vmatprep.mubr.msk.bf16.mxu0 %vm1319_vm0, %v1318_v34 }
  0x55   :  { %1213 = vmatprep.mubr.msk.bf16.mxu1 %vm1319_vm0, %v1318_v34 }
  0x5b   :  { %1198 = vmatmul.mubr.msk.bf16.vlgmr.msra.gmra.mrb[28].mxu0 %vm519_vm1, %v1311_v3 }
  0x5c   :  { %1214 = vmatmul.mubr.msk.bf16.vlgmr.msra.gmra.mrb[28].mxu1 %vm519_vm1, %v1312_v4  ;;  %1201 = vmatprep.mubr.msk.bf16.mxu0 %vm1319_vm0, %v1318_v34 }
  0x5d   :  { %1217 = vmatprep.mubr.msk.bf16.mxu1 %vm1319_vm0, %v1318_v34 }
  0x63   :  { %1202 = vmatmul.mubr.msk.bf16.gmra.mrb[32].mxu0 %vm519_vm1, %v1313_v5 }
  0x64   :  { %1218 = vmatmul.mubr.msk.bf16.gmra.mrb[32].mxu1 %vm519_vm1, %v1314_v6  ;;  %1205 = vmatprep.mubr.msk.bf16.mxu0 %vm1319_vm0, %v1318_v34 }
  0x65   :  { %1221 = vmatprep.mubr.msk.bf16.mxu1 %vm1319_vm0, %v1318_v34 }
  0x6b   :  { %1206 = vmatmul.mubr.msk.bf16.gmra.mrb[36].mxu0 %vm519_vm1, %v1315_v7 }
  0x6c   :  { %1222 = vmatmul.mubr.msk.bf16.gmra.mrb[36].mxu1 %vm519_vm1, %v1316_v8  ;;  %1209 = vmatprep.mubr.msk.bf16.mxu0 %vm1319_vm0, %v1318_v34 }
  0x73   :  { %1210 = vmatmul.mubr.msk.bf16.gmra.mrb[40].mxu0 %vm519_vm1, %v1317_v9 }
  0xf6   :  { %v1078_v10 = vpop.f32.mrb[0].mxu0 }
  0xf7   :  { %v1079_v12 = vpop.f32.mrb[1].mxu0  ;;  %v1136_v13 = vpop.f32.mrb[0].mxu1 }
  0xf8   :  { %v1080_v14 = vadd.f32 %v1079_v12, %v1078_v10  ;;  %v1081_v15 = vpop.f32.mrb[2].mxu0  ;;  %v1137_v16 = vpop.f32.mrb[1].mxu1 }
  0xf9   :  { %v1082_v17 = vpop.f32.mrb[3].mxu0  ;;  %v1138_v18 = vadd.f32 %v1137_v16, %v1136_v13  ;;  %v1139_v19 = vpop.f32.mrb[2].mxu1 }
  0xfa   :  { %v576_v20 = vadd.f32 %v1080_v14, %v1584_v11  ;;  %v1083_v21 = vadd.f32 %v1082_v17, %v1081_v15  ;;  %v1140_v22 = vpop.f32.mrb[3].mxu1 }
  0xfb   :  { %v1141_v23 = vadd.f32 %v1140_v22, %v1139_v19 }
  0xfc   :  { %v579_v24 = vadd.f32 %v1083_v21, %v1584_v11  ;;  %v1588_v25 = vadd.f32 %v1138_v18, %v576_v20 }
  0xfe   :  { %v1084_v26 = vpop.f32.mrb[4].mxu0  ;;  %v1590_v27 = vadd.f32 %v1141_v23, %v579_v24 }
  0xff   :  { %v1085_v28 = vpop.f32.mrb[5].mxu0  ;;  %v1142_v29 = vpop.f32.mrb[4].mxu1 }
 0x100   :  { %v1086_v30 = vadd.f32 %v1085_v28, %v1084_v26  ;;  %v1087_v31 = vpop.f32.mrb[6].mxu0  ;;  %v1143_v32 = vpop.f32.mrb[5].mxu1 }
 0x101   :  { %v1088_v33 = vpop.f32.mrb[7].mxu0  ;;  %v1144_v34 = vadd.f32 %v1143_v32, %v1142_v29  ;;  %v1145_v35 = vpop.f32.mrb[6].mxu1 }
 0x102   :  { %v584_v36 = vadd.f32 %v1086_v30, %v1584_v11  ;;  %v1089_v37 = vadd.f32 %v1088_v33, %v1087_v31  ;;  %v1146_v38 = vpop.f32.mrb[7].mxu1 }
 0x103   :  { %v1147_v39 = vadd.f32 %v1146_v38, %v1145_v35 }
 0x104   :  { %v587_v40 = vadd.f32 %v1089_v37, %v1584_v11  ;;  %v1594_v41 = vadd.f32 %v1144_v34, %v584_v36 }
 0x106   :  { %v1090_v42 = vpop.f32.mrb[8].mxu0  ;;  %v1596_v43 = vadd.f32 %v1147_v39, %v587_v40 }
 0x107   :  { %v1091_v44 = vpop.f32.mrb[9].mxu0  ;;  %v1148_v45 = vpop.f32.mrb[8].mxu1 }
 0x108   :  { %v1092_v46 = vadd.f32 %v1091_v44, %v1090_v42  ;;  %v1093_v47 = vpop.f32.mrb[10].mxu0  ;;  %v1149_v48 = vpop.f32.mrb[9].mxu1 }
 0x109   :  { %v1094_v49 = vpop.f32.mrb[11].mxu0  ;;  %v1150_v50 = vadd.f32 %v1149_v48, %v1148_v45  ;;  %v1151_v51 = vpop.f32.mrb[10].mxu1 }
 0x10a   :  { %v592_v52 = vadd.f32 %v1092_v46, %v1584_v11  ;;  %v1095_v53 = vadd.f32 %v1094_v49, %v1093_v47  ;;  %v1152_v54 = vpop.f32.mrb[11].mxu1 }
 0x10b   :  { %v1153_v55 = vadd.f32 %v1152_v54, %v1151_v51 }
 0x10c   :  { %v595_v56 = vadd.f32 %v1095_v53, %v1584_v11  ;;  %v1600_v57 = vadd.f32 %v1150_v50, %v592_v52 }
 0x10e   :  { %v1096_v58 = vpop.f32.mrb[12].mxu0  ;;  %v1602_v59 = vadd.f32 %v1153_v55, %v595_v56 }
 0x10f   :  { %v1097_v60 = vpop.f32.mrb[13].mxu0  ;;  %v1154_v61 = vpop.f32.mrb[12].mxu1 }
 0x110   :  { %v1098_v62 = vadd.f32 %v1097_v60, %v1096_v58  ;;  %v1099_v63 = vpop.f32.mrb[14].mxu0  ;;  %v1155_v0 = vpop.f32.mrb[13].mxu1 }
 0x111   :  { %v1100_v1 = vpop.f32.mrb[15].mxu0  ;;  %v1156_v2 = vadd.f32 %v1155_v0, %v1154_v61  ;;  %v1157_v3 = vpop.f32.mrb[14].mxu1 }
 0x112   :  { %v600_v4 = vadd.f32 %v1098_v62, %v1584_v11  ;;  %v1101_v5 = vadd.f32 %v1100_v1, %v1099_v63  ;;  %v1158_v6 = vpop.f32.mrb[15].mxu1  ;;  %v1618_v63 = vld [vmem:[%s1665_s3] ss:$0 sm:$0xff] }
 0x113   :  { %v1159_v7 = vadd.f32 %v1158_v6, %v1157_v3 }
 0x114   :  { %v603_v8 = vadd.f32 %v1101_v5, %v1584_v11  ;;  %v1606_v9 = vadd.f32 %v1156_v2, %v600_v4 }
 0x116   :  { %v1102_v10 = vpop.f32.mrb[16].mxu0  ;;  %v1608_v12 = vadd.f32 %v1159_v7, %v603_v8 }
 0x117   :  { %v1103_v13 = vpop.f32.mrb[17].mxu0  ;;  %v1160_v14 = vpop.f32.mrb[16].mxu1 }
 0x118   :  { %v1104_v15 = vadd.f32 %v1103_v13, %v1102_v10  ;;  %v1105_v16 = vpop.f32.mrb[18].mxu0  ;;  %v1161_v17 = vpop.f32.mrb[17].mxu1 }
 0x119   :  { %v1106_v18 = vpop.f32.mrb[19].mxu0  ;;  %v1162_v19 = vadd.f32 %v1161_v17, %v1160_v14  ;;  %v1163_v20 = vpop.f32.mrb[18].mxu1 }
 0x11a   :  { %v608_v21 = vadd.f32 %v1104_v15, %v1584_v11  ;;  %v1107_v22 = vadd.f32 %v1106_v18, %v1105_v16  ;;  %v1164_v23 = vpop.f32.mrb[19].mxu1 }
 0x11b   :  { %v1165_v24 = vadd.f32 %v1164_v23, %v1163_v20 }
 0x11c   :  { %v611_v26 = vadd.f32 %v1107_v22, %v1584_v11  ;;  %v696_v28 = vadd.f32 %v1162_v19, %v608_v21 }
 0x11e   :  { %v1108_v29 = vpop.f32.mrb[20].mxu0  ;;  %v699_v30 = vadd.f32 %v1165_v24, %v611_v26 }
 0x11f   :  { %v1109_v31 = vpop.f32.mrb[21].mxu0  ;;  %v1166_v32 = vpop.f32.mrb[20].mxu1 }
 0x120   :  { %v1110_v33 = vadd.f32 %v1109_v31, %v1108_v29  ;;  %v1111_v34 = vpop.f32.mrb[22].mxu0  ;;  %v1167_v35 = vpop.f32.mrb[21].mxu1 }
 0x121   :  { %v1112_v36 = vpop.f32.mrb[23].mxu0  ;;  %v1168_v37 = vadd.f32 %v1167_v35, %v1166_v32  ;;  %v1169_v38 = vpop.f32.mrb[22].mxu1 }
 0x122   :  { %v616_v39 = vadd.f32 %v1110_v33, %v1584_v11  ;;  %v1113_v40 = vadd.f32 %v1112_v36, %v1111_v34  ;;  %v1170_v42 = vpop.f32.mrb[23].mxu1 }
 0x123   :  { %v1171_v44 = vadd.f32 %v1170_v42, %v1169_v38 }
 0x124   :  { %v619_v45 = vadd.f32 %v1113_v40, %v1584_v11  ;;  %v704_v46 = vadd.f32 %v1168_v37, %v616_v39 }
 0x126   :  { %v1114_v47 = vpop.f32.mrb[24].mxu0  ;;  %v707_v48 = vadd.f32 %v1171_v44, %v619_v45 }
 0x127   :  { %v1115_v49 = vpop.f32.mrb[25].mxu0  ;;  %v1172_v50 = vpop.f32.mrb[24].mxu1 }
 0x128   :  { %v1116_v51 = vadd.f32 %v1115_v49, %v1114_v47  ;;  %v1117_v52 = vpop.f32.mrb[26].mxu0  ;;  %v1173_v53 = vpop.f32.mrb[25].mxu1 }
 0x129   :  { %v1118_v54 = vpop.f32.mrb[27].mxu0  ;;  %v1174_v55 = vadd.f32 %v1173_v53, %v1172_v50  ;;  %v1175_v56 = vpop.f32.mrb[26].mxu1 }
 0x12a   :  { %v624_v58 = vadd.f32 %v1116_v51, %v1584_v11  ;;  %v1176_v60 = vpop.f32.mrb[27].mxu1 }
 0x12c   :  { %v712_v61 = vadd.f32 %v1174_v55, %v624_v58 }
 0x12e   :  { %v751_v62 = vpop.f32.mrb[28].mxu0 }
 0x12f   :  { %v752_v0 = vadd.f32 %v751_v62, %v1588_v25  ;;  %v783_v1 = vpop.f32.mrb[28].mxu1  ;;  %v1199_v2 = vpop.f32.mrb[29].mxu0 }
 0x130   :  { %v784_v3 = vadd.f32 %v783_v1, %v696_v28  ;;  %v1215_v4 = vpop.f32.mrb[29].mxu1  ;;  %v754_v5 = vpop.f32.mrb[30].mxu0 }
 0x131   :  { %v825_v6 = vmul.f32 %v1618_v63, %v752_v0  ;;  %v755_v7 = vadd.f32 %v754_v5, %v1590_v27  ;;  %v786_v11 = vpop.f32.mrb[30].mxu1  ;;  %v1200_v8 = vpop.f32.mrb[31].mxu0  ;;  %vm805_vm2 = vcmp.ge.f32.partialorder %v752_v0, 0.0 }
 0x132   :  { %v833_v10 = vmul.f32 %v1618_v63, %v784_v3  ;;  %v787_v13 = vadd.f32 %v786_v11, %v699_v30  ;;  %v1216_v14 = vpop.f32.mrb[31].mxu1  ;;  %vm813_vm3 = vcmp.ge.f32.partialorder %v784_v3, 0.0 }
 0x133   :  { %vm806_vm4 = vcmp.ge.f32.partialorder %v755_v7, 0.0  ;;  %v826_v25 = vmul.f32 %v1618_v63, %v755_v7  ;;  %v838_v16 = vsel %vm805_vm2, %v752_v0, %v825_v6 }
 0x134   :  { %vm814_vm5 = vcmp.ge.f32.partialorder %v787_v13, 0.0  ;;  %v834_v15 = vmul.f32 %v1618_v63, %v787_v13  ;;  %v846_v18 = vsel %vm813_vm3, %v784_v3, %v833_v10 }
 0x135   :  { %v839_v17 = vsel %vm806_vm4, %v755_v7, %v826_v25 }
 0x136   :  { %v1030_v19 = vpack.c.bf16 %v839_v17, %v838_v16  ;;  %v847_v20 = vsel %vm814_vm5, %v787_v13, %v834_v15  ;;  %v759_v27 = vpop.f32.mrb[32].mxu0 }
 0x137   :  { %v1050_v21 = vpack.c.bf16 %v847_v20, %v846_v18  ;;  %v760_v22 = vadd.f32 %v759_v27, %v1594_v41  ;;  %v791_v23 = vpop.f32.mrb[32].mxu1  ;;  %v1203_v24 = vpop.f32.mrb[33].mxu0 }
 0x138   :  { %1031 = vst [vmem:[%s1666_s4] sm:$0xff] %v1030_v19   ;;  %v792_v26 = vadd.f32 %v791_v23, %v704_v46  ;;  %v1219_v28 = vpop.f32.mrb[33].mxu1  ;;  %v762_v29 = vpop.f32.mrb[34].mxu0 }
 0x139   :  { %1060 = vst [vmem:[%s1666_s4 + $0x20] sm:$0xff] %v1050_v21   ;;  %v827_v30 = vmul.f32 %v1618_v63, %v760_v22  ;;  %v763_v31 = vadd.f32 %v762_v29, %v1596_v43  ;;  %v794_v32 = vpop.f32.mrb[34].mxu1  ;;  %v1204_v33 = vpop.f32.mrb[35].mxu0  ;;  %vm807_vm6 = vcmp.ge.f32.partialorder %v760_v22, 0.0 }
 0x13a   :  { %v835_v41 = vmul.f32 %v1618_v63, %v792_v26  ;;  %v795_v34 = vadd.f32 %v794_v32, %v707_v48  ;;  %v1220_v35 = vpop.f32.mrb[35].mxu1  ;;  %vm815_vm7 = vcmp.ge.f32.partialorder %v792_v26, 0.0 }
 0x13b   :  { %vm808_vm8 = vcmp.ge.f32.partialorder %v763_v31, 0.0  ;;  %v828_v36 = vmul.f32 %v1618_v63, %v763_v31  ;;  %v840_v38 = vsel %vm807_vm6, %v760_v22, %v827_v30 }
 0x13c   :  { %vm816_vm9 = vcmp.ge.f32.partialorder %v795_v34, 0.0  ;;  %v836_v37 = vmul.f32 %v1618_v63, %v795_v34  ;;  %v848_v40 = vsel %vm815_vm7, %v792_v26, %v835_v41 }
 0x13d   :  { %v841_v39 = vsel %vm808_vm8, %v763_v31, %v828_v36 }
 0x13e   :  { %v1035_v42 = vpack.c.bf16 %v841_v39, %v840_v38  ;;  %v849_v44 = vsel %vm816_vm9, %v795_v34, %v836_v37  ;;  %v767_v43 = vpop.f32.mrb[36].mxu0 }
 0x13f   :  { %v1055_v45 = vpack.c.bf16 %v849_v44, %v848_v40  ;;  %v768_v46 = vadd.f32 %v767_v43, %v1600_v57  ;;  %v799_v47 = vpop.f32.mrb[36].mxu1  ;;  %v1207_v49 = vpop.f32.mrb[37].mxu0 }
 0x140   :  { %1057 = vst [vmem:[%s1666_s4 + $0x8] sm:$0xff] %v1035_v42   ;;  %v800_v48 = vadd.f32 %v799_v47, %v712_v61  ;;  %v770_v50 = vpop.f32.mrb[38].mxu0  ;;  %v1223_v51 = vpop.f32.mrb[37].mxu1 }
 0x141   :  { %1061 = vst [vmem:[%s1666_s4 + $0x28] sm:$0xff] %v1055_v45   ;;  %v829_v52 = vmul.f32 %v1618_v63, %v768_v46  ;;  %v771_v53 = vadd.f32 %v770_v50, %v1602_v59  ;;  %v1208_v54 = vpop.f32.mrb[39].mxu0  ;;  %v802_v55 = vpop.f32.mrb[38].mxu1  ;;  %vm809_vm10 = vcmp.ge.f32.partialorder %v768_v46, 0.0 }
 0x142   :  { %vm817_vm11 = vcmp.ge.f32.partialorder %v800_v48, 0.0  ;;  %v837_v57 = vmul.f32 %v1618_v63, %v800_v48  ;;  %v1224_v56 = vpop.f32.mrb[39].mxu1 }
 0x143   :  { %vm810_vm12 = vcmp.ge.f32.partialorder %v771_v53, 0.0  ;;  %v830_v58 = vmul.f32 %v1618_v63, %v771_v53  ;;  %v842_v61 = vsel %vm809_vm10, %v768_v46, %v829_v52 }
 0x144   :  { %v850_v60 = vsel %vm817_vm11, %v800_v48, %v837_v57 }
 0x145   :  { %v1026_v62 = vpack.c.bf16 %v850_v60, %v850_v60  ;;  %v843_v0 = vsel %vm810_vm12, %v771_v53, %v830_v58 }
 0x146   :  { %v1040_v1 = vpack.c.bf16 %v843_v0, %v842_v61  ;;  %v775_v2 = vpop.f32.mrb[40].mxu0 }
 0x147   :  { %916 = vst [vmem:[%s1666_s4 + $0x30] sm:$0x1] %v1026_v62  ;;  %v776_v59 = vadd.f32 %v775_v2, %v1606_v9  ;;  %v1211_v3 = vpop.f32.mrb[41].mxu0 }
 0x148   :  { %1058 = vst [vmem:[%s1666_s4 + $0x10] sm:$0xff] %v1040_v1   ;;  %v778_v4 = vpop.f32.mrb[42].mxu0 }
 0x149   :  { %v831_v5 = vmul.f32 %v1618_v63, %v776_v59  ;;  %v779_v6 = vadd.f32 %v778_v4, %v1608_v12  ;;  %v1212_v7 = vpop.f32.mrb[43].mxu0  ;;  %vm811_vm13 = vcmp.ge.f32.partialorder %v776_v59, 0.0 }
 0x14b   :  { %vm812_vm14 = vcmp.ge.f32.partialorder %v779_v6, 0.0  ;;  %v832_v11 = vmul.f32 %v1618_v63, %v779_v6  ;;  %v844_v8 = vsel %vm811_vm13, %v776_v59, %v831_v5 }
 0x14d   :  { %v845_v10 = vsel %vm812_vm14, %v779_v6, %v832_v11 }
 0x14e   :  { %v1045_v13 = vpack.c.bf16 %v845_v10, %v844_v8 }
 0x150   :  { %1059 = vst [vmem:[%s1666_s4 + $0x18] sm:$0xff] %v1045_v13  }

// kernel: onet_forward.15
= control target key start
LH: loop header
LB: loop body
LE: loop exit
PB: predicated region body
PF: predicated region fallthrough
CT: control target
= control target key end

     0   :  { %v97_v9 = vlaneseq  ;;  %v1337_v10 = vmov 1966171168   ;;  %s1773_s0 = inlined_call_operand.vmem [shape: bf16[2,512], index: 0, kind: input, shape index: {}]   ;;  %s1774_s1 = inlined_call_operand.vmem [shape: bf16[512,256], index: 1, kind: input, shape index: {}]   ;;  %s1775_s2 = inlined_call_operand.vmem [shape: f32[1,256], index: 2, kind: input, shape index: {}]   ;;  %s1776_s3 = inlined_call_operand.vmem [shape: bf16[256,256], index: 3, kind: input, shape index: {}]   ;;  %s1777_s4 = inlined_call_operand.vmem [shape: f32[1,256], index: 4, kind: input, shape index: {}]   ;;  %s1778_s5 = inlined_call_operand.vmem [shape: bf16[256,128], index: 5, kind: input, shape index: {}]   ;;  %s1779_s6 = inlined_call_operand.vmem [shape: f32[1,128], index: 6, kind: input, shape index: {}]   ;;  %s1780_s7 = inlined_call_operand.vmem [shape: f32[2,128], index: 7, kind: output, shape index: {0}]   ;;  %s1781_s8 = inlined_call_operand.hbm [shape: f32[2,256], index: 8, kind: output, shape index: {1}]  }
   0x1   :  { %v1149_v0 = vld [vmem:[%s1774_s1 + $0x4] ss:$8 sps:$4 sm:$0xff]   ;;  %v1151_v1 = vld [vmem:[%s1774_s1] ss:$8 sps:$4 sm:$0xff]   ;;  %v1152_v2 = vld [vmem:[%s1774_s1 + $0x14] ss:$8 sps:$4 sm:$0xff]   ;;  %v117_v11 = vunpack.c.l.s4 %v1337_v10 }
   0x2   :  { %456 = vmatprep.subr.bf16.mxu0 %v1149_v0  ;;  %v1154_v3 = vld [vmem:[%s1774_s1 + $0x10] ss:$8 sps:$4 sm:$0xff]   ;;  %v1155_v4 = vld [vmem:[%s1774_s1 + $0x24] ss:$8 sps:$4 sm:$0xff]   ;;  %v1157_v5 = vld [vmem:[%s1774_s1 + $0x20] ss:$8 sps:$4 sm:$0xff]  }
   0x3   :  { %457 = vmatpush1.bf16.msra.mxu0 %v1151_v1  ;;  %v1158_v6 = vld [vmem:[%s1774_s1 + $0x34] ss:$8 sps:$4 sm:$0xff]   ;;  %v1160_v7 = vld [vmem:[%s1774_s1 + $0x30] ss:$8 sps:$4 sm:$0xff]   ;;  %v1161_v8 = vld [vmem:[%s1774_s1 + $0x44] ss:$8 sps:$4 sm:$0xff]   ;;  %v118_v15 = vunpack.c.0.s8 %v117_v11 }
   0x4   :  { %458 = vmatprep.subr.bf16.mxu0 %v1152_v2  ;;  %v1163_v12 = vld [vmem:[%s1774_s1 + $0x40] ss:$8 sps:$4 sm:$0xff]   ;;  %v1164_v13 = vld [vmem:[%s1774_s1 + $0x54] ss:$8 sps:$4 sm:$0xff]   ;;  %v1418_v14 = vshrl.u32 %v97_v9, 7 }
   0x5   :  { %v1166_v16 = vld [vmem:[%s1774_s1 + $0x50] ss:$8 sps:$4 sm:$0xff]   ;;  %v1167_v17 = vld [vmem:[%s1774_s1 + $0x64] ss:$8 sps:$4 sm:$0xff]   ;;  %v1169_v21 = vld [vmem:[%s1774_s1 + $0x60] ss:$8 sps:$4 sm:$0xff]  }
   0x6   :  { %v1427_v18 = vsub.s32 %v118_v15, %v1418_v14  ;;  %v1432_v19 = vld.sshfl [vmem:[%s1773_s0] sm:$0x33 pattern:$0x75316420]  ;;  %v1170_v22 = vld [vmem:[%s1774_s1 + $0x74] ss:$8 sps:$4 sm:$0xff]  }
   0x7   :  { %459 = vmatpush1.bf16.msra.mxu0 %v1154_v3  ;;  %v115_v20 = vcombine.high %v1432_v19, %v1432_v19  ;;  %v1172_v24 = vld [vmem:[%s1774_s1 + $0x70] ss:$8 sps:$4 sm:$0xff]   ;;  %v1173_v25 = vld [vmem:[%s1774_s1 + $0x84] ss:$8 sps:$4 sm:$0xff]   ;;  %v1175_v26 = vld [vmem:[%s1774_s1 + $0x80] ss:$8 sps:$4 sm:$0xff]  }
   0x8   :  { %460 = vmatprep.subr.bf16.mxu0 %v1155_v4  ;;  %v1176_v27 = vld [vmem:[%s1774_s1 + $0x94] ss:$8 sps:$4 sm:$0xff]   ;;  %v1178_v28 = vld [vmem:[%s1774_s1 + $0x90] ss:$8 sps:$4 sm:$0xff]   ;;  %v1179_v29 = vld [vmem:[%s1774_s1 + $0xa4] ss:$8 sps:$4 sm:$0xff]   ;;  %v1538_v54 = vrot.slane %v1432_v19, %v1427_v18 }
   0x9   :  { %v1443_v23 = vrot.slane %v115_v20, %v1427_v18  ;;  %v1181_v30 = vld [vmem:[%s1774_s1 + $0xa0] ss:$8 sps:$4 sm:$0xff]   ;;  %v1182_v31 = vld [vmem:[%s1774_s1 + $0xb4] ss:$8 sps:$4 sm:$0xff]   ;;  %v1184_v32 = vld [vmem:[%s1774_s1 + $0xb0] ss:$8 sps:$4 sm:$0xff]  }
   0xa   :  { %v1185_v33 = vld [vmem:[%s1774_s1 + $0xc4] ss:$8 sps:$4 sm:$0xff]   ;;  %v1247_v35 = vld [vmem:[%s1776_s3] ss:$8 sps:$4 sm:$0xff]   ;;  %v1248_v36 = vld [vmem:[%s1776_s3 + $0x14] ss:$8 sps:$4 sm:$0xff]  }
   0xb   :  { %461 = vmatpush1.bf16.msra.mxu0 %v1157_v5  ;;  %488 = vmatprep.mubr.bf16.mxu0 %v1443_v23  ;;  %v1245_v34 = vld [vmem:[%s1776_s3 + $0x4] ss:$8 sps:$4 sm:$0xff]   ;;  %v1187_v37 = vld [vmem:[%s1774_s1 + $0xc0] ss:$8 sps:$4 sm:$0xff]   ;;  %v1250_v38 = vld [vmem:[%s1776_s3 + $0x10] ss:$8 sps:$4 sm:$0xff]   ;;  %v131_v57 = vcombine.high %v1443_v23, %v1443_v23 }
   0xc   :  { %462 = vmatprep.subr.bf16.mxu0 %v1158_v6  ;;  %744 = vmatprep.subr.bf16.mxu1 %v1245_v34  ;;  %v1188_v39 = vld [vmem:[%s1774_s1 + $0xd4] ss:$8 sps:$4 sm:$0xff]   ;;  %v1251_v40 = vld [vmem:[%s1776_s3 + $0x24] ss:$8 sps:$4 sm:$0xff]   ;;  %v1190_v41 = vld [vmem:[%s1774_s1 + $0xd0] ss:$8 sps:$4 sm:$0xff]  }
   0xd   :  { %745 = vmatpush1.bf16.msra.mxu1 %v1247_v35  ;;  %v1253_v42 = vld [vmem:[%s1776_s3 + $0x20] ss:$8 sps:$4 sm:$0xff]   ;;  %v1191_v43 = vld [vmem:[%s1774_s1 + $0xe4] ss:$8 sps:$4 sm:$0xff]   ;;  %v1254_v44 = vld [vmem:[%s1776_s3 + $0x34] ss:$8 sps:$4 sm:$0xff]  }
   0xe   :  { %746 = vmatprep.subr.bf16.mxu1 %v1248_v36  ;;  %v1193_v45 = vld [vmem:[%s1774_s1 + $0xe0] ss:$8 sps:$4 sm:$0xff]   ;;  %v1256_v46 = vld [vmem:[%s1776_s3 + $0x30] ss:$8 sps:$4 sm:$0xff]   ;;  %v1194_v47 = vld [vmem:[%s1774_s1 + $0xf4] ss:$8 sps:$4 sm:$0xff]  }
   0xf   :  { %463 = vmatpush1.bf16.msra.mxu0 %v1160_v7  ;;  %v1257_v48 = vld [vmem:[%s1776_s3 + $0x44] ss:$8 sps:$4 sm:$0xff]   ;;  %v1196_v49 = vld [vmem:[%s1774_s1 + $0xf0] ss:$8 sps:$4 sm:$0xff]   ;;  %v1259_v50 = vld [vmem:[%s1776_s3 + $0x40] ss:$8 sps:$4 sm:$0xff]  }
  0x10   :  { %464 = vmatprep.subr.bf16.mxu0 %v1161_v8  ;;  %v1199_v51 = vld [vmem:[%s1774_s1 + $0x104] ss:$8 sps:$4 sm:$0xff]   ;;  %v1260_v52 = vld [vmem:[%s1776_s3 + $0x54] ss:$8 sps:$4 sm:$0xff]   ;;  %v1197_v53 = vld [vmem:[%s1774_s1 + $0x100] ss:$8 sps:$4 sm:$0xff]  }
  0x11   :  { %747 = vmatpush1.bf16.msra.mxu1 %v1250_v38  ;;  %v1202_v55 = vld [vmem:[%s1774_s1 + $0x114] ss:$8 sps:$4 sm:$0xff]   ;;  %v1262_v56 = vld [vmem:[%s1776_s3 + $0x50] ss:$8 sps:$4 sm:$0xff]   ;;  %v1263_v58 = vld [vmem:[%s1776_s3 + $0x64] ss:$8 sps:$4 sm:$0xff]  }
  0x12   :  { %748 = vmatprep.subr.bf16.mxu1 %v1251_v40  ;;  %v1200_v59 = vld [vmem:[%s1774_s1 + $0x110] ss:$8 sps:$4 sm:$0xff]   ;;  %v1205_v60 = vld [vmem:[%s1774_s1 + $0x124] ss:$8 sps:$4 sm:$0xff]   ;;  %v1265_v61 = vld [vmem:[%s1776_s3 + $0x60] ss:$8 sps:$4 sm:$0xff]  }
  0x13   :  { %465 = vmatpush1.bf16.msra.mxu0 %v1163_v12  ;;  %v1266_v62 = vld [vmem:[%s1776_s3 + $0x74] ss:$8 sps:$4 sm:$0xff]   ;;  %v1203_v63 = vld [vmem:[%s1774_s1 + $0x120] ss:$8 sps:$4 sm:$0xff]   ;;  %v1268_v1 = vld [vmem:[%s1776_s3 + $0x70] ss:$8 sps:$4 sm:$0xff]  }
  0x14   :  { %466 = vmatprep.subr.bf16.mxu0 %v1164_v13  ;;  %v1208_v0 = vld [vmem:[%s1774_s1 + $0x134] ss:$8 sps:$4 sm:$0xff]   ;;  %v1269_v2 = vld [vmem:[%s1776_s3 + $0x84] ss:$8 sps:$4 sm:$0xff]  }
  0x15   :  { %749 = vmatpush1.bf16.msra.mxu1 %v1253_v42 }
  0x16   :  { %750 = vmatprep.subr.bf16.mxu1 %v1254_v44 }
  0x17   :  { %467 = vmatpush1.bf16.msra.mxu0 %v1166_v16 }
  0x18   :  { %468 = vmatprep.subr.bf16.mxu0 %v1167_v17 }
  0x19   :  { %751 = vmatpush1.bf16.msra.mxu1 %v1256_v46 }
  0x1a   :  { %752 = vmatprep.subr.bf16.mxu1 %v1257_v48 }
  0x1b   :  { %469 = vmatpush1.bf16.msra.mxu0 %v1169_v21 }
  0x1c   :  { %470 = vmatprep.subr.bf16.mxu0 %v1170_v22 }
  0x1d   :  { %753 = vmatpush1.bf16.msra.mxu1 %v1259_v50 }
  0x1e   :  { %754 = vmatprep.subr.bf16.mxu1 %v1260_v52 }
  0x1f   :  { %471 = vmatpush1.bf16.msra.mxu0 %v1172_v24 }
  0x20   :  { %472 = vmatprep.subr.bf16.mxu0 %v1173_v25 }
  0x21   :  { %755 = vmatpush1.bf16.msra.mxu1 %v1262_v56 }
  0x22   :  { %756 = vmatprep.subr.bf16.mxu1 %v1263_v58 }
  0x23   :  { %473 = vmatpush1.bf16.msra.mxu0 %v1175_v26 }
  0x24   :  { %474 = vmatprep.subr.bf16.mxu0 %v1176_v27 }
  0x25   :  { %757 = vmatpush1.bf16.msra.mxu1 %v1265_v61 }
  0x26   :  { %758 = vmatprep.subr.bf16.mxu1 %v1266_v62 }
  0x27   :  { %475 = vmatpush1.bf16.msra.mxu0 %v1178_v28 }
  0x28   :  { %476 = vmatprep.subr.bf16.mxu0 %v1179_v29 }
  0x2b   :  { %477 = vmatpush1.bf16.msra.mxu0 %v1181_v30 }
  0x2c   :  { %478 = vmatprep.subr.bf16.mxu0 %v1182_v31 }
  0x2f   :  { %479 = vmatpush1.bf16.msra.mxu0 %v1184_v32 }
  0x30   :  { %480 = vmatprep.subr.bf16.mxu0 %v1185_v33 }
  0x33   :  { %481 = vmatpush1.bf16.msra.mxu0 %v1187_v37 }
  0x34   :  { %482 = vmatprep.subr.bf16.mxu0 %v1188_v39 }
  0x37   :  { %483 = vmatpush1.bf16.msra.mxu0 %v1190_v41 }
  0x38   :  { %484 = vmatprep.subr.bf16.mxu0 %v1191_v43 }
  0x3b   :  { %485 = vmatpush1.bf16.msra.mxu0 %v1193_v45 }
  0x3c   :  { %486 = vmatprep.subr.bf16.mxu0 %v1194_v47 }
  0x3f   :  { %487 = vmatpush1.bf16.msra.mxu0 %v1196_v49 }
  0x40   :  { %497 = vmatprep.subr.bf16.mxu0 %v1199_v51 }
  0x42   :  { %489 = vmatmul.mubr.bf16.vlgmr.msra.gmra.mrb[0].mxu0 %v1538_v54 }
  0x43   :  { %498 = vmatpush1.bf16.msra.mxu0 %v1197_v53  ;;  %529 = vmatprep.mubr.bf16.mxu0 %v131_v57 }
  0x44   :  { %499 = vmatprep.subr.bf16.mxu0 %v1202_v55 }
  0x47   :  { %500 = vmatpush1.bf16.msra.mxu0 %v1200_v59 }
  0x48   :  { %501 = vmatprep.subr.bf16.mxu0 %v1205_v60 }
  0x49   :  { %14 = vsyncpa [#allocation3], 0  ;;  %v1206_v3 = vld [vmem:[%s1774_s1 + $0x130] ss:$8 sps:$4 sm:$0xff]   ;;  %v1211_v4 = vld [vmem:[%s1774_s1 + $0x144] ss:$8 sps:$4 sm:$0xff]   ;;  %759 = vmatpush1.bf16.msra.mxu1 %v1268_v1  ;;  %v130_v42 = vcombine.high %v1538_v54, %v1538_v54 }
  0x4a   :  { %v1271_v5 = vld [vmem:[%s1776_s3 + $0x80] ss:$8 sps:$4 sm:$0xff]   ;;  %760 = vmatprep.subr.bf16.mxu1 %v1269_v2  ;;  %v1272_v6 = vld [vmem:[%s1776_s3 + $0x94] ss:$8 sps:$4 sm:$0xff]   ;;  %v1274_v10 = vld [vmem:[%s1776_s3 + $0x90] ss:$8 sps:$4 sm:$0xff]  }
  0x4b   :  { %502 = vmatpush1.bf16.msra.mxu0 %v1203_v63  ;;  %v1209_v7 = vld [vmem:[%s1774_s1 + $0x140] ss:$8 sps:$4 sm:$0xff]   ;;  %v1214_v8 = vld [vmem:[%s1774_s1 + $0x154] ss:$8 sps:$4 sm:$0xff]   ;;  %v1275_v11 = vld [vmem:[%s1776_s3 + $0xa4] ss:$8 sps:$4 sm:$0xff]  }
  0x4c   :  { %503 = vmatprep.subr.bf16.mxu0 %v1208_v0  ;;  %v1212_v12 = vld [vmem:[%s1774_s1 + $0x150] ss:$8 sps:$4 sm:$0xff]   ;;  %v1217_v13 = vld [vmem:[%s1774_s1 + $0x164] ss:$8 sps:$4 sm:$0xff]   ;;  %v1277_v15 = vld [vmem:[%s1776_s3 + $0xa0] ss:$8 sps:$4 sm:$0xff]  }
  0x4d   :  { %761 = vmatpush1.bf16.msra.mxu1 %v1271_v5  ;;  %v1278_v16 = vld [vmem:[%s1776_s3 + $0xb4] ss:$8 sps:$4 sm:$0xff]   ;;  %v1215_v17 = vld [vmem:[%s1774_s1 + $0x160] ss:$8 sps:$4 sm:$0xff]   ;;  %v1280_v19 = vld [vmem:[%s1776_s3 + $0xb0] ss:$8 sps:$4 sm:$0xff]  }
  0x4e   :  { %762 = vmatprep.subr.bf16.mxu1 %v1272_v6  ;;  %v1220_v18 = vld [vmem:[%s1774_s1 + $0x174] ss:$8 sps:$4 sm:$0xff]   ;;  %v1281_v20 = vld [vmem:[%s1776_s3 + $0xc4] ss:$8 sps:$4 sm:$0xff]   ;;  %v1218_v21 = vld [vmem:[%s1774_s1 + $0x170] ss:$8 sps:$4 sm:$0xff]  }
  0x4f   :  { %504 = vmatpush1.bf16.msra.mxu0 %v1206_v3  ;;  %v1223_v22 = vld [vmem:[%s1774_s1 + $0x184] ss:$8 sps:$4 sm:$0xff]   ;;  %v1283_v23 = vld [vmem:[%s1776_s3 + $0xc0] ss:$8 sps:$4 sm:$0xff]   ;;  %v1284_v24 = vld [vmem:[%s1776_s3 + $0xd4] ss:$8 sps:$4 sm:$0xff]  }
  0x50   :  { %505 = vmatprep.subr.bf16.mxu0 %v1211_v4  ;;  %v1221_v25 = vld [vmem:[%s1774_s1 + $0x180] ss:$8 sps:$4 sm:$0xff]   ;;  %v1226_v26 = vld [vmem:[%s1774_s1 + $0x194] ss:$8 sps:$4 sm:$0xff]   ;;  %v1286_v27 = vld [vmem:[%s1776_s3 + $0xd0] ss:$8 sps:$4 sm:$0xff]  }
  0x51   :  { %763 = vmatpush1.bf16.msra.mxu1 %v1274_v10  ;;  %v1287_v28 = vld [vmem:[%s1776_s3 + $0xe4] ss:$8 sps:$4 sm:$0xff]   ;;  %v1224_v29 = vld [vmem:[%s1774_s1 + $0x190] ss:$8 sps:$4 sm:$0xff]   ;;  %v1227_v31 = vld [vmem:[%s1774_s1 + $0x1a0] ss:$8 sps:$4 sm:$0xff]  }
  0x52   :  { %764 = vmatprep.subr.bf16.mxu1 %v1275_v11  ;;  %v1229_v30 = vld [vmem:[%s1774_s1 + $0x1a4] ss:$8 sps:$4 sm:$0xff]   ;;  %v1232_v32 = vld [vmem:[%s1774_s1 + $0x1b4] ss:$8 sps:$4 sm:$0xff]   ;;  %v1230_v33 = vld [vmem:[%s1774_s1 + $0x1b0] ss:$8 sps:$4 sm:$0xff]  }
  0x53   :  { %506 = vmatpush1.bf16.msra.mxu0 %v1209_v7  ;;  %v1235_v34 = vld [vmem:[%s1774_s1 + $0x1c4] ss:$8 sps:$4 sm:$0xff]   ;;  %v1233_v35 = vld [vmem:[%s1774_s1 + $0x1c0] ss:$8 sps:$4 sm:$0xff]   ;;  %v1238_v36 = vld [vmem:[%s1774_s1 + $0x1d4] ss:$8 sps:$4 sm:$0xff]  }
  0x54   :  { %507 = vmatprep.subr.bf16.mxu0 %v1214_v8  ;;  %v1236_v37 = vld [vmem:[%s1774_s1 + $0x1d0] ss:$8 sps:$4 sm:$0xff]   ;;  %v1241_v38 = vld [vmem:[%s1774_s1 + $0x1e4] ss:$8 sps:$4 sm:$0xff]   ;;  %v1239_v39 = vld [vmem:[%s1774_s1 + $0x1e0] ss:$8 sps:$4 sm:$0xff]  }
  0x55   :  { %765 = vmatpush1.bf16.msra.mxu1 %v1277_v15  ;;  %v1244_v40 = vld [vmem:[%s1774_s1 + $0x1f4] ss:$8 sps:$4 sm:$0xff]   ;;  %v1242_v41 = vld [vmem:[%s1774_s1 + $0x1f0] ss:$8 sps:$4 sm:$0xff]   ;;  %v1289_v43 = vld [vmem:[%s1776_s3 + $0xe0] ss:$8 sps:$4 sm:$0xff]  }
  0x56   :  { %766 = vmatprep.subr.bf16.mxu1 %v1278_v16  ;;  %v1290_v44 = vld [vmem:[%s1776_s3 + $0xf4] ss:$8 sps:$4 sm:$0xff]   ;;  %v1292_v45 = vld [vmem:[%s1776_s3 + $0xf0] ss:$8 sps:$4 sm:$0xff]   ;;  %v1293_v46 = vld [vmem:[%s1778_s5 + $0x40] sm:$0xff]   ;;  %v99_v47 = vsub.s32 0, %v1418_v14 }
  0x57   :  { %508 = vmatpush1.bf16.msra.mxu0 %v1212_v12  ;;  %v95_v48 = vld [vmem:[%s1775_s2] sm:$0x3]  ;;  %v103_v49 = vsub.s32 1, %v1418_v14  ;;  %v1295_v61 = vld [vmem:[%s1778_s5 + $0x48] sm:$0xff]   ;;  %v1297_v62 = vld [vmem:[%s1778_s5 + $0x50] sm:$0xff]  }
  0x58   :  { %509 = vmatprep.subr.bf16.mxu0 %v1217_v13  ;;  %v100_v50 = vrot.slane %v95_v48, %v99_v47  ;;  %v1294_v59 = vld [vmem:[%s1778_s5] sm:$0xff]   ;;  %v1296_v14 = vld [vmem:[%s1778_s5 + $0x8] sm:$0xff]   ;;  %v1298_v63 = vld [vmem:[%s1778_s5 + $0x10] sm:$0xff]  }
  0x59   :  { %767 = vmatpush1.bf16.msra.mxu1 %v1280_v19  ;;  %v104_v51 = vrot.slane %v95_v48, %v103_v49  ;;  %v1299_v0 = vld [vmem:[%s1778_s5 + $0x58] sm:$0xff]   ;;  %v1301_v2 = vld [vmem:[%s1778_s5 + $0x60] sm:$0xff]   ;;  %v1303_v4 = vld [vmem:[%s1778_s5 + $0x68] sm:$0xff]  }
  0x5a   :  { %768 = vmatprep.subr.bf16.mxu1 %v1281_v20  ;;  %v1300_v1 = vld [vmem:[%s1778_s5 + $0x18] sm:$0xff]   ;;  %v1302_v3 = vld [vmem:[%s1778_s5 + $0x20] sm:$0xff]   ;;  %v1304_v5 = vld [vmem:[%s1778_s5 + $0x28] sm:$0xff]  }
  0x5b   :  { %510 = vmatpush1.bf16.msra.mxu0 %v1215_v17  ;;  %v1305_v6 = vld [vmem:[%s1778_s5 + $0x70] sm:$0xff]   ;;  %v1307_v8 = vld [vmem:[%s1778_s5 + $0x78] sm:$0xff]   ;;  %v572_v11 = vld [vmem:[%s1777_s4] sm:$0x3] }
  0x5c   :  { %511 = vmatprep.subr.bf16.mxu0 %v1220_v18  ;;  %v1306_v7 = vld [vmem:[%s1778_s5 + $0x30] sm:$0xff]   ;;  %v1308_v10 = vld [vmem:[%s1778_s5 + $0x38] sm:$0xff]   ;;  %v577_v12 = vrot.slane %v572_v11, %v99_v47  ;;  %v581_v13 = vrot.slane %v572_v11, %v103_v49  ;;  %s1338_s5 = smov [#allocation2]  }
  0x5d   :  { %769 = vmatpush1.bf16.msra.mxu1 %v1283_v23  ;;  %s993_s22 = sshll.u32 %s1338_s5, 4  ;;  %s994_s22 = int_to_ptr.vmem [resolvable:$true] %s993_s22 }
  0x5e   :  { %770 = vmatprep.subr.bf16.mxu1 %v1284_v24  ;;  %s1313_s23 = scalar_lea.vmem %s994_s22, 64  ;;  %p1318_p1 = scmp.lt.s32.totalorder %s994_s22, %s994_s22 }
  0x5f   :  { %512 = vmatpush1.bf16.msra.mxu0 %v1218_v21  ;;  %p1314_p0 = scmp.ne.s32.totalorder %s994_s22, %s1313_s23  ;;  %p1319_p2 = scmp.lt.s32.totalorder %s1313_s23, %s1313_s23 }
  0x60   :  { %513 = vmatprep.subr.bf16.mxu0 %v1223_v22 }
  0x61   :  { %771 = vmatpush1.bf16.msra.mxu1 %v1286_v27  ;;  %p1320_p3 = por %p1319_p2, %p1318_p1 }
  0x62   :  { %772 = vmatprep.subr.bf16.mxu1 %v1287_v28 }
  0x63   :  { %514 = vmatpush1.bf16.msra.mxu0 %v1221_v25  ;;  %p1321_p4 = pnand %p1320_p3, %p1314_p0 }
  0x64   :  { %515 = vmatprep.subr.bf16.mxu0 %v1226_v26 }
  0x65   :  { %773 = vmatpush1.bf16.msra.mxu1 %v1289_v43 }
  0x66   :  { %774 = vmatprep.subr.bf16.mxu1 %v1290_v44 }
  0x67   :  { %516 = vmatpush1.bf16.msra.mxu0 %v1224_v29 }
  0x68   :  { %517 = vmatprep.subr.bf16.mxu0 %v1229_v30 }
  0x69   :  { %775 = vmatpush1.bf16.msra.mxu1 %v1292_v45 }
  0x6a   :  { %1119 = vmatprep.subr.bf16.mxu1 %v1293_v46 }
  0x6b   :  { %518 = vmatpush1.bf16.msra.mxu0 %v1227_v31 }
  0x6c   :  { %519 = vmatprep.subr.bf16.mxu0 %v1232_v32 }
  0x6f   :  { %520 = vmatpush1.bf16.msra.mxu0 %v1230_v33 }
  0x70   :  { %521 = vmatprep.subr.bf16.mxu0 %v1235_v34 }
  0x73   :  { %522 = vmatpush1.bf16.msra.mxu0 %v1233_v35 }
  0x74   :  { %523 = vmatprep.subr.bf16.mxu0 %v1238_v36 }
  0x77   :  { %524 = vmatpush1.bf16.msra.mxu0 %v1236_v37 }
  0x78   :  { %525 = vmatprep.subr.bf16.mxu0 %v1241_v38 }
  0x7b   :  { %526 = vmatpush1.bf16.msra.mxu0 %v1239_v39 }
  0x7c   :  { %527 = vmatprep.subr.bf16.mxu0 %v1244_v40 }
  0x7f   :  { %528 = vmatpush1.bf16.msra.mxu0 %v1242_v41 }
  0x82   :  { %530 = vmatmul.mubr.bf16.vlgmr.msra.gmra.mrb[0].mxu0 %v130_v42 }
 0x155   :  { %v531_v52 = vpop.f32.mrb[0].mxu0 }
 0x156   :  { %v1141_v53 = vadd.f32 %v531_v52, %v100_v50  ;;  %v533_v54 = vpop.f32.mrb[1].mxu0 }
 0x157   :  { %v535_v55 = vpop.f32.mrb[2].mxu0  ;;  %v1142_v56 = vadd.f32 %v533_v54, %v104_v51 }
 0x158   :  { %v536_v57 = vpop.f32.mrb[3].mxu0  ;;  %v538_v60 = vpack.c.bf16 %v1141_v53, %v1141_v53 }
 0x159   :  { %v539_v58 = vpack.c.bf16 %v1142_v56, %v1142_v56 }
 0x15b   :  { %776 = vmatprep.mubr.bf16.mxu1 %v539_v58 }
 0x15c   :  { %777 = vmatmul.mubr.bf16.vlgmr.msra.gmra.mrb[0].mxu1 %v538_v60 }
 0x15d   :  { %1120 = vmatpush3.bf16.msra.mxu1 %v1294_v59 }
 0x15e   :  { %1121 = vmatprep.subr.bf16.mxu1 %v1295_v61 }
 0x161   :  { %1122 = vmatpush3.bf16.msra.mxu1 %v1296_v14 }
 0x162   :  { %1123 = vmatprep.subr.bf16.mxu1 %v1297_v62 }
 0x165   :  { %1124 = vmatpush3.bf16.msra.mxu1 %v1298_v63 }
 0x166   :  { %1125 = vmatprep.subr.bf16.mxu1 %v1299_v0 }
 0x169   :  { %1126 = vmatpush3.bf16.msra.mxu1 %v1300_v1 }
 0x16a   :  { %1127 = vmatprep.subr.bf16.mxu1 %v1301_v2 }
 0x16d   :  { %1128 = vmatpush3.bf16.msra.mxu1 %v1302_v3 }
 0x16e   :  { %1129 = vmatprep.subr.bf16.mxu1 %v1303_v4 }
 0x171   :  { %1130 = vmatpush3.bf16.msra.mxu1 %v1304_v5 }
 0x172   :  { %1131 = vmatprep.subr.bf16.mxu1 %v1305_v6 }
 0x175   :  { %1132 = vmatpush3.bf16.msra.mxu1 %v1306_v7 }
 0x176   :  { %1133 = vmatprep.subr.bf16.mxu1 %v1307_v8 }
 0x179   :  { %1134 = vmatpush3.bf16.msra.mxu1 %v1308_v10 }
 0x22f   :  { %v778_v15 = vpop.f32.mrb[0].mxu1 }
 0x230   :  { %v779_v16 = vadd.f32 %v778_v15, %v577_v12  ;;  %v780_v17 = vpop.f32.mrb[1].mxu1 }
 0x231   :  { %v781_v18 = vadd.f32 %v780_v17, %v581_v13  ;;  %v782_v19 = vpop.f32.mrb[2].mxu1 }
 0x232   :  { %v783_v20 = vpop.f32.mrb[3].mxu1  ;;  %v785_v23 = vpack.c.bf16 %v779_v16, %v779_v16 }
 0x233   :  { %v786_v21 = vpack.c.bf16 %v781_v18, %v781_v18  ;;  %v975_v22 = vcombine.low %v779_v16, %v781_v18 }
 0x235   :  { %954 = vmatprep.mubr.bf16.mxu1 %v786_v21  ;;  %1118 = vst.sshfl [vmem:[#allocation2] sm:$0x33 pattern:$0x76325410] %v975_v22 }
 0x236   :  { %955 = vmatmul.mubr.bf16.vlgmr.msra.gmra.mrb[4].mxu1 %v785_v23 }
 0x237   :  { %1324 = shalt.err (!%p1321_p4)
}
 0x238   :  { %s1325_s25 = scalar_lea.hbm %s1781_s8, 64 }
 0x239   :  { %p1326_p5 = scmp.ne.s32.totalorder %s1781_s8, %s1325_s25  ;;  %p1329_p6 = scmp.lt.u32.totalorder %s1325_s25, %s1781_s8 }
 0x23b   :  { %p1331_p7 = pnand %p1329_p6, %p1326_p5 }
 0x23d   :  { %1334 = shalt.err (!%p1331_p7)
}
 0x23e   :  { %996 = dma.vmem_to_hbm [thread:$0]  %s994_s22, 64, %s1781_s8, [#allocation3]   ;;  %v1100_v25 = vld [vmem:[%s1779_s6] ss:$0 sm:$0xff]  ;;  %v963_v34 = vand.u32 127, %v97_v9 }
 0x240   :  { %vm964_vm0 = vcmp.eq.s32.totalorder %v963_v34, 0 }
 0x309   :  { %v1135_v24 = vpop.f32.mrb[4].mxu1 }
 0x30a   :  { %v1136_v26 = vpop.f32.mrb[5].mxu1 }
 0x30b   :  { %v1137_v27 = vadd.f32 %v1136_v26, %v1135_v24  ;;  %v1138_v28 = vpop.f32.mrb[6].mxu1 }
 0x30c   :  { %v1139_v29 = vpop.f32.mrb[7].mxu1 }
 0x30d   :  { %v957_v30 = vadd.f32 %v1137_v27, %v1100_v25 }
 0x30f   :  { %v1117_v31 = vmul.f32 -1.442695, %v957_v30 }
 0x311   :  { %1309 = vpow2.f32 %v1117_v31 }
 0x31b   :  { %v1310_v32 = vpop.eup %1309 }
 0x31c   :  { %v968_v33 = vadd.f32 1.0, %v1310_v32 }
 0x31e   :  { %1311 = vrcp.f32 %v968_v33 }
 0x328   :  { %v1312_v35 = vpop.eup %1311 }
 0x329   :  { %v971_v36 = vsel %vm964_vm0, %v1312_v35, %v957_v30 }
 0x32a   :  { %972 = vst [vmem:[%s1780_s7] sm:$0x3] %v971_v36 }
 0x32b   :  { %1335 = dma.done.wait [#allocation3], 64  }
 0x32c   :  { %1336 = vsyncadd [#allocation3], 4294967232 }
 0x32d   :  { %1002 = vsyncpa [#allocation3], 1 }

</bundles_post_ra>
